<compile_context>
chip_gen: v7x
topology: tpu7x:2x2x1
jax: 0.10.0
libtpu: 0.0.40
codegen_flags: <defaults>
</compile_context>

<pallas_src>
import functools

import jax
import jax.numpy as jnp
from jax.experimental import pallas as pl
from jax.experimental.pallas import tpu as pltpu

HIDDEN = 32          # nn.GRU(hidden_size=32)
NUM_LAYERS = 4       # num_layers=4


# ----------------------------------------------------------------------------
# Fused kernel: all GRU layers (both directions) + MLP head.
# PyTorch GRU gate math (gate order r, z, n):
#   r = sigmoid(x W_ir + b_ir + h W_hr + b_hr)
#   z = sigmoid(x W_iz + b_iz + h W_hz + b_hz)
#   n = tanh   (x W_in + b_in + r * (h W_hn + b_hn))
#   h' = (1 - z) * n + z * h           ==  n + z * (h - n)
# b_hr/b_hz are pre-folded into the input-side bias; b_hn is kept separate.
# ----------------------------------------------------------------------------
def sgru_fused_kernel(x_ref, wih_ref, bih_ref, whh_ref, bhn_ref,
                      w1_ref, b1_ref, w2_ref, b2_ref, w3_ref, b3_ref,
                      o_ref, hid_ref, gi_ref,
                      *, seq_len, batch_pad, out_len):
    T, Bp, H = seq_len, batch_pad, HIDDEN
    f32 = jnp.float32

    for layer in range(NUM_LAYERS):
        # ---- Hoisted input projection: ONE bulk matmul per layer over all T*Bp rows
        #      and both directions.  Column order: [fwd r z n | bwd r z n].
        if layer == 0:
            gi_ref[...] = (jnp.dot(x_ref[...], wih_ref[layer],
                                   preferred_element_type=f32)
                           + bih_ref[layer])
        else:
            w_in = wih_ref[layer]                                 # [d_pad, 6H]
            if w_in.shape[0] != 2 * H:                            # trim feature padding
                w_in = w_in[0:2 * H, :]
            gi_ref[...] = (jnp.dot(hid_ref[...], w_in,
                                   preferred_element_type=f32)
                           + bih_ref[layer])

        # Per-direction recurrent weights / n-gate recurrent bias, loaded once per layer.
        w_hh = [whh_ref[layer * 2 + d] for d in range(2)]         # each [H, 3H]
        bhn_all = bhn_ref[layer]                                  # [1, 2H]
        b_hn = [bhn_all[:, 0:H], bhn_all[:, H:2 * H]]

        # ---- Recurrence: fwd and bwd interleaved in one unrolled time loop so the two
        #      independent per-direction chains (matmul / EUP) can be co-scheduled.
        h_dir = [jnp.zeros((Bp, H), f32), jnp.zeros((Bp, H), f32)]
        for i in range(T):
            for d in range(2):
                t = i if d == 0 else T - 1 - i
                r0, r1 = t * Bp, (t + 1) * Bp
                gi = gi_ref[r0:r1, 3 * H * d: 3 * H * (d + 1)]    # [Bp, 3H]
                if i == 0:
                    # h0 == 0 -> recurrent matmul reduces to zero; skip it.
                    rz = jax.nn.sigmoid(gi[:, 0:2 * H])           # r | z in one EUP op
                    r = rz[:, 0:H]
                    z = rz[:, H:2 * H]
                    n = jnp.tanh(gi[:, 2 * H:3 * H] + r * b_hn[d])
                    h_new = n - z * n
                else:
                    h = h_dir[d]
                    gh = jnp.dot(h, w_hh[d], preferred_element_type=f32)   # [Bp, 3H]
                    rz = jax.nn.sigmoid(gi[:, 0:2 * H] + gh[:, 0:2 * H])
                    r = rz[:, 0:H]
                    z = rz[:, H:2 * H]
                    n = jnp.tanh(gi[:, 2 * H:3 * H]
                                 + r * (gh[:, 2 * H:3 * H] + b_hn[d]))
                    h_new = n + z * (h - n)
                hid_ref[r0:r1, d * H:(d + 1) * H] = h_new
                h_dir[d] = h_new

    # ---- MLP head on the last out_len timesteps (single dot on the packed slab).
    hc = hid_ref[(T - out_len) * Bp:, :]                          # [out_len*Bp, 2H]
    h1 = jnp.maximum(jnp.dot(hc, w1_ref[...], preferred_element_type=f32)
                     + b1_ref[...], 0.0)
    h2 = jnp.maximum(jnp.dot(h1, w2_ref[...], preferred_element_type=f32)
                     + b2_ref[...], 0.0)
    o_ref[...] = jnp.dot(h2, w3_ref[...], preferred_element_type=f32) + b3_ref[...]


# ----------------------------------------------------------------------------
# Parameter construction (deterministic, mimics PyTorch shapes; weights stored
# pre-transposed as [in, out] with gate column order [r | z | n]).
# ----------------------------------------------------------------------------
def init_params(key, n_features, n_outputs):
    H = HIDDEN
    k = 1.0 / jnp.sqrt(jnp.float32(H))

    def uni(key, shape):
        return jax.random.uniform(key, shape, jnp.float32, minval=-k, maxval=k)

    params = {"gru": [], "dense": {}}
    for layer in range(NUM_LAYERS):
        din = n_features if layer == 0 else 2 * H
        dirs = {}
        for d in ("fwd", "bwd"):
            key, k1, k2, k3, k4 = jax.random.split(key, 5)
            dirs[d] = dict(
                wih=uni(k1, (din, 3 * H)),
                whh=uni(k2, (H, 3 * H)),
                bih=uni(k3, (1, 3 * H)),
                bhh=uni(k4, (1, 3 * H)),
            )
        params["gru"].append(dirs)

    key, k1, k2, k3, k4, k5, k6 = jax.random.split(key, 7)
    params["dense"] = dict(
        w1=uni(k1, (2 * H, 32)), b1=uni(k2, (1, 32)),
        w2=uni(k3, (32, 16)),    b2=uni(k4, (1, 16)),
        w3=uni(k5, (16, n_outputs)), b3=uni(k6, (1, n_outputs)),
    )
    return params


# ----------------------------------------------------------------------------
# Pack per-layer parameters into the fused-kernel layout.
#   wih : [L, d_pad, 6H]   columns [f_r f_z f_n | b_r b_z b_n], rows zero-padded
#   bih : [L, 1, 6H]       with b_hr/b_hz folded in (n keeps only b_in)
#   whh : [L*2, H, 3H]     index layer*2 + dir, columns [r z n]
#   bhn : [L, 1, 2H]       [b_hn_fwd | b_hn_bwd]
# ----------------------------------------------------------------------------
def pack_params(params, n_features):
    H, L = HIDDEN, NUM_LAYERS
    d_pad = max(n_features, 2 * H)
    wih_l, bih_l, whh_l, bhn_l = [], [], [], []
    for layer in range(L):
        din = n_features if layer == 0 else 2 * H
        w_cols, b_cols, bhn_cols = [], [], []
        for dname in ("fwd", "bwd"):
            p = params["gru"][layer][dname]
            w = p["wih"]                                          # [din, 3H]
            if din < d_pad:
                w = jnp.pad(w, ((0, d_pad - din), (0, 0)))
            w_cols.append(w)
            bih = p["bih"][0]                                     # [3H]
            bhh = p["bhh"][0]                                     # [3H]
            # fold b_hr, b_hz into the input-side bias; keep b_hn separate
            b_cols.append(jnp.concatenate([bih[:2 * H] + bhh[:2 * H], bih[2 * H:]]))
            bhn_cols.append(bhh[2 * H:])                          # [H]
            whh_l.append(p["whh"])                                # [H, 3H]
        wih_l.append(jnp.concatenate(w_cols, axis=1))             # [d_pad, 6H]
        bih_l.append(jnp.concatenate(b_cols)[None, :])            # [1, 6H]
        bhn_l.append(jnp.concatenate(bhn_cols)[None, :])          # [1, 2H]
    wih = jnp.stack(wih_l)                                        # [L, d_pad, 6H]
    bih = jnp.stack(bih_l)                                        # [L, 1, 6H]
    whh = jnp.stack(whh_l)                                        # [L*2, H, 3H]
    bhn = jnp.stack(bhn_l)                                        # [L, 1, 2H]
    return wih, bih, whh, bhn


# ----------------------------------------------------------------------------
# Full forward pass (Pallas path).
# ----------------------------------------------------------------------------
@functools.partial(jax.jit, static_argnames=("out_len",))
def sgru_forward(x_btf, params, *, out_len):
    B, T, F = x_btf.shape
    H = HIDDEN
    Bp = ((B + 7) // 8) * 8                # pad batch to a full sublane group
    d_pad = max(F, 2 * H)
    n_out = params["dense"]["w3"].shape[1]

    # Time-major, batch- and feature-padded, flattened to a lane-friendly 2-D slab.
    x = jnp.transpose(x_btf, (1, 0, 2))                           # [T, B, F]
    x = jnp.pad(x, ((0, 0), (0, Bp - B), (0, d_pad - F)))         # [T, Bp, d_pad]
    x2d = x.reshape(T * Bp, d_pad)

    wih, bih, whh, bhn = pack_params(params, F)
    d = params["dense"]

    kernel = functools.partial(sgru_fused_kernel,
                               seq_len=T, batch_pad=Bp, out_len=out_len)
    y = pl.pallas_call(
        kernel,
        out_shape=jax.ShapeDtypeStruct((out_len * Bp, n_out), jnp.float32),
        scratch_shapes=[pltpu.VMEM((T * Bp, 2 * H), jnp.float32),   # packed hidden slab [f|b]
                        pltpu.VMEM((T * Bp, 6 * H), jnp.float32)],  # per-layer gi slab
        compiler_params=pltpu.CompilerParams(vmem_limit_bytes=32 * 1024 * 1024),
    )(x2d, wih, bih, whh, bhn,
      d["w1"], d["b1"], d["w2"], d["b2"], d["w3"], d["b3"])

    y = y.reshape(out_len, Bp, n_out)[:, :B]                      # drop batch padding
    return jnp.transpose(y, (1, 0, 2))                            # [B, out_len, n_out]


# ----------------------------------------------------------------------------
# Pure-JAX reference for correctness checking.
# ----------------------------------------------------------------------------
def _gru_dir_ref(x_tbd, wih, whh, bih, bhh, reverse):
    H = HIDDEN
    xs = x_tbd[::-1] if reverse else x_tbd

    def step(h, x_t):
        gi = x_t @ wih + bih[0]
        gh = h @ whh + bhh[0]
        r = jax.nn.sigmoid(gi[:, :H] + gh[:, :H])
        z = jax.nn.sigmoid(gi[:, H:2 * H] + gh[:, H:2 * H])
        n = jnp.tanh(gi[:, 2 * H:] + r * gh[:, 2 * H:])
        h_new = (1.0 - z) * n + z * h
        return h_new, h_new

    h0 = jnp.zeros((x_tbd.shape[1], H), jnp.float32)
    _, ys = jax.lax.scan(step, h0, xs)
    return ys[::-1] if reverse else ys


def sgru_forward_ref(x_btf, params, out_len):
    h = jnp.transpose(x_btf, (1, 0, 2))
    for layer in range(NUM_LAYERS):
        pf = params["gru"][layer]["fwd"]
        pb = params["gru"][layer]["bwd"]
        out_f = _gru_dir_ref(h, pf["wih"], pf["whh"], pf["bih"], pf["bhh"], False)
        out_b = _gru_dir_ref(h, pb["wih"], pb["whh"], pb["bih"], pb["bhh"], True)
        h = jnp.concatenate([out_f, out_b], axis=-1)
    d = params["dense"]
    y = jnp.maximum(h @ d["w1"] + d["b1"][0], 0.0)
    y = jnp.maximum(y @ d["w2"] + d["b2"][0], 0.0)
    y = y @ d["w3"] + d["b3"][0]
    y = jnp.transpose(y, (1, 0, 2))
    return y[:, -out_len:, :]


if __name__ == "__main__":
    B, T, N_FEATURES, N_OUTPUTS, OUT_LEN = 2, 8, 4, 3, 4

    key = jax.random.PRNGKey(0)
    kx, kp = jax.random.split(key)
    x = jax.random.normal(kx, (B, T, N_FEATURES), jnp.float32)
    params = init_params(kp, N_FEATURES, N_OUTPUTS)

    out = sgru_forward(x, params, out_len=OUT_LEN)
    out = jax.block_until_ready(out)

    ref = sgru_forward_ref(x, params, OUT_LEN)
    assert out.shape == (B, OUT_LEN, N_OUTPUTS), out.shape
    assert jnp.allclose(out, ref, rtol=2e-4, atol=2e-4), "mismatch vs pure-JAX reference"

    print("KERNEL_OK")
</pallas_src>

<mosaic_0001>
module attributes {stable_mosaic.version = 11 : i64} {
  func.func @sgru_fused_kernel(%arg0: memref<64x64xf32, #tpu.memory_space<vmem>>, %arg1: memref<4x64x192xf32, #tpu.memory_space<vmem>>, %arg2: memref<4x1x192xf32, #tpu.memory_space<vmem>>, %arg3: memref<8x32x96xf32, #tpu.memory_space<vmem>>, %arg4: memref<4x1x64xf32, #tpu.memory_space<vmem>>, %arg5: memref<64x32xf32, #tpu.memory_space<vmem>>, %arg6: memref<1x32xf32, #tpu.memory_space<vmem>>, %arg7: memref<32x16xf32, #tpu.memory_space<vmem>>, %arg8: memref<1x16xf32, #tpu.memory_space<vmem>>, %arg9: memref<16x3xf32, #tpu.memory_space<vmem>>, %arg10: memref<1x3xf32, #tpu.memory_space<vmem>>, %arg11: memref<32x3xf32, #tpu.memory_space<vmem>>, %arg12: memref<64x64xf32, #tpu.memory_space<vmem>>, %arg13: memref<64x192xf32, #tpu.memory_space<vmem>>) attributes {dimension_semantics = [], scalar_prefetch = 0 : i64, scratch_operands = 2 : i64, tpu.core_type = #tpu.core_type<tc>} {
    %c0 = arith.constant 0 : index
    %c0_0 = arith.constant 0 : index
    %0 = vector.load %arg0[%c0, %c0_0] : memref<64x64xf32, #tpu.memory_space<vmem>>, vector<64x64xf32>
    %c0_1 = arith.constant 0 : index
    %c0_2 = arith.constant 0 : index
    %c0_3 = arith.constant 0 : index
    %1 = vector.load %arg1[%c0_1, %c0_2, %c0_3] : memref<4x64x192xf32, #tpu.memory_space<vmem>>, vector<1x64x192xf32>
    %2 = vector.shape_cast %1 : vector<1x64x192xf32> to vector<64x192xf32>
    %cst = arith.constant dense<0.000000e+00> : vector<64x192xf32>
    %3 = tpu.matmul %0, %2, %cst {dimension_numbers = #tpu.dot_dimension_numbers<[1], [0], [0], [1], [0, 0, 1, 1], [], []>} : vector<64x64xf32>, vector<64x192xf32>, vector<64x192xf32> -> vector<64x192xf32>
    %c0_4 = arith.constant 0 : index
    %c0_5 = arith.constant 0 : index
    %c0_6 = arith.constant 0 : index
    %4 = vector.load %arg2[%c0_4, %c0_5, %c0_6] : memref<4x1x192xf32, #tpu.memory_space<vmem>>, vector<1x1x192xf32>
    %5 = vector.shape_cast %4 : vector<1x1x192xf32> to vector<1x192xf32>
    %6 = vector.broadcast %5 : vector<1x192xf32> to vector<64x192xf32>
    %7 = arith.addf %3, %6 : vector<64x192xf32>
    %c0_7 = arith.constant 0 : index
    %c0_8 = arith.constant 0 : index
    %8 = vector.load %arg13[%c0_7, %c0_8] : memref<64x192xf32, #tpu.memory_space<vmem>>, vector<64x192xf32>
    tpu.vector_store %arg13[%c0_7, %c0_8], %7 {strides = array<i32>} : memref<64x192xf32, #tpu.memory_space<vmem>>, vector<64x192xf32>,
    %c0_9 = arith.constant 0 : index
    %c0_10 = arith.constant 0 : index
    %c0_11 = arith.constant 0 : index
    %9 = vector.load %arg3[%c0_9, %c0_10, %c0_11] : memref<8x32x96xf32, #tpu.memory_space<vmem>>, vector<1x32x96xf32>
    %10 = vector.shape_cast %9 : vector<1x32x96xf32> to vector<32x96xf32>
    %c1 = arith.constant 1 : index
    %c0_12 = arith.constant 0 : index
    %c0_13 = arith.constant 0 : index
    %11 = vector.load %arg3[%c1, %c0_12, %c0_13] : memref<8x32x96xf32, #tpu.memory_space<vmem>>, vector<1x32x96xf32>
    %12 = vector.shape_cast %11 : vector<1x32x96xf32> to vector<32x96xf32>
    %c0_14 = arith.constant 0 : index
    %c0_15 = arith.constant 0 : index
    %c0_16 = arith.constant 0 : index
    %13 = vector.load %arg4[%c0_14, %c0_15, %c0_16] : memref<4x1x64xf32, #tpu.memory_space<vmem>>, vector<1x1x64xf32>
    %14 = vector.shape_cast %13 : vector<1x1x64xf32> to vector<1x64xf32>
    %15 = vector.extract_strided_slice %14 {offsets = [0, 0], sizes = [1, 32], strides = [1, 1]} : vector<1x64xf32> to vector<1x32xf32>
    %16 = vector.extract_strided_slice %14 {offsets = [0, 32], sizes = [1, 32], strides = [1, 1]} : vector<1x64xf32> to vector<1x32xf32>
    %c0_17 = arith.constant 0 : index
    %c0_18 = arith.constant 0 : index
    %17 = vector.load %arg13[%c0_17, %c0_18] : memref<64x192xf32, #tpu.memory_space<vmem>>, vector<8x96xf32>
    %18 = vector.extract_strided_slice %17 {offsets = [0, 0], sizes = [8, 64], strides = [1, 1]} : vector<8x96xf32> to vector<8x64xf32>
    %19 = arith.negf %18 : vector<8x64xf32>
    %20 = math.exp %19 : vector<8x64xf32>
    %cst_19 = arith.constant 1.000000e+00 : f32
    %21 = vector.broadcast %cst_19 : f32 to vector<8x64xf32>
    %22 = arith.addf %21, %20 : vector<8x64xf32>
    %23 = arith.divf %21, %22 : vector<8x64xf32>
    %24 = vector.extract_strided_slice %23 {offsets = [0, 0], sizes = [8, 32], strides = [1, 1]} : vector<8x64xf32> to vector<8x32xf32>
    %25 = vector.extract_strided_slice %23 {offsets = [0, 32], sizes = [8, 32], strides = [1, 1]} : vector<8x64xf32> to vector<8x32xf32>
    %26 = vector.extract_strided_slice %17 {offsets = [0, 64], sizes = [8, 32], strides = [1, 1]} : vector<8x96xf32> to vector<8x32xf32>
    %27 = vector.broadcast %15 : vector<1x32xf32> to vector<8x32xf32>
    %28 = arith.mulf %24, %27 : vector<8x32xf32>
    %29 = arith.addf %26, %28 : vector<8x32xf32>
    %30 = math.tanh %29 : vector<8x32xf32>
    %31 = arith.mulf %25, %30 : vector<8x32xf32>
    %32 = arith.subf %30, %31 : vector<8x32xf32>
    %c0_20 = arith.constant 0 : index
    %c0_21 = arith.constant 0 : index
    %33 = vector.load %arg12[%c0_20, %c0_21] : memref<64x64xf32, #tpu.memory_space<vmem>>, vector<8x32xf32>
    tpu.vector_store %arg12[%c0_20, %c0_21], %32 {strides = array<i32>} : memref<64x64xf32, #tpu.memory_space<vmem>>, vector<8x32xf32>,
    %c56 = arith.constant 56 : index
    %c96 = arith.constant 96 : index
    %34 = vector.load %arg13[%c56, %c96] : memref<64x192xf32, #tpu.memory_space<vmem>>, vector<8x96xf32>
    %35 = vector.extract_strided_slice %34 {offsets = [0, 0], sizes = [8, 64], strides = [1, 1]} : vector<8x96xf32> to vector<8x64xf32>
    %36 = arith.negf %35 : vector<8x64xf32>
    %37 = math.exp %36 : vector<8x64xf32>
    %cst_22 = arith.constant 1.000000e+00 : f32
    %38 = vector.broadcast %cst_22 : f32 to vector<8x64xf32>
    %39 = arith.addf %38, %37 : vector<8x64xf32>
    %40 = arith.divf %38, %39 : vector<8x64xf32>
    %41 = vector.extract_strided_slice %40 {offsets = [0, 0], sizes = [8, 32], strides = [1, 1]} : vector<8x64xf32> to vector<8x32xf32>
    %42 = vector.extract_strided_slice %40 {offsets = [0, 32], sizes = [8, 32], strides = [1, 1]} : vector<8x64xf32> to vector<8x32xf32>
    %43 = vector.extract_strided_slice %34 {offsets = [0, 64], sizes = [8, 32], strides = [1, 1]} : vector<8x96xf32> to vector<8x32xf32>
    %44 = vector.broadcast %16 : vector<1x32xf32> to vector<8x32xf32>
    %45 = arith.mulf %41, %44 : vector<8x32xf32>
    %46 = arith.addf %43, %45 : vector<8x32xf32>
    %47 = math.tanh %46 : vector<8x32xf32>
    %48 = arith.mulf %42, %47 : vector<8x32xf32>
    %49 = arith.subf %47, %48 : vector<8x32xf32>
    %c56_23 = arith.constant 56 : index
    %c32 = arith.constant 32 : index
    %50 = vector.load %arg12[%c56_23, %c32] : memref<64x64xf32, #tpu.memory_space<vmem>>, vector<8x32xf32>
    tpu.vector_store %arg12[%c56_23, %c32], %49 {strides = array<i32>} : memref<64x64xf32, #tpu.memory_space<vmem>>, vector<8x32xf32>,
    %c8 = arith.constant 8 : index
    %c0_24 = arith.constant 0 : index
    %51 = vector.load %arg13[%c8, %c0_24] : memref<64x192xf32, #tpu.memory_space<vmem>>, vector<8x96xf32>
    %cst_25 = arith.constant dense<0.000000e+00> : vector<8x96xf32>
    %52 = tpu.matmul %32, %10, %cst_25 {dimension_numbers = #tpu.dot_dimension_numbers<[1], [0], [0], [1], [0, 0, 1, 1], [], []>} : vector<8x32xf32>, vector<32x96xf32>, vector<8x96xf32> -> vector<8x96xf32>
    %53 = vector.extract_strided_slice %51 {offsets = [0, 0], sizes = [8, 64], strides = [1, 1]} : vector<8x96xf32> to vector<8x64xf32>
    %54 = vector.extract_strided_slice %52 {offsets = [0, 0], sizes = [8, 64], strides = [1, 1]} : vector<8x96xf32> to vector<8x64xf32>
    %55 = arith.addf %53, %54 : vector<8x64xf32>
    %56 = arith.negf %55 : vector<8x64xf32>
    %57 = math.exp %56 : vector<8x64xf32>
    %cst_26 = arith.constant 1.000000e+00 : f32
    %58 = vector.broadcast %cst_26 : f32 to vector<8x64xf32>
    %59 = arith.addf %58, %57 : vector<8x64xf32>
    %60 = arith.divf %58, %59 : vector<8x64xf32>
    %61 = vector.extract_strided_slice %60 {offsets = [0, 0], sizes = [8, 32], strides = [1, 1]} : vector<8x64xf32> to vector<8x32xf32>
    %62 = vector.extract_strided_slice %60 {offsets = [0, 32], sizes = [8, 32], strides = [1, 1]} : vector<8x64xf32> to vector<8x32xf32>
    %63 = vector.extract_strided_slice %51 {offsets = [0, 64], sizes = [8, 32], strides = [1, 1]} : vector<8x96xf32> to vector<8x32xf32>
    %64 = vector.extract_strided_slice %52 {offsets = [0, 64], sizes = [8, 32], strides = [1, 1]} : vector<8x96xf32> to vector<8x32xf32>
    %65 = vector.broadcast %15 : vector<1x32xf32> to vector<8x32xf32>
    %66 = arith.addf %64, %65 : vector<8x32xf32>
    %67 = arith.mulf %61, %66 : vector<8x32xf32>
    %68 = arith.addf %63, %67 : vector<8x32xf32>
    %69 = math.tanh %68 : vector<8x32xf32>
    %70 = arith.subf %32, %69 : vector<8x32xf32>
    %71 = arith.mulf %62, %70 : vector<8x32xf32>
    %72 = arith.addf %69, %71 : vector<8x32xf32>
    %c8_27 = arith.constant 8 : index
    %c0_28 = arith.constant 0 : index
    %73 = vector.load %arg12[%c8_27, %c0_28] : memref<64x64xf32, #tpu.memory_space<vmem>>, vector<8x32xf32>
    tpu.vector_store %arg12[%c8_27, %c0_28], %72 {strides = array<i32>} : memref<64x64xf32, #tpu.memory_space<vmem>>, vector<8x32xf32>,
    %c48 = arith.constant 48 : index
    %c96_29 = arith.constant 96 : index
    %74 = vector.load %arg13[%c48, %c96_29] : memref<64x192xf32, #tpu.memory_space<vmem>>, vector<8x96xf32>
    %cst_30 = arith.constant dense<0.000000e+00> : vector<8x96xf32>
    %75 = tpu.matmul %49, %12, %cst_30 {dimension_numbers = #tpu.dot_dimension_numbers<[1], [0], [0], [1], [0, 0, 1, 1], [], []>} : vector<8x32xf32>, vector<32x96xf32>, vector<8x96xf32> -> vector<8x96xf32>
    %76 = vector.extract_strided_slice %74 {offsets = [0, 0], sizes = [8, 64], strides = [1, 1]} : vector<8x96xf32> to vector<8x64xf32>
    %77 = vector.extract_strided_slice %75 {offsets = [0, 0], sizes = [8, 64], strides = [1, 1]} : vector<8x96xf32> to vector<8x64xf32>
    %78 = arith.addf %76, %77 : vector<8x64xf32>
    %79 = arith.negf %78 : vector<8x64xf32>
    %80 = math.exp %79 : vector<8x64xf32>
    %cst_31 = arith.constant 1.000000e+00 : f32
    %81 = vector.broadcast %cst_31 : f32 to vector<8x64xf32>
    %82 = arith.addf %81, %80 : vector<8x64xf32>
    %83 = arith.divf %81, %82 : vector<8x64xf32>
    %84 = vector.extract_strided_slice %83 {offsets = [0, 0], sizes = [8, 32], strides = [1, 1]} : vector<8x64xf32> to vector<8x32xf32>
    %85 = vector.extract_strided_slice %83 {offsets = [0, 32], sizes = [8, 32], strides = [1, 1]} : vector<8x64xf32> to vector<8x32xf32>
    %86 = vector.extract_strided_slice %74 {offsets = [0, 64], sizes = [8, 32], strides = [1, 1]} : vector<8x96xf32> to vector<8x32xf32>
    %87 = vector.extract_strided_slice %75 {offsets = [0, 64], sizes = [8, 32], strides = [1, 1]} : vector<8x96xf32> to vector<8x32xf32>
    %88 = vector.broadcast %16 : vector<1x32xf32> to vector<8x32xf32>
    %89 = arith.addf %87, %88 : vector<8x32xf32>
    %90 = arith.mulf %84, %89 : vector<8x32xf32>
    %91 = arith.addf %86, %90 : vector<8x32xf32>
    %92 = math.tanh %91 : vector<8x32xf32>
    %93 = arith.subf %49, %92 : vector<8x32xf32>
    %94 = arith.mulf %85, %93 : vector<8x32xf32>
    %95 = arith.addf %92, %94 : vector<8x32xf32>
    %c48_32 = arith.constant 48 : index
    %c32_33 = arith.constant 32 : index
    %96 = vector.load %arg12[%c48_32, %c32_33] : memref<64x64xf32, #tpu.memory_space<vmem>>, vector<8x32xf32>
    tpu.vector_store %arg12[%c48_32, %c32_33], %95 {strides = array<i32>} : memref<64x64xf32, #tpu.memory_space<vmem>>, vector<8x32xf32>,
    %c16 = arith.constant 16 : index
    %c0_34 = arith.constant 0 : index
    %97 = vector.load %arg13[%c16, %c0_34] : memref<64x192xf32, #tpu.memory_space<vmem>>, vector<8x96xf32>
    %cst_35 = arith.constant dense<0.000000e+00> : vector<8x96xf32>
    %98 = tpu.matmul %72, %10, %cst_35 {dimension_numbers = #tpu.dot_dimension_numbers<[1], [0], [0], [1], [0, 0, 1, 1], [], []>} : vector<8x32xf32>, vector<32x96xf32>, vector<8x96xf32> -> vector<8x96xf32>
    %99 = vector.extract_strided_slice %97 {offsets = [0, 0], sizes = [8, 64], strides = [1, 1]} : vector<8x96xf32> to vector<8x64xf32>
    %100 = vector.extract_strided_slice %98 {offsets = [0, 0], sizes = [8, 64], strides = [1, 1]} : vector<8x96xf32> to vector<8x64xf32>
    %101 = arith.addf %99, %100 : vector<8x64xf32>
    %102 = arith.negf %101 : vector<8x64xf32>
    %103 = math.exp %102 : vector<8x64xf32>
    %cst_36 = arith.constant 1.000000e+00 : f32
    %104 = vector.broadcast %cst_36 : f32 to vector<8x64xf32>
    %105 = arith.addf %104, %103 : vector<8x64xf32>
    %106 = arith.divf %104, %105 : vector<8x64xf32>
    %107 = vector.extract_strided_slice %106 {offsets = [0, 0], sizes = [8, 32], strides = [1, 1]} : vector<8x64xf32> to vector<8x32xf32>
    %108 = vector.extract_strided_slice %106 {offsets = [0, 32], sizes = [8, 32], strides = [1, 1]} : vector<8x64xf32> to vector<8x32xf32>
    %109 = vector.extract_strided_slice %97 {offsets = [0, 64], sizes = [8, 32], strides = [1, 1]} : vector<8x96xf32> to vector<8x32xf32>
    %110 = vector.extract_strided_slice %98 {offsets = [0, 64], sizes = [8, 32], strides = [1, 1]} : vector<8x96xf32> to vector<8x32xf32>
    %111 = vector.broadcast %15 : vector<1x32xf32> to vector<8x32xf32>
    %112 = arith.addf %110, %111 : vector<8x32xf32>
    %113 = arith.mulf %107, %112 : vector<8x32xf32>
    %114 = arith.addf %109, %113 : vector<8x32xf32>
    %115 = math.tanh %114 : vector<8x32xf32>
    %116 = arith.subf %72, %115 : vector<8x32xf32>
    %117 = arith.mulf %108, %116 : vector<8x32xf32>
    %118 = arith.addf %115, %117 : vector<8x32xf32>
    %c16_37 = arith.constant 16 : index
    %c0_38 = arith.constant 0 : index
    %119 = vector.load %arg12[%c16_37, %c0_38] : memref<64x64xf32, #tpu.memory_space<vmem>>, vector<8x32xf32>
    tpu.vector_store %arg12[%c16_37, %c0_38], %118 {strides = array<i32>} : memref<64x64xf32, #tpu.memory_space<vmem>>, vector<8x32xf32>,
    %c40 = arith.constant 40 : index
    %c96_39 = arith.constant 96 : index
    %120 = vector.load %arg13[%c40, %c96_39] : memref<64x192xf32, #tpu.memory_space<vmem>>, vector<8x96xf32>
    %cst_40 = arith.constant dense<0.000000e+00> : vector<8x96xf32>
    %121 = tpu.matmul %95, %12, %cst_40 {dimension_numbers = #tpu.dot_dimension_numbers<[1], [0], [0], [1], [0, 0, 1, 1], [], []>} : vector<8x32xf32>, vector<32x96xf32>, vector<8x96xf32> -> vector<8x96xf32>
    %122 = vector.extract_strided_slice %120 {offsets = [0, 0], sizes = [8, 64], strides = [1, 1]} : vector<8x96xf32> to vector<8x64xf32>
    %123 = vector.extract_strided_slice %121 {offsets = [0, 0], sizes = [8, 64], strides = [1, 1]} : vector<8x96xf32> to vector<8x64xf32>
    %124 = arith.addf %122, %123 : vector<8x64xf32>
    %125 = arith.negf %124 : vector<8x64xf32>
    %126 = math.exp %125 : vector<8x64xf32>
    %cst_41 = arith.constant 1.000000e+00 : f32
    %127 = vector.broadcast %cst_41 : f32 to vector<8x64xf32>
    %128 = arith.addf %127, %126 : vector<8x64xf32>
    %129 = arith.divf %127, %128 : vector<8x64xf32>
    %130 = vector.extract_strided_slice %129 {offsets = [0, 0], sizes = [8, 32], strides = [1, 1]} : vector<8x64xf32> to vector<8x32xf32>
    %131 = vector.extract_strided_slice %129 {offsets = [0, 32], sizes = [8, 32], strides = [1, 1]} : vector<8x64xf32> to vector<8x32xf32>
    %132 = vector.extract_strided_slice %120 {offsets = [0, 64], sizes = [8, 32], strides = [1, 1]} : vector<8x96xf32> to vector<8x32xf32>
    %133 = vector.extract_strided_slice %121 {offsets = [0, 64], sizes = [8, 32], strides = [1, 1]} : vector<8x96xf32> to vector<8x32xf32>
    %134 = vector.broadcast %16 : vector<1x32xf32> to vector<8x32xf32>
    %135 = arith.addf %133, %134 : vector<8x32xf32>
    %136 = arith.mulf %130, %135 : vector<8x32xf32>
    %137 = arith.addf %132, %136 : vector<8x32xf32>
    %138 = math.tanh %137 : vector<8x32xf32>
    %139 = arith.subf %95, %138 : vector<8x32xf32>
    %140 = arith.mulf %131, %139 : vector<8x32xf32>
    %141 = arith.addf %138, %140 : vector<8x32xf32>
    %c40_42 = arith.constant 40 : index
    %c32_43 = arith.constant 32 : index
    %142 = vector.load %arg12[%c40_42, %c32_43] : memref<64x64xf32, #tpu.memory_space<vmem>>, vector<8x32xf32>
    tpu.vector_store %arg12[%c40_42, %c32_43], %141 {strides = array<i32>} : memref<64x64xf32, #tpu.memory_space<vmem>>, vector<8x32xf32>,
    %c24 = arith.constant 24 : index
    %c0_44 = arith.constant 0 : index
    %143 = vector.load %arg13[%c24, %c0_44] : memref<64x192xf32, #tpu.memory_space<vmem>>, vector<8x96xf32>
    %cst_45 = arith.constant dense<0.000000e+00> : vector<8x96xf32>
    %144 = tpu.matmul %118, %10, %cst_45 {dimension_numbers = #tpu.dot_dimension_numbers<[1], [0], [0], [1], [0, 0, 1, 1], [], []>} : vector<8x32xf32>, vector<32x96xf32>, vector<8x96xf32> -> vector<8x96xf32>
    %145 = vector.extract_strided_slice %143 {offsets = [0, 0], sizes = [8, 64], strides = [1, 1]} : vector<8x96xf32> to vector<8x64xf32>
    %146 = vector.extract_strided_slice %144 {offsets = [0, 0], sizes = [8, 64], strides = [1, 1]} : vector<8x96xf32> to vector<8x64xf32>
    %147 = arith.addf %145, %146 : vector<8x64xf32>
    %148 = arith.negf %147 : vector<8x64xf32>
    %149 = math.exp %148 : vector<8x64xf32>
    %cst_46 = arith.constant 1.000000e+00 : f32
    %150 = vector.broadcast %cst_46 : f32 to vector<8x64xf32>
    %151 = arith.addf %150, %149 : vector<8x64xf32>
    %152 = arith.divf %150, %151 : vector<8x64xf32>
    %153 = vector.extract_strided_slice %152 {offsets = [0, 0], sizes = [8, 32], strides = [1, 1]} : vector<8x64xf32> to vector<8x32xf32>
    %154 = vector.extract_strided_slice %152 {offsets = [0, 32], sizes = [8, 32], strides = [1, 1]} : vector<8x64xf32> to vector<8x32xf32>
    %155 = vector.extract_strided_slice %143 {offsets = [0, 64], sizes = [8, 32], strides = [1, 1]} : vector<8x96xf32> to vector<8x32xf32>
    %156 = vector.extract_strided_slice %144 {offsets = [0, 64], sizes = [8, 32], strides = [1, 1]} : vector<8x96xf32> to vector<8x32xf32>
    %157 = vector.broadcast %15 : vector<1x32xf32> to vector<8x32xf32>
    %158 = arith.addf %156, %157 : vector<8x32xf32>
    %159 = arith.mulf %153, %158 : vector<8x32xf32>
    %160 = arith.addf %155, %159 : vector<8x32xf32>
    %161 = math.tanh %160 : vector<8x32xf32>
    %162 = arith.subf %118, %161 : vector<8x32xf32>
    %163 = arith.mulf %154, %162 : vector<8x32xf32>
    %164 = arith.addf %161, %163 : vector<8x32xf32>
    %c24_47 = arith.constant 24 : index
    %c0_48 = arith.constant 0 : index
    %165 = vector.load %arg12[%c24_47, %c0_48] : memref<64x64xf32, #tpu.memory_space<vmem>>, vector<8x32xf32>
    tpu.vector_store %arg12[%c24_47, %c0_48], %164 {strides = array<i32>} : memref<64x64xf32, #tpu.memory_space<vmem>>, vector<8x32xf32>,
    %c32_49 = arith.constant 32 : index
    %c96_50 = arith.constant 96 : index
    %166 = vector.load %arg13[%c32_49, %c96_50] : memref<64x192xf32, #tpu.memory_space<vmem>>, vector<8x96xf32>
    %cst_51 = arith.constant dense<0.000000e+00> : vector<8x96xf32>
    %167 = tpu.matmul %141, %12, %cst_51 {dimension_numbers = #tpu.dot_dimension_numbers<[1], [0], [0], [1], [0, 0, 1, 1], [], []>} : vector<8x32xf32>, vector<32x96xf32>, vector<8x96xf32> -> vector<8x96xf32>
    %168 = vector.extract_strided_slice %166 {offsets = [0, 0], sizes = [8, 64], strides = [1, 1]} : vector<8x96xf32> to vector<8x64xf32>
    %169 = vector.extract_strided_slice %167 {offsets = [0, 0], sizes = [8, 64], strides = [1, 1]} : vector<8x96xf32> to vector<8x64xf32>
    %170 = arith.addf %168, %169 : vector<8x64xf32>
    %171 = arith.negf %170 : vector<8x64xf32>
    %172 = math.exp %171 : vector<8x64xf32>
    %cst_52 = arith.constant 1.000000e+00 : f32
    %173 = vector.broadcast %cst_52 : f32 to vector<8x64xf32>
    %174 = arith.addf %173, %172 : vector<8x64xf32>
    %175 = arith.divf %173, %174 : vector<8x64xf32>
    %176 = vector.extract_strided_slice %175 {offsets = [0, 0], sizes = [8, 32], strides = [1, 1]} : vector<8x64xf32> to vector<8x32xf32>
    %177 = vector.extract_strided_slice %175 {offsets = [0, 32], sizes = [8, 32], strides = [1, 1]} : vector<8x64xf32> to vector<8x32xf32>
    %178 = vector.extract_strided_slice %166 {offsets = [0, 64], sizes = [8, 32], strides = [1, 1]} : vector<8x96xf32> to vector<8x32xf32>
    %179 = vector.extract_strided_slice %167 {offsets = [0, 64], sizes = [8, 32], strides = [1, 1]} : vector<8x96xf32> to vector<8x32xf32>
    %180 = vector.broadcast %16 : vector<1x32xf32> to vector<8x32xf32>
    %181 = arith.addf %179, %180 : vector<8x32xf32>
    %182 = arith.mulf %176, %181 : vector<8x32xf32>
    %183 = arith.addf %178, %182 : vector<8x32xf32>
    %184 = math.tanh %183 : vector<8x32xf32>
    %185 = arith.subf %141, %184 : vector<8x32xf32>
    %186 = arith.mulf %177, %185 : vector<8x32xf32>
    %187 = arith.addf %184, %186 : vector<8x32xf32>
    %c32_53 = arith.constant 32 : index
    %c32_54 = arith.constant 32 : index
    %188 = vector.load %arg12[%c32_53, %c32_54] : memref<64x64xf32, #tpu.memory_space<vmem>>, vector<8x32xf32>
    tpu.vector_store %arg12[%c32_53, %c32_54], %187 {strides = array<i32>} : memref<64x64xf32, #tpu.memory_space<vmem>>, vector<8x32xf32>,
    %c32_55 = arith.constant 32 : index
    %c0_56 = arith.constant 0 : index
    %189 = vector.load %arg13[%c32_55, %c0_56] : memref<64x192xf32, #tpu.memory_space<vmem>>, vector<8x96xf32>
    %cst_57 = arith.constant dense<0.000000e+00> : vector<8x96xf32>
    %190 = tpu.matmul %164, %10, %cst_57 {dimension_numbers = #tpu.dot_dimension_numbers<[1], [0], [0], [1], [0, 0, 1, 1], [], []>} : vector<8x32xf32>, vector<32x96xf32>, vector<8x96xf32> -> vector<8x96xf32>
    %191 = vector.extract_strided_slice %189 {offsets = [0, 0], sizes = [8, 64], strides = [1, 1]} : vector<8x96xf32> to vector<8x64xf32>
    %192 = vector.extract_strided_slice %190 {offsets = [0, 0], sizes = [8, 64], strides = [1, 1]} : vector<8x96xf32> to vector<8x64xf32>
    %193 = arith.addf %191, %192 : vector<8x64xf32>
    %194 = arith.negf %193 : vector<8x64xf32>
    %195 = math.exp %194 : vector<8x64xf32>
    %cst_58 = arith.constant 1.000000e+00 : f32
    %196 = vector.broadcast %cst_58 : f32 to vector<8x64xf32>
    %197 = arith.addf %196, %195 : vector<8x64xf32>
    %198 = arith.divf %196, %197 : vector<8x64xf32>
    %199 = vector.extract_strided_slice %198 {offsets = [0, 0], sizes = [8, 32], strides = [1, 1]} : vector<8x64xf32> to vector<8x32xf32>
    %200 = vector.extract_strided_slice %198 {offsets = [0, 32], sizes = [8, 32], strides = [1, 1]} : vector<8x64xf32> to vector<8x32xf32>
    %201 = vector.extract_strided_slice %189 {offsets = [0, 64], sizes = [8, 32], strides = [1, 1]} : vector<8x96xf32> to vector<8x32xf32>
    %202 = vector.extract_strided_slice %190 {offsets = [0, 64], sizes = [8, 32], strides = [1, 1]} : vector<8x96xf32> to vector<8x32xf32>
    %203 = vector.broadcast %15 : vector<1x32xf32> to vector<8x32xf32>
    %204 = arith.addf %202, %203 : vector<8x32xf32>
    %205 = arith.mulf %199, %204 : vector<8x32xf32>
    %206 = arith.addf %201, %205 : vector<8x32xf32>
    %207 = math.tanh %206 : vector<8x32xf32>
    %208 = arith.subf %164, %207 : vector<8x32xf32>
    %209 = arith.mulf %200, %208 : vector<8x32xf32>
    %210 = arith.addf %207, %209 : vector<8x32xf32>
    %c32_59 = arith.constant 32 : index
    %c0_60 = arith.constant 0 : index
    %211 = vector.load %arg12[%c32_59, %c0_60] : memref<64x64xf32, #tpu.memory_space<vmem>>, vector<8x32xf32>
    tpu.vector_store %arg12[%c32_59, %c0_60], %210 {strides = array<i32>} : memref<64x64xf32, #tpu.memory_space<vmem>>, vector<8x32xf32>,
    %c24_61 = arith.constant 24 : index
    %c96_62 = arith.constant 96 : index
    %212 = vector.load %arg13[%c24_61, %c96_62] : memref<64x192xf32, #tpu.memory_space<vmem>>, vector<8x96xf32>
    %cst_63 = arith.constant dense<0.000000e+00> : vector<8x96xf32>
    %213 = tpu.matmul %187, %12, %cst_63 {dimension_numbers = #tpu.dot_dimension_numbers<[1], [0], [0], [1], [0, 0, 1, 1], [], []>} : vector<8x32xf32>, vector<32x96xf32>, vector<8x96xf32> -> vector<8x96xf32>
    %214 = vector.extract_strided_slice %212 {offsets = [0, 0], sizes = [8, 64], strides = [1, 1]} : vector<8x96xf32> to vector<8x64xf32>
    %215 = vector.extract_strided_slice %213 {offsets = [0, 0], sizes = [8, 64], strides = [1, 1]} : vector<8x96xf32> to vector<8x64xf32>
    %216 = arith.addf %214, %215 : vector<8x64xf32>
    %217 = arith.negf %216 : vector<8x64xf32>
    %218 = math.exp %217 : vector<8x64xf32>
    %cst_64 = arith.constant 1.000000e+00 : f32
    %219 = vector.broadcast %cst_64 : f32 to vector<8x64xf32>
    %220 = arith.addf %219, %218 : vector<8x64xf32>
    %221 = arith.divf %219, %220 : vector<8x64xf32>
    %222 = vector.extract_strided_slice %221 {offsets = [0, 0], sizes = [8, 32], strides = [1, 1]} : vector<8x64xf32> to vector<8x32xf32>
    %223 = vector.extract_strided_slice %221 {offsets = [0, 32], sizes = [8, 32], strides = [1, 1]} : vector<8x64xf32> to vector<8x32xf32>
    %224 = vector.extract_strided_slice %212 {offsets = [0, 64], sizes = [8, 32], strides = [1, 1]} : vector<8x96xf32> to vector<8x32xf32>
    %225 = vector.extract_strided_slice %213 {offsets = [0, 64], sizes = [8, 32], strides = [1, 1]} : vector<8x96xf32> to vector<8x32xf32>
    %226 = vector.broadcast %16 : vector<1x32xf32> to vector<8x32xf32>
    %227 = arith.addf %225, %226 : vector<8x32xf32>
    %228 = arith.mulf %222, %227 : vector<8x32xf32>
    %229 = arith.addf %224, %228 : vector<8x32xf32>
    %230 = math.tanh %229 : vector<8x32xf32>
    %231 = arith.subf %187, %230 : vector<8x32xf32>
    %232 = arith.mulf %223, %231 : vector<8x32xf32>
    %233 = arith.addf %230, %232 : vector<8x32xf32>
    %c24_65 = arith.constant 24 : index
    %c32_66 = arith.constant 32 : index
    %234 = vector.load %arg12[%c24_65, %c32_66] : memref<64x64xf32, #tpu.memory_space<vmem>>, vector<8x32xf32>
    tpu.vector_store %arg12[%c24_65, %c32_66], %233 {strides = array<i32>} : memref<64x64xf32, #tpu.memory_space<vmem>>, vector<8x32xf32>,
    %c40_67 = arith.constant 40 : index
    %c0_68 = arith.constant 0 : index
    %235 = vector.load %arg13[%c40_67, %c0_68] : memref<64x192xf32, #tpu.memory_space<vmem>>, vector<8x96xf32>
    %cst_69 = arith.constant dense<0.000000e+00> : vector<8x96xf32>
    %236 = tpu.matmul %210, %10, %cst_69 {dimension_numbers = #tpu.dot_dimension_numbers<[1], [0], [0], [1], [0, 0, 1, 1], [], []>} : vector<8x32xf32>, vector<32x96xf32>, vector<8x96xf32> -> vector<8x96xf32>
    %237 = vector.extract_strided_slice %235 {offsets = [0, 0], sizes = [8, 64], strides = [1, 1]} : vector<8x96xf32> to vector<8x64xf32>
    %238 = vector.extract_strided_slice %236 {offsets = [0, 0], sizes = [8, 64], strides = [1, 1]} : vector<8x96xf32> to vector<8x64xf32>
    %239 = arith.addf %237, %238 : vector<8x64xf32>
    %240 = arith.negf %239 : vector<8x64xf32>
    %241 = math.exp %240 : vector<8x64xf32>
    %cst_70 = arith.constant 1.000000e+00 : f32
    %242 = vector.broadcast %cst_70 : f32 to vector<8x64xf32>
    %243 = arith.addf %242, %241 : vector<8x64xf32>
    %244 = arith.divf %242, %243 : vector<8x64xf32>
    %245 = vector.extract_strided_slice %244 {offsets = [0, 0], sizes = [8, 32], strides = [1, 1]} : vector<8x64xf32> to vector<8x32xf32>
    %246 = vector.extract_strided_slice %244 {offsets = [0, 32], sizes = [8, 32], strides = [1, 1]} : vector<8x64xf32> to vector<8x32xf32>
    %247 = vector.extract_strided_slice %235 {offsets = [0, 64], sizes = [8, 32], strides = [1, 1]} : vector<8x96xf32> to vector<8x32xf32>
    %248 = vector.extract_strided_slice %236 {offsets = [0, 64], sizes = [8, 32], strides = [1, 1]} : vector<8x96xf32> to vector<8x32xf32>
    %249 = vector.broadcast %15 : vector<1x32xf32> to vector<8x32xf32>
    %250 = arith.addf %248, %249 : vector<8x32xf32>
    %251 = arith.mulf %245, %250 : vector<8x32xf32>
    %252 = arith.addf %247, %251 : vector<8x32xf32>
    %253 = math.tanh %252 : vector<8x32xf32>
    %254 = arith.subf %210, %253 : vector<8x32xf32>
    %255 = arith.mulf %246, %254 : vector<8x32xf32>
    %256 = arith.addf %253, %255 : vector<8x32xf32>
    %c40_71 = arith.constant 40 : index
    %c0_72 = arith.constant 0 : index
    %257 = vector.load %arg12[%c40_71, %c0_72] : memref<64x64xf32, #tpu.memory_space<vmem>>, vector<8x32xf32>
    tpu.vector_store %arg12[%c40_71, %c0_72], %256 {strides = array<i32>} : memref<64x64xf32, #tpu.memory_space<vmem>>, vector<8x32xf32>,
    %c16_73 = arith.constant 16 : index
    %c96_74 = arith.constant 96 : index
    %258 = vector.load %arg13[%c16_73, %c96_74] : memref<64x192xf32, #tpu.memory_space<vmem>>, vector<8x96xf32>
    %cst_75 = arith.constant dense<0.000000e+00> : vector<8x96xf32>
    %259 = tpu.matmul %233, %12, %cst_75 {dimension_numbers = #tpu.dot_dimension_numbers<[1], [0], [0], [1], [0, 0, 1, 1], [], []>} : vector<8x32xf32>, vector<32x96xf32>, vector<8x96xf32> -> vector<8x96xf32>
    %260 = vector.extract_strided_slice %258 {offsets = [0, 0], sizes = [8, 64], strides = [1, 1]} : vector<8x96xf32> to vector<8x64xf32>
    %261 = vector.extract_strided_slice %259 {offsets = [0, 0], sizes = [8, 64], strides = [1, 1]} : vector<8x96xf32> to vector<8x64xf32>
    %262 = arith.addf %260, %261 : vector<8x64xf32>
    %263 = arith.negf %262 : vector<8x64xf32>
    %264 = math.exp %263 : vector<8x64xf32>
    %cst_76 = arith.constant 1.000000e+00 : f32
    %265 = vector.broadcast %cst_76 : f32 to vector<8x64xf32>
    %266 = arith.addf %265, %264 : vector<8x64xf32>
    %267 = arith.divf %265, %266 : vector<8x64xf32>
    %268 = vector.extract_strided_slice %267 {offsets = [0, 0], sizes = [8, 32], strides = [1, 1]} : vector<8x64xf32> to vector<8x32xf32>
    %269 = vector.extract_strided_slice %267 {offsets = [0, 32], sizes = [8, 32], strides = [1, 1]} : vector<8x64xf32> to vector<8x32xf32>
    %270 = vector.extract_strided_slice %258 {offsets = [0, 64], sizes = [8, 32], strides = [1, 1]} : vector<8x96xf32> to vector<8x32xf32>
    %271 = vector.extract_strided_slice %259 {offsets = [0, 64], sizes = [8, 32], strides = [1, 1]} : vector<8x96xf32> to vector<8x32xf32>
    %272 = vector.broadcast %16 : vector<1x32xf32> to vector<8x32xf32>
    %273 = arith.addf %271, %272 : vector<8x32xf32>
    %274 = arith.mulf %268, %273 : vector<8x32xf32>
    %275 = arith.addf %270, %274 : vector<8x32xf32>
    %276 = math.tanh %275 : vector<8x32xf32>
    %277 = arith.subf %233, %276 : vector<8x32xf32>
    %278 = arith.mulf %269, %277 : vector<8x32xf32>
    %279 = arith.addf %276, %278 : vector<8x32xf32>
    %c16_77 = arith.constant 16 : index
    %c32_78 = arith.constant 32 : index
    %280 = vector.load %arg12[%c16_77, %c32_78] : memref<64x64xf32, #tpu.memory_space<vmem>>, vector<8x32xf32>
    tpu.vector_store %arg12[%c16_77, %c32_78], %279 {strides = array<i32>} : memref<64x64xf32, #tpu.memory_space<vmem>>, vector<8x32xf32>,
    %c48_79 = arith.constant 48 : index
    %c0_80 = arith.constant 0 : index
    %281 = vector.load %arg13[%c48_79, %c0_80] : memref<64x192xf32, #tpu.memory_space<vmem>>, vector<8x96xf32>
    %cst_81 = arith.constant dense<0.000000e+00> : vector<8x96xf32>
    %282 = tpu.matmul %256, %10, %cst_81 {dimension_numbers = #tpu.dot_dimension_numbers<[1], [0], [0], [1], [0, 0, 1, 1], [], []>} : vector<8x32xf32>, vector<32x96xf32>, vector<8x96xf32> -> vector<8x96xf32>
    %283 = vector.extract_strided_slice %281 {offsets = [0, 0], sizes = [8, 64], strides = [1, 1]} : vector<8x96xf32> to vector<8x64xf32>
    %284 = vector.extract_strided_slice %282 {offsets = [0, 0], sizes = [8, 64], strides = [1, 1]} : vector<8x96xf32> to vector<8x64xf32>
    %285 = arith.addf %283, %284 : vector<8x64xf32>
    %286 = arith.negf %285 : vector<8x64xf32>
    %287 = math.exp %286 : vector<8x64xf32>
    %cst_82 = arith.constant 1.000000e+00 : f32
    %288 = vector.broadcast %cst_82 : f32 to vector<8x64xf32>
    %289 = arith.addf %288, %287 : vector<8x64xf32>
    %290 = arith.divf %288, %289 : vector<8x64xf32>
    %291 = vector.extract_strided_slice %290 {offsets = [0, 0], sizes = [8, 32], strides = [1, 1]} : vector<8x64xf32> to vector<8x32xf32>
    %292 = vector.extract_strided_slice %290 {offsets = [0, 32], sizes = [8, 32], strides = [1, 1]} : vector<8x64xf32> to vector<8x32xf32>
    %293 = vector.extract_strided_slice %281 {offsets = [0, 64], sizes = [8, 32], strides = [1, 1]} : vector<8x96xf32> to vector<8x32xf32>
    %294 = vector.extract_strided_slice %282 {offsets = [0, 64], sizes = [8, 32], strides = [1, 1]} : vector<8x96xf32> to vector<8x32xf32>
    %295 = vector.broadcast %15 : vector<1x32xf32> to vector<8x32xf32>
    %296 = arith.addf %294, %295 : vector<8x32xf32>
    %297 = arith.mulf %291, %296 : vector<8x32xf32>
    %298 = arith.addf %293, %297 : vector<8x32xf32>
    %299 = math.tanh %298 : vector<8x32xf32>
    %300 = arith.subf %256, %299 : vector<8x32xf32>
    %301 = arith.mulf %292, %300 : vector<8x32xf32>
    %302 = arith.addf %299, %301 : vector<8x32xf32>
    %c48_83 = arith.constant 48 : index
    %c0_84 = arith.constant 0 : index
    %303 = vector.load %arg12[%c48_83, %c0_84] : memref<64x64xf32, #tpu.memory_space<vmem>>, vector<8x32xf32>
    tpu.vector_store %arg12[%c48_83, %c0_84], %302 {strides = array<i32>} : memref<64x64xf32, #tpu.memory_space<vmem>>, vector<8x32xf32>,
    %c8_85 = arith.constant 8 : index
    %c96_86 = arith.constant 96 : index
    %304 = vector.load %arg13[%c8_85, %c96_86] : memref<64x192xf32, #tpu.memory_space<vmem>>, vector<8x96xf32>
    %cst_87 = arith.constant dense<0.000000e+00> : vector<8x96xf32>
    %305 = tpu.matmul %279, %12, %cst_87 {dimension_numbers = #tpu.dot_dimension_numbers<[1], [0], [0], [1], [0, 0, 1, 1], [], []>} : vector<8x32xf32>, vector<32x96xf32>, vector<8x96xf32> -> vector<8x96xf32>
    %306 = vector.extract_strided_slice %304 {offsets = [0, 0], sizes = [8, 64], strides = [1, 1]} : vector<8x96xf32> to vector<8x64xf32>
    %307 = vector.extract_strided_slice %305 {offsets = [0, 0], sizes = [8, 64], strides = [1, 1]} : vector<8x96xf32> to vector<8x64xf32>
    %308 = arith.addf %306, %307 : vector<8x64xf32>
    %309 = arith.negf %308 : vector<8x64xf32>
    %310 = math.exp %309 : vector<8x64xf32>
    %cst_88 = arith.constant 1.000000e+00 : f32
    %311 = vector.broadcast %cst_88 : f32 to vector<8x64xf32>
    %312 = arith.addf %311, %310 : vector<8x64xf32>
    %313 = arith.divf %311, %312 : vector<8x64xf32>
    %314 = vector.extract_strided_slice %313 {offsets = [0, 0], sizes = [8, 32], strides = [1, 1]} : vector<8x64xf32> to vector<8x32xf32>
    %315 = vector.extract_strided_slice %313 {offsets = [0, 32], sizes = [8, 32], strides = [1, 1]} : vector<8x64xf32> to vector<8x32xf32>
    %316 = vector.extract_strided_slice %304 {offsets = [0, 64], sizes = [8, 32], strides = [1, 1]} : vector<8x96xf32> to vector<8x32xf32>
    %317 = vector.extract_strided_slice %305 {offsets = [0, 64], sizes = [8, 32], strides = [1, 1]} : vector<8x96xf32> to vector<8x32xf32>
    %318 = vector.broadcast %16 : vector<1x32xf32> to vector<8x32xf32>
    %319 = arith.addf %317, %318 : vector<8x32xf32>
    %320 = arith.mulf %314, %319 : vector<8x32xf32>
    %321 = arith.addf %316, %320 : vector<8x32xf32>
    %322 = math.tanh %321 : vector<8x32xf32>
    %323 = arith.subf %279, %322 : vector<8x32xf32>
    %324 = arith.mulf %315, %323 : vector<8x32xf32>
    %325 = arith.addf %322, %324 : vector<8x32xf32>
    %c8_89 = arith.constant 8 : index
    %c32_90 = arith.constant 32 : index
    %326 = vector.load %arg12[%c8_89, %c32_90] : memref<64x64xf32, #tpu.memory_space<vmem>>, vector<8x32xf32>
    tpu.vector_store %arg12[%c8_89, %c32_90], %325 {strides = array<i32>} : memref<64x64xf32, #tpu.memory_space<vmem>>, vector<8x32xf32>,
    %c56_91 = arith.constant 56 : index
    %c0_92 = arith.constant 0 : index
    %327 = vector.load %arg13[%c56_91, %c0_92] : memref<64x192xf32, #tpu.memory_space<vmem>>, vector<8x96xf32>
    %cst_93 = arith.constant dense<0.000000e+00> : vector<8x96xf32>
    %328 = tpu.matmul %302, %10, %cst_93 {dimension_numbers = #tpu.dot_dimension_numbers<[1], [0], [0], [1], [0, 0, 1, 1], [], []>} : vector<8x32xf32>, vector<32x96xf32>, vector<8x96xf32> -> vector<8x96xf32>
    %329 = vector.extract_strided_slice %327 {offsets = [0, 0], sizes = [8, 64], strides = [1, 1]} : vector<8x96xf32> to vector<8x64xf32>
    %330 = vector.extract_strided_slice %328 {offsets = [0, 0], sizes = [8, 64], strides = [1, 1]} : vector<8x96xf32> to vector<8x64xf32>
    %331 = arith.addf %329, %330 : vector<8x64xf32>
    %332 = arith.negf %331 : vector<8x64xf32>
    %333 = math.exp %332 : vector<8x64xf32>
    %cst_94 = arith.constant 1.000000e+00 : f32
    %334 = vector.broadcast %cst_94 : f32 to vector<8x64xf32>
    %335 = arith.addf %334, %333 : vector<8x64xf32>
    %336 = arith.divf %334, %335 : vector<8x64xf32>
    %337 = vector.extract_strided_slice %336 {offsets = [0, 0], sizes = [8, 32], strides = [1, 1]} : vector<8x64xf32> to vector<8x32xf32>
    %338 = vector.extract_strided_slice %336 {offsets = [0, 32], sizes = [8, 32], strides = [1, 1]} : vector<8x64xf32> to vector<8x32xf32>
    %339 = vector.extract_strided_slice %327 {offsets = [0, 64], sizes = [8, 32], strides = [1, 1]} : vector<8x96xf32> to vector<8x32xf32>
    %340 = vector.extract_strided_slice %328 {offsets = [0, 64], sizes = [8, 32], strides = [1, 1]} : vector<8x96xf32> to vector<8x32xf32>
    %341 = vector.broadcast %15 : vector<1x32xf32> to vector<8x32xf32>
    %342 = arith.addf %340, %341 : vector<8x32xf32>
    %343 = arith.mulf %337, %342 : vector<8x32xf32>
    %344 = arith.addf %339, %343 : vector<8x32xf32>
    %345 = math.tanh %344 : vector<8x32xf32>
    %346 = arith.subf %302, %345 : vector<8x32xf32>
    %347 = arith.mulf %338, %346 : vector<8x32xf32>
    %348 = arith.addf %345, %347 : vector<8x32xf32>
    %c56_95 = arith.constant 56 : index
    %c0_96 = arith.constant 0 : index
    %349 = vector.load %arg12[%c56_95, %c0_96] : memref<64x64xf32, #tpu.memory_space<vmem>>, vector<8x32xf32>
    tpu.vector_store %arg12[%c56_95, %c0_96], %348 {strides = array<i32>} : memref<64x64xf32, #tpu.memory_space<vmem>>, vector<8x32xf32>,
    %c0_97 = arith.constant 0 : index
    %c96_98 = arith.constant 96 : index
    %350 = vector.load %arg13[%c0_97, %c96_98] : memref<64x192xf32, #tpu.memory_space<vmem>>, vector<8x96xf32>
    %cst_99 = arith.constant dense<0.000000e+00> : vector<8x96xf32>
    %351 = tpu.matmul %325, %12, %cst_99 {dimension_numbers = #tpu.dot_dimension_numbers<[1], [0], [0], [1], [0, 0, 1, 1], [], []>} : vector<8x32xf32>, vector<32x96xf32>, vector<8x96xf32> -> vector<8x96xf32>
    %352 = vector.extract_strided_slice %350 {offsets = [0, 0], sizes = [8, 64], strides = [1, 1]} : vector<8x96xf32> to vector<8x64xf32>
    %353 = vector.extract_strided_slice %351 {offsets = [0, 0], sizes = [8, 64], strides = [1, 1]} : vector<8x96xf32> to vector<8x64xf32>
    %354 = arith.addf %352, %353 : vector<8x64xf32>
    %355 = arith.negf %354 : vector<8x64xf32>
    %356 = math.exp %355 : vector<8x64xf32>
    %cst_100 = arith.constant 1.000000e+00 : f32
    %357 = vector.broadcast %cst_100 : f32 to vector<8x64xf32>
    %358 = arith.addf %357, %356 : vector<8x64xf32>
    %359 = arith.divf %357, %358 : vector<8x64xf32>
    %360 = vector.extract_strided_slice %359 {offsets = [0, 0], sizes = [8, 32], strides = [1, 1]} : vector<8x64xf32> to vector<8x32xf32>
    %361 = vector.extract_strided_slice %359 {offsets = [0, 32], sizes = [8, 32], strides = [1, 1]} : vector<8x64xf32> to vector<8x32xf32>
    %362 = vector.extract_strided_slice %350 {offsets = [0, 64], sizes = [8, 32], strides = [1, 1]} : vector<8x96xf32> to vector<8x32xf32>
    %363 = vector.extract_strided_slice %351 {offsets = [0, 64], sizes = [8, 32], strides = [1, 1]} : vector<8x96xf32> to vector<8x32xf32>
    %364 = vector.broadcast %16 : vector<1x32xf32> to vector<8x32xf32>
    %365 = arith.addf %363, %364 : vector<8x32xf32>
    %366 = arith.mulf %360, %365 : vector<8x32xf32>
    %367 = arith.addf %362, %366 : vector<8x32xf32>
    %368 = math.tanh %367 : vector<8x32xf32>
    %369 = arith.subf %325, %368 : vector<8x32xf32>
    %370 = arith.mulf %361, %369 : vector<8x32xf32>
    %371 = arith.addf %368, %370 : vector<8x32xf32>
    %c0_101 = arith.constant 0 : index
    %c32_102 = arith.constant 32 : index
    %372 = vector.load %arg12[%c0_101, %c32_102] : memref<64x64xf32, #tpu.memory_space<vmem>>, vector<8x32xf32>
    tpu.vector_store %arg12[%c0_101, %c32_102], %371 {strides = array<i32>} : memref<64x64xf32, #tpu.memory_space<vmem>>, vector<8x32xf32>,
    %c1_103 = arith.constant 1 : index
    %c0_104 = arith.constant 0 : index
    %c0_105 = arith.constant 0 : index
    %373 = vector.load %arg1[%c1_103, %c0_104, %c0_105] : memref<4x64x192xf32, #tpu.memory_space<vmem>>, vector<1x64x192xf32>
    %374 = vector.shape_cast %373 : vector<1x64x192xf32> to vector<64x192xf32>
    %c0_106 = arith.constant 0 : index
    %c0_107 = arith.constant 0 : index
    %375 = vector.load %arg12[%c0_106, %c0_107] : memref<64x64xf32, #tpu.memory_space<vmem>>, vector<64x64xf32>
    %cst_108 = arith.constant dense<0.000000e+00> : vector<64x192xf32>
    %376 = tpu.matmul %375, %374, %cst_108 {dimension_numbers = #tpu.dot_dimension_numbers<[1], [0], [0], [1], [0, 0, 1, 1], [], []>} : vector<64x64xf32>, vector<64x192xf32>, vector<64x192xf32> -> vector<64x192xf32>
    %c1_109 = arith.constant 1 : index
    %c0_110 = arith.constant 0 : index
    %c0_111 = arith.constant 0 : index
    %377 = vector.load %arg2[%c1_109, %c0_110, %c0_111] : memref<4x1x192xf32, #tpu.memory_space<vmem>>, vector<1x1x192xf32>
    %378 = vector.shape_cast %377 : vector<1x1x192xf32> to vector<1x192xf32>
    %379 = vector.broadcast %378 : vector<1x192xf32> to vector<64x192xf32>
    %380 = arith.addf %376, %379 : vector<64x192xf32>
    %c0_112 = arith.constant 0 : index
    %c0_113 = arith.constant 0 : index
    %381 = vector.load %arg13[%c0_112, %c0_113] : memref<64x192xf32, #tpu.memory_space<vmem>>, vector<64x192xf32>
    tpu.vector_store %arg13[%c0_112, %c0_113], %380 {strides = array<i32>} : memref<64x192xf32, #tpu.memory_space<vmem>>, vector<64x192xf32>,
    %c2 = arith.constant 2 : index
    %c0_114 = arith.constant 0 : index
    %c0_115 = arith.constant 0 : index
    %382 = vector.load %arg3[%c2, %c0_114, %c0_115] : memref<8x32x96xf32, #tpu.memory_space<vmem>>, vector<1x32x96xf32>
    %383 = vector.shape_cast %382 : vector<1x32x96xf32> to vector<32x96xf32>
    %c3 = arith.constant 3 : index
    %c0_116 = arith.constant 0 : index
    %c0_117 = arith.constant 0 : index
    %384 = vector.load %arg3[%c3, %c0_116, %c0_117] : memref<8x32x96xf32, #tpu.memory_space<vmem>>, vector<1x32x96xf32>
    %385 = vector.shape_cast %384 : vector<1x32x96xf32> to vector<32x96xf32>
    %c1_118 = arith.constant 1 : index
    %c0_119 = arith.constant 0 : index
    %c0_120 = arith.constant 0 : index
    %386 = vector.load %arg4[%c1_118, %c0_119, %c0_120] : memref<4x1x64xf32, #tpu.memory_space<vmem>>, vector<1x1x64xf32>
    %387 = vector.shape_cast %386 : vector<1x1x64xf32> to vector<1x64xf32>
    %388 = vector.extract_strided_slice %387 {offsets = [0, 0], sizes = [1, 32], strides = [1, 1]} : vector<1x64xf32> to vector<1x32xf32>
    %389 = vector.extract_strided_slice %387 {offsets = [0, 32], sizes = [1, 32], strides = [1, 1]} : vector<1x64xf32> to vector<1x32xf32>
    %c0_121 = arith.constant 0 : index
    %c0_122 = arith.constant 0 : index
    %390 = vector.load %arg13[%c0_121, %c0_122] : memref<64x192xf32, #tpu.memory_space<vmem>>, vector<8x96xf32>
    %391 = vector.extract_strided_slice %390 {offsets = [0, 0], sizes = [8, 64], strides = [1, 1]} : vector<8x96xf32> to vector<8x64xf32>
    %392 = arith.negf %391 : vector<8x64xf32>
    %393 = math.exp %392 : vector<8x64xf32>
    %cst_123 = arith.constant 1.000000e+00 : f32
    %394 = vector.broadcast %cst_123 : f32 to vector<8x64xf32>
    %395 = arith.addf %394, %393 : vector<8x64xf32>
    %396 = arith.divf %394, %395 : vector<8x64xf32>
    %397 = vector.extract_strided_slice %396 {offsets = [0, 0], sizes = [8, 32], strides = [1, 1]} : vector<8x64xf32> to vector<8x32xf32>
    %398 = vector.extract_strided_slice %396 {offsets = [0, 32], sizes = [8, 32], strides = [1, 1]} : vector<8x64xf32> to vector<8x32xf32>
    %399 = vector.extract_strided_slice %390 {offsets = [0, 64], sizes = [8, 32], strides = [1, 1]} : vector<8x96xf32> to vector<8x32xf32>
    %400 = vector.broadcast %388 : vector<1x32xf32> to vector<8x32xf32>
    %401 = arith.mulf %397, %400 : vector<8x32xf32>
    %402 = arith.addf %399, %401 : vector<8x32xf32>
    %403 = math.tanh %402 : vector<8x32xf32>
    %404 = arith.mulf %398, %403 : vector<8x32xf32>
    %405 = arith.subf %403, %404 : vector<8x32xf32>
    %c0_124 = arith.constant 0 : index
    %c0_125 = arith.constant 0 : index
    %406 = vector.load %arg12[%c0_124, %c0_125] : memref<64x64xf32, #tpu.memory_space<vmem>>, vector<8x32xf32>
    tpu.vector_store %arg12[%c0_124, %c0_125], %405 {strides = array<i32>} : memref<64x64xf32, #tpu.memory_space<vmem>>, vector<8x32xf32>,
    %c56_126 = arith.constant 56 : index
    %c96_127 = arith.constant 96 : index
    %407 = vector.load %arg13[%c56_126, %c96_127] : memref<64x192xf32, #tpu.memory_space<vmem>>, vector<8x96xf32>
    %408 = vector.extract_strided_slice %407 {offsets = [0, 0], sizes = [8, 64], strides = [1, 1]} : vector<8x96xf32> to vector<8x64xf32>
    %409 = arith.negf %408 : vector<8x64xf32>
    %410 = math.exp %409 : vector<8x64xf32>
    %cst_128 = arith.constant 1.000000e+00 : f32
    %411 = vector.broadcast %cst_128 : f32 to vector<8x64xf32>
    %412 = arith.addf %411, %410 : vector<8x64xf32>
    %413 = arith.divf %411, %412 : vector<8x64xf32>
    %414 = vector.extract_strided_slice %413 {offsets = [0, 0], sizes = [8, 32], strides = [1, 1]} : vector<8x64xf32> to vector<8x32xf32>
    %415 = vector.extract_strided_slice %413 {offsets = [0, 32], sizes = [8, 32], strides = [1, 1]} : vector<8x64xf32> to vector<8x32xf32>
    %416 = vector.extract_strided_slice %407 {offsets = [0, 64], sizes = [8, 32], strides = [1, 1]} : vector<8x96xf32> to vector<8x32xf32>
    %417 = vector.broadcast %389 : vector<1x32xf32> to vector<8x32xf32>
    %418 = arith.mulf %414, %417 : vector<8x32xf32>
    %419 = arith.addf %416, %418 : vector<8x32xf32>
    %420 = math.tanh %419 : vector<8x32xf32>
    %421 = arith.mulf %415, %420 : vector<8x32xf32>
    %422 = arith.subf %420, %421 : vector<8x32xf32>
    %c56_129 = arith.constant 56 : index
    %c32_130 = arith.constant 32 : index
    %423 = vector.load %arg12[%c56_129, %c32_130] : memref<64x64xf32, #tpu.memory_space<vmem>>, vector<8x32xf32>
    tpu.vector_store %arg12[%c56_129, %c32_130], %422 {strides = array<i32>} : memref<64x64xf32, #tpu.memory_space<vmem>>, vector<8x32xf32>,
    %c8_131 = arith.constant 8 : index
    %c0_132 = arith.constant 0 : index
    %424 = vector.load %arg13[%c8_131, %c0_132] : memref<64x192xf32, #tpu.memory_space<vmem>>, vector<8x96xf32>
    %cst_133 = arith.constant dense<0.000000e+00> : vector<8x96xf32>
    %425 = tpu.matmul %405, %383, %cst_133 {dimension_numbers = #tpu.dot_dimension_numbers<[1], [0], [0], [1], [0, 0, 1, 1], [], []>} : vector<8x32xf32>, vector<32x96xf32>, vector<8x96xf32> -> vector<8x96xf32>
    %426 = vector.extract_strided_slice %424 {offsets = [0, 0], sizes = [8, 64], strides = [1, 1]} : vector<8x96xf32> to vector<8x64xf32>
    %427 = vector.extract_strided_slice %425 {offsets = [0, 0], sizes = [8, 64], strides = [1, 1]} : vector<8x96xf32> to vector<8x64xf32>
    %428 = arith.addf %426, %427 : vector<8x64xf32>
    %429 = arith.negf %428 : vector<8x64xf32>
    %430 = math.exp %429 : vector<8x64xf32>
    %cst_134 = arith.constant 1.000000e+00 : f32
    %431 = vector.broadcast %cst_134 : f32 to vector<8x64xf32>
    %432 = arith.addf %431, %430 : vector<8x64xf32>
    %433 = arith.divf %431, %432 : vector<8x64xf32>
    %434 = vector.extract_strided_slice %433 {offsets = [0, 0], sizes = [8, 32], strides = [1, 1]} : vector<8x64xf32> to vector<8x32xf32>
    %435 = vector.extract_strided_slice %433 {offsets = [0, 32], sizes = [8, 32], strides = [1, 1]} : vector<8x64xf32> to vector<8x32xf32>
    %436 = vector.extract_strided_slice %424 {offsets = [0, 64], sizes = [8, 32], strides = [1, 1]} : vector<8x96xf32> to vector<8x32xf32>
    %437 = vector.extract_strided_slice %425 {offsets = [0, 64], sizes = [8, 32], strides = [1, 1]} : vector<8x96xf32> to vector<8x32xf32>
    %438 = vector.broadcast %388 : vector<1x32xf32> to vector<8x32xf32>
    %439 = arith.addf %437, %438 : vector<8x32xf32>
    %440 = arith.mulf %434, %439 : vector<8x32xf32>
    %441 = arith.addf %436, %440 : vector<8x32xf32>
    %442 = math.tanh %441 : vector<8x32xf32>
    %443 = arith.subf %405, %442 : vector<8x32xf32>
    %444 = arith.mulf %435, %443 : vector<8x32xf32>
    %445 = arith.addf %442, %444 : vector<8x32xf32>
    %c8_135 = arith.constant 8 : index
    %c0_136 = arith.constant 0 : index
    %446 = vector.load %arg12[%c8_135, %c0_136] : memref<64x64xf32, #tpu.memory_space<vmem>>, vector<8x32xf32>
    tpu.vector_store %arg12[%c8_135, %c0_136], %445 {strides = array<i32>} : memref<64x64xf32, #tpu.memory_space<vmem>>, vector<8x32xf32>,
    %c48_137 = arith.constant 48 : index
    %c96_138 = arith.constant 96 : index
    %447 = vector.load %arg13[%c48_137, %c96_138] : memref<64x192xf32, #tpu.memory_space<vmem>>, vector<8x96xf32>
    %cst_139 = arith.constant dense<0.000000e+00> : vector<8x96xf32>
    %448 = tpu.matmul %422, %385, %cst_139 {dimension_numbers = #tpu.dot_dimension_numbers<[1], [0], [0], [1], [0, 0, 1, 1], [], []>} : vector<8x32xf32>, vector<32x96xf32>, vector<8x96xf32> -> vector<8x96xf32>
    %449 = vector.extract_strided_slice %447 {offsets = [0, 0], sizes = [8, 64], strides = [1, 1]} : vector<8x96xf32> to vector<8x64xf32>
    %450 = vector.extract_strided_slice %448 {offsets = [0, 0], sizes = [8, 64], strides = [1, 1]} : vector<8x96xf32> to vector<8x64xf32>
    %451 = arith.addf %449, %450 : vector<8x64xf32>
    %452 = arith.negf %451 : vector<8x64xf32>
    %453 = math.exp %452 : vector<8x64xf32>
    %cst_140 = arith.constant 1.000000e+00 : f32
    %454 = vector.broadcast %cst_140 : f32 to vector<8x64xf32>
    %455 = arith.addf %454, %453 : vector<8x64xf32>
    %456 = arith.divf %454, %455 : vector<8x64xf32>
    %457 = vector.extract_strided_slice %456 {offsets = [0, 0], sizes = [8, 32], strides = [1, 1]} : vector<8x64xf32> to vector<8x32xf32>
    %458 = vector.extract_strided_slice %456 {offsets = [0, 32], sizes = [8, 32], strides = [1, 1]} : vector<8x64xf32> to vector<8x32xf32>
    %459 = vector.extract_strided_slice %447 {offsets = [0, 64], sizes = [8, 32], strides = [1, 1]} : vector<8x96xf32> to vector<8x32xf32>
    %460 = vector.extract_strided_slice %448 {offsets = [0, 64], sizes = [8, 32], strides = [1, 1]} : vector<8x96xf32> to vector<8x32xf32>
    %461 = vector.broadcast %389 : vector<1x32xf32> to vector<8x32xf32>
    %462 = arith.addf %460, %461 : vector<8x32xf32>
    %463 = arith.mulf %457, %462 : vector<8x32xf32>
    %464 = arith.addf %459, %463 : vector<8x32xf32>
    %465 = math.tanh %464 : vector<8x32xf32>
    %466 = arith.subf %422, %465 : vector<8x32xf32>
    %467 = arith.mulf %458, %466 : vector<8x32xf32>
    %468 = arith.addf %465, %467 : vector<8x32xf32>
    %c48_141 = arith.constant 48 : index
    %c32_142 = arith.constant 32 : index
    %469 = vector.load %arg12[%c48_141, %c32_142] : memref<64x64xf32, #tpu.memory_space<vmem>>, vector<8x32xf32>
    tpu.vector_store %arg12[%c48_141, %c32_142], %468 {strides = array<i32>} : memref<64x64xf32, #tpu.memory_space<vmem>>, vector<8x32xf32>,
    %c16_143 = arith.constant 16 : index
    %c0_144 = arith.constant 0 : index
    %470 = vector.load %arg13[%c16_143, %c0_144] : memref<64x192xf32, #tpu.memory_space<vmem>>, vector<8x96xf32>
    %cst_145 = arith.constant dense<0.000000e+00> : vector<8x96xf32>
    %471 = tpu.matmul %445, %383, %cst_145 {dimension_numbers = #tpu.dot_dimension_numbers<[1], [0], [0], [1], [0, 0, 1, 1], [], []>} : vector<8x32xf32>, vector<32x96xf32>, vector<8x96xf32> -> vector<8x96xf32>
    %472 = vector.extract_strided_slice %470 {offsets = [0, 0], sizes = [8, 64], strides = [1, 1]} : vector<8x96xf32> to vector<8x64xf32>
    %473 = vector.extract_strided_slice %471 {offsets = [0, 0], sizes = [8, 64], strides = [1, 1]} : vector<8x96xf32> to vector<8x64xf32>
    %474 = arith.addf %472, %473 : vector<8x64xf32>
    %475 = arith.negf %474 : vector<8x64xf32>
    %476 = math.exp %475 : vector<8x64xf32>
    %cst_146 = arith.constant 1.000000e+00 : f32
    %477 = vector.broadcast %cst_146 : f32 to vector<8x64xf32>
    %478 = arith.addf %477, %476 : vector<8x64xf32>
    %479 = arith.divf %477, %478 : vector<8x64xf32>
    %480 = vector.extract_strided_slice %479 {offsets = [0, 0], sizes = [8, 32], strides = [1, 1]} : vector<8x64xf32> to vector<8x32xf32>
    %481 = vector.extract_strided_slice %479 {offsets = [0, 32], sizes = [8, 32], strides = [1, 1]} : vector<8x64xf32> to vector<8x32xf32>
    %482 = vector.extract_strided_slice %470 {offsets = [0, 64], sizes = [8, 32], strides = [1, 1]} : vector<8x96xf32> to vector<8x32xf32>
    %483 = vector.extract_strided_slice %471 {offsets = [0, 64], sizes = [8, 32], strides = [1, 1]} : vector<8x96xf32> to vector<8x32xf32>
    %484 = vector.broadcast %388 : vector<1x32xf32> to vector<8x32xf32>
    %485 = arith.addf %483, %484 : vector<8x32xf32>
    %486 = arith.mulf %480, %485 : vector<8x32xf32>
    %487 = arith.addf %482, %486 : vector<8x32xf32>
    %488 = math.tanh %487 : vector<8x32xf32>
    %489 = arith.subf %445, %488 : vector<8x32xf32>
    %490 = arith.mulf %481, %489 : vector<8x32xf32>
    %491 = arith.addf %488, %490 : vector<8x32xf32>
    %c16_147 = arith.constant 16 : index
    %c0_148 = arith.constant 0 : index
    %492 = vector.load %arg12[%c16_147, %c0_148] : memref<64x64xf32, #tpu.memory_space<vmem>>, vector<8x32xf32>
    tpu.vector_store %arg12[%c16_147, %c0_148], %491 {strides = array<i32>} : memref<64x64xf32, #tpu.memory_space<vmem>>, vector<8x32xf32>,
    %c40_149 = arith.constant 40 : index
    %c96_150 = arith.constant 96 : index
    %493 = vector.load %arg13[%c40_149, %c96_150] : memref<64x192xf32, #tpu.memory_space<vmem>>, vector<8x96xf32>
    %cst_151 = arith.constant dense<0.000000e+00> : vector<8x96xf32>
    %494 = tpu.matmul %468, %385, %cst_151 {dimension_numbers = #tpu.dot_dimension_numbers<[1], [0], [0], [1], [0, 0, 1, 1], [], []>} : vector<8x32xf32>, vector<32x96xf32>, vector<8x96xf32> -> vector<8x96xf32>
    %495 = vector.extract_strided_slice %493 {offsets = [0, 0], sizes = [8, 64], strides = [1, 1]} : vector<8x96xf32> to vector<8x64xf32>
    %496 = vector.extract_strided_slice %494 {offsets = [0, 0], sizes = [8, 64], strides = [1, 1]} : vector<8x96xf32> to vector<8x64xf32>
    %497 = arith.addf %495, %496 : vector<8x64xf32>
    %498 = arith.negf %497 : vector<8x64xf32>
    %499 = math.exp %498 : vector<8x64xf32>
    %cst_152 = arith.constant 1.000000e+00 : f32
    %500 = vector.broadcast %cst_152 : f32 to vector<8x64xf32>
    %501 = arith.addf %500, %499 : vector<8x64xf32>
    %502 = arith.divf %500, %501 : vector<8x64xf32>
    %503 = vector.extract_strided_slice %502 {offsets = [0, 0], sizes = [8, 32], strides = [1, 1]} : vector<8x64xf32> to vector<8x32xf32>
    %504 = vector.extract_strided_slice %502 {offsets = [0, 32], sizes = [8, 32], strides = [1, 1]} : vector<8x64xf32> to vector<8x32xf32>
    %505 = vector.extract_strided_slice %493 {offsets = [0, 64], sizes = [8, 32], strides = [1, 1]} : vector<8x96xf32> to vector<8x32xf32>
    %506 = vector.extract_strided_slice %494 {offsets = [0, 64], sizes = [8, 32], strides = [1, 1]} : vector<8x96xf32> to vector<8x32xf32>
    %507 = vector.broadcast %389 : vector<1x32xf32> to vector<8x32xf32>
    %508 = arith.addf %506, %507 : vector<8x32xf32>
    %509 = arith.mulf %503, %508 : vector<8x32xf32>
    %510 = arith.addf %505, %509 : vector<8x32xf32>
    %511 = math.tanh %510 : vector<8x32xf32>
    %512 = arith.subf %468, %511 : vector<8x32xf32>
    %513 = arith.mulf %504, %512 : vector<8x32xf32>
    %514 = arith.addf %511, %513 : vector<8x32xf32>
    %c40_153 = arith.constant 40 : index
    %c32_154 = arith.constant 32 : index
    %515 = vector.load %arg12[%c40_153, %c32_154] : memref<64x64xf32, #tpu.memory_space<vmem>>, vector<8x32xf32>
    tpu.vector_store %arg12[%c40_153, %c32_154], %514 {strides = array<i32>} : memref<64x64xf32, #tpu.memory_space<vmem>>, vector<8x32xf32>,
    %c24_155 = arith.constant 24 : index
    %c0_156 = arith.constant 0 : index
    %516 = vector.load %arg13[%c24_155, %c0_156] : memref<64x192xf32, #tpu.memory_space<vmem>>, vector<8x96xf32>
    %cst_157 = arith.constant dense<0.000000e+00> : vector<8x96xf32>
    %517 = tpu.matmul %491, %383, %cst_157 {dimension_numbers = #tpu.dot_dimension_numbers<[1], [0], [0], [1], [0, 0, 1, 1], [], []>} : vector<8x32xf32>, vector<32x96xf32>, vector<8x96xf32> -> vector<8x96xf32>
    %518 = vector.extract_strided_slice %516 {offsets = [0, 0], sizes = [8, 64], strides = [1, 1]} : vector<8x96xf32> to vector<8x64xf32>
    %519 = vector.extract_strided_slice %517 {offsets = [0, 0], sizes = [8, 64], strides = [1, 1]} : vector<8x96xf32> to vector<8x64xf32>
    %520 = arith.addf %518, %519 : vector<8x64xf32>
    %521 = arith.negf %520 : vector<8x64xf32>
    %522 = math.exp %521 : vector<8x64xf32>
    %cst_158 = arith.constant 1.000000e+00 : f32
    %523 = vector.broadcast %cst_158 : f32 to vector<8x64xf32>
    %524 = arith.addf %523, %522 : vector<8x64xf32>
    %525 = arith.divf %523, %524 : vector<8x64xf32>
    %526 = vector.extract_strided_slice %525 {offsets = [0, 0], sizes = [8, 32], strides = [1, 1]} : vector<8x64xf32> to vector<8x32xf32>
    %527 = vector.extract_strided_slice %525 {offsets = [0, 32], sizes = [8, 32], strides = [1, 1]} : vector<8x64xf32> to vector<8x32xf32>
    %528 = vector.extract_strided_slice %516 {offsets = [0, 64], sizes = [8, 32], strides = [1, 1]} : vector<8x96xf32> to vector<8x32xf32>
    %529 = vector.extract_strided_slice %517 {offsets = [0, 64], sizes = [8, 32], strides = [1, 1]} : vector<8x96xf32> to vector<8x32xf32>
    %530 = vector.broadcast %388 : vector<1x32xf32> to vector<8x32xf32>
    %531 = arith.addf %529, %530 : vector<8x32xf32>
    %532 = arith.mulf %526, %531 : vector<8x32xf32>
    %533 = arith.addf %528, %532 : vector<8x32xf32>
    %534 = math.tanh %533 : vector<8x32xf32>
    %535 = arith.subf %491, %534 : vector<8x32xf32>
    %536 = arith.mulf %527, %535 : vector<8x32xf32>
    %537 = arith.addf %534, %536 : vector<8x32xf32>
    %c24_159 = arith.constant 24 : index
    %c0_160 = arith.constant 0 : index
    %538 = vector.load %arg12[%c24_159, %c0_160] : memref<64x64xf32, #tpu.memory_space<vmem>>, vector<8x32xf32>
    tpu.vector_store %arg12[%c24_159, %c0_160], %537 {strides = array<i32>} : memref<64x64xf32, #tpu.memory_space<vmem>>, vector<8x32xf32>,
    %c32_161 = arith.constant 32 : index
    %c96_162 = arith.constant 96 : index
    %539 = vector.load %arg13[%c32_161, %c96_162] : memref<64x192xf32, #tpu.memory_space<vmem>>, vector<8x96xf32>
    %cst_163 = arith.constant dense<0.000000e+00> : vector<8x96xf32>
    %540 = tpu.matmul %514, %385, %cst_163 {dimension_numbers = #tpu.dot_dimension_numbers<[1], [0], [0], [1], [0, 0, 1, 1], [], []>} : vector<8x32xf32>, vector<32x96xf32>, vector<8x96xf32> -> vector<8x96xf32>
    %541 = vector.extract_strided_slice %539 {offsets = [0, 0], sizes = [8, 64], strides = [1, 1]} : vector<8x96xf32> to vector<8x64xf32>
    %542 = vector.extract_strided_slice %540 {offsets = [0, 0], sizes = [8, 64], strides = [1, 1]} : vector<8x96xf32> to vector<8x64xf32>
    %543 = arith.addf %541, %542 : vector<8x64xf32>
    %544 = arith.negf %543 : vector<8x64xf32>
    %545 = math.exp %544 : vector<8x64xf32>
    %cst_164 = arith.constant 1.000000e+00 : f32
    %546 = vector.broadcast %cst_164 : f32 to vector<8x64xf32>
    %547 = arith.addf %546, %545 : vector<8x64xf32>
    %548 = arith.divf %546, %547 : vector<8x64xf32>
    %549 = vector.extract_strided_slice %548 {offsets = [0, 0], sizes = [8, 32], strides = [1, 1]} : vector<8x64xf32> to vector<8x32xf32>
    %550 = vector.extract_strided_slice %548 {offsets = [0, 32], sizes = [8, 32], strides = [1, 1]} : vector<8x64xf32> to vector<8x32xf32>
    %551 = vector.extract_strided_slice %539 {offsets = [0, 64], sizes = [8, 32], strides = [1, 1]} : vector<8x96xf32> to vector<8x32xf32>
    %552 = vector.extract_strided_slice %540 {offsets = [0, 64], sizes = [8, 32], strides = [1, 1]} : vector<8x96xf32> to vector<8x32xf32>
    %553 = vector.broadcast %389 : vector<1x32xf32> to vector<8x32xf32>
    %554 = arith.addf %552, %553 : vector<8x32xf32>
    %555 = arith.mulf %549, %554 : vector<8x32xf32>
    %556 = arith.addf %551, %555 : vector<8x32xf32>
    %557 = math.tanh %556 : vector<8x32xf32>
    %558 = arith.subf %514, %557 : vector<8x32xf32>
    %559 = arith.mulf %550, %558 : vector<8x32xf32>
    %560 = arith.addf %557, %559 : vector<8x32xf32>
    %c32_165 = arith.constant 32 : index
    %c32_166 = arith.constant 32 : index
    %561 = vector.load %arg12[%c32_165, %c32_166] : memref<64x64xf32, #tpu.memory_space<vmem>>, vector<8x32xf32>
    tpu.vector_store %arg12[%c32_165, %c32_166], %560 {strides = array<i32>} : memref<64x64xf32, #tpu.memory_space<vmem>>, vector<8x32xf32>,
    %c32_167 = arith.constant 32 : index
    %c0_168 = arith.constant 0 : index
    %562 = vector.load %arg13[%c32_167, %c0_168] : memref<64x192xf32, #tpu.memory_space<vmem>>, vector<8x96xf32>
    %cst_169 = arith.constant dense<0.000000e+00> : vector<8x96xf32>
    %563 = tpu.matmul %537, %383, %cst_169 {dimension_numbers = #tpu.dot_dimension_numbers<[1], [0], [0], [1], [0, 0, 1, 1], [], []>} : vector<8x32xf32>, vector<32x96xf32>, vector<8x96xf32> -> vector<8x96xf32>
    %564 = vector.extract_strided_slice %562 {offsets = [0, 0], sizes = [8, 64], strides = [1, 1]} : vector<8x96xf32> to vector<8x64xf32>
    %565 = vector.extract_strided_slice %563 {offsets = [0, 0], sizes = [8, 64], strides = [1, 1]} : vector<8x96xf32> to vector<8x64xf32>
    %566 = arith.addf %564, %565 : vector<8x64xf32>
    %567 = arith.negf %566 : vector<8x64xf32>
    %568 = math.exp %567 : vector<8x64xf32>
    %cst_170 = arith.constant 1.000000e+00 : f32
    %569 = vector.broadcast %cst_170 : f32 to vector<8x64xf32>
    %570 = arith.addf %569, %568 : vector<8x64xf32>
    %571 = arith.divf %569, %570 : vector<8x64xf32>
    %572 = vector.extract_strided_slice %571 {offsets = [0, 0], sizes = [8, 32], strides = [1, 1]} : vector<8x64xf32> to vector<8x32xf32>
    %573 = vector.extract_strided_slice %571 {offsets = [0, 32], sizes = [8, 32], strides = [1, 1]} : vector<8x64xf32> to vector<8x32xf32>
    %574 = vector.extract_strided_slice %562 {offsets = [0, 64], sizes = [8, 32], strides = [1, 1]} : vector<8x96xf32> to vector<8x32xf32>
    %575 = vector.extract_strided_slice %563 {offsets = [0, 64], sizes = [8, 32], strides = [1, 1]} : vector<8x96xf32> to vector<8x32xf32>
    %576 = vector.broadcast %388 : vector<1x32xf32> to vector<8x32xf32>
    %577 = arith.addf %575, %576 : vector<8x32xf32>
    %578 = arith.mulf %572, %577 : vector<8x32xf32>
    %579 = arith.addf %574, %578 : vector<8x32xf32>
    %580 = math.tanh %579 : vector<8x32xf32>
    %581 = arith.subf %537, %580 : vector<8x32xf32>
    %582 = arith.mulf %573, %581 : vector<8x32xf32>
    %583 = arith.addf %580, %582 : vector<8x32xf32>
    %c32_171 = arith.constant 32 : index
    %c0_172 = arith.constant 0 : index
    %584 = vector.load %arg12[%c32_171, %c0_172] : memref<64x64xf32, #tpu.memory_space<vmem>>, vector<8x32xf32>
    tpu.vector_store %arg12[%c32_171, %c0_172], %583 {strides = array<i32>} : memref<64x64xf32, #tpu.memory_space<vmem>>, vector<8x32xf32>,
    %c24_173 = arith.constant 24 : index
    %c96_174 = arith.constant 96 : index
    %585 = vector.load %arg13[%c24_173, %c96_174] : memref<64x192xf32, #tpu.memory_space<vmem>>, vector<8x96xf32>
    %cst_175 = arith.constant dense<0.000000e+00> : vector<8x96xf32>
    %586 = tpu.matmul %560, %385, %cst_175 {dimension_numbers = #tpu.dot_dimension_numbers<[1], [0], [0], [1], [0, 0, 1, 1], [], []>} : vector<8x32xf32>, vector<32x96xf32>, vector<8x96xf32> -> vector<8x96xf32>
    %587 = vector.extract_strided_slice %585 {offsets = [0, 0], sizes = [8, 64], strides = [1, 1]} : vector<8x96xf32> to vector<8x64xf32>
    %588 = vector.extract_strided_slice %586 {offsets = [0, 0], sizes = [8, 64], strides = [1, 1]} : vector<8x96xf32> to vector<8x64xf32>
    %589 = arith.addf %587, %588 : vector<8x64xf32>
    %590 = arith.negf %589 : vector<8x64xf32>
    %591 = math.exp %590 : vector<8x64xf32>
    %cst_176 = arith.constant 1.000000e+00 : f32
    %592 = vector.broadcast %cst_176 : f32 to vector<8x64xf32>
    %593 = arith.addf %592, %591 : vector<8x64xf32>
    %594 = arith.divf %592, %593 : vector<8x64xf32>
    %595 = vector.extract_strided_slice %594 {offsets = [0, 0], sizes = [8, 32], strides = [1, 1]} : vector<8x64xf32> to vector<8x32xf32>
    %596 = vector.extract_strided_slice %594 {offsets = [0, 32], sizes = [8, 32], strides = [1, 1]} : vector<8x64xf32> to vector<8x32xf32>
    %597 = vector.extract_strided_slice %585 {offsets = [0, 64], sizes = [8, 32], strides = [1, 1]} : vector<8x96xf32> to vector<8x32xf32>
    %598 = vector.extract_strided_slice %586 {offsets = [0, 64], sizes = [8, 32], strides = [1, 1]} : vector<8x96xf32> to vector<8x32xf32>
    %599 = vector.broadcast %389 : vector<1x32xf32> to vector<8x32xf32>
    %600 = arith.addf %598, %599 : vector<8x32xf32>
    %601 = arith.mulf %595, %600 : vector<8x32xf32>
    %602 = arith.addf %597, %601 : vector<8x32xf32>
    %603 = math.tanh %602 : vector<8x32xf32>
    %604 = arith.subf %560, %603 : vector<8x32xf32>
    %605 = arith.mulf %596, %604 : vector<8x32xf32>
    %606 = arith.addf %603, %605 : vector<8x32xf32>
    %c24_177 = arith.constant 24 : index
    %c32_178 = arith.constant 32 : index
    %607 = vector.load %arg12[%c24_177, %c32_178] : memref<64x64xf32, #tpu.memory_space<vmem>>, vector<8x32xf32>
    tpu.vector_store %arg12[%c24_177, %c32_178], %606 {strides = array<i32>} : memref<64x64xf32, #tpu.memory_space<vmem>>, vector<8x32xf32>,
    %c40_179 = arith.constant 40 : index
    %c0_180 = arith.constant 0 : index
    %608 = vector.load %arg13[%c40_179, %c0_180] : memref<64x192xf32, #tpu.memory_space<vmem>>, vector<8x96xf32>
    %cst_181 = arith.constant dense<0.000000e+00> : vector<8x96xf32>
    %609 = tpu.matmul %583, %383, %cst_181 {dimension_numbers = #tpu.dot_dimension_numbers<[1], [0], [0], [1], [0, 0, 1, 1], [], []>} : vector<8x32xf32>, vector<32x96xf32>, vector<8x96xf32> -> vector<8x96xf32>
    %610 = vector.extract_strided_slice %608 {offsets = [0, 0], sizes = [8, 64], strides = [1, 1]} : vector<8x96xf32> to vector<8x64xf32>
    %611 = vector.extract_strided_slice %609 {offsets = [0, 0], sizes = [8, 64], strides = [1, 1]} : vector<8x96xf32> to vector<8x64xf32>
    %612 = arith.addf %610, %611 : vector<8x64xf32>
    %613 = arith.negf %612 : vector<8x64xf32>
    %614 = math.exp %613 : vector<8x64xf32>
    %cst_182 = arith.constant 1.000000e+00 : f32
    %615 = vector.broadcast %cst_182 : f32 to vector<8x64xf32>
    %616 = arith.addf %615, %614 : vector<8x64xf32>
    %617 = arith.divf %615, %616 : vector<8x64xf32>
    %618 = vector.extract_strided_slice %617 {offsets = [0, 0], sizes = [8, 32], strides = [1, 1]} : vector<8x64xf32> to vector<8x32xf32>
    %619 = vector.extract_strided_slice %617 {offsets = [0, 32], sizes = [8, 32], strides = [1, 1]} : vector<8x64xf32> to vector<8x32xf32>
    %620 = vector.extract_strided_slice %608 {offsets = [0, 64], sizes = [8, 32], strides = [1, 1]} : vector<8x96xf32> to vector<8x32xf32>
    %621 = vector.extract_strided_slice %609 {offsets = [0, 64], sizes = [8, 32], strides = [1, 1]} : vector<8x96xf32> to vector<8x32xf32>
    %622 = vector.broadcast %388 : vector<1x32xf32> to vector<8x32xf32>
    %623 = arith.addf %621, %622 : vector<8x32xf32>
    %624 = arith.mulf %618, %623 : vector<8x32xf32>
    %625 = arith.addf %620, %624 : vector<8x32xf32>
    %626 = math.tanh %625 : vector<8x32xf32>
    %627 = arith.subf %583, %626 : vector<8x32xf32>
    %628 = arith.mulf %619, %627 : vector<8x32xf32>
    %629 = arith.addf %626, %628 : vector<8x32xf32>
    %c40_183 = arith.constant 40 : index
    %c0_184 = arith.constant 0 : index
    %630 = vector.load %arg12[%c40_183, %c0_184] : memref<64x64xf32, #tpu.memory_space<vmem>>, vector<8x32xf32>
    tpu.vector_store %arg12[%c40_183, %c0_184], %629 {strides = array<i32>} : memref<64x64xf32, #tpu.memory_space<vmem>>, vector<8x32xf32>,
    %c16_185 = arith.constant 16 : index
    %c96_186 = arith.constant 96 : index
    %631 = vector.load %arg13[%c16_185, %c96_186] : memref<64x192xf32, #tpu.memory_space<vmem>>, vector<8x96xf32>
    %cst_187 = arith.constant dense<0.000000e+00> : vector<8x96xf32>
    %632 = tpu.matmul %606, %385, %cst_187 {dimension_numbers = #tpu.dot_dimension_numbers<[1], [0], [0], [1], [0, 0, 1, 1], [], []>} : vector<8x32xf32>, vector<32x96xf32>, vector<8x96xf32> -> vector<8x96xf32>
    %633 = vector.extract_strided_slice %631 {offsets = [0, 0], sizes = [8, 64], strides = [1, 1]} : vector<8x96xf32> to vector<8x64xf32>
    %634 = vector.extract_strided_slice %632 {offsets = [0, 0], sizes = [8, 64], strides = [1, 1]} : vector<8x96xf32> to vector<8x64xf32>
    %635 = arith.addf %633, %634 : vector<8x64xf32>
    %636 = arith.negf %635 : vector<8x64xf32>
    %637 = math.exp %636 : vector<8x64xf32>
    %cst_188 = arith.constant 1.000000e+00 : f32
    %638 = vector.broadcast %cst_188 : f32 to vector<8x64xf32>
    %639 = arith.addf %638, %637 : vector<8x64xf32>
    %640 = arith.divf %638, %639 : vector<8x64xf32>
    %641 = vector.extract_strided_slice %640 {offsets = [0, 0], sizes = [8, 32], strides = [1, 1]} : vector<8x64xf32> to vector<8x32xf32>
    %642 = vector.extract_strided_slice %640 {offsets = [0, 32], sizes = [8, 32], strides = [1, 1]} : vector<8x64xf32> to vector<8x32xf32>
    %643 = vector.extract_strided_slice %631 {offsets = [0, 64], sizes = [8, 32], strides = [1, 1]} : vector<8x96xf32> to vector<8x32xf32>
    %644 = vector.extract_strided_slice %632 {offsets = [0, 64], sizes = [8, 32], strides = [1, 1]} : vector<8x96xf32> to vector<8x32xf32>
    %645 = vector.broadcast %389 : vector<1x32xf32> to vector<8x32xf32>
    %646 = arith.addf %644, %645 : vector<8x32xf32>
    %647 = arith.mulf %641, %646 : vector<8x32xf32>
    %648 = arith.addf %643, %647 : vector<8x32xf32>
    %649 = math.tanh %648 : vector<8x32xf32>
    %650 = arith.subf %606, %649 : vector<8x32xf32>
    %651 = arith.mulf %642, %650 : vector<8x32xf32>
    %652 = arith.addf %649, %651 : vector<8x32xf32>
    %c16_189 = arith.constant 16 : index
    %c32_190 = arith.constant 32 : index
    %653 = vector.load %arg12[%c16_189, %c32_190] : memref<64x64xf32, #tpu.memory_space<vmem>>, vector<8x32xf32>
    tpu.vector_store %arg12[%c16_189, %c32_190], %652 {strides = array<i32>} : memref<64x64xf32, #tpu.memory_space<vmem>>, vector<8x32xf32>,
    %c48_191 = arith.constant 48 : index
    %c0_192 = arith.constant 0 : index
    %654 = vector.load %arg13[%c48_191, %c0_192] : memref<64x192xf32, #tpu.memory_space<vmem>>, vector<8x96xf32>
    %cst_193 = arith.constant dense<0.000000e+00> : vector<8x96xf32>
    %655 = tpu.matmul %629, %383, %cst_193 {dimension_numbers = #tpu.dot_dimension_numbers<[1], [0], [0], [1], [0, 0, 1, 1], [], []>} : vector<8x32xf32>, vector<32x96xf32>, vector<8x96xf32> -> vector<8x96xf32>
    %656 = vector.extract_strided_slice %654 {offsets = [0, 0], sizes = [8, 64], strides = [1, 1]} : vector<8x96xf32> to vector<8x64xf32>
    %657 = vector.extract_strided_slice %655 {offsets = [0, 0], sizes = [8, 64], strides = [1, 1]} : vector<8x96xf32> to vector<8x64xf32>
    %658 = arith.addf %656, %657 : vector<8x64xf32>
    %659 = arith.negf %658 : vector<8x64xf32>
    %660 = math.exp %659 : vector<8x64xf32>
    %cst_194 = arith.constant 1.000000e+00 : f32
    %661 = vector.broadcast %cst_194 : f32 to vector<8x64xf32>
    %662 = arith.addf %661, %660 : vector<8x64xf32>
    %663 = arith.divf %661, %662 : vector<8x64xf32>
    %664 = vector.extract_strided_slice %663 {offsets = [0, 0], sizes = [8, 32], strides = [1, 1]} : vector<8x64xf32> to vector<8x32xf32>
    %665 = vector.extract_strided_slice %663 {offsets = [0, 32], sizes = [8, 32], strides = [1, 1]} : vector<8x64xf32> to vector<8x32xf32>
    %666 = vector.extract_strided_slice %654 {offsets = [0, 64], sizes = [8, 32], strides = [1, 1]} : vector<8x96xf32> to vector<8x32xf32>
    %667 = vector.extract_strided_slice %655 {offsets = [0, 64], sizes = [8, 32], strides = [1, 1]} : vector<8x96xf32> to vector<8x32xf32>
    %668 = vector.broadcast %388 : vector<1x32xf32> to vector<8x32xf32>
    %669 = arith.addf %667, %668 : vector<8x32xf32>
    %670 = arith.mulf %664, %669 : vector<8x32xf32>
    %671 = arith.addf %666, %670 : vector<8x32xf32>
    %672 = math.tanh %671 : vector<8x32xf32>
    %673 = arith.subf %629, %672 : vector<8x32xf32>
    %674 = arith.mulf %665, %673 : vector<8x32xf32>
    %675 = arith.addf %672, %674 : vector<8x32xf32>
    %c48_195 = arith.constant 48 : index
    %c0_196 = arith.constant 0 : index
    %676 = vector.load %arg12[%c48_195, %c0_196] : memref<64x64xf32, #tpu.memory_space<vmem>>, vector<8x32xf32>
    tpu.vector_store %arg12[%c48_195, %c0_196], %675 {strides = array<i32>} : memref<64x64xf32, #tpu.memory_space<vmem>>, vector<8x32xf32>,
    %c8_197 = arith.constant 8 : index
    %c96_198 = arith.constant 96 : index
    %677 = vector.load %arg13[%c8_197, %c96_198] : memref<64x192xf32, #tpu.memory_space<vmem>>, vector<8x96xf32>
    %cst_199 = arith.constant dense<0.000000e+00> : vector<8x96xf32>
    %678 = tpu.matmul %652, %385, %cst_199 {dimension_numbers = #tpu.dot_dimension_numbers<[1], [0], [0], [1], [0, 0, 1, 1], [], []>} : vector<8x32xf32>, vector<32x96xf32>, vector<8x96xf32> -> vector<8x96xf32>
    %679 = vector.extract_strided_slice %677 {offsets = [0, 0], sizes = [8, 64], strides = [1, 1]} : vector<8x96xf32> to vector<8x64xf32>
    %680 = vector.extract_strided_slice %678 {offsets = [0, 0], sizes = [8, 64], strides = [1, 1]} : vector<8x96xf32> to vector<8x64xf32>
    %681 = arith.addf %679, %680 : vector<8x64xf32>
    %682 = arith.negf %681 : vector<8x64xf32>
    %683 = math.exp %682 : vector<8x64xf32>
    %cst_200 = arith.constant 1.000000e+00 : f32
    %684 = vector.broadcast %cst_200 : f32 to vector<8x64xf32>
    %685 = arith.addf %684, %683 : vector<8x64xf32>
    %686 = arith.divf %684, %685 : vector<8x64xf32>
    %687 = vector.extract_strided_slice %686 {offsets = [0, 0], sizes = [8, 32], strides = [1, 1]} : vector<8x64xf32> to vector<8x32xf32>
    %688 = vector.extract_strided_slice %686 {offsets = [0, 32], sizes = [8, 32], strides = [1, 1]} : vector<8x64xf32> to vector<8x32xf32>
    %689 = vector.extract_strided_slice %677 {offsets = [0, 64], sizes = [8, 32], strides = [1, 1]} : vector<8x96xf32> to vector<8x32xf32>
    %690 = vector.extract_strided_slice %678 {offsets = [0, 64], sizes = [8, 32], strides = [1, 1]} : vector<8x96xf32> to vector<8x32xf32>
    %691 = vector.broadcast %389 : vector<1x32xf32> to vector<8x32xf32>
    %692 = arith.addf %690, %691 : vector<8x32xf32>
    %693 = arith.mulf %687, %692 : vector<8x32xf32>
    %694 = arith.addf %689, %693 : vector<8x32xf32>
    %695 = math.tanh %694 : vector<8x32xf32>
    %696 = arith.subf %652, %695 : vector<8x32xf32>
    %697 = arith.mulf %688, %696 : vector<8x32xf32>
    %698 = arith.addf %695, %697 : vector<8x32xf32>
    %c8_201 = arith.constant 8 : index
    %c32_202 = arith.constant 32 : index
    %699 = vector.load %arg12[%c8_201, %c32_202] : memref<64x64xf32, #tpu.memory_space<vmem>>, vector<8x32xf32>
    tpu.vector_store %arg12[%c8_201, %c32_202], %698 {strides = array<i32>} : memref<64x64xf32, #tpu.memory_space<vmem>>, vector<8x32xf32>,
    %c56_203 = arith.constant 56 : index
    %c0_204 = arith.constant 0 : index
    %700 = vector.load %arg13[%c56_203, %c0_204] : memref<64x192xf32, #tpu.memory_space<vmem>>, vector<8x96xf32>
    %cst_205 = arith.constant dense<0.000000e+00> : vector<8x96xf32>
    %701 = tpu.matmul %675, %383, %cst_205 {dimension_numbers = #tpu.dot_dimension_numbers<[1], [0], [0], [1], [0, 0, 1, 1], [], []>} : vector<8x32xf32>, vector<32x96xf32>, vector<8x96xf32> -> vector<8x96xf32>
    %702 = vector.extract_strided_slice %700 {offsets = [0, 0], sizes = [8, 64], strides = [1, 1]} : vector<8x96xf32> to vector<8x64xf32>
    %703 = vector.extract_strided_slice %701 {offsets = [0, 0], sizes = [8, 64], strides = [1, 1]} : vector<8x96xf32> to vector<8x64xf32>
    %704 = arith.addf %702, %703 : vector<8x64xf32>
    %705 = arith.negf %704 : vector<8x64xf32>
    %706 = math.exp %705 : vector<8x64xf32>
    %cst_206 = arith.constant 1.000000e+00 : f32
    %707 = vector.broadcast %cst_206 : f32 to vector<8x64xf32>
    %708 = arith.addf %707, %706 : vector<8x64xf32>
    %709 = arith.divf %707, %708 : vector<8x64xf32>
    %710 = vector.extract_strided_slice %709 {offsets = [0, 0], sizes = [8, 32], strides = [1, 1]} : vector<8x64xf32> to vector<8x32xf32>
    %711 = vector.extract_strided_slice %709 {offsets = [0, 32], sizes = [8, 32], strides = [1, 1]} : vector<8x64xf32> to vector<8x32xf32>
    %712 = vector.extract_strided_slice %700 {offsets = [0, 64], sizes = [8, 32], strides = [1, 1]} : vector<8x96xf32> to vector<8x32xf32>
    %713 = vector.extract_strided_slice %701 {offsets = [0, 64], sizes = [8, 32], strides = [1, 1]} : vector<8x96xf32> to vector<8x32xf32>
    %714 = vector.broadcast %388 : vector<1x32xf32> to vector<8x32xf32>
    %715 = arith.addf %713, %714 : vector<8x32xf32>
    %716 = arith.mulf %710, %715 : vector<8x32xf32>
    %717 = arith.addf %712, %716 : vector<8x32xf32>
    %718 = math.tanh %717 : vector<8x32xf32>
    %719 = arith.subf %675, %718 : vector<8x32xf32>
    %720 = arith.mulf %711, %719 : vector<8x32xf32>
    %721 = arith.addf %718, %720 : vector<8x32xf32>
    %c56_207 = arith.constant 56 : index
    %c0_208 = arith.constant 0 : index
    %722 = vector.load %arg12[%c56_207, %c0_208] : memref<64x64xf32, #tpu.memory_space<vmem>>, vector<8x32xf32>
    tpu.vector_store %arg12[%c56_207, %c0_208], %721 {strides = array<i32>} : memref<64x64xf32, #tpu.memory_space<vmem>>, vector<8x32xf32>,
    %c0_209 = arith.constant 0 : index
    %c96_210 = arith.constant 96 : index
    %723 = vector.load %arg13[%c0_209, %c96_210] : memref<64x192xf32, #tpu.memory_space<vmem>>, vector<8x96xf32>
    %cst_211 = arith.constant dense<0.000000e+00> : vector<8x96xf32>
    %724 = tpu.matmul %698, %385, %cst_211 {dimension_numbers = #tpu.dot_dimension_numbers<[1], [0], [0], [1], [0, 0, 1, 1], [], []>} : vector<8x32xf32>, vector<32x96xf32>, vector<8x96xf32> -> vector<8x96xf32>
    %725 = vector.extract_strided_slice %723 {offsets = [0, 0], sizes = [8, 64], strides = [1, 1]} : vector<8x96xf32> to vector<8x64xf32>
    %726 = vector.extract_strided_slice %724 {offsets = [0, 0], sizes = [8, 64], strides = [1, 1]} : vector<8x96xf32> to vector<8x64xf32>
    %727 = arith.addf %725, %726 : vector<8x64xf32>
    %728 = arith.negf %727 : vector<8x64xf32>
    %729 = math.exp %728 : vector<8x64xf32>
    %cst_212 = arith.constant 1.000000e+00 : f32
    %730 = vector.broadcast %cst_212 : f32 to vector<8x64xf32>
    %731 = arith.addf %730, %729 : vector<8x64xf32>
    %732 = arith.divf %730, %731 : vector<8x64xf32>
    %733 = vector.extract_strided_slice %732 {offsets = [0, 0], sizes = [8, 32], strides = [1, 1]} : vector<8x64xf32> to vector<8x32xf32>
    %734 = vector.extract_strided_slice %732 {offsets = [0, 32], sizes = [8, 32], strides = [1, 1]} : vector<8x64xf32> to vector<8x32xf32>
    %735 = vector.extract_strided_slice %723 {offsets = [0, 64], sizes = [8, 32], strides = [1, 1]} : vector<8x96xf32> to vector<8x32xf32>
    %736 = vector.extract_strided_slice %724 {offsets = [0, 64], sizes = [8, 32], strides = [1, 1]} : vector<8x96xf32> to vector<8x32xf32>
    %737 = vector.broadcast %389 : vector<1x32xf32> to vector<8x32xf32>
    %738 = arith.addf %736, %737 : vector<8x32xf32>
    %739 = arith.mulf %733, %738 : vector<8x32xf32>
    %740 = arith.addf %735, %739 : vector<8x32xf32>
    %741 = math.tanh %740 : vector<8x32xf32>
    %742 = arith.subf %698, %741 : vector<8x32xf32>
    %743 = arith.mulf %734, %742 : vector<8x32xf32>
    %744 = arith.addf %741, %743 : vector<8x32xf32>
    %c0_213 = arith.constant 0 : index
    %c32_214 = arith.constant 32 : index
    %745 = vector.load %arg12[%c0_213, %c32_214] : memref<64x64xf32, #tpu.memory_space<vmem>>, vector<8x32xf32>
    tpu.vector_store %arg12[%c0_213, %c32_214], %744 {strides = array<i32>} : memref<64x64xf32, #tpu.memory_space<vmem>>, vector<8x32xf32>,
    %c2_215 = arith.constant 2 : index
    %c0_216 = arith.constant 0 : index
    %c0_217 = arith.constant 0 : index
    %746 = vector.load %arg1[%c2_215, %c0_216, %c0_217] : memref<4x64x192xf32, #tpu.memory_space<vmem>>, vector<1x64x192xf32>
    %747 = vector.shape_cast %746 : vector<1x64x192xf32> to vector<64x192xf32>
    %c0_218 = arith.constant 0 : index
    %c0_219 = arith.constant 0 : index
    %748 = vector.load %arg12[%c0_218, %c0_219] : memref<64x64xf32, #tpu.memory_space<vmem>>, vector<64x64xf32>
    %cst_220 = arith.constant dense<0.000000e+00> : vector<64x192xf32>
    %749 = tpu.matmul %748, %747, %cst_220 {dimension_numbers = #tpu.dot_dimension_numbers<[1], [0], [0], [1], [0, 0, 1, 1], [], []>} : vector<64x64xf32>, vector<64x192xf32>, vector<64x192xf32> -> vector<64x192xf32>
    %c2_221 = arith.constant 2 : index
    %c0_222 = arith.constant 0 : index
    %c0_223 = arith.constant 0 : index
    %750 = vector.load %arg2[%c2_221, %c0_222, %c0_223] : memref<4x1x192xf32, #tpu.memory_space<vmem>>, vector<1x1x192xf32>
    %751 = vector.shape_cast %750 : vector<1x1x192xf32> to vector<1x192xf32>
    %752 = vector.broadcast %751 : vector<1x192xf32> to vector<64x192xf32>
    %753 = arith.addf %749, %752 : vector<64x192xf32>
    %c0_224 = arith.constant 0 : index
    %c0_225 = arith.constant 0 : index
    %754 = vector.load %arg13[%c0_224, %c0_225] : memref<64x192xf32, #tpu.memory_space<vmem>>, vector<64x192xf32>
    tpu.vector_store %arg13[%c0_224, %c0_225], %753 {strides = array<i32>} : memref<64x192xf32, #tpu.memory_space<vmem>>, vector<64x192xf32>,
    %c4 = arith.constant 4 : index
    %c0_226 = arith.constant 0 : index
    %c0_227 = arith.constant 0 : index
    %755 = vector.load %arg3[%c4, %c0_226, %c0_227] : memref<8x32x96xf32, #tpu.memory_space<vmem>>, vector<1x32x96xf32>
    %756 = vector.shape_cast %755 : vector<1x32x96xf32> to vector<32x96xf32>
    %c5 = arith.constant 5 : index
    %c0_228 = arith.constant 0 : index
    %c0_229 = arith.constant 0 : index
    %757 = vector.load %arg3[%c5, %c0_228, %c0_229] : memref<8x32x96xf32, #tpu.memory_space<vmem>>, vector<1x32x96xf32>
    %758 = vector.shape_cast %757 : vector<1x32x96xf32> to vector<32x96xf32>
    %c2_230 = arith.constant 2 : index
    %c0_231 = arith.constant 0 : index
    %c0_232 = arith.constant 0 : index
    %759 = vector.load %arg4[%c2_230, %c0_231, %c0_232] : memref<4x1x64xf32, #tpu.memory_space<vmem>>, vector<1x1x64xf32>
    %760 = vector.shape_cast %759 : vector<1x1x64xf32> to vector<1x64xf32>
    %761 = vector.extract_strided_slice %760 {offsets = [0, 0], sizes = [1, 32], strides = [1, 1]} : vector<1x64xf32> to vector<1x32xf32>
    %762 = vector.extract_strided_slice %760 {offsets = [0, 32], sizes = [1, 32], strides = [1, 1]} : vector<1x64xf32> to vector<1x32xf32>
    %c0_233 = arith.constant 0 : index
    %c0_234 = arith.constant 0 : index
    %763 = vector.load %arg13[%c0_233, %c0_234] : memref<64x192xf32, #tpu.memory_space<vmem>>, vector<8x96xf32>
    %764 = vector.extract_strided_slice %763 {offsets = [0, 0], sizes = [8, 64], strides = [1, 1]} : vector<8x96xf32> to vector<8x64xf32>
    %765 = arith.negf %764 : vector<8x64xf32>
    %766 = math.exp %765 : vector<8x64xf32>
    %cst_235 = arith.constant 1.000000e+00 : f32
    %767 = vector.broadcast %cst_235 : f32 to vector<8x64xf32>
    %768 = arith.addf %767, %766 : vector<8x64xf32>
    %769 = arith.divf %767, %768 : vector<8x64xf32>
    %770 = vector.extract_strided_slice %769 {offsets = [0, 0], sizes = [8, 32], strides = [1, 1]} : vector<8x64xf32> to vector<8x32xf32>
    %771 = vector.extract_strided_slice %769 {offsets = [0, 32], sizes = [8, 32], strides = [1, 1]} : vector<8x64xf32> to vector<8x32xf32>
    %772 = vector.extract_strided_slice %763 {offsets = [0, 64], sizes = [8, 32], strides = [1, 1]} : vector<8x96xf32> to vector<8x32xf32>
    %773 = vector.broadcast %761 : vector<1x32xf32> to vector<8x32xf32>
    %774 = arith.mulf %770, %773 : vector<8x32xf32>
    %775 = arith.addf %772, %774 : vector<8x32xf32>
    %776 = math.tanh %775 : vector<8x32xf32>
    %777 = arith.mulf %771, %776 : vector<8x32xf32>
    %778 = arith.subf %776, %777 : vector<8x32xf32>
    %c0_236 = arith.constant 0 : index
    %c0_237 = arith.constant 0 : index
    %779 = vector.load %arg12[%c0_236, %c0_237] : memref<64x64xf32, #tpu.memory_space<vmem>>, vector<8x32xf32>
    tpu.vector_store %arg12[%c0_236, %c0_237], %778 {strides = array<i32>} : memref<64x64xf32, #tpu.memory_space<vmem>>, vector<8x32xf32>,
    %c56_238 = arith.constant 56 : index
    %c96_239 = arith.constant 96 : index
    %780 = vector.load %arg13[%c56_238, %c96_239] : memref<64x192xf32, #tpu.memory_space<vmem>>, vector<8x96xf32>
    %781 = vector.extract_strided_slice %780 {offsets = [0, 0], sizes = [8, 64], strides = [1, 1]} : vector<8x96xf32> to vector<8x64xf32>
    %782 = arith.negf %781 : vector<8x64xf32>
    %783 = math.exp %782 : vector<8x64xf32>
    %cst_240 = arith.constant 1.000000e+00 : f32
    %784 = vector.broadcast %cst_240 : f32 to vector<8x64xf32>
    %785 = arith.addf %784, %783 : vector<8x64xf32>
    %786 = arith.divf %784, %785 : vector<8x64xf32>
    %787 = vector.extract_strided_slice %786 {offsets = [0, 0], sizes = [8, 32], strides = [1, 1]} : vector<8x64xf32> to vector<8x32xf32>
    %788 = vector.extract_strided_slice %786 {offsets = [0, 32], sizes = [8, 32], strides = [1, 1]} : vector<8x64xf32> to vector<8x32xf32>
    %789 = vector.extract_strided_slice %780 {offsets = [0, 64], sizes = [8, 32], strides = [1, 1]} : vector<8x96xf32> to vector<8x32xf32>
    %790 = vector.broadcast %762 : vector<1x32xf32> to vector<8x32xf32>
    %791 = arith.mulf %787, %790 : vector<8x32xf32>
    %792 = arith.addf %789, %791 : vector<8x32xf32>
    %793 = math.tanh %792 : vector<8x32xf32>
    %794 = arith.mulf %788, %793 : vector<8x32xf32>
    %795 = arith.subf %793, %794 : vector<8x32xf32>
    %c56_241 = arith.constant 56 : index
    %c32_242 = arith.constant 32 : index
    %796 = vector.load %arg12[%c56_241, %c32_242] : memref<64x64xf32, #tpu.memory_space<vmem>>, vector<8x32xf32>
    tpu.vector_store %arg12[%c56_241, %c32_242], %795 {strides = array<i32>} : memref<64x64xf32, #tpu.memory_space<vmem>>, vector<8x32xf32>,
    %c8_243 = arith.constant 8 : index
    %c0_244 = arith.constant 0 : index
    %797 = vector.load %arg13[%c8_243, %c0_244] : memref<64x192xf32, #tpu.memory_space<vmem>>, vector<8x96xf32>
    %cst_245 = arith.constant dense<0.000000e+00> : vector<8x96xf32>
    %798 = tpu.matmul %778, %756, %cst_245 {dimension_numbers = #tpu.dot_dimension_numbers<[1], [0], [0], [1], [0, 0, 1, 1], [], []>} : vector<8x32xf32>, vector<32x96xf32>, vector<8x96xf32> -> vector<8x96xf32>
    %799 = vector.extract_strided_slice %797 {offsets = [0, 0], sizes = [8, 64], strides = [1, 1]} : vector<8x96xf32> to vector<8x64xf32>
    %800 = vector.extract_strided_slice %798 {offsets = [0, 0], sizes = [8, 64], strides = [1, 1]} : vector<8x96xf32> to vector<8x64xf32>
    %801 = arith.addf %799, %800 : vector<8x64xf32>
    %802 = arith.negf %801 : vector<8x64xf32>
    %803 = math.exp %802 : vector<8x64xf32>
    %cst_246 = arith.constant 1.000000e+00 : f32
    %804 = vector.broadcast %cst_246 : f32 to vector<8x64xf32>
    %805 = arith.addf %804, %803 : vector<8x64xf32>
    %806 = arith.divf %804, %805 : vector<8x64xf32>
    %807 = vector.extract_strided_slice %806 {offsets = [0, 0], sizes = [8, 32], strides = [1, 1]} : vector<8x64xf32> to vector<8x32xf32>
    %808 = vector.extract_strided_slice %806 {offsets = [0, 32], sizes = [8, 32], strides = [1, 1]} : vector<8x64xf32> to vector<8x32xf32>
    %809 = vector.extract_strided_slice %797 {offsets = [0, 64], sizes = [8, 32], strides = [1, 1]} : vector<8x96xf32> to vector<8x32xf32>
    %810 = vector.extract_strided_slice %798 {offsets = [0, 64], sizes = [8, 32], strides = [1, 1]} : vector<8x96xf32> to vector<8x32xf32>
    %811 = vector.broadcast %761 : vector<1x32xf32> to vector<8x32xf32>
    %812 = arith.addf %810, %811 : vector<8x32xf32>
    %813 = arith.mulf %807, %812 : vector<8x32xf32>
    %814 = arith.addf %809, %813 : vector<8x32xf32>
    %815 = math.tanh %814 : vector<8x32xf32>
    %816 = arith.subf %778, %815 : vector<8x32xf32>
    %817 = arith.mulf %808, %816 : vector<8x32xf32>
    %818 = arith.addf %815, %817 : vector<8x32xf32>
    %c8_247 = arith.constant 8 : index
    %c0_248 = arith.constant 0 : index
    %819 = vector.load %arg12[%c8_247, %c0_248] : memref<64x64xf32, #tpu.memory_space<vmem>>, vector<8x32xf32>
    tpu.vector_store %arg12[%c8_247, %c0_248], %818 {strides = array<i32>} : memref<64x64xf32, #tpu.memory_space<vmem>>, vector<8x32xf32>,
    %c48_249 = arith.constant 48 : index
    %c96_250 = arith.constant 96 : index
    %820 = vector.load %arg13[%c48_249, %c96_250] : memref<64x192xf32, #tpu.memory_space<vmem>>, vector<8x96xf32>
    %cst_251 = arith.constant dense<0.000000e+00> : vector<8x96xf32>
    %821 = tpu.matmul %795, %758, %cst_251 {dimension_numbers = #tpu.dot_dimension_numbers<[1], [0], [0], [1], [0, 0, 1, 1], [], []>} : vector<8x32xf32>, vector<32x96xf32>, vector<8x96xf32> -> vector<8x96xf32>
    %822 = vector.extract_strided_slice %820 {offsets = [0, 0], sizes = [8, 64], strides = [1, 1]} : vector<8x96xf32> to vector<8x64xf32>
    %823 = vector.extract_strided_slice %821 {offsets = [0, 0], sizes = [8, 64], strides = [1, 1]} : vector<8x96xf32> to vector<8x64xf32>
    %824 = arith.addf %822, %823 : vector<8x64xf32>
    %825 = arith.negf %824 : vector<8x64xf32>
    %826 = math.exp %825 : vector<8x64xf32>
    %cst_252 = arith.constant 1.000000e+00 : f32
    %827 = vector.broadcast %cst_252 : f32 to vector<8x64xf32>
    %828 = arith.addf %827, %826 : vector<8x64xf32>
    %829 = arith.divf %827, %828 : vector<8x64xf32>
    %830 = vector.extract_strided_slice %829 {offsets = [0, 0], sizes = [8, 32], strides = [1, 1]} : vector<8x64xf32> to vector<8x32xf32>
    %831 = vector.extract_strided_slice %829 {offsets = [0, 32], sizes = [8, 32], strides = [1, 1]} : vector<8x64xf32> to vector<8x32xf32>
    %832 = vector.extract_strided_slice %820 {offsets = [0, 64], sizes = [8, 32], strides = [1, 1]} : vector<8x96xf32> to vector<8x32xf32>
    %833 = vector.extract_strided_slice %821 {offsets = [0, 64], sizes = [8, 32], strides = [1, 1]} : vector<8x96xf32> to vector<8x32xf32>
    %834 = vector.broadcast %762 : vector<1x32xf32> to vector<8x32xf32>
    %835 = arith.addf %833, %834 : vector<8x32xf32>
    %836 = arith.mulf %830, %835 : vector<8x32xf32>
    %837 = arith.addf %832, %836 : vector<8x32xf32>
    %838 = math.tanh %837 : vector<8x32xf32>
    %839 = arith.subf %795, %838 : vector<8x32xf32>
    %840 = arith.mulf %831, %839 : vector<8x32xf32>
    %841 = arith.addf %838, %840 : vector<8x32xf32>
    %c48_253 = arith.constant 48 : index
    %c32_254 = arith.constant 32 : index
    %842 = vector.load %arg12[%c48_253, %c32_254] : memref<64x64xf32, #tpu.memory_space<vmem>>, vector<8x32xf32>
    tpu.vector_store %arg12[%c48_253, %c32_254], %841 {strides = array<i32>} : memref<64x64xf32, #tpu.memory_space<vmem>>, vector<8x32xf32>,
    %c16_255 = arith.constant 16 : index
    %c0_256 = arith.constant 0 : index
    %843 = vector.load %arg13[%c16_255, %c0_256] : memref<64x192xf32, #tpu.memory_space<vmem>>, vector<8x96xf32>
    %cst_257 = arith.constant dense<0.000000e+00> : vector<8x96xf32>
    %844 = tpu.matmul %818, %756, %cst_257 {dimension_numbers = #tpu.dot_dimension_numbers<[1], [0], [0], [1], [0, 0, 1, 1], [], []>} : vector<8x32xf32>, vector<32x96xf32>, vector<8x96xf32> -> vector<8x96xf32>
    %845 = vector.extract_strided_slice %843 {offsets = [0, 0], sizes = [8, 64], strides = [1, 1]} : vector<8x96xf32> to vector<8x64xf32>
    %846 = vector.extract_strided_slice %844 {offsets = [0, 0], sizes = [8, 64], strides = [1, 1]} : vector<8x96xf32> to vector<8x64xf32>
    %847 = arith.addf %845, %846 : vector<8x64xf32>
    %848 = arith.negf %847 : vector<8x64xf32>
    %849 = math.exp %848 : vector<8x64xf32>
    %cst_258 = arith.constant 1.000000e+00 : f32
    %850 = vector.broadcast %cst_258 : f32 to vector<8x64xf32>
    %851 = arith.addf %850, %849 : vector<8x64xf32>
    %852 = arith.divf %850, %851 : vector<8x64xf32>
    %853 = vector.extract_strided_slice %852 {offsets = [0, 0], sizes = [8, 32], strides = [1, 1]} : vector<8x64xf32> to vector<8x32xf32>
    %854 = vector.extract_strided_slice %852 {offsets = [0, 32], sizes = [8, 32], strides = [1, 1]} : vector<8x64xf32> to vector<8x32xf32>
    %855 = vector.extract_strided_slice %843 {offsets = [0, 64], sizes = [8, 32], strides = [1, 1]} : vector<8x96xf32> to vector<8x32xf32>
    %856 = vector.extract_strided_slice %844 {offsets = [0, 64], sizes = [8, 32], strides = [1, 1]} : vector<8x96xf32> to vector<8x32xf32>
    %857 = vector.broadcast %761 : vector<1x32xf32> to vector<8x32xf32>
    %858 = arith.addf %856, %857 : vector<8x32xf32>
    %859 = arith.mulf %853, %858 : vector<8x32xf32>
    %860 = arith.addf %855, %859 : vector<8x32xf32>
    %861 = math.tanh %860 : vector<8x32xf32>
    %862 = arith.subf %818, %861 : vector<8x32xf32>
    %863 = arith.mulf %854, %862 : vector<8x32xf32>
    %864 = arith.addf %861, %863 : vector<8x32xf32>
    %c16_259 = arith.constant 16 : index
    %c0_260 = arith.constant 0 : index
    %865 = vector.load %arg12[%c16_259, %c0_260] : memref<64x64xf32, #tpu.memory_space<vmem>>, vector<8x32xf32>
    tpu.vector_store %arg12[%c16_259, %c0_260], %864 {strides = array<i32>} : memref<64x64xf32, #tpu.memory_space<vmem>>, vector<8x32xf32>,
    %c40_261 = arith.constant 40 : index
    %c96_262 = arith.constant 96 : index
    %866 = vector.load %arg13[%c40_261, %c96_262] : memref<64x192xf32, #tpu.memory_space<vmem>>, vector<8x96xf32>
    %cst_263 = arith.constant dense<0.000000e+00> : vector<8x96xf32>
    %867 = tpu.matmul %841, %758, %cst_263 {dimension_numbers = #tpu.dot_dimension_numbers<[1], [0], [0], [1], [0, 0, 1, 1], [], []>} : vector<8x32xf32>, vector<32x96xf32>, vector<8x96xf32> -> vector<8x96xf32>
    %868 = vector.extract_strided_slice %866 {offsets = [0, 0], sizes = [8, 64], strides = [1, 1]} : vector<8x96xf32> to vector<8x64xf32>
    %869 = vector.extract_strided_slice %867 {offsets = [0, 0], sizes = [8, 64], strides = [1, 1]} : vector<8x96xf32> to vector<8x64xf32>
    %870 = arith.addf %868, %869 : vector<8x64xf32>
    %871 = arith.negf %870 : vector<8x64xf32>
    %872 = math.exp %871 : vector<8x64xf32>
    %cst_264 = arith.constant 1.000000e+00 : f32
    %873 = vector.broadcast %cst_264 : f32 to vector<8x64xf32>
    %874 = arith.addf %873, %872 : vector<8x64xf32>
    %875 = arith.divf %873, %874 : vector<8x64xf32>
    %876 = vector.extract_strided_slice %875 {offsets = [0, 0], sizes = [8, 32], strides = [1, 1]} : vector<8x64xf32> to vector<8x32xf32>
    %877 = vector.extract_strided_slice %875 {offsets = [0, 32], sizes = [8, 32], strides = [1, 1]} : vector<8x64xf32> to vector<8x32xf32>
    %878 = vector.extract_strided_slice %866 {offsets = [0, 64], sizes = [8, 32], strides = [1, 1]} : vector<8x96xf32> to vector<8x32xf32>
    %879 = vector.extract_strided_slice %867 {offsets = [0, 64], sizes = [8, 32], strides = [1, 1]} : vector<8x96xf32> to vector<8x32xf32>
    %880 = vector.broadcast %762 : vector<1x32xf32> to vector<8x32xf32>
    %881 = arith.addf %879, %880 : vector<8x32xf32>
    %882 = arith.mulf %876, %881 : vector<8x32xf32>
    %883 = arith.addf %878, %882 : vector<8x32xf32>
    %884 = math.tanh %883 : vector<8x32xf32>
    %885 = arith.subf %841, %884 : vector<8x32xf32>
    %886 = arith.mulf %877, %885 : vector<8x32xf32>
    %887 = arith.addf %884, %886 : vector<8x32xf32>
    %c40_265 = arith.constant 40 : index
    %c32_266 = arith.constant 32 : index
    %888 = vector.load %arg12[%c40_265, %c32_266] : memref<64x64xf32, #tpu.memory_space<vmem>>, vector<8x32xf32>
    tpu.vector_store %arg12[%c40_265, %c32_266], %887 {strides = array<i32>} : memref<64x64xf32, #tpu.memory_space<vmem>>, vector<8x32xf32>,
    %c24_267 = arith.constant 24 : index
    %c0_268 = arith.constant 0 : index
    %889 = vector.load %arg13[%c24_267, %c0_268] : memref<64x192xf32, #tpu.memory_space<vmem>>, vector<8x96xf32>
    %cst_269 = arith.constant dense<0.000000e+00> : vector<8x96xf32>
    %890 = tpu.matmul %864, %756, %cst_269 {dimension_numbers = #tpu.dot_dimension_numbers<[1], [0], [0], [1], [0, 0, 1, 1], [], []>} : vector<8x32xf32>, vector<32x96xf32>, vector<8x96xf32> -> vector<8x96xf32>
    %891 = vector.extract_strided_slice %889 {offsets = [0, 0], sizes = [8, 64], strides = [1, 1]} : vector<8x96xf32> to vector<8x64xf32>
    %892 = vector.extract_strided_slice %890 {offsets = [0, 0], sizes = [8, 64], strides = [1, 1]} : vector<8x96xf32> to vector<8x64xf32>
    %893 = arith.addf %891, %892 : vector<8x64xf32>
    %894 = arith.negf %893 : vector<8x64xf32>
    %895 = math.exp %894 : vector<8x64xf32>
    %cst_270 = arith.constant 1.000000e+00 : f32
    %896 = vector.broadcast %cst_270 : f32 to vector<8x64xf32>
    %897 = arith.addf %896, %895 : vector<8x64xf32>
    %898 = arith.divf %896, %897 : vector<8x64xf32>
    %899 = vector.extract_strided_slice %898 {offsets = [0, 0], sizes = [8, 32], strides = [1, 1]} : vector<8x64xf32> to vector<8x32xf32>
    %900 = vector.extract_strided_slice %898 {offsets = [0, 32], sizes = [8, 32], strides = [1, 1]} : vector<8x64xf32> to vector<8x32xf32>
    %901 = vector.extract_strided_slice %889 {offsets = [0, 64], sizes = [8, 32], strides = [1, 1]} : vector<8x96xf32> to vector<8x32xf32>
    %902 = vector.extract_strided_slice %890 {offsets = [0, 64], sizes = [8, 32], strides = [1, 1]} : vector<8x96xf32> to vector<8x32xf32>
    %903 = vector.broadcast %761 : vector<1x32xf32> to vector<8x32xf32>
    %904 = arith.addf %902, %903 : vector<8x32xf32>
    %905 = arith.mulf %899, %904 : vector<8x32xf32>
    %906 = arith.addf %901, %905 : vector<8x32xf32>
    %907 = math.tanh %906 : vector<8x32xf32>
    %908 = arith.subf %864, %907 : vector<8x32xf32>
    %909 = arith.mulf %900, %908 : vector<8x32xf32>
    %910 = arith.addf %907, %909 : vector<8x32xf32>
    %c24_271 = arith.constant 24 : index
    %c0_272 = arith.constant 0 : index
    %911 = vector.load %arg12[%c24_271, %c0_272] : memref<64x64xf32, #tpu.memory_space<vmem>>, vector<8x32xf32>
    tpu.vector_store %arg12[%c24_271, %c0_272], %910 {strides = array<i32>} : memref<64x64xf32, #tpu.memory_space<vmem>>, vector<8x32xf32>,
    %c32_273 = arith.constant 32 : index
    %c96_274 = arith.constant 96 : index
    %912 = vector.load %arg13[%c32_273, %c96_274] : memref<64x192xf32, #tpu.memory_space<vmem>>, vector<8x96xf32>
    %cst_275 = arith.constant dense<0.000000e+00> : vector<8x96xf32>
    %913 = tpu.matmul %887, %758, %cst_275 {dimension_numbers = #tpu.dot_dimension_numbers<[1], [0], [0], [1], [0, 0, 1, 1], [], []>} : vector<8x32xf32>, vector<32x96xf32>, vector<8x96xf32> -> vector<8x96xf32>
    %914 = vector.extract_strided_slice %912 {offsets = [0, 0], sizes = [8, 64], strides = [1, 1]} : vector<8x96xf32> to vector<8x64xf32>
    %915 = vector.extract_strided_slice %913 {offsets = [0, 0], sizes = [8, 64], strides = [1, 1]} : vector<8x96xf32> to vector<8x64xf32>
    %916 = arith.addf %914, %915 : vector<8x64xf32>
    %917 = arith.negf %916 : vector<8x64xf32>
    %918 = math.exp %917 : vector<8x64xf32>
    %cst_276 = arith.constant 1.000000e+00 : f32
    %919 = vector.broadcast %cst_276 : f32 to vector<8x64xf32>
    %920 = arith.addf %919, %918 : vector<8x64xf32>
    %921 = arith.divf %919, %920 : vector<8x64xf32>
    %922 = vector.extract_strided_slice %921 {offsets = [0, 0], sizes = [8, 32], strides = [1, 1]} : vector<8x64xf32> to vector<8x32xf32>
    %923 = vector.extract_strided_slice %921 {offsets = [0, 32], sizes = [8, 32], strides = [1, 1]} : vector<8x64xf32> to vector<8x32xf32>
    %924 = vector.extract_strided_slice %912 {offsets = [0, 64], sizes = [8, 32], strides = [1, 1]} : vector<8x96xf32> to vector<8x32xf32>
    %925 = vector.extract_strided_slice %913 {offsets = [0, 64], sizes = [8, 32], strides = [1, 1]} : vector<8x96xf32> to vector<8x32xf32>
    %926 = vector.broadcast %762 : vector<1x32xf32> to vector<8x32xf32>
    %927 = arith.addf %925, %926 : vector<8x32xf32>
    %928 = arith.mulf %922, %927 : vector<8x32xf32>
    %929 = arith.addf %924, %928 : vector<8x32xf32>
    %930 = math.tanh %929 : vector<8x32xf32>
    %931 = arith.subf %887, %930 : vector<8x32xf32>
    %932 = arith.mulf %923, %931 : vector<8x32xf32>
    %933 = arith.addf %930, %932 : vector<8x32xf32>
    %c32_277 = arith.constant 32 : index
    %c32_278 = arith.constant 32 : index
    %934 = vector.load %arg12[%c32_277, %c32_278] : memref<64x64xf32, #tpu.memory_space<vmem>>, vector<8x32xf32>
    tpu.vector_store %arg12[%c32_277, %c32_278], %933 {strides = array<i32>} : memref<64x64xf32, #tpu.memory_space<vmem>>, vector<8x32xf32>,
    %c32_279 = arith.constant 32 : index
    %c0_280 = arith.constant 0 : index
    %935 = vector.load %arg13[%c32_279, %c0_280] : memref<64x192xf32, #tpu.memory_space<vmem>>, vector<8x96xf32>
    %cst_281 = arith.constant dense<0.000000e+00> : vector<8x96xf32>
    %936 = tpu.matmul %910, %756, %cst_281 {dimension_numbers = #tpu.dot_dimension_numbers<[1], [0], [0], [1], [0, 0, 1, 1], [], []>} : vector<8x32xf32>, vector<32x96xf32>, vector<8x96xf32> -> vector<8x96xf32>
    %937 = vector.extract_strided_slice %935 {offsets = [0, 0], sizes = [8, 64], strides = [1, 1]} : vector<8x96xf32> to vector<8x64xf32>
    %938 = vector.extract_strided_slice %936 {offsets = [0, 0], sizes = [8, 64], strides = [1, 1]} : vector<8x96xf32> to vector<8x64xf32>
    %939 = arith.addf %937, %938 : vector<8x64xf32>
    %940 = arith.negf %939 : vector<8x64xf32>
    %941 = math.exp %940 : vector<8x64xf32>
    %cst_282 = arith.constant 1.000000e+00 : f32
    %942 = vector.broadcast %cst_282 : f32 to vector<8x64xf32>
    %943 = arith.addf %942, %941 : vector<8x64xf32>
    %944 = arith.divf %942, %943 : vector<8x64xf32>
    %945 = vector.extract_strided_slice %944 {offsets = [0, 0], sizes = [8, 32], strides = [1, 1]} : vector<8x64xf32> to vector<8x32xf32>
    %946 = vector.extract_strided_slice %944 {offsets = [0, 32], sizes = [8, 32], strides = [1, 1]} : vector<8x64xf32> to vector<8x32xf32>
    %947 = vector.extract_strided_slice %935 {offsets = [0, 64], sizes = [8, 32], strides = [1, 1]} : vector<8x96xf32> to vector<8x32xf32>
    %948 = vector.extract_strided_slice %936 {offsets = [0, 64], sizes = [8, 32], strides = [1, 1]} : vector<8x96xf32> to vector<8x32xf32>
    %949 = vector.broadcast %761 : vector<1x32xf32> to vector<8x32xf32>
    %950 = arith.addf %948, %949 : vector<8x32xf32>
    %951 = arith.mulf %945, %950 : vector<8x32xf32>
    %952 = arith.addf %947, %951 : vector<8x32xf32>
    %953 = math.tanh %952 : vector<8x32xf32>
    %954 = arith.subf %910, %953 : vector<8x32xf32>
    %955 = arith.mulf %946, %954 : vector<8x32xf32>
    %956 = arith.addf %953, %955 : vector<8x32xf32>
    %c32_283 = arith.constant 32 : index
    %c0_284 = arith.constant 0 : index
    %957 = vector.load %arg12[%c32_283, %c0_284] : memref<64x64xf32, #tpu.memory_space<vmem>>, vector<8x32xf32>
    tpu.vector_store %arg12[%c32_283, %c0_284], %956 {strides = array<i32>} : memref<64x64xf32, #tpu.memory_space<vmem>>, vector<8x32xf32>,
    %c24_285 = arith.constant 24 : index
    %c96_286 = arith.constant 96 : index
    %958 = vector.load %arg13[%c24_285, %c96_286] : memref<64x192xf32, #tpu.memory_space<vmem>>, vector<8x96xf32>
    %cst_287 = arith.constant dense<0.000000e+00> : vector<8x96xf32>
    %959 = tpu.matmul %933, %758, %cst_287 {dimension_numbers = #tpu.dot_dimension_numbers<[1], [0], [0], [1], [0, 0, 1, 1], [], []>} : vector<8x32xf32>, vector<32x96xf32>, vector<8x96xf32> -> vector<8x96xf32>
    %960 = vector.extract_strided_slice %958 {offsets = [0, 0], sizes = [8, 64], strides = [1, 1]} : vector<8x96xf32> to vector<8x64xf32>
    %961 = vector.extract_strided_slice %959 {offsets = [0, 0], sizes = [8, 64], strides = [1, 1]} : vector<8x96xf32> to vector<8x64xf32>
    %962 = arith.addf %960, %961 : vector<8x64xf32>
    %963 = arith.negf %962 : vector<8x64xf32>
    %964 = math.exp %963 : vector<8x64xf32>
    %cst_288 = arith.constant 1.000000e+00 : f32
    %965 = vector.broadcast %cst_288 : f32 to vector<8x64xf32>
    %966 = arith.addf %965, %964 : vector<8x64xf32>
    %967 = arith.divf %965, %966 : vector<8x64xf32>
    %968 = vector.extract_strided_slice %967 {offsets = [0, 0], sizes = [8, 32], strides = [1, 1]} : vector<8x64xf32> to vector<8x32xf32>
    %969 = vector.extract_strided_slice %967 {offsets = [0, 32], sizes = [8, 32], strides = [1, 1]} : vector<8x64xf32> to vector<8x32xf32>
    %970 = vector.extract_strided_slice %958 {offsets = [0, 64], sizes = [8, 32], strides = [1, 1]} : vector<8x96xf32> to vector<8x32xf32>
    %971 = vector.extract_strided_slice %959 {offsets = [0, 64], sizes = [8, 32], strides = [1, 1]} : vector<8x96xf32> to vector<8x32xf32>
    %972 = vector.broadcast %762 : vector<1x32xf32> to vector<8x32xf32>
    %973 = arith.addf %971, %972 : vector<8x32xf32>
    %974 = arith.mulf %968, %973 : vector<8x32xf32>
    %975 = arith.addf %970, %974 : vector<8x32xf32>
    %976 = math.tanh %975 : vector<8x32xf32>
    %977 = arith.subf %933, %976 : vector<8x32xf32>
    %978 = arith.mulf %969, %977 : vector<8x32xf32>
    %979 = arith.addf %976, %978 : vector<8x32xf32>
    %c24_289 = arith.constant 24 : index
    %c32_290 = arith.constant 32 : index
    %980 = vector.load %arg12[%c24_289, %c32_290] : memref<64x64xf32, #tpu.memory_space<vmem>>, vector<8x32xf32>
    tpu.vector_store %arg12[%c24_289, %c32_290], %979 {strides = array<i32>} : memref<64x64xf32, #tpu.memory_space<vmem>>, vector<8x32xf32>,
    %c40_291 = arith.constant 40 : index
    %c0_292 = arith.constant 0 : index
    %981 = vector.load %arg13[%c40_291, %c0_292] : memref<64x192xf32, #tpu.memory_space<vmem>>, vector<8x96xf32>
    %cst_293 = arith.constant dense<0.000000e+00> : vector<8x96xf32>
    %982 = tpu.matmul %956, %756, %cst_293 {dimension_numbers = #tpu.dot_dimension_numbers<[1], [0], [0], [1], [0, 0, 1, 1], [], []>} : vector<8x32xf32>, vector<32x96xf32>, vector<8x96xf32> -> vector<8x96xf32>
    %983 = vector.extract_strided_slice %981 {offsets = [0, 0], sizes = [8, 64], strides = [1, 1]} : vector<8x96xf32> to vector<8x64xf32>
    %984 = vector.extract_strided_slice %982 {offsets = [0, 0], sizes = [8, 64], strides = [1, 1]} : vector<8x96xf32> to vector<8x64xf32>
    %985 = arith.addf %983, %984 : vector<8x64xf32>
    %986 = arith.negf %985 : vector<8x64xf32>
    %987 = math.exp %986 : vector<8x64xf32>
    %cst_294 = arith.constant 1.000000e+00 : f32
    %988 = vector.broadcast %cst_294 : f32 to vector<8x64xf32>
    %989 = arith.addf %988, %987 : vector<8x64xf32>
    %990 = arith.divf %988, %989 : vector<8x64xf32>
    %991 = vector.extract_strided_slice %990 {offsets = [0, 0], sizes = [8, 32], strides = [1, 1]} : vector<8x64xf32> to vector<8x32xf32>
    %992 = vector.extract_strided_slice %990 {offsets = [0, 32], sizes = [8, 32], strides = [1, 1]} : vector<8x64xf32> to vector<8x32xf32>
    %993 = vector.extract_strided_slice %981 {offsets = [0, 64], sizes = [8, 32], strides = [1, 1]} : vector<8x96xf32> to vector<8x32xf32>
    %994 = vector.extract_strided_slice %982 {offsets = [0, 64], sizes = [8, 32], strides = [1, 1]} : vector<8x96xf32> to vector<8x32xf32>
    %995 = vector.broadcast %761 : vector<1x32xf32> to vector<8x32xf32>
    %996 = arith.addf %994, %995 : vector<8x32xf32>
    %997 = arith.mulf %991, %996 : vector<8x32xf32>
    %998 = arith.addf %993, %997 : vector<8x32xf32>
    %999 = math.tanh %998 : vector<8x32xf32>
    %1000 = arith.subf %956, %999 : vector<8x32xf32>
    %1001 = arith.mulf %992, %1000 : vector<8x32xf32>
    %1002 = arith.addf %999, %1001 : vector<8x32xf32>
    %c40_295 = arith.constant 40 : index
    %c0_296 = arith.constant 0 : index
    %1003 = vector.load %arg12[%c40_295, %c0_296] : memref<64x64xf32, #tpu.memory_space<vmem>>, vector<8x32xf32>
    tpu.vector_store %arg12[%c40_295, %c0_296], %1002 {strides = array<i32>} : memref<64x64xf32, #tpu.memory_space<vmem>>, vector<8x32xf32>,
    %c16_297 = arith.constant 16 : index
    %c96_298 = arith.constant 96 : index
    %1004 = vector.load %arg13[%c16_297, %c96_298] : memref<64x192xf32, #tpu.memory_space<vmem>>, vector<8x96xf32>
    %cst_299 = arith.constant dense<0.000000e+00> : vector<8x96xf32>
    %1005 = tpu.matmul %979, %758, %cst_299 {dimension_numbers = #tpu.dot_dimension_numbers<[1], [0], [0], [1], [0, 0, 1, 1], [], []>} : vector<8x32xf32>, vector<32x96xf32>, vector<8x96xf32> -> vector<8x96xf32>
    %1006 = vector.extract_strided_slice %1004 {offsets = [0, 0], sizes = [8, 64], strides = [1, 1]} : vector<8x96xf32> to vector<8x64xf32>
    %1007 = vector.extract_strided_slice %1005 {offsets = [0, 0], sizes = [8, 64], strides = [1, 1]} : vector<8x96xf32> to vector<8x64xf32>
    %1008 = arith.addf %1006, %1007 : vector<8x64xf32>
    %1009 = arith.negf %1008 : vector<8x64xf32>
    %1010 = math.exp %1009 : vector<8x64xf32>
    %cst_300 = arith.constant 1.000000e+00 : f32
    %1011 = vector.broadcast %cst_300 : f32 to vector<8x64xf32>
    %1012 = arith.addf %1011, %1010 : vector<8x64xf32>
    %1013 = arith.divf %1011, %1012 : vector<8x64xf32>
    %1014 = vector.extract_strided_slice %1013 {offsets = [0, 0], sizes = [8, 32], strides = [1, 1]} : vector<8x64xf32> to vector<8x32xf32>
    %1015 = vector.extract_strided_slice %1013 {offsets = [0, 32], sizes = [8, 32], strides = [1, 1]} : vector<8x64xf32> to vector<8x32xf32>
    %1016 = vector.extract_strided_slice %1004 {offsets = [0, 64], sizes = [8, 32], strides = [1, 1]} : vector<8x96xf32> to vector<8x32xf32>
    %1017 = vector.extract_strided_slice %1005 {offsets = [0, 64], sizes = [8, 32], strides = [1, 1]} : vector<8x96xf32> to vector<8x32xf32>
    %1018 = vector.broadcast %762 : vector<1x32xf32> to vector<8x32xf32>
    %1019 = arith.addf %1017, %1018 : vector<8x32xf32>
    %1020 = arith.mulf %1014, %1019 : vector<8x32xf32>
    %1021 = arith.addf %1016, %1020 : vector<8x32xf32>
    %1022 = math.tanh %1021 : vector<8x32xf32>
    %1023 = arith.subf %979, %1022 : vector<8x32xf32>
    %1024 = arith.mulf %1015, %1023 : vector<8x32xf32>
    %1025 = arith.addf %1022, %1024 : vector<8x32xf32>
    %c16_301 = arith.constant 16 : index
    %c32_302 = arith.constant 32 : index
    %1026 = vector.load %arg12[%c16_301, %c32_302] : memref<64x64xf32, #tpu.memory_space<vmem>>, vector<8x32xf32>
    tpu.vector_store %arg12[%c16_301, %c32_302], %1025 {strides = array<i32>} : memref<64x64xf32, #tpu.memory_space<vmem>>, vector<8x32xf32>,
    %c48_303 = arith.constant 48 : index
    %c0_304 = arith.constant 0 : index
    %1027 = vector.load %arg13[%c48_303, %c0_304] : memref<64x192xf32, #tpu.memory_space<vmem>>, vector<8x96xf32>
    %cst_305 = arith.constant dense<0.000000e+00> : vector<8x96xf32>
    %1028 = tpu.matmul %1002, %756, %cst_305 {dimension_numbers = #tpu.dot_dimension_numbers<[1], [0], [0], [1], [0, 0, 1, 1], [], []>} : vector<8x32xf32>, vector<32x96xf32>, vector<8x96xf32> -> vector<8x96xf32>
    %1029 = vector.extract_strided_slice %1027 {offsets = [0, 0], sizes = [8, 64], strides = [1, 1]} : vector<8x96xf32> to vector<8x64xf32>
    %1030 = vector.extract_strided_slice %1028 {offsets = [0, 0], sizes = [8, 64], strides = [1, 1]} : vector<8x96xf32> to vector<8x64xf32>
    %1031 = arith.addf %1029, %1030 : vector<8x64xf32>
    %1032 = arith.negf %1031 : vector<8x64xf32>
    %1033 = math.exp %1032 : vector<8x64xf32>
    %cst_306 = arith.constant 1.000000e+00 : f32
    %1034 = vector.broadcast %cst_306 : f32 to vector<8x64xf32>
    %1035 = arith.addf %1034, %1033 : vector<8x64xf32>
    %1036 = arith.divf %1034, %1035 : vector<8x64xf32>
    %1037 = vector.extract_strided_slice %1036 {offsets = [0, 0], sizes = [8, 32], strides = [1, 1]} : vector<8x64xf32> to vector<8x32xf32>
    %1038 = vector.extract_strided_slice %1036 {offsets = [0, 32], sizes = [8, 32], strides = [1, 1]} : vector<8x64xf32> to vector<8x32xf32>
    %1039 = vector.extract_strided_slice %1027 {offsets = [0, 64], sizes = [8, 32], strides = [1, 1]} : vector<8x96xf32> to vector<8x32xf32>
    %1040 = vector.extract_strided_slice %1028 {offsets = [0, 64], sizes = [8, 32], strides = [1, 1]} : vector<8x96xf32> to vector<8x32xf32>
    %1041 = vector.broadcast %761 : vector<1x32xf32> to vector<8x32xf32>
    %1042 = arith.addf %1040, %1041 : vector<8x32xf32>
    %1043 = arith.mulf %1037, %1042 : vector<8x32xf32>
    %1044 = arith.addf %1039, %1043 : vector<8x32xf32>
    %1045 = math.tanh %1044 : vector<8x32xf32>
    %1046 = arith.subf %1002, %1045 : vector<8x32xf32>
    %1047 = arith.mulf %1038, %1046 : vector<8x32xf32>
    %1048 = arith.addf %1045, %1047 : vector<8x32xf32>
    %c48_307 = arith.constant 48 : index
    %c0_308 = arith.constant 0 : index
    %1049 = vector.load %arg12[%c48_307, %c0_308] : memref<64x64xf32, #tpu.memory_space<vmem>>, vector<8x32xf32>
    tpu.vector_store %arg12[%c48_307, %c0_308], %1048 {strides = array<i32>} : memref<64x64xf32, #tpu.memory_space<vmem>>, vector<8x32xf32>,
    %c8_309 = arith.constant 8 : index
    %c96_310 = arith.constant 96 : index
    %1050 = vector.load %arg13[%c8_309, %c96_310] : memref<64x192xf32, #tpu.memory_space<vmem>>, vector<8x96xf32>
    %cst_311 = arith.constant dense<0.000000e+00> : vector<8x96xf32>
    %1051 = tpu.matmul %1025, %758, %cst_311 {dimension_numbers = #tpu.dot_dimension_numbers<[1], [0], [0], [1], [0, 0, 1, 1], [], []>} : vector<8x32xf32>, vector<32x96xf32>, vector<8x96xf32> -> vector<8x96xf32>
    %1052 = vector.extract_strided_slice %1050 {offsets = [0, 0], sizes = [8, 64], strides = [1, 1]} : vector<8x96xf32> to vector<8x64xf32>
    %1053 = vector.extract_strided_slice %1051 {offsets = [0, 0], sizes = [8, 64], strides = [1, 1]} : vector<8x96xf32> to vector<8x64xf32>
    %1054 = arith.addf %1052, %1053 : vector<8x64xf32>
    %1055 = arith.negf %1054 : vector<8x64xf32>
    %1056 = math.exp %1055 : vector<8x64xf32>
    %cst_312 = arith.constant 1.000000e+00 : f32
    %1057 = vector.broadcast %cst_312 : f32 to vector<8x64xf32>
    %1058 = arith.addf %1057, %1056 : vector<8x64xf32>
    %1059 = arith.divf %1057, %1058 : vector<8x64xf32>
    %1060 = vector.extract_strided_slice %1059 {offsets = [0, 0], sizes = [8, 32], strides = [1, 1]} : vector<8x64xf32> to vector<8x32xf32>
    %1061 = vector.extract_strided_slice %1059 {offsets = [0, 32], sizes = [8, 32], strides = [1, 1]} : vector<8x64xf32> to vector<8x32xf32>
    %1062 = vector.extract_strided_slice %1050 {offsets = [0, 64], sizes = [8, 32], strides = [1, 1]} : vector<8x96xf32> to vector<8x32xf32>
    %1063 = vector.extract_strided_slice %1051 {offsets = [0, 64], sizes = [8, 32], strides = [1, 1]} : vector<8x96xf32> to vector<8x32xf32>
    %1064 = vector.broadcast %762 : vector<1x32xf32> to vector<8x32xf32>
    %1065 = arith.addf %1063, %1064 : vector<8x32xf32>
    %1066 = arith.mulf %1060, %1065 : vector<8x32xf32>
    %1067 = arith.addf %1062, %1066 : vector<8x32xf32>
    %1068 = math.tanh %1067 : vector<8x32xf32>
    %1069 = arith.subf %1025, %1068 : vector<8x32xf32>
    %1070 = arith.mulf %1061, %1069 : vector<8x32xf32>
    %1071 = arith.addf %1068, %1070 : vector<8x32xf32>
    %c8_313 = arith.constant 8 : index
    %c32_314 = arith.constant 32 : index
    %1072 = vector.load %arg12[%c8_313, %c32_314] : memref<64x64xf32, #tpu.memory_space<vmem>>, vector<8x32xf32>
    tpu.vector_store %arg12[%c8_313, %c32_314], %1071 {strides = array<i32>} : memref<64x64xf32, #tpu.memory_space<vmem>>, vector<8x32xf32>,
    %c56_315 = arith.constant 56 : index
    %c0_316 = arith.constant 0 : index
    %1073 = vector.load %arg13[%c56_315, %c0_316] : memref<64x192xf32, #tpu.memory_space<vmem>>, vector<8x96xf32>
    %cst_317 = arith.constant dense<0.000000e+00> : vector<8x96xf32>
    %1074 = tpu.matmul %1048, %756, %cst_317 {dimension_numbers = #tpu.dot_dimension_numbers<[1], [0], [0], [1], [0, 0, 1, 1], [], []>} : vector<8x32xf32>, vector<32x96xf32>, vector<8x96xf32> -> vector<8x96xf32>
    %1075 = vector.extract_strided_slice %1073 {offsets = [0, 0], sizes = [8, 64], strides = [1, 1]} : vector<8x96xf32> to vector<8x64xf32>
    %1076 = vector.extract_strided_slice %1074 {offsets = [0, 0], sizes = [8, 64], strides = [1, 1]} : vector<8x96xf32> to vector<8x64xf32>
    %1077 = arith.addf %1075, %1076 : vector<8x64xf32>
    %1078 = arith.negf %1077 : vector<8x64xf32>
    %1079 = math.exp %1078 : vector<8x64xf32>
    %cst_318 = arith.constant 1.000000e+00 : f32
    %1080 = vector.broadcast %cst_318 : f32 to vector<8x64xf32>
    %1081 = arith.addf %1080, %1079 : vector<8x64xf32>
    %1082 = arith.divf %1080, %1081 : vector<8x64xf32>
    %1083 = vector.extract_strided_slice %1082 {offsets = [0, 0], sizes = [8, 32], strides = [1, 1]} : vector<8x64xf32> to vector<8x32xf32>
    %1084 = vector.extract_strided_slice %1082 {offsets = [0, 32], sizes = [8, 32], strides = [1, 1]} : vector<8x64xf32> to vector<8x32xf32>
    %1085 = vector.extract_strided_slice %1073 {offsets = [0, 64], sizes = [8, 32], strides = [1, 1]} : vector<8x96xf32> to vector<8x32xf32>
    %1086 = vector.extract_strided_slice %1074 {offsets = [0, 64], sizes = [8, 32], strides = [1, 1]} : vector<8x96xf32> to vector<8x32xf32>
    %1087 = vector.broadcast %761 : vector<1x32xf32> to vector<8x32xf32>
    %1088 = arith.addf %1086, %1087 : vector<8x32xf32>
    %1089 = arith.mulf %1083, %1088 : vector<8x32xf32>
    %1090 = arith.addf %1085, %1089 : vector<8x32xf32>
    %1091 = math.tanh %1090 : vector<8x32xf32>
    %1092 = arith.subf %1048, %1091 : vector<8x32xf32>
    %1093 = arith.mulf %1084, %1092 : vector<8x32xf32>
    %1094 = arith.addf %1091, %1093 : vector<8x32xf32>
    %c56_319 = arith.constant 56 : index
    %c0_320 = arith.constant 0 : index
    %1095 = vector.load %arg12[%c56_319, %c0_320] : memref<64x64xf32, #tpu.memory_space<vmem>>, vector<8x32xf32>
    tpu.vector_store %arg12[%c56_319, %c0_320], %1094 {strides = array<i32>} : memref<64x64xf32, #tpu.memory_space<vmem>>, vector<8x32xf32>,
    %c0_321 = arith.constant 0 : index
    %c96_322 = arith.constant 96 : index
    %1096 = vector.load %arg13[%c0_321, %c96_322] : memref<64x192xf32, #tpu.memory_space<vmem>>, vector<8x96xf32>
    %cst_323 = arith.constant dense<0.000000e+00> : vector<8x96xf32>
    %1097 = tpu.matmul %1071, %758, %cst_323 {dimension_numbers = #tpu.dot_dimension_numbers<[1], [0], [0], [1], [0, 0, 1, 1], [], []>} : vector<8x32xf32>, vector<32x96xf32>, vector<8x96xf32> -> vector<8x96xf32>
    %1098 = vector.extract_strided_slice %1096 {offsets = [0, 0], sizes = [8, 64], strides = [1, 1]} : vector<8x96xf32> to vector<8x64xf32>
    %1099 = vector.extract_strided_slice %1097 {offsets = [0, 0], sizes = [8, 64], strides = [1, 1]} : vector<8x96xf32> to vector<8x64xf32>
    %1100 = arith.addf %1098, %1099 : vector<8x64xf32>
    %1101 = arith.negf %1100 : vector<8x64xf32>
    %1102 = math.exp %1101 : vector<8x64xf32>
    %cst_324 = arith.constant 1.000000e+00 : f32
    %1103 = vector.broadcast %cst_324 : f32 to vector<8x64xf32>
    %1104 = arith.addf %1103, %1102 : vector<8x64xf32>
    %1105 = arith.divf %1103, %1104 : vector<8x64xf32>
    %1106 = vector.extract_strided_slice %1105 {offsets = [0, 0], sizes = [8, 32], strides = [1, 1]} : vector<8x64xf32> to vector<8x32xf32>
    %1107 = vector.extract_strided_slice %1105 {offsets = [0, 32], sizes = [8, 32], strides = [1, 1]} : vector<8x64xf32> to vector<8x32xf32>
    %1108 = vector.extract_strided_slice %1096 {offsets = [0, 64], sizes = [8, 32], strides = [1, 1]} : vector<8x96xf32> to vector<8x32xf32>
    %1109 = vector.extract_strided_slice %1097 {offsets = [0, 64], sizes = [8, 32], strides = [1, 1]} : vector<8x96xf32> to vector<8x32xf32>
    %1110 = vector.broadcast %762 : vector<1x32xf32> to vector<8x32xf32>
    %1111 = arith.addf %1109, %1110 : vector<8x32xf32>
    %1112 = arith.mulf %1106, %1111 : vector<8x32xf32>
    %1113 = arith.addf %1108, %1112 : vector<8x32xf32>
    %1114 = math.tanh %1113 : vector<8x32xf32>
    %1115 = arith.subf %1071, %1114 : vector<8x32xf32>
    %1116 = arith.mulf %1107, %1115 : vector<8x32xf32>
    %1117 = arith.addf %1114, %1116 : vector<8x32xf32>
    %c0_325 = arith.constant 0 : index
    %c32_326 = arith.constant 32 : index
    %1118 = vector.load %arg12[%c0_325, %c32_326] : memref<64x64xf32, #tpu.memory_space<vmem>>, vector<8x32xf32>
    tpu.vector_store %arg12[%c0_325, %c32_326], %1117 {strides = array<i32>} : memref<64x64xf32, #tpu.memory_space<vmem>>, vector<8x32xf32>,
    %c3_327 = arith.constant 3 : index
    %c0_328 = arith.constant 0 : index
    %c0_329 = arith.constant 0 : index
    %1119 = vector.load %arg1[%c3_327, %c0_328, %c0_329] : memref<4x64x192xf32, #tpu.memory_space<vmem>>, vector<1x64x192xf32>
    %1120 = vector.shape_cast %1119 : vector<1x64x192xf32> to vector<64x192xf32>
    %c0_330 = arith.constant 0 : index
    %c0_331 = arith.constant 0 : index
    %1121 = vector.load %arg12[%c0_330, %c0_331] : memref<64x64xf32, #tpu.memory_space<vmem>>, vector<64x64xf32>
    %cst_332 = arith.constant dense<0.000000e+00> : vector<64x192xf32>
    %1122 = tpu.matmul %1121, %1120, %cst_332 {dimension_numbers = #tpu.dot_dimension_numbers<[1], [0], [0], [1], [0, 0, 1, 1], [], []>} : vector<64x64xf32>, vector<64x192xf32>, vector<64x192xf32> -> vector<64x192xf32>
    %c3_333 = arith.constant 3 : index
    %c0_334 = arith.constant 0 : index
    %c0_335 = arith.constant 0 : index
    %1123 = vector.load %arg2[%c3_333, %c0_334, %c0_335] : memref<4x1x192xf32, #tpu.memory_space<vmem>>, vector<1x1x192xf32>
    %1124 = vector.shape_cast %1123 : vector<1x1x192xf32> to vector<1x192xf32>
    %1125 = vector.broadcast %1124 : vector<1x192xf32> to vector<64x192xf32>
    %1126 = arith.addf %1122, %1125 : vector<64x192xf32>
    %c0_336 = arith.constant 0 : index
    %c0_337 = arith.constant 0 : index
    %1127 = vector.load %arg13[%c0_336, %c0_337] : memref<64x192xf32, #tpu.memory_space<vmem>>, vector<64x192xf32>
    tpu.vector_store %arg13[%c0_336, %c0_337], %1126 {strides = array<i32>} : memref<64x192xf32, #tpu.memory_space<vmem>>, vector<64x192xf32>,
    %c6 = arith.constant 6 : index
    %c0_338 = arith.constant 0 : index
    %c0_339 = arith.constant 0 : index
    %1128 = vector.load %arg3[%c6, %c0_338, %c0_339] : memref<8x32x96xf32, #tpu.memory_space<vmem>>, vector<1x32x96xf32>
    %1129 = vector.shape_cast %1128 : vector<1x32x96xf32> to vector<32x96xf32>
    %c7 = arith.constant 7 : index
    %c0_340 = arith.constant 0 : index
    %c0_341 = arith.constant 0 : index
    %1130 = vector.load %arg3[%c7, %c0_340, %c0_341] : memref<8x32x96xf32, #tpu.memory_space<vmem>>, vector<1x32x96xf32>
    %1131 = vector.shape_cast %1130 : vector<1x32x96xf32> to vector<32x96xf32>
    %c3_342 = arith.constant 3 : index
    %c0_343 = arith.constant 0 : index
    %c0_344 = arith.constant 0 : index
    %1132 = vector.load %arg4[%c3_342, %c0_343, %c0_344] : memref<4x1x64xf32, #tpu.memory_space<vmem>>, vector<1x1x64xf32>
    %1133 = vector.shape_cast %1132 : vector<1x1x64xf32> to vector<1x64xf32>
    %1134 = vector.extract_strided_slice %1133 {offsets = [0, 0], sizes = [1, 32], strides = [1, 1]} : vector<1x64xf32> to vector<1x32xf32>
    %1135 = vector.extract_strided_slice %1133 {offsets = [0, 32], sizes = [1, 32], strides = [1, 1]} : vector<1x64xf32> to vector<1x32xf32>
    %c0_345 = arith.constant 0 : index
    %c0_346 = arith.constant 0 : index
    %1136 = vector.load %arg13[%c0_345, %c0_346] : memref<64x192xf32, #tpu.memory_space<vmem>>, vector<8x96xf32>
    %1137 = vector.extract_strided_slice %1136 {offsets = [0, 0], sizes = [8, 64], strides = [1, 1]} : vector<8x96xf32> to vector<8x64xf32>
    %1138 = arith.negf %1137 : vector<8x64xf32>
    %1139 = math.exp %1138 : vector<8x64xf32>
    %cst_347 = arith.constant 1.000000e+00 : f32
    %1140 = vector.broadcast %cst_347 : f32 to vector<8x64xf32>
    %1141 = arith.addf %1140, %1139 : vector<8x64xf32>
    %1142 = arith.divf %1140, %1141 : vector<8x64xf32>
    %1143 = vector.extract_strided_slice %1142 {offsets = [0, 0], sizes = [8, 32], strides = [1, 1]} : vector<8x64xf32> to vector<8x32xf32>
    %1144 = vector.extract_strided_slice %1142 {offsets = [0, 32], sizes = [8, 32], strides = [1, 1]} : vector<8x64xf32> to vector<8x32xf32>
    %1145 = vector.extract_strided_slice %1136 {offsets = [0, 64], sizes = [8, 32], strides = [1, 1]} : vector<8x96xf32> to vector<8x32xf32>
    %1146 = vector.broadcast %1134 : vector<1x32xf32> to vector<8x32xf32>
    %1147 = arith.mulf %1143, %1146 : vector<8x32xf32>
    %1148 = arith.addf %1145, %1147 : vector<8x32xf32>
    %1149 = math.tanh %1148 : vector<8x32xf32>
    %1150 = arith.mulf %1144, %1149 : vector<8x32xf32>
    %1151 = arith.subf %1149, %1150 : vector<8x32xf32>
    %c0_348 = arith.constant 0 : index
    %c0_349 = arith.constant 0 : index
    %1152 = vector.load %arg12[%c0_348, %c0_349] : memref<64x64xf32, #tpu.memory_space<vmem>>, vector<8x32xf32>
    tpu.vector_store %arg12[%c0_348, %c0_349], %1151 {strides = array<i32>} : memref<64x64xf32, #tpu.memory_space<vmem>>, vector<8x32xf32>,
    %c56_350 = arith.constant 56 : index
    %c96_351 = arith.constant 96 : index
    %1153 = vector.load %arg13[%c56_350, %c96_351] : memref<64x192xf32, #tpu.memory_space<vmem>>, vector<8x96xf32>
    %1154 = vector.extract_strided_slice %1153 {offsets = [0, 0], sizes = [8, 64], strides = [1, 1]} : vector<8x96xf32> to vector<8x64xf32>
    %1155 = arith.negf %1154 : vector<8x64xf32>
    %1156 = math.exp %1155 : vector<8x64xf32>
    %cst_352 = arith.constant 1.000000e+00 : f32
    %1157 = vector.broadcast %cst_352 : f32 to vector<8x64xf32>
    %1158 = arith.addf %1157, %1156 : vector<8x64xf32>
    %1159 = arith.divf %1157, %1158 : vector<8x64xf32>
    %1160 = vector.extract_strided_slice %1159 {offsets = [0, 0], sizes = [8, 32], strides = [1, 1]} : vector<8x64xf32> to vector<8x32xf32>
    %1161 = vector.extract_strided_slice %1159 {offsets = [0, 32], sizes = [8, 32], strides = [1, 1]} : vector<8x64xf32> to vector<8x32xf32>
    %1162 = vector.extract_strided_slice %1153 {offsets = [0, 64], sizes = [8, 32], strides = [1, 1]} : vector<8x96xf32> to vector<8x32xf32>
    %1163 = vector.broadcast %1135 : vector<1x32xf32> to vector<8x32xf32>
    %1164 = arith.mulf %1160, %1163 : vector<8x32xf32>
    %1165 = arith.addf %1162, %1164 : vector<8x32xf32>
    %1166 = math.tanh %1165 : vector<8x32xf32>
    %1167 = arith.mulf %1161, %1166 : vector<8x32xf32>
    %1168 = arith.subf %1166, %1167 : vector<8x32xf32>
    %c56_353 = arith.constant 56 : index
    %c32_354 = arith.constant 32 : index
    %1169 = vector.load %arg12[%c56_353, %c32_354] : memref<64x64xf32, #tpu.memory_space<vmem>>, vector<8x32xf32>
    tpu.vector_store %arg12[%c56_353, %c32_354], %1168 {strides = array<i32>} : memref<64x64xf32, #tpu.memory_space<vmem>>, vector<8x32xf32>,
    %c8_355 = arith.constant 8 : index
    %c0_356 = arith.constant 0 : index
    %1170 = vector.load %arg13[%c8_355, %c0_356] : memref<64x192xf32, #tpu.memory_space<vmem>>, vector<8x96xf32>
    %cst_357 = arith.constant dense<0.000000e+00> : vector<8x96xf32>
    %1171 = tpu.matmul %1151, %1129, %cst_357 {dimension_numbers = #tpu.dot_dimension_numbers<[1], [0], [0], [1], [0, 0, 1, 1], [], []>} : vector<8x32xf32>, vector<32x96xf32>, vector<8x96xf32> -> vector<8x96xf32>
    %1172 = vector.extract_strided_slice %1170 {offsets = [0, 0], sizes = [8, 64], strides = [1, 1]} : vector<8x96xf32> to vector<8x64xf32>
    %1173 = vector.extract_strided_slice %1171 {offsets = [0, 0], sizes = [8, 64], strides = [1, 1]} : vector<8x96xf32> to vector<8x64xf32>
    %1174 = arith.addf %1172, %1173 : vector<8x64xf32>
    %1175 = arith.negf %1174 : vector<8x64xf32>
    %1176 = math.exp %1175 : vector<8x64xf32>
    %cst_358 = arith.constant 1.000000e+00 : f32
    %1177 = vector.broadcast %cst_358 : f32 to vector<8x64xf32>
    %1178 = arith.addf %1177, %1176 : vector<8x64xf32>
    %1179 = arith.divf %1177, %1178 : vector<8x64xf32>
    %1180 = vector.extract_strided_slice %1179 {offsets = [0, 0], sizes = [8, 32], strides = [1, 1]} : vector<8x64xf32> to vector<8x32xf32>
    %1181 = vector.extract_strided_slice %1179 {offsets = [0, 32], sizes = [8, 32], strides = [1, 1]} : vector<8x64xf32> to vector<8x32xf32>
    %1182 = vector.extract_strided_slice %1170 {offsets = [0, 64], sizes = [8, 32], strides = [1, 1]} : vector<8x96xf32> to vector<8x32xf32>
    %1183 = vector.extract_strided_slice %1171 {offsets = [0, 64], sizes = [8, 32], strides = [1, 1]} : vector<8x96xf32> to vector<8x32xf32>
    %1184 = vector.broadcast %1134 : vector<1x32xf32> to vector<8x32xf32>
    %1185 = arith.addf %1183, %1184 : vector<8x32xf32>
    %1186 = arith.mulf %1180, %1185 : vector<8x32xf32>
    %1187 = arith.addf %1182, %1186 : vector<8x32xf32>
    %1188 = math.tanh %1187 : vector<8x32xf32>
    %1189 = arith.subf %1151, %1188 : vector<8x32xf32>
    %1190 = arith.mulf %1181, %1189 : vector<8x32xf32>
    %1191 = arith.addf %1188, %1190 : vector<8x32xf32>
    %c8_359 = arith.constant 8 : index
    %c0_360 = arith.constant 0 : index
    %1192 = vector.load %arg12[%c8_359, %c0_360] : memref<64x64xf32, #tpu.memory_space<vmem>>, vector<8x32xf32>
    tpu.vector_store %arg12[%c8_359, %c0_360], %1191 {strides = array<i32>} : memref<64x64xf32, #tpu.memory_space<vmem>>, vector<8x32xf32>,
    %c48_361 = arith.constant 48 : index
    %c96_362 = arith.constant 96 : index
    %1193 = vector.load %arg13[%c48_361, %c96_362] : memref<64x192xf32, #tpu.memory_space<vmem>>, vector<8x96xf32>
    %cst_363 = arith.constant dense<0.000000e+00> : vector<8x96xf32>
    %1194 = tpu.matmul %1168, %1131, %cst_363 {dimension_numbers = #tpu.dot_dimension_numbers<[1], [0], [0], [1], [0, 0, 1, 1], [], []>} : vector<8x32xf32>, vector<32x96xf32>, vector<8x96xf32> -> vector<8x96xf32>
    %1195 = vector.extract_strided_slice %1193 {offsets = [0, 0], sizes = [8, 64], strides = [1, 1]} : vector<8x96xf32> to vector<8x64xf32>
    %1196 = vector.extract_strided_slice %1194 {offsets = [0, 0], sizes = [8, 64], strides = [1, 1]} : vector<8x96xf32> to vector<8x64xf32>
    %1197 = arith.addf %1195, %1196 : vector<8x64xf32>
    %1198 = arith.negf %1197 : vector<8x64xf32>
    %1199 = math.exp %1198 : vector<8x64xf32>
    %cst_364 = arith.constant 1.000000e+00 : f32
    %1200 = vector.broadcast %cst_364 : f32 to vector<8x64xf32>
    %1201 = arith.addf %1200, %1199 : vector<8x64xf32>
    %1202 = arith.divf %1200, %1201 : vector<8x64xf32>
    %1203 = vector.extract_strided_slice %1202 {offsets = [0, 0], sizes = [8, 32], strides = [1, 1]} : vector<8x64xf32> to vector<8x32xf32>
    %1204 = vector.extract_strided_slice %1202 {offsets = [0, 32], sizes = [8, 32], strides = [1, 1]} : vector<8x64xf32> to vector<8x32xf32>
    %1205 = vector.extract_strided_slice %1193 {offsets = [0, 64], sizes = [8, 32], strides = [1, 1]} : vector<8x96xf32> to vector<8x32xf32>
    %1206 = vector.extract_strided_slice %1194 {offsets = [0, 64], sizes = [8, 32], strides = [1, 1]} : vector<8x96xf32> to vector<8x32xf32>
    %1207 = vector.broadcast %1135 : vector<1x32xf32> to vector<8x32xf32>
    %1208 = arith.addf %1206, %1207 : vector<8x32xf32>
    %1209 = arith.mulf %1203, %1208 : vector<8x32xf32>
    %1210 = arith.addf %1205, %1209 : vector<8x32xf32>
    %1211 = math.tanh %1210 : vector<8x32xf32>
    %1212 = arith.subf %1168, %1211 : vector<8x32xf32>
    %1213 = arith.mulf %1204, %1212 : vector<8x32xf32>
    %1214 = arith.addf %1211, %1213 : vector<8x32xf32>
    %c48_365 = arith.constant 48 : index
    %c32_366 = arith.constant 32 : index
    %1215 = vector.load %arg12[%c48_365, %c32_366] : memref<64x64xf32, #tpu.memory_space<vmem>>, vector<8x32xf32>
    tpu.vector_store %arg12[%c48_365, %c32_366], %1214 {strides = array<i32>} : memref<64x64xf32, #tpu.memory_space<vmem>>, vector<8x32xf32>,
    %c16_367 = arith.constant 16 : index
    %c0_368 = arith.constant 0 : index
    %1216 = vector.load %arg13[%c16_367, %c0_368] : memref<64x192xf32, #tpu.memory_space<vmem>>, vector<8x96xf32>
    %cst_369 = arith.constant dense<0.000000e+00> : vector<8x96xf32>
    %1217 = tpu.matmul %1191, %1129, %cst_369 {dimension_numbers = #tpu.dot_dimension_numbers<[1], [0], [0], [1], [0, 0, 1, 1], [], []>} : vector<8x32xf32>, vector<32x96xf32>, vector<8x96xf32> -> vector<8x96xf32>
    %1218 = vector.extract_strided_slice %1216 {offsets = [0, 0], sizes = [8, 64], strides = [1, 1]} : vector<8x96xf32> to vector<8x64xf32>
    %1219 = vector.extract_strided_slice %1217 {offsets = [0, 0], sizes = [8, 64], strides = [1, 1]} : vector<8x96xf32> to vector<8x64xf32>
    %1220 = arith.addf %1218, %1219 : vector<8x64xf32>
    %1221 = arith.negf %1220 : vector<8x64xf32>
    %1222 = math.exp %1221 : vector<8x64xf32>
    %cst_370 = arith.constant 1.000000e+00 : f32
    %1223 = vector.broadcast %cst_370 : f32 to vector<8x64xf32>
    %1224 = arith.addf %1223, %1222 : vector<8x64xf32>
    %1225 = arith.divf %1223, %1224 : vector<8x64xf32>
    %1226 = vector.extract_strided_slice %1225 {offsets = [0, 0], sizes = [8, 32], strides = [1, 1]} : vector<8x64xf32> to vector<8x32xf32>
    %1227 = vector.extract_strided_slice %1225 {offsets = [0, 32], sizes = [8, 32], strides = [1, 1]} : vector<8x64xf32> to vector<8x32xf32>
    %1228 = vector.extract_strided_slice %1216 {offsets = [0, 64], sizes = [8, 32], strides = [1, 1]} : vector<8x96xf32> to vector<8x32xf32>
    %1229 = vector.extract_strided_slice %1217 {offsets = [0, 64], sizes = [8, 32], strides = [1, 1]} : vector<8x96xf32> to vector<8x32xf32>
    %1230 = vector.broadcast %1134 : vector<1x32xf32> to vector<8x32xf32>
    %1231 = arith.addf %1229, %1230 : vector<8x32xf32>
    %1232 = arith.mulf %1226, %1231 : vector<8x32xf32>
    %1233 = arith.addf %1228, %1232 : vector<8x32xf32>
    %1234 = math.tanh %1233 : vector<8x32xf32>
    %1235 = arith.subf %1191, %1234 : vector<8x32xf32>
    %1236 = arith.mulf %1227, %1235 : vector<8x32xf32>
    %1237 = arith.addf %1234, %1236 : vector<8x32xf32>
    %c16_371 = arith.constant 16 : index
    %c0_372 = arith.constant 0 : index
    %1238 = vector.load %arg12[%c16_371, %c0_372] : memref<64x64xf32, #tpu.memory_space<vmem>>, vector<8x32xf32>
    tpu.vector_store %arg12[%c16_371, %c0_372], %1237 {strides = array<i32>} : memref<64x64xf32, #tpu.memory_space<vmem>>, vector<8x32xf32>,
    %c40_373 = arith.constant 40 : index
    %c96_374 = arith.constant 96 : index
    %1239 = vector.load %arg13[%c40_373, %c96_374] : memref<64x192xf32, #tpu.memory_space<vmem>>, vector<8x96xf32>
    %cst_375 = arith.constant dense<0.000000e+00> : vector<8x96xf32>
    %1240 = tpu.matmul %1214, %1131, %cst_375 {dimension_numbers = #tpu.dot_dimension_numbers<[1], [0], [0], [1], [0, 0, 1, 1], [], []>} : vector<8x32xf32>, vector<32x96xf32>, vector<8x96xf32> -> vector<8x96xf32>
    %1241 = vector.extract_strided_slice %1239 {offsets = [0, 0], sizes = [8, 64], strides = [1, 1]} : vector<8x96xf32> to vector<8x64xf32>
    %1242 = vector.extract_strided_slice %1240 {offsets = [0, 0], sizes = [8, 64], strides = [1, 1]} : vector<8x96xf32> to vector<8x64xf32>
    %1243 = arith.addf %1241, %1242 : vector<8x64xf32>
    %1244 = arith.negf %1243 : vector<8x64xf32>
    %1245 = math.exp %1244 : vector<8x64xf32>
    %cst_376 = arith.constant 1.000000e+00 : f32
    %1246 = vector.broadcast %cst_376 : f32 to vector<8x64xf32>
    %1247 = arith.addf %1246, %1245 : vector<8x64xf32>
    %1248 = arith.divf %1246, %1247 : vector<8x64xf32>
    %1249 = vector.extract_strided_slice %1248 {offsets = [0, 0], sizes = [8, 32], strides = [1, 1]} : vector<8x64xf32> to vector<8x32xf32>
    %1250 = vector.extract_strided_slice %1248 {offsets = [0, 32], sizes = [8, 32], strides = [1, 1]} : vector<8x64xf32> to vector<8x32xf32>
    %1251 = vector.extract_strided_slice %1239 {offsets = [0, 64], sizes = [8, 32], strides = [1, 1]} : vector<8x96xf32> to vector<8x32xf32>
    %1252 = vector.extract_strided_slice %1240 {offsets = [0, 64], sizes = [8, 32], strides = [1, 1]} : vector<8x96xf32> to vector<8x32xf32>
    %1253 = vector.broadcast %1135 : vector<1x32xf32> to vector<8x32xf32>
    %1254 = arith.addf %1252, %1253 : vector<8x32xf32>
    %1255 = arith.mulf %1249, %1254 : vector<8x32xf32>
    %1256 = arith.addf %1251, %1255 : vector<8x32xf32>
    %1257 = math.tanh %1256 : vector<8x32xf32>
    %1258 = arith.subf %1214, %1257 : vector<8x32xf32>
    %1259 = arith.mulf %1250, %1258 : vector<8x32xf32>
    %1260 = arith.addf %1257, %1259 : vector<8x32xf32>
    %c40_377 = arith.constant 40 : index
    %c32_378 = arith.constant 32 : index
    %1261 = vector.load %arg12[%c40_377, %c32_378] : memref<64x64xf32, #tpu.memory_space<vmem>>, vector<8x32xf32>
    tpu.vector_store %arg12[%c40_377, %c32_378], %1260 {strides = array<i32>} : memref<64x64xf32, #tpu.memory_space<vmem>>, vector<8x32xf32>,
    %c24_379 = arith.constant 24 : index
    %c0_380 = arith.constant 0 : index
    %1262 = vector.load %arg13[%c24_379, %c0_380] : memref<64x192xf32, #tpu.memory_space<vmem>>, vector<8x96xf32>
    %cst_381 = arith.constant dense<0.000000e+00> : vector<8x96xf32>
    %1263 = tpu.matmul %1237, %1129, %cst_381 {dimension_numbers = #tpu.dot_dimension_numbers<[1], [0], [0], [1], [0, 0, 1, 1], [], []>} : vector<8x32xf32>, vector<32x96xf32>, vector<8x96xf32> -> vector<8x96xf32>
    %1264 = vector.extract_strided_slice %1262 {offsets = [0, 0], sizes = [8, 64], strides = [1, 1]} : vector<8x96xf32> to vector<8x64xf32>
    %1265 = vector.extract_strided_slice %1263 {offsets = [0, 0], sizes = [8, 64], strides = [1, 1]} : vector<8x96xf32> to vector<8x64xf32>
    %1266 = arith.addf %1264, %1265 : vector<8x64xf32>
    %1267 = arith.negf %1266 : vector<8x64xf32>
    %1268 = math.exp %1267 : vector<8x64xf32>
    %cst_382 = arith.constant 1.000000e+00 : f32
    %1269 = vector.broadcast %cst_382 : f32 to vector<8x64xf32>
    %1270 = arith.addf %1269, %1268 : vector<8x64xf32>
    %1271 = arith.divf %1269, %1270 : vector<8x64xf32>
    %1272 = vector.extract_strided_slice %1271 {offsets = [0, 0], sizes = [8, 32], strides = [1, 1]} : vector<8x64xf32> to vector<8x32xf32>
    %1273 = vector.extract_strided_slice %1271 {offsets = [0, 32], sizes = [8, 32], strides = [1, 1]} : vector<8x64xf32> to vector<8x32xf32>
    %1274 = vector.extract_strided_slice %1262 {offsets = [0, 64], sizes = [8, 32], strides = [1, 1]} : vector<8x96xf32> to vector<8x32xf32>
    %1275 = vector.extract_strided_slice %1263 {offsets = [0, 64], sizes = [8, 32], strides = [1, 1]} : vector<8x96xf32> to vector<8x32xf32>
    %1276 = vector.broadcast %1134 : vector<1x32xf32> to vector<8x32xf32>
    %1277 = arith.addf %1275, %1276 : vector<8x32xf32>
    %1278 = arith.mulf %1272, %1277 : vector<8x32xf32>
    %1279 = arith.addf %1274, %1278 : vector<8x32xf32>
    %1280 = math.tanh %1279 : vector<8x32xf32>
    %1281 = arith.subf %1237, %1280 : vector<8x32xf32>
    %1282 = arith.mulf %1273, %1281 : vector<8x32xf32>
    %1283 = arith.addf %1280, %1282 : vector<8x32xf32>
    %c24_383 = arith.constant 24 : index
    %c0_384 = arith.constant 0 : index
    %1284 = vector.load %arg12[%c24_383, %c0_384] : memref<64x64xf32, #tpu.memory_space<vmem>>, vector<8x32xf32>
    tpu.vector_store %arg12[%c24_383, %c0_384], %1283 {strides = array<i32>} : memref<64x64xf32, #tpu.memory_space<vmem>>, vector<8x32xf32>,
    %c32_385 = arith.constant 32 : index
    %c96_386 = arith.constant 96 : index
    %1285 = vector.load %arg13[%c32_385, %c96_386] : memref<64x192xf32, #tpu.memory_space<vmem>>, vector<8x96xf32>
    %cst_387 = arith.constant dense<0.000000e+00> : vector<8x96xf32>
    %1286 = tpu.matmul %1260, %1131, %cst_387 {dimension_numbers = #tpu.dot_dimension_numbers<[1], [0], [0], [1], [0, 0, 1, 1], [], []>} : vector<8x32xf32>, vector<32x96xf32>, vector<8x96xf32> -> vector<8x96xf32>
    %1287 = vector.extract_strided_slice %1285 {offsets = [0, 0], sizes = [8, 64], strides = [1, 1]} : vector<8x96xf32> to vector<8x64xf32>
    %1288 = vector.extract_strided_slice %1286 {offsets = [0, 0], sizes = [8, 64], strides = [1, 1]} : vector<8x96xf32> to vector<8x64xf32>
    %1289 = arith.addf %1287, %1288 : vector<8x64xf32>
    %1290 = arith.negf %1289 : vector<8x64xf32>
    %1291 = math.exp %1290 : vector<8x64xf32>
    %cst_388 = arith.constant 1.000000e+00 : f32
    %1292 = vector.broadcast %cst_388 : f32 to vector<8x64xf32>
    %1293 = arith.addf %1292, %1291 : vector<8x64xf32>
    %1294 = arith.divf %1292, %1293 : vector<8x64xf32>
    %1295 = vector.extract_strided_slice %1294 {offsets = [0, 0], sizes = [8, 32], strides = [1, 1]} : vector<8x64xf32> to vector<8x32xf32>
    %1296 = vector.extract_strided_slice %1294 {offsets = [0, 32], sizes = [8, 32], strides = [1, 1]} : vector<8x64xf32> to vector<8x32xf32>
    %1297 = vector.extract_strided_slice %1285 {offsets = [0, 64], sizes = [8, 32], strides = [1, 1]} : vector<8x96xf32> to vector<8x32xf32>
    %1298 = vector.extract_strided_slice %1286 {offsets = [0, 64], sizes = [8, 32], strides = [1, 1]} : vector<8x96xf32> to vector<8x32xf32>
    %1299 = vector.broadcast %1135 : vector<1x32xf32> to vector<8x32xf32>
    %1300 = arith.addf %1298, %1299 : vector<8x32xf32>
    %1301 = arith.mulf %1295, %1300 : vector<8x32xf32>
    %1302 = arith.addf %1297, %1301 : vector<8x32xf32>
    %1303 = math.tanh %1302 : vector<8x32xf32>
    %1304 = arith.subf %1260, %1303 : vector<8x32xf32>
    %1305 = arith.mulf %1296, %1304 : vector<8x32xf32>
    %1306 = arith.addf %1303, %1305 : vector<8x32xf32>
    %c32_389 = arith.constant 32 : index
    %c32_390 = arith.constant 32 : index
    %1307 = vector.load %arg12[%c32_389, %c32_390] : memref<64x64xf32, #tpu.memory_space<vmem>>, vector<8x32xf32>
    tpu.vector_store %arg12[%c32_389, %c32_390], %1306 {strides = array<i32>} : memref<64x64xf32, #tpu.memory_space<vmem>>, vector<8x32xf32>,
    %c32_391 = arith.constant 32 : index
    %c0_392 = arith.constant 0 : index
    %1308 = vector.load %arg13[%c32_391, %c0_392] : memref<64x192xf32, #tpu.memory_space<vmem>>, vector<8x96xf32>
    %cst_393 = arith.constant dense<0.000000e+00> : vector<8x96xf32>
    %1309 = tpu.matmul %1283, %1129, %cst_393 {dimension_numbers = #tpu.dot_dimension_numbers<[1], [0], [0], [1], [0, 0, 1, 1], [], []>} : vector<8x32xf32>, vector<32x96xf32>, vector<8x96xf32> -> vector<8x96xf32>
    %1310 = vector.extract_strided_slice %1308 {offsets = [0, 0], sizes = [8, 64], strides = [1, 1]} : vector<8x96xf32> to vector<8x64xf32>
    %1311 = vector.extract_strided_slice %1309 {offsets = [0, 0], sizes = [8, 64], strides = [1, 1]} : vector<8x96xf32> to vector<8x64xf32>
    %1312 = arith.addf %1310, %1311 : vector<8x64xf32>
    %1313 = arith.negf %1312 : vector<8x64xf32>
    %1314 = math.exp %1313 : vector<8x64xf32>
    %cst_394 = arith.constant 1.000000e+00 : f32
    %1315 = vector.broadcast %cst_394 : f32 to vector<8x64xf32>
    %1316 = arith.addf %1315, %1314 : vector<8x64xf32>
    %1317 = arith.divf %1315, %1316 : vector<8x64xf32>
    %1318 = vector.extract_strided_slice %1317 {offsets = [0, 0], sizes = [8, 32], strides = [1, 1]} : vector<8x64xf32> to vector<8x32xf32>
    %1319 = vector.extract_strided_slice %1317 {offsets = [0, 32], sizes = [8, 32], strides = [1, 1]} : vector<8x64xf32> to vector<8x32xf32>
    %1320 = vector.extract_strided_slice %1308 {offsets = [0, 64], sizes = [8, 32], strides = [1, 1]} : vector<8x96xf32> to vector<8x32xf32>
    %1321 = vector.extract_strided_slice %1309 {offsets = [0, 64], sizes = [8, 32], strides = [1, 1]} : vector<8x96xf32> to vector<8x32xf32>
    %1322 = vector.broadcast %1134 : vector<1x32xf32> to vector<8x32xf32>
    %1323 = arith.addf %1321, %1322 : vector<8x32xf32>
    %1324 = arith.mulf %1318, %1323 : vector<8x32xf32>
    %1325 = arith.addf %1320, %1324 : vector<8x32xf32>
    %1326 = math.tanh %1325 : vector<8x32xf32>
    %1327 = arith.subf %1283, %1326 : vector<8x32xf32>
    %1328 = arith.mulf %1319, %1327 : vector<8x32xf32>
    %1329 = arith.addf %1326, %1328 : vector<8x32xf32>
    %c32_395 = arith.constant 32 : index
    %c0_396 = arith.constant 0 : index
    %1330 = vector.load %arg12[%c32_395, %c0_396] : memref<64x64xf32, #tpu.memory_space<vmem>>, vector<8x32xf32>
    tpu.vector_store %arg12[%c32_395, %c0_396], %1329 {strides = array<i32>} : memref<64x64xf32, #tpu.memory_space<vmem>>, vector<8x32xf32>,
    %c24_397 = arith.constant 24 : index
    %c96_398 = arith.constant 96 : index
    %1331 = vector.load %arg13[%c24_397, %c96_398] : memref<64x192xf32, #tpu.memory_space<vmem>>, vector<8x96xf32>
    %cst_399 = arith.constant dense<0.000000e+00> : vector<8x96xf32>
    %1332 = tpu.matmul %1306, %1131, %cst_399 {dimension_numbers = #tpu.dot_dimension_numbers<[1], [0], [0], [1], [0, 0, 1, 1], [], []>} : vector<8x32xf32>, vector<32x96xf32>, vector<8x96xf32> -> vector<8x96xf32>
    %1333 = vector.extract_strided_slice %1331 {offsets = [0, 0], sizes = [8, 64], strides = [1, 1]} : vector<8x96xf32> to vector<8x64xf32>
    %1334 = vector.extract_strided_slice %1332 {offsets = [0, 0], sizes = [8, 64], strides = [1, 1]} : vector<8x96xf32> to vector<8x64xf32>
    %1335 = arith.addf %1333, %1334 : vector<8x64xf32>
    %1336 = arith.negf %1335 : vector<8x64xf32>
    %1337 = math.exp %1336 : vector<8x64xf32>
    %cst_400 = arith.constant 1.000000e+00 : f32
    %1338 = vector.broadcast %cst_400 : f32 to vector<8x64xf32>
    %1339 = arith.addf %1338, %1337 : vector<8x64xf32>
    %1340 = arith.divf %1338, %1339 : vector<8x64xf32>
    %1341 = vector.extract_strided_slice %1340 {offsets = [0, 0], sizes = [8, 32], strides = [1, 1]} : vector<8x64xf32> to vector<8x32xf32>
    %1342 = vector.extract_strided_slice %1340 {offsets = [0, 32], sizes = [8, 32], strides = [1, 1]} : vector<8x64xf32> to vector<8x32xf32>
    %1343 = vector.extract_strided_slice %1331 {offsets = [0, 64], sizes = [8, 32], strides = [1, 1]} : vector<8x96xf32> to vector<8x32xf32>
    %1344 = vector.extract_strided_slice %1332 {offsets = [0, 64], sizes = [8, 32], strides = [1, 1]} : vector<8x96xf32> to vector<8x32xf32>
    %1345 = vector.broadcast %1135 : vector<1x32xf32> to vector<8x32xf32>
    %1346 = arith.addf %1344, %1345 : vector<8x32xf32>
    %1347 = arith.mulf %1341, %1346 : vector<8x32xf32>
    %1348 = arith.addf %1343, %1347 : vector<8x32xf32>
    %1349 = math.tanh %1348 : vector<8x32xf32>
    %1350 = arith.subf %1306, %1349 : vector<8x32xf32>
    %1351 = arith.mulf %1342, %1350 : vector<8x32xf32>
    %1352 = arith.addf %1349, %1351 : vector<8x32xf32>
    %c24_401 = arith.constant 24 : index
    %c32_402 = arith.constant 32 : index
    %1353 = vector.load %arg12[%c24_401, %c32_402] : memref<64x64xf32, #tpu.memory_space<vmem>>, vector<8x32xf32>
    tpu.vector_store %arg12[%c24_401, %c32_402], %1352 {strides = array<i32>} : memref<64x64xf32, #tpu.memory_space<vmem>>, vector<8x32xf32>,
    %c40_403 = arith.constant 40 : index
    %c0_404 = arith.constant 0 : index
    %1354 = vector.load %arg13[%c40_403, %c0_404] : memref<64x192xf32, #tpu.memory_space<vmem>>, vector<8x96xf32>
    %cst_405 = arith.constant dense<0.000000e+00> : vector<8x96xf32>
    %1355 = tpu.matmul %1329, %1129, %cst_405 {dimension_numbers = #tpu.dot_dimension_numbers<[1], [0], [0], [1], [0, 0, 1, 1], [], []>} : vector<8x32xf32>, vector<32x96xf32>, vector<8x96xf32> -> vector<8x96xf32>
    %1356 = vector.extract_strided_slice %1354 {offsets = [0, 0], sizes = [8, 64], strides = [1, 1]} : vector<8x96xf32> to vector<8x64xf32>
    %1357 = vector.extract_strided_slice %1355 {offsets = [0, 0], sizes = [8, 64], strides = [1, 1]} : vector<8x96xf32> to vector<8x64xf32>
    %1358 = arith.addf %1356, %1357 : vector<8x64xf32>
    %1359 = arith.negf %1358 : vector<8x64xf32>
    %1360 = math.exp %1359 : vector<8x64xf32>
    %cst_406 = arith.constant 1.000000e+00 : f32
    %1361 = vector.broadcast %cst_406 : f32 to vector<8x64xf32>
    %1362 = arith.addf %1361, %1360 : vector<8x64xf32>
    %1363 = arith.divf %1361, %1362 : vector<8x64xf32>
    %1364 = vector.extract_strided_slice %1363 {offsets = [0, 0], sizes = [8, 32], strides = [1, 1]} : vector<8x64xf32> to vector<8x32xf32>
    %1365 = vector.extract_strided_slice %1363 {offsets = [0, 32], sizes = [8, 32], strides = [1, 1]} : vector<8x64xf32> to vector<8x32xf32>
    %1366 = vector.extract_strided_slice %1354 {offsets = [0, 64], sizes = [8, 32], strides = [1, 1]} : vector<8x96xf32> to vector<8x32xf32>
    %1367 = vector.extract_strided_slice %1355 {offsets = [0, 64], sizes = [8, 32], strides = [1, 1]} : vector<8x96xf32> to vector<8x32xf32>
    %1368 = vector.broadcast %1134 : vector<1x32xf32> to vector<8x32xf32>
    %1369 = arith.addf %1367, %1368 : vector<8x32xf32>
    %1370 = arith.mulf %1364, %1369 : vector<8x32xf32>
    %1371 = arith.addf %1366, %1370 : vector<8x32xf32>
    %1372 = math.tanh %1371 : vector<8x32xf32>
    %1373 = arith.subf %1329, %1372 : vector<8x32xf32>
    %1374 = arith.mulf %1365, %1373 : vector<8x32xf32>
    %1375 = arith.addf %1372, %1374 : vector<8x32xf32>
    %c40_407 = arith.constant 40 : index
    %c0_408 = arith.constant 0 : index
    %1376 = vector.load %arg12[%c40_407, %c0_408] : memref<64x64xf32, #tpu.memory_space<vmem>>, vector<8x32xf32>
    tpu.vector_store %arg12[%c40_407, %c0_408], %1375 {strides = array<i32>} : memref<64x64xf32, #tpu.memory_space<vmem>>, vector<8x32xf32>,
    %c16_409 = arith.constant 16 : index
    %c96_410 = arith.constant 96 : index
    %1377 = vector.load %arg13[%c16_409, %c96_410] : memref<64x192xf32, #tpu.memory_space<vmem>>, vector<8x96xf32>
    %cst_411 = arith.constant dense<0.000000e+00> : vector<8x96xf32>
    %1378 = tpu.matmul %1352, %1131, %cst_411 {dimension_numbers = #tpu.dot_dimension_numbers<[1], [0], [0], [1], [0, 0, 1, 1], [], []>} : vector<8x32xf32>, vector<32x96xf32>, vector<8x96xf32> -> vector<8x96xf32>
    %1379 = vector.extract_strided_slice %1377 {offsets = [0, 0], sizes = [8, 64], strides = [1, 1]} : vector<8x96xf32> to vector<8x64xf32>
    %1380 = vector.extract_strided_slice %1378 {offsets = [0, 0], sizes = [8, 64], strides = [1, 1]} : vector<8x96xf32> to vector<8x64xf32>
    %1381 = arith.addf %1379, %1380 : vector<8x64xf32>
    %1382 = arith.negf %1381 : vector<8x64xf32>
    %1383 = math.exp %1382 : vector<8x64xf32>
    %cst_412 = arith.constant 1.000000e+00 : f32
    %1384 = vector.broadcast %cst_412 : f32 to vector<8x64xf32>
    %1385 = arith.addf %1384, %1383 : vector<8x64xf32>
    %1386 = arith.divf %1384, %1385 : vector<8x64xf32>
    %1387 = vector.extract_strided_slice %1386 {offsets = [0, 0], sizes = [8, 32], strides = [1, 1]} : vector<8x64xf32> to vector<8x32xf32>
    %1388 = vector.extract_strided_slice %1386 {offsets = [0, 32], sizes = [8, 32], strides = [1, 1]} : vector<8x64xf32> to vector<8x32xf32>
    %1389 = vector.extract_strided_slice %1377 {offsets = [0, 64], sizes = [8, 32], strides = [1, 1]} : vector<8x96xf32> to vector<8x32xf32>
    %1390 = vector.extract_strided_slice %1378 {offsets = [0, 64], sizes = [8, 32], strides = [1, 1]} : vector<8x96xf32> to vector<8x32xf32>
    %1391 = vector.broadcast %1135 : vector<1x32xf32> to vector<8x32xf32>
    %1392 = arith.addf %1390, %1391 : vector<8x32xf32>
    %1393 = arith.mulf %1387, %1392 : vector<8x32xf32>
    %1394 = arith.addf %1389, %1393 : vector<8x32xf32>
    %1395 = math.tanh %1394 : vector<8x32xf32>
    %1396 = arith.subf %1352, %1395 : vector<8x32xf32>
    %1397 = arith.mulf %1388, %1396 : vector<8x32xf32>
    %1398 = arith.addf %1395, %1397 : vector<8x32xf32>
    %c16_413 = arith.constant 16 : index
    %c32_414 = arith.constant 32 : index
    %1399 = vector.load %arg12[%c16_413, %c32_414] : memref<64x64xf32, #tpu.memory_space<vmem>>, vector<8x32xf32>
    tpu.vector_store %arg12[%c16_413, %c32_414], %1398 {strides = array<i32>} : memref<64x64xf32, #tpu.memory_space<vmem>>, vector<8x32xf32>,
    %c48_415 = arith.constant 48 : index
    %c0_416 = arith.constant 0 : index
    %1400 = vector.load %arg13[%c48_415, %c0_416] : memref<64x192xf32, #tpu.memory_space<vmem>>, vector<8x96xf32>
    %cst_417 = arith.constant dense<0.000000e+00> : vector<8x96xf32>
    %1401 = tpu.matmul %1375, %1129, %cst_417 {dimension_numbers = #tpu.dot_dimension_numbers<[1], [0], [0], [1], [0, 0, 1, 1], [], []>} : vector<8x32xf32>, vector<32x96xf32>, vector<8x96xf32> -> vector<8x96xf32>
    %1402 = vector.extract_strided_slice %1400 {offsets = [0, 0], sizes = [8, 64], strides = [1, 1]} : vector<8x96xf32> to vector<8x64xf32>
    %1403 = vector.extract_strided_slice %1401 {offsets = [0, 0], sizes = [8, 64], strides = [1, 1]} : vector<8x96xf32> to vector<8x64xf32>
    %1404 = arith.addf %1402, %1403 : vector<8x64xf32>
    %1405 = arith.negf %1404 : vector<8x64xf32>
    %1406 = math.exp %1405 : vector<8x64xf32>
    %cst_418 = arith.constant 1.000000e+00 : f32
    %1407 = vector.broadcast %cst_418 : f32 to vector<8x64xf32>
    %1408 = arith.addf %1407, %1406 : vector<8x64xf32>
    %1409 = arith.divf %1407, %1408 : vector<8x64xf32>
    %1410 = vector.extract_strided_slice %1409 {offsets = [0, 0], sizes = [8, 32], strides = [1, 1]} : vector<8x64xf32> to vector<8x32xf32>
    %1411 = vector.extract_strided_slice %1409 {offsets = [0, 32], sizes = [8, 32], strides = [1, 1]} : vector<8x64xf32> to vector<8x32xf32>
    %1412 = vector.extract_strided_slice %1400 {offsets = [0, 64], sizes = [8, 32], strides = [1, 1]} : vector<8x96xf32> to vector<8x32xf32>
    %1413 = vector.extract_strided_slice %1401 {offsets = [0, 64], sizes = [8, 32], strides = [1, 1]} : vector<8x96xf32> to vector<8x32xf32>
    %1414 = vector.broadcast %1134 : vector<1x32xf32> to vector<8x32xf32>
    %1415 = arith.addf %1413, %1414 : vector<8x32xf32>
    %1416 = arith.mulf %1410, %1415 : vector<8x32xf32>
    %1417 = arith.addf %1412, %1416 : vector<8x32xf32>
    %1418 = math.tanh %1417 : vector<8x32xf32>
    %1419 = arith.subf %1375, %1418 : vector<8x32xf32>
    %1420 = arith.mulf %1411, %1419 : vector<8x32xf32>
    %1421 = arith.addf %1418, %1420 : vector<8x32xf32>
    %c48_419 = arith.constant 48 : index
    %c0_420 = arith.constant 0 : index
    %1422 = vector.load %arg12[%c48_419, %c0_420] : memref<64x64xf32, #tpu.memory_space<vmem>>, vector<8x32xf32>
    tpu.vector_store %arg12[%c48_419, %c0_420], %1421 {strides = array<i32>} : memref<64x64xf32, #tpu.memory_space<vmem>>, vector<8x32xf32>,
    %c8_421 = arith.constant 8 : index
    %c96_422 = arith.constant 96 : index
    %1423 = vector.load %arg13[%c8_421, %c96_422] : memref<64x192xf32, #tpu.memory_space<vmem>>, vector<8x96xf32>
    %cst_423 = arith.constant dense<0.000000e+00> : vector<8x96xf32>
    %1424 = tpu.matmul %1398, %1131, %cst_423 {dimension_numbers = #tpu.dot_dimension_numbers<[1], [0], [0], [1], [0, 0, 1, 1], [], []>} : vector<8x32xf32>, vector<32x96xf32>, vector<8x96xf32> -> vector<8x96xf32>
    %1425 = vector.extract_strided_slice %1423 {offsets = [0, 0], sizes = [8, 64], strides = [1, 1]} : vector<8x96xf32> to vector<8x64xf32>
    %1426 = vector.extract_strided_slice %1424 {offsets = [0, 0], sizes = [8, 64], strides = [1, 1]} : vector<8x96xf32> to vector<8x64xf32>
    %1427 = arith.addf %1425, %1426 : vector<8x64xf32>
    %1428 = arith.negf %1427 : vector<8x64xf32>
    %1429 = math.exp %1428 : vector<8x64xf32>
    %cst_424 = arith.constant 1.000000e+00 : f32
    %1430 = vector.broadcast %cst_424 : f32 to vector<8x64xf32>
    %1431 = arith.addf %1430, %1429 : vector<8x64xf32>
    %1432 = arith.divf %1430, %1431 : vector<8x64xf32>
    %1433 = vector.extract_strided_slice %1432 {offsets = [0, 0], sizes = [8, 32], strides = [1, 1]} : vector<8x64xf32> to vector<8x32xf32>
    %1434 = vector.extract_strided_slice %1432 {offsets = [0, 32], sizes = [8, 32], strides = [1, 1]} : vector<8x64xf32> to vector<8x32xf32>
    %1435 = vector.extract_strided_slice %1423 {offsets = [0, 64], sizes = [8, 32], strides = [1, 1]} : vector<8x96xf32> to vector<8x32xf32>
    %1436 = vector.extract_strided_slice %1424 {offsets = [0, 64], sizes = [8, 32], strides = [1, 1]} : vector<8x96xf32> to vector<8x32xf32>
    %1437 = vector.broadcast %1135 : vector<1x32xf32> to vector<8x32xf32>
    %1438 = arith.addf %1436, %1437 : vector<8x32xf32>
    %1439 = arith.mulf %1433, %1438 : vector<8x32xf32>
    %1440 = arith.addf %1435, %1439 : vector<8x32xf32>
    %1441 = math.tanh %1440 : vector<8x32xf32>
    %1442 = arith.subf %1398, %1441 : vector<8x32xf32>
    %1443 = arith.mulf %1434, %1442 : vector<8x32xf32>
    %1444 = arith.addf %1441, %1443 : vector<8x32xf32>
    %c8_425 = arith.constant 8 : index
    %c32_426 = arith.constant 32 : index
    %1445 = vector.load %arg12[%c8_425, %c32_426] : memref<64x64xf32, #tpu.memory_space<vmem>>, vector<8x32xf32>
    tpu.vector_store %arg12[%c8_425, %c32_426], %1444 {strides = array<i32>} : memref<64x64xf32, #tpu.memory_space<vmem>>, vector<8x32xf32>,
    %c56_427 = arith.constant 56 : index
    %c0_428 = arith.constant 0 : index
    %1446 = vector.load %arg13[%c56_427, %c0_428] : memref<64x192xf32, #tpu.memory_space<vmem>>, vector<8x96xf32>
    %cst_429 = arith.constant dense<0.000000e+00> : vector<8x96xf32>
    %1447 = tpu.matmul %1421, %1129, %cst_429 {dimension_numbers = #tpu.dot_dimension_numbers<[1], [0], [0], [1], [0, 0, 1, 1], [], []>} : vector<8x32xf32>, vector<32x96xf32>, vector<8x96xf32> -> vector<8x96xf32>
    %1448 = vector.extract_strided_slice %1446 {offsets = [0, 0], sizes = [8, 64], strides = [1, 1]} : vector<8x96xf32> to vector<8x64xf32>
    %1449 = vector.extract_strided_slice %1447 {offsets = [0, 0], sizes = [8, 64], strides = [1, 1]} : vector<8x96xf32> to vector<8x64xf32>
    %1450 = arith.addf %1448, %1449 : vector<8x64xf32>
    %1451 = arith.negf %1450 : vector<8x64xf32>
    %1452 = math.exp %1451 : vector<8x64xf32>
    %cst_430 = arith.constant 1.000000e+00 : f32
    %1453 = vector.broadcast %cst_430 : f32 to vector<8x64xf32>
    %1454 = arith.addf %1453, %1452 : vector<8x64xf32>
    %1455 = arith.divf %1453, %1454 : vector<8x64xf32>
    %1456 = vector.extract_strided_slice %1455 {offsets = [0, 0], sizes = [8, 32], strides = [1, 1]} : vector<8x64xf32> to vector<8x32xf32>
    %1457 = vector.extract_strided_slice %1455 {offsets = [0, 32], sizes = [8, 32], strides = [1, 1]} : vector<8x64xf32> to vector<8x32xf32>
    %1458 = vector.extract_strided_slice %1446 {offsets = [0, 64], sizes = [8, 32], strides = [1, 1]} : vector<8x96xf32> to vector<8x32xf32>
    %1459 = vector.extract_strided_slice %1447 {offsets = [0, 64], sizes = [8, 32], strides = [1, 1]} : vector<8x96xf32> to vector<8x32xf32>
    %1460 = vector.broadcast %1134 : vector<1x32xf32> to vector<8x32xf32>
    %1461 = arith.addf %1459, %1460 : vector<8x32xf32>
    %1462 = arith.mulf %1456, %1461 : vector<8x32xf32>
    %1463 = arith.addf %1458, %1462 : vector<8x32xf32>
    %1464 = math.tanh %1463 : vector<8x32xf32>
    %1465 = arith.subf %1421, %1464 : vector<8x32xf32>
    %1466 = arith.mulf %1457, %1465 : vector<8x32xf32>
    %1467 = arith.addf %1464, %1466 : vector<8x32xf32>
    %c56_431 = arith.constant 56 : index
    %c0_432 = arith.constant 0 : index
    %1468 = vector.load %arg12[%c56_431, %c0_432] : memref<64x64xf32, #tpu.memory_space<vmem>>, vector<8x32xf32>
    tpu.vector_store %arg12[%c56_431, %c0_432], %1467 {strides = array<i32>} : memref<64x64xf32, #tpu.memory_space<vmem>>, vector<8x32xf32>,
    %c0_433 = arith.constant 0 : index
    %c96_434 = arith.constant 96 : index
    %1469 = vector.load %arg13[%c0_433, %c96_434] : memref<64x192xf32, #tpu.memory_space<vmem>>, vector<8x96xf32>
    %cst_435 = arith.constant dense<0.000000e+00> : vector<8x96xf32>
    %1470 = tpu.matmul %1444, %1131, %cst_435 {dimension_numbers = #tpu.dot_dimension_numbers<[1], [0], [0], [1], [0, 0, 1, 1], [], []>} : vector<8x32xf32>, vector<32x96xf32>, vector<8x96xf32> -> vector<8x96xf32>
    %1471 = vector.extract_strided_slice %1469 {offsets = [0, 0], sizes = [8, 64], strides = [1, 1]} : vector<8x96xf32> to vector<8x64xf32>
    %1472 = vector.extract_strided_slice %1470 {offsets = [0, 0], sizes = [8, 64], strides = [1, 1]} : vector<8x96xf32> to vector<8x64xf32>
    %1473 = arith.addf %1471, %1472 : vector<8x64xf32>
    %1474 = arith.negf %1473 : vector<8x64xf32>
    %1475 = math.exp %1474 : vector<8x64xf32>
    %cst_436 = arith.constant 1.000000e+00 : f32
    %1476 = vector.broadcast %cst_436 : f32 to vector<8x64xf32>
    %1477 = arith.addf %1476, %1475 : vector<8x64xf32>
    %1478 = arith.divf %1476, %1477 : vector<8x64xf32>
    %1479 = vector.extract_strided_slice %1478 {offsets = [0, 0], sizes = [8, 32], strides = [1, 1]} : vector<8x64xf32> to vector<8x32xf32>
    %1480 = vector.extract_strided_slice %1478 {offsets = [0, 32], sizes = [8, 32], strides = [1, 1]} : vector<8x64xf32> to vector<8x32xf32>
    %1481 = vector.extract_strided_slice %1469 {offsets = [0, 64], sizes = [8, 32], strides = [1, 1]} : vector<8x96xf32> to vector<8x32xf32>
    %1482 = vector.extract_strided_slice %1470 {offsets = [0, 64], sizes = [8, 32], strides = [1, 1]} : vector<8x96xf32> to vector<8x32xf32>
    %1483 = vector.broadcast %1135 : vector<1x32xf32> to vector<8x32xf32>
    %1484 = arith.addf %1482, %1483 : vector<8x32xf32>
    %1485 = arith.mulf %1479, %1484 : vector<8x32xf32>
    %1486 = arith.addf %1481, %1485 : vector<8x32xf32>
    %1487 = math.tanh %1486 : vector<8x32xf32>
    %1488 = arith.subf %1444, %1487 : vector<8x32xf32>
    %1489 = arith.mulf %1480, %1488 : vector<8x32xf32>
    %1490 = arith.addf %1487, %1489 : vector<8x32xf32>
    %c0_437 = arith.constant 0 : index
    %c32_438 = arith.constant 32 : index
    %1491 = vector.load %arg12[%c0_437, %c32_438] : memref<64x64xf32, #tpu.memory_space<vmem>>, vector<8x32xf32>
    tpu.vector_store %arg12[%c0_437, %c32_438], %1490 {strides = array<i32>} : memref<64x64xf32, #tpu.memory_space<vmem>>, vector<8x32xf32>,
    %c32_439 = arith.constant 32 : index
    %c0_440 = arith.constant 0 : index
    %1492 = vector.load %arg12[%c32_439, %c0_440] : memref<64x64xf32, #tpu.memory_space<vmem>>, vector<32x64xf32>
    %c0_441 = arith.constant 0 : index
    %c0_442 = arith.constant 0 : index
    %1493 = vector.load %arg5[%c0_441, %c0_442] : memref<64x32xf32, #tpu.memory_space<vmem>>, vector<64x32xf32>
    %cst_443 = arith.constant dense<0.000000e+00> : vector<32x32xf32>
    %1494 = tpu.matmul %1492, %1493, %cst_443 {dimension_numbers = #tpu.dot_dimension_numbers<[1], [0], [0], [1], [0, 0, 1, 1], [], []>} : vector<32x64xf32>, vector<64x32xf32>, vector<32x32xf32> -> vector<32x32xf32>
    %c0_444 = arith.constant 0 : index
    %c0_445 = arith.constant 0 : index
    %1495 = vector.load %arg6[%c0_444, %c0_445] : memref<1x32xf32, #tpu.memory_space<vmem>>, vector<1x32xf32>
    %1496 = vector.broadcast %1495 : vector<1x32xf32> to vector<32x32xf32>
    %1497 = arith.addf %1494, %1496 : vector<32x32xf32>
    %cst_446 = arith.constant 0.000000e+00 : f32
    %1498 = vector.broadcast %cst_446 : f32 to vector<32x32xf32>
    %1499 = arith.maximumf %1497, %1498 : vector<32x32xf32>
    %c0_447 = arith.constant 0 : index
    %c0_448 = arith.constant 0 : index
    %1500 = vector.load %arg7[%c0_447, %c0_448] : memref<32x16xf32, #tpu.memory_space<vmem>>, vector<32x16xf32>
    %cst_449 = arith.constant dense<0.000000e+00> : vector<32x16xf32>
    %1501 = tpu.matmul %1499, %1500, %cst_449 {dimension_numbers = #tpu.dot_dimension_numbers<[1], [0], [0], [1], [0, 0, 1, 1], [], []>} : vector<32x32xf32>, vector<32x16xf32>, vector<32x16xf32> -> vector<32x16xf32>
    %c0_450 = arith.constant 0 : index
    %c0_451 = arith.constant 0 : index
    %1502 = vector.load %arg8[%c0_450, %c0_451] : memref<1x16xf32, #tpu.memory_space<vmem>>, vector<1x16xf32>
    %1503 = vector.broadcast %1502 : vector<1x16xf32> to vector<32x16xf32>
    %1504 = arith.addf %1501, %1503 : vector<32x16xf32>
    %cst_452 = arith.constant 0.000000e+00 : f32
    %1505 = vector.broadcast %cst_452 : f32 to vector<32x16xf32>
    %1506 = arith.maximumf %1504, %1505 : vector<32x16xf32>
    %c0_453 = arith.constant 0 : index
    %c0_454 = arith.constant 0 : index
    %1507 = vector.load %arg9[%c0_453, %c0_454] : memref<16x3xf32, #tpu.memory_space<vmem>>, vector<16x3xf32>
    %cst_455 = arith.constant dense<0.000000e+00> : vector<32x3xf32>
    %1508 = tpu.matmul %1506, %1507, %cst_455 {dimension_numbers = #tpu.dot_dimension_numbers<[1], [0], [0], [1], [0, 0, 1, 1], [], []>} : vector<32x16xf32>, vector<16x3xf32>, vector<32x3xf32> -> vector<32x3xf32>
    %c0_456 = arith.constant 0 : index
    %c0_457 = arith.constant 0 : index
    %1509 = vector.load %arg10[%c0_456, %c0_457] : memref<1x3xf32, #tpu.memory_space<vmem>>, vector<1x3xf32>
    %1510 = vector.broadcast %1509 : vector<1x3xf32> to vector<32x3xf32>
    %1511 = arith.addf %1508, %1510 : vector<32x3xf32>
    %c0_458 = arith.constant 0 : index
    %c0_459 = arith.constant 0 : index
    %1512 = vector.load %arg11[%c0_458, %c0_459] : memref<32x3xf32, #tpu.memory_space<vmem>>, vector<32x3xf32>
    tpu.vector_store %arg11[%c0_458, %c0_459], %1511 {strides = array<i32>} : memref<32x3xf32, #tpu.memory_space<vmem>>, vector<32x3xf32>,
    return
  }
}

</mosaic_0001>

<bundles_post_ra>
// kernel: sgru_forward.1
= control target key start
LH: loop header
LB: loop body
LE: loop exit
PB: predicated region body
PF: predicated region fallthrough
CT: control target
= control target key end

     0   :  { %v10046_v3 = vmov 0.0   ;;  %s10047_s13 = smov 64   ;;  %vm74_vm0 = vcmask 523264   ;;  %v64_v34 = vlaneseq  ;;  %s10049_s14 = smov 32   ;;  %vm10051_vm1 = vmmov 0   ;;  %s11758_s1 = inlined_call_operand.vmem [shape: f32[4,64,192], index: 1, kind: input, shape index: {}]   ;;  %s11759_s4 = inlined_call_operand.vmem [shape: f32[4,1,64], index: 4, kind: input, shape index: {}]   ;;  %s11760_s0 = inlined_call_operand.vmem [shape: f32[64,64], index: 0, kind: input, shape index: {}]   ;;  %s11761_s2 = inlined_call_operand.vmem [shape: f32[4,1,192], index: 2, kind: input, shape index: {}]   ;;  %s11762_s3 = inlined_call_operand.vmem [shape: f32[8,32,96], index: 3, kind: input, shape index: {}]   ;;  %s11763_s5 = inlined_call_operand.vmem [shape: f32[64,32], index: 5, kind: input, shape index: {}]   ;;  %s11764_s7 = inlined_call_operand.vmem [shape: f32[32,16], index: 7, kind: input, shape index: {}]   ;;  %s11765_s6 = inlined_call_operand.vmem [shape: f32[1,32], index: 6, kind: input, shape index: {}]   ;;  %s11766_s9 = inlined_call_operand.vmem [shape: f32[16,3], index: 9, kind: input, shape index: {}]   ;;  %s11767_s8 = inlined_call_operand.vmem [shape: f32[1,16], index: 8, kind: input, shape index: {}]   ;;  %s11768_s10 = inlined_call_operand.vmem [shape: f32[1,3], index: 10, kind: input, shape index: {}]   ;;  %s11769_s11 = inlined_call_operand.vmem [shape: f32[32,3], index: 11, kind: output, shape index: {}]  }
   0x1   :  { %v47_v0 = vld [vmem:[%s11758_s1 + $0x8] sm:$0xff]  ;;  %v49_v1 = vld [vmem:[%s11758_s1 + $0x18] sm:$0xff]  ;;  %v46_v2 = vld [vmem:[%s11758_s1] sm:$0xff]  ;;  %163 = vmatprep.mubr.f32.mxu0 %v10046_v3  ;;  %8444 = vmatprep.mubr.msk.f32.mxu1 %vm10051_vm1, %v10046_v3  ;;  %vm308_vm2 = vcmask 523520   ;;  %vm272_vm3 = vcmask 261120   ;;  %vm7738_vm4 = vcmask 130048  }
   0x2   :  { %v9098_v4 = vpack.c.bf16 %v49_v1, %v47_v0  ;;  %v48_v5 = vld [vmem:[%s11758_s1 + $0x10] sm:$0xff]  ;;  %v51_v6 = vld [vmem:[%s11758_s1 + $0x28] sm:$0xff]  ;;  %v53_v7 = vld [vmem:[%s11758_s1 + $0x38] sm:$0xff]  ;;  %v65_v35 = vshrl.u32 %v64_v34, 7  ;;  %v10050_v34 = vmov 0.0|0.0   ;;  %vm7836_vm5 = vcmask 23552  }
   0x3   :  { %v9100_v8 = vpack.c.bf16 %v48_v5, %v46_v2  ;;  %v9102_v9 = vpack.c.bf16 %v53_v7, %v51_v6  ;;  %v50_v10 = vld [vmem:[%s11758_s1 + $0x20] sm:$0xff]  ;;  %v52_v11 = vld [vmem:[%s11758_s1 + $0x30] sm:$0xff]  ;;  %v55_v12 = vld [vmem:[%s11758_s1 + $0x48] sm:$0xff]  ;;  %9114 = vmatprep.subr.bf16.mxu1 %v10050_v34 }
   0x4   :  { %9099 = vmatprep.subr.bf16.mxu0 %v9098_v4  ;;  %v57_v13 = vld [vmem:[%s11758_s1 + $0x58] sm:$0xff]  ;;  %v9104_v14 = vpack.c.bf16 %v52_v11, %v50_v10  ;;  %v54_v16 = vld [vmem:[%s11758_s1 + $0x40] sm:$0xff]  ;;  %v56_v17 = vld [vmem:[%s11758_s1 + $0x50] sm:$0xff]  ;;  %v10207_v36 = vsub.s32 0, %v65_v35  ;;  %v10212_v38 = vsub.s32 1, %v65_v35 }
   0x5   :  { %9101 = vmatpush1.bf16.msra.mxu0 %v9100_v8  ;;  %v9106_v15 = vpack.c.bf16 %v57_v13, %v55_v12  ;;  %v59_v18 = vld [vmem:[%s11758_s1 + $0x68] sm:$0xff]  ;;  %v61_v19 = vld [vmem:[%s11758_s1 + $0x78] sm:$0xff]  ;;  %v9108_v20 = vpack.c.bf16 %v56_v17, %v54_v16  ;;  %v10158_v21 = vld [vmem:[%s11759_s4] ss:$0 sm:$0xff] }
   0x6   :  { %9103 = vmatprep.subr.bf16.mxu0 %v9102_v9  ;;  %v9110_v22 = vpack.c.bf16 %v61_v19, %v59_v18  ;;  %v58_v23 = vld [vmem:[%s11758_s1 + $0x60] sm:$0xff]  ;;  %v60_v24 = vld [vmem:[%s11758_s1 + $0x70] sm:$0xff]  ;;  %288 = vrot.lane.b32.xlu0 %v10158_v21, %s10047_s13  ;;  %v39_v27 = vld [vmem:[%s11760_s0 + $0x8] sm:$0xff] }
   0x7   :  { %v9112_v25 = vpack.c.bf16 %v60_v24, %v58_v23  ;;  %v38_v26 = vld [vmem:[%s11760_s0] sm:$0xff]  ;;  %v40_v28 = vld [vmem:[%s11760_s0 + $0x10] sm:$0xff]  ;;  %v41_v29 = vld [vmem:[%s11760_s0 + $0x18] sm:$0xff] }
   0x8   :  { %v42_v30 = vld [vmem:[%s11760_s0 + $0x20] sm:$0xff]  ;;  %v43_v31 = vld [vmem:[%s11760_s0 + $0x28] sm:$0xff]  ;;  %v44_v32 = vld [vmem:[%s11760_s0 + $0x30] sm:$0xff] }
   0x9   :  { %9105 = vmatpush1.bf16.msra.mxu0 %v9104_v14  ;;  %v45_v33 = vld [vmem:[%s11760_s0 + $0x38] sm:$0xff]  ;;  %v62_v37 = vld [vmem:[%s11761_s2] sm:$0x3]  ;;  %s10048_s0 = smov 96  }
   0xa   :  { %9107 = vmatprep.subr.bf16.mxu0 %v9106_v15  ;;  %v67_v39 = vrot.slane %v62_v37, %v10207_v36  ;;  %v71_v40 = vrot.slane %v62_v37, %v10212_v38  ;;  %v228_v35 = vld [vmem:[%s11762_s3] sm:$0xff]  ;;  %v229_v37 = vld [vmem:[%s11762_s3 + $0x8] sm:$0xff] }
   0xd   :  { %9109 = vmatpush1.bf16.msra.mxu0 %v9108_v20 }
   0xe   :  { %9111 = vmatprep.subr.bf16.mxu0 %v9110_v22 }
  0x11   :  { %9113 = vmatpush1.bf16.msra.mxu0 %v9112_v25 }
  0x12   :  { %9144 = vmatprep.subr.bf16.mxu0 %v10050_v34 }
  0x14   :  { %7845 = vmatmul.mubr.msk.f32.vlgmr.msra.gmra.mrb[0].mxu0 %vm74_vm0, %v38_v26 }
  0x15   :  { %169 = vmatprep.mubr.f32.mxu0 %v10046_v3 }
  0x18   :  { %7846 = vmatmul.mubr.msk.f32.gmra.mrb[2].mxu0 %vm74_vm0, %v39_v27 }
  0x19   :  { %175 = vmatprep.mubr.f32.mxu0 %v10046_v3 }
  0x1c   :  { %7847 = vmatmul.mubr.msk.f32.gmra.mrb[4].mxu0 %vm74_vm0, %v40_v28 }
  0x1d   :  { %181 = vmatprep.mubr.f32.mxu0 %v10046_v3 }
  0x20   :  { %7848 = vmatmul.mubr.msk.f32.gmra.mrb[6].mxu0 %vm74_vm0, %v41_v29 }
  0x21   :  { %187 = vmatprep.mubr.f32.mxu0 %v10046_v3 }
  0x24   :  { %7849 = vmatmul.mubr.msk.f32.gmra.mrb[8].mxu0 %vm74_vm0, %v42_v30 }
  0x25   :  { %193 = vmatprep.mubr.f32.mxu0 %v10046_v3 }
  0x28   :  { %7850 = vmatmul.mubr.msk.f32.gmra.mrb[10].mxu0 %vm74_vm0, %v43_v31 }
  0x29   :  { %199 = vmatprep.mubr.f32.mxu0 %v10046_v3 }
  0x2c   :  { %7851 = vmatmul.mubr.msk.f32.gmra.mrb[12].mxu0 %vm74_vm0, %v44_v32 }
  0x2d   :  { %205 = vmatprep.mubr.f32.mxu0 %v10046_v3 }
  0x30   :  { %7852 = vmatmul.mubr.msk.f32.gmra.mrb[14].mxu0 %vm74_vm0, %v45_v33 }
  0x31   :  { %8499 = vmatprep.mubr.msk.f32.mxu0 %vm10051_vm1, %v10046_v3 }
  0x78   :  { %v10238_v18 = vpop.permute.xlu0 %288 }
  0xe7   :  { %v165_v41 = vpop.f32.mrb[0].mxu0 }
  0xe8   :  { %v166_v42 = vadd.f32 %v165_v41, %v67_v39  ;;  %v167_v43 = vpop.f32.mrb[1].mxu0  ;;  %v231_v41 = vld [vmem:[%s11762_s3 + $0x18] sm:$0xff] }
  0xe9   :  { %v168_v44 = vadd.f32 %v167_v43, %v71_v40 }
  0xea   :  { %212 = vst [vmem:[#allocation3] sm:$0xff] %v166_v42  ;;  %v7857_v45 = vmul.f32 -1.442695, %v166_v42 }
  0xeb   :  { %213 = vst.msk [vmem:[#allocation3 + $0x8] sm:$0xff] %vm74_vm0, %v168_v44  ;;  %v171_v46 = vpop.f32.mrb[2].mxu0 }
  0xec   :  { %v10217_v47 = vadd.f32 %v171_v46, %v67_v39  ;;  %v173_v48 = vpop.f32.mrb[3].mxu0  ;;  %9532 = vpow2.f32 %v7857_v45  ;;  %v7853_v46 = vld [vmem:[%s11762_s3 + $0x20] sm:$0xff] }
  0xed   :  { %v174_v49 = vadd.f32 %v173_v48, %v71_v40  ;;  %v7854_v48 = vld [vmem:[%s11762_s3 + $0x28] sm:$0xff] }
  0xef   :  { %215 = vst.msk [vmem:[#allocation3 + $0x18] sm:$0xff] %vm74_vm0, %v174_v49  ;;  %v177_v50 = vpop.f32.mrb[4].mxu0  ;;  %v10278_v49 = vpack.c.bf16 %v7854_v48, %v7853_v46 }
  0xf0   :  { %v10220_v51 = vadd.f32 %v177_v50, %v67_v39  ;;  %v179_v52 = vpop.f32.mrb[5].mxu0  ;;  %v7855_v50 = vld [vmem:[%s11762_s3 + $0x30] sm:$0xff] }
  0xf1   :  { %v180_v53 = vadd.f32 %v179_v52, %v71_v40  ;;  %v7856_v52 = vld [vmem:[%s11762_s3 + $0x38] sm:$0xff]  ;;  %9146 = vmatpush3.bf16.msra.mxu0 %v10278_v49 }
  0xf2   :  { %9147 = vmatprep.subr.bf16.mxu0 %v10050_v34 }
  0xf3   :  { %217 = vst.msk [vmem:[#allocation3 + $0x28] sm:$0xff] %vm74_vm0, %v180_v53  ;;  %v183_v54 = vpop.f32.mrb[6].mxu0  ;;  %v10288_v53 = vpack.c.bf16 %v7856_v52, %v7855_v50 }
  0xf4   :  { %v10223_v55 = vadd.f32 %v183_v54, %v67_v39  ;;  %v185_v56 = vpop.f32.mrb[7].mxu0 }
  0xf5   :  { %v186_v57 = vadd.f32 %v185_v56, %v71_v40  ;;  %9149 = vmatpush3.bf16.msra.mxu0 %v10288_v53 }
  0xf6   :  { %v9533_v58 = vpop.eup %9532  ;;  %9156 = vmatprep.subr.bf16.mxu0 %v10050_v34 }
  0xf7   :  { %219 = vst.msk [vmem:[#allocation3 + $0x38] sm:$0xff] %vm74_vm0, %v186_v57  ;;  %v189_v59 = vpop.f32.mrb[8].mxu0  ;;  %v242_v60 = vadd.f32 1.0, %v9533_v58 }
  0xf8   :  { %v10226_v61 = vadd.f32 %v189_v59, %v67_v39  ;;  %v191_v62 = vpop.f32.mrb[9].mxu0 }
  0xf9   :  { %v192_v63 = vadd.f32 %v191_v62, %v71_v40  ;;  %9534 = vrcp.f32 %v242_v60 }
  0xfb   :  { %221 = vst.msk [vmem:[#allocation3 + $0x48] sm:$0xff] %vm74_vm0, %v192_v63  ;;  %v195_v0 = vpop.f32.mrb[10].mxu0 }
  0xfc   :  { %v10229_v1 = vadd.f32 %v195_v0, %v67_v39  ;;  %v197_v2 = vpop.f32.mrb[11].mxu0 }
  0xfd   :  { %v198_v4 = vadd.f32 %v197_v2, %v71_v40 }
  0xff   :  { %223 = vst.msk [vmem:[#allocation3 + $0x58] sm:$0xff] %vm74_vm0, %v198_v4  ;;  %v201_v5 = vpop.f32.mrb[12].mxu0 }
 0x100   :  { %v10232_v6 = vadd.f32 %v201_v5, %v67_v39  ;;  %v203_v7 = vpop.f32.mrb[13].mxu0 }
 0x101   :  { %v204_v8 = vadd.f32 %v203_v7, %v71_v40 }
 0x103   :  { %v9535_v9 = vpop.eup %9534  ;;  %225 = vst.msk [vmem:[#allocation3 + $0x68] sm:$0xff] %vm74_vm0, %v204_v8  ;;  %v207_v10 = vpop.f32.mrb[14].mxu0 }
 0x104   :  { %v208_v11 = vadd.f32 %v207_v10, %v67_v39  ;;  %v209_v12 = vpop.f32.mrb[15].mxu0  ;;  %v251_v13 = vmul.f32 %v9535_v9, %v10158_v21  ;;  %v230_v39 = vld [vmem:[%s11762_s3 + $0x10] sm:$0xff] }
 0x105   :  { %v210_v14 = vadd.f32 %v209_v12, %v71_v40  ;;  %v10257_v40 = vpack.c.bf16 %v229_v37, %v228_v35 }
 0x106   :  { %226 = vst [vmem:[#allocation3 + $0x70] sm:$0xff] %v208_v11  ;;  %253 = vrot.lane.b32.xlu0 %v251_v13, %s10047_s13  ;;  %v7859_v15 = vmul.f32 -1.442695, %v208_v11 }
 0x107   :  { %227 = vst.msk [vmem:[#allocation3 + $0x78] sm:$0xff] %vm74_vm0, %v210_v14  ;;  %9116 = vmatpush3.bf16.msra.mxu1 %v10257_v40 }
 0x108   :  { %9536 = vpow2.f32 %v7859_v15  ;;  %9117 = vmatprep.subr.bf16.mxu1 %v10050_v34 }
 0x10e   :  { %v275_v25 = vld [vmem:[#allocation3 + $0x78] sm:$0xff] }
 0x10f   :  { %v7860_v29 = vmul.f32 -1.442695, %v275_v25 }
 0x112   :  { %v9537_v16 = vpop.eup %9536 }
 0x113   :  { %v282_v17 = vadd.f32 1.0, %v9537_v16 }
 0x115   :  { %9538 = vrcp.f32 %v282_v17 }
 0x11f   :  { %v9539_v19 = vpop.eup %9538 }
 0x120   :  { %v291_v20 = vmul.f32 %v9539_v19, %v10238_v18 }
 0x122   :  { %293 = vrot.lane.b32.xlu1 %v291_v20, %s10047_s13 }
 0x178   :  { %v254_v22 = vpop.permute.xlu0 %253 }
 0x179   :  { %v256_v23 = vadd.f32 %v254_v22, %v166_v42  ;;  %v10266_v42 = vpack.c.bf16 %v231_v41, %v230_v39 }
 0x17b   :  { %9540 = vtanh.f32 %v256_v23  ;;  %9119 = vmatpush3.bf16.msra.mxu1 %v10266_v42 }
 0x17c   :  { %9120 = vmatprep.subr.bf16.mxu1 %v10050_v34 }
 0x185   :  { %v9541_v24 = vpop.eup %9540 }
 0x186   :  { %259 = vrot.lane.b32.xlu1 %v9541_v24, %s10048_s0 }
 0x194   :  { %v294_v26 = vpop.permute.xlu1 %293 }
 0x195   :  { %v296_v27 = vadd.f32 %v294_v26, %v275_v25 }
 0x197   :  { %9542 = vtanh.f32 %v296_v27 }
 0x198   :  { %9544 = vpow2.f32 %v7860_v29 }
 0x1a1   :  { %v9543_v28 = vpop.eup %9542 }
 0x1a2   :  { %299 = vrot.lane.b32.xlu0 %v9543_v28, %s10048_s0  ;;  %v9545_v32 = vpop.eup %9544 }
 0x1a3   :  { %v283_v33 = vadd.f32 1.0, %v9545_v32 }
 0x1a5   :  { %9546 = vrcp.f32 %v283_v33 }
 0x1af   :  { %v9547_v43 = vpop.eup %9546 }
 0x1f8   :  { %v260_v30 = vpop.permute.xlu1 %259 }
 0x1f9   :  { %v262_v31 = vmul.f32 %v9535_v9, %v260_v30 }
 0x1fb   :  { %264 = vrot.lane.b32.xlu1 %v262_v31, %s10049_s14 }
 0x214   :  { %v300_v44 = vpop.permute.xlu0 %299 }
 0x215   :  { %v302_v45 = vmul.f32 %v9547_v43, %v300_v44 }
 0x217   :  { %304 = vrot.lane.b32.xlu0 %v302_v45, %s10049_s14 }
 0x26d   :  { %v265_v54 = vpop.permute.xlu1 %264 }
 0x26e   :  { %v267_v56 = vsub.f32 %v9541_v24, %v265_v54 }
 0x270   :  { %269 = vrot.lane.b32.xlu1 %v267_v56, %s10047_s13 }
 0x274   :  { %513 = vrot.lane.b32.xlu1 %v10158_v21, %s10049_s14 }
 0x289   :  { %v305_v57 = vpop.permute.xlu0 %304 }
 0x28a   :  { %v307_v58 = vsub.f32 %v9543_v28, %v305_v57  ;;  %v419_v28 = vld [vmem:[#allocation3 + $0x68] sm:$0xff] }
 0x28c   :  { %421 = vrot.lane.b32.xlu0 %v307_v58, %s10048_s0  ;;  %309 = vst.msk [vmem:[#allocation2 + $0x38] sm:$0xff] %vm308_vm2, %v307_v58 }
 0x2e2   :  { %v270_v59 = vpop.permute.xlu1 %269 }
 0x2e3   :  { %273 = vst.msk [vmem:[#allocation2] sm:$0xff] %vm272_vm3, %v270_v59  ;;  %8445 = vmatmul.mubr.msk.f32.vlgmr.msra.gmra.mrb[0].mxu1 %vm272_vm3, %v270_v59 }
 0x2e4   :  { %9122 = vmatpush3.bf16.msra.mxu1 %v10278_v49  ;;  %8455 = vmatprep.mubr.msk.f32.mxu1 %vm10051_vm1, %v10046_v3 }
 0x2e5   :  { %9123 = vmatprep.subr.bf16.mxu1 %v10050_v34 }
 0x2e6   :  { %v10314_v0 = vpop.permute.xlu1 %513 }
 0x2e8   :  { %9125 = vmatpush3.bf16.msra.mxu1 %v10288_v53 }
 0x2e9   :  { %9126 = vmatprep.subr.bf16.mxu1 %v10050_v34 }
 0x2fe   :  { %v422_v21 = vpop.permute.xlu0 %421 }
 0x2ff   :  { %8456 = vmatmul.mubr.msk.f32.vlgmr.msra.gmra.mrb[2].mxu1 %vm272_vm3, %v422_v21 }
 0x300   :  { %9128 = vmatpush3.bf16.msra.mxu1 %v10257_v40  ;;  %8466 = vmatprep.mubr.msk.f32.mxu1 %vm10051_vm1, %v10046_v3 }
 0x301   :  { %9129 = vmatprep.subr.bf16.mxu1 %v10050_v34 }
 0x304   :  { %9131 = vmatpush3.bf16.msra.mxu1 %v10266_v42 }
 0x305   :  { %9132 = vmatprep.subr.bf16.mxu1 %v10050_v34 }
 0x3b6   :  { %v379_v60 = vpop.f32.mrb[0].mxu1 }
 0x3b7   :  { %v390_v62 = vadd.f32 %v379_v60, %v10238_v18  ;;  %v8446_v63 = vpop.f32.mrb[1].mxu1  ;;  %v383_v7 = vadd.f32 %v379_v60, %v10217_v47 }
 0x3b9   :  { %392 = vrot.lane.b32.xlu1 %v390_v62, %s10047_s13  ;;  %v7862_v8 = vmul.f32 -1.442695, %v383_v7 }
 0x3bb   :  { %9548 = vpow2.f32 %v7862_v8 }
 0x3c5   :  { %v9549_v9 = vpop.eup %9548 }
 0x3c6   :  { %v387_v10 = vadd.f32 1.0, %v9549_v9 }
 0x3c8   :  { %9550 = vrcp.f32 %v387_v10 }
 0x3d2   :  { %v491_v2 = vpop.f32.mrb[2].mxu1  ;;  %v9551_v11 = vpop.eup %9550 }
 0x3d3   :  { %496 = vrot.lane.b32.xlu0 %v491_v2, %s10048_s0  ;;  %v8457_v4 = vpop.f32.mrb[3].mxu1  ;;  %v516_v5 = vadd.f32 %v10314_v0, %v491_v2 }
 0x3d7   :  { %518 = vrot.lane.b32.xlu0 %v516_v5, %s10049_s14 }
 0x42b   :  { %v393_v12 = vpop.permute.xlu1 %392 }
 0x42c   :  { %v395_v13 = vmul.f32 %v9551_v11, %v393_v12 }
 0x42e   :  { %397 = vrot.lane.b32.xlu1 %v395_v13, %s10047_s13 }
 0x445   :  { %v497_v14 = vpop.permute.xlu0 %496 }
 0x446   :  { %v499_v15 = vadd.f32 %v497_v14, %v10232_v6  ;;  %v500_v37 = vadd.f32 %v497_v14, %v419_v28 }
 0x448   :  { %v7864_v16 = vmul.f32 -1.442695, %v499_v15  ;;  %v7865_v39 = vmul.f32 -1.442695, %v500_v37 }
 0x449   :  { %v519_v22 = vpop.permute.xlu0 %518 }
 0x44a   :  { %9552 = vpow2.f32 %v7864_v16 }
 0x454   :  { %v9553_v17 = vpop.eup %9552 }
 0x455   :  { %v507_v19 = vadd.f32 1.0, %v9553_v17 }
 0x457   :  { %9554 = vrcp.f32 %v507_v19 }
 0x461   :  { %v9555_v20 = vpop.eup %9554 }
 0x462   :  { %v521_v23 = vmul.f32 %v9555_v20, %v519_v22 }
 0x464   :  { %523 = vrot.lane.b32.xlu0 %v521_v23, %s10047_s13 }
 0x4a0   :  { %v398_v24 = vpop.permute.xlu1 %397 }
 0x4a1   :  { %v400_v25 = vadd.f32 %v398_v24, %v10217_v47 }
 0x4a3   :  { %9556 = vtanh.f32 %v400_v25  ;;  %v649_v25 = vld [vmem:[#allocation3 + $0x58] sm:$0xff] }
 0x4ad   :  { %v9557_v26 = vpop.eup %9556 }
 0x4ae   :  { %v402_v27 = vsub.f32 %v267_v56, %v9557_v26 }
 0x4b0   :  { %404 = vrot.lane.b32.xlu1 %v402_v27, %s10048_s0 }
 0x4d6   :  { %v524_v29 = vpop.permute.xlu0 %523 }
 0x4d7   :  { %v526_v30 = vadd.f32 %v524_v29, %v419_v28 }
 0x4d9   :  { %9558 = vtanh.f32 %v526_v30 }
 0x4da   :  { %9560 = vpow2.f32 %v7865_v39 }
 0x4e3   :  { %v9559_v31 = vpop.eup %9558 }
 0x4e4   :  { %v528_v32 = vsub.f32 %v307_v58, %v9559_v31  ;;  %v9561_v41 = vpop.eup %9560 }
 0x4e5   :  { %v508_v43 = vadd.f32 1.0, %v9561_v41 }
 0x4e6   :  { %530 = vrot.lane.b32.xlu0 %v528_v32, %s10048_s0 }
 0x4e7   :  { %9562 = vrcp.f32 %v508_v43 }
 0x4f1   :  { %v9563_v44 = vpop.eup %9562 }
 0x522   :  { %v405_v33 = vpop.permute.xlu1 %404 }
 0x523   :  { %v407_v35 = vmul.f32 %v9551_v11, %v405_v33 }
 0x525   :  { %409 = vrot.lane.b32.xlu1 %v407_v35, %s10049_s14 }
 0x558   :  { %v531_v45 = vpop.permute.xlu0 %530 }
 0x559   :  { %v533_v46 = vmul.f32 %v9563_v44, %v531_v45 }
 0x55b   :  { %535 = vrot.lane.b32.xlu0 %v533_v46, %s10049_s14 }
 0x597   :  { %v410_v48 = vpop.permute.xlu1 %409 }
 0x598   :  { %v412_v50 = vadd.f32 %v9557_v26, %v410_v48 }
 0x59a   :  { %414 = vrot.lane.b32.xlu1 %v412_v50, %s10047_s13 }
 0x5cd   :  { %v536_v52 = vpop.permute.xlu0 %535 }
 0x5ce   :  { %v538_v54 = vadd.f32 %v9559_v31, %v536_v52 }
 0x5d0   :  { %651 = vrot.lane.b32.xlu0 %v538_v54, %s10048_s0  ;;  %539 = vst.msk [vmem:[#allocation2 + $0x30] sm:$0xff] %vm308_vm2, %v538_v54 }
 0x60c   :  { %v415_v56 = vpop.permute.xlu1 %414 }
 0x60d   :  { %417 = vst.msk [vmem:[#allocation2 + $0x8] sm:$0xff] %vm272_vm3, %v415_v56  ;;  %8467 = vmatmul.mubr.msk.f32.vlgmr.msra.gmra.mrb[4].mxu1 %vm272_vm3, %v415_v56 }
 0x60e   :  { %9134 = vmatpush3.bf16.msra.mxu1 %v10278_v49  ;;  %8477 = vmatprep.mubr.msk.f32.mxu1 %vm10051_vm1, %v10046_v3 }
 0x60f   :  { %9135 = vmatprep.subr.bf16.mxu1 %v10050_v34 }
 0x612   :  { %9137 = vmatpush3.bf16.msra.mxu1 %v10288_v53 }
 0x613   :  { %9138 = vmatprep.subr.bf16.mxu1 %v10050_v34 }
 0x642   :  { %v652_v57 = vpop.permute.xlu0 %651 }
 0x643   :  { %8478 = vmatmul.mubr.msk.f32.vlgmr.msra.gmra.mrb[6].mxu1 %vm272_vm3, %v652_v57 }
 0x644   :  { %9140 = vmatpush3.bf16.msra.mxu1 %v10257_v40  ;;  %8488 = vmatprep.mubr.msk.f32.mxu1 %vm10051_vm1, %v10046_v3 }
 0x645   :  { %9141 = vmatprep.subr.bf16.mxu1 %v10050_v34 }
 0x648   :  { %9143 = vmatpush3.bf16.msra.mxu1 %v10266_v42 }
 0x649   :  { %9150 = vmatprep.subr.bf16.mxu1 %v10050_v34 }
 0x6e0   :  { %v609_v58 = vpop.f32.mrb[4].mxu1 }
 0x6e1   :  { %v8468_v59 = vpop.f32.mrb[5].mxu1  ;;  %v620_v63 = vadd.f32 %v609_v58, %v10238_v18  ;;  %v613_v2 = vadd.f32 %v609_v58, %v10220_v51 }
 0x6e3   :  { %v7867_v4 = vmul.f32 -1.442695, %v613_v2 }
 0x6e5   :  { %9564 = vpow2.f32 %v7867_v4 }
 0x6ef   :  { %v9565_v5 = vpop.eup %9564 }
 0x6f0   :  { %v617_v7 = vadd.f32 1.0, %v9565_v5 }
 0x6f2   :  { %9566 = vrcp.f32 %v617_v7 }
 0x6fc   :  { %v9567_v12 = vpop.eup %9566 }
 0x716   :  { %v721_v21 = vpop.f32.mrb[6].mxu1 }
 0x717   :  { %v743_v60 = vadd.f32 %v721_v21, %v10314_v0  ;;  %726 = vrot.lane.b32.xlu1 %v721_v21, %s10048_s0  ;;  %v8479_v62 = vpop.f32.mrb[7].mxu1 }
 0x719   :  { %745 = vrot.lane.b32.xlu0 %v743_v60, %s10049_s14 }
 0x71d   :  { %622 = vrot.lane.b32.xlu0 %v620_v63, %s10047_s13 }
 0x789   :  { %v727_v8 = vpop.permute.xlu1 %726 }
 0x78a   :  { %v729_v9 = vadd.f32 %v727_v8, %v10229_v1  ;;  %v730_v30 = vadd.f32 %v727_v8, %v649_v25 }
 0x78b   :  { %v746_v10 = vpop.permute.xlu0 %745 }
 0x78c   :  { %v7869_v11 = vmul.f32 -1.442695, %v729_v9  ;;  %v7870_v31 = vmul.f32 -1.442695, %v730_v30 }
 0x78e   :  { %9568 = vpow2.f32 %v7869_v11 }
 0x78f   :  { %v623_v13 = vpop.permute.xlu0 %622 }
 0x790   :  { %v625_v14 = vmul.f32 %v9567_v12, %v623_v13 }
 0x792   :  { %627 = vrot.lane.b32.xlu0 %v625_v14, %s10047_s13 }
 0x798   :  { %v9569_v15 = vpop.eup %9568 }
 0x799   :  { %v737_v16 = vadd.f32 1.0, %v9569_v15 }
 0x79b   :  { %9570 = vrcp.f32 %v737_v16 }
 0x7a5   :  { %v9571_v17 = vpop.eup %9570 }
 0x7a6   :  { %v748_v19 = vmul.f32 %v9571_v17, %v746_v10 }
 0x7a8   :  { %750 = vrot.lane.b32.xlu1 %v748_v19, %s10047_s13 }
 0x804   :  { %v628_v20 = vpop.permute.xlu0 %627 }
 0x805   :  { %v630_v22 = vadd.f32 %v628_v20, %v10220_v51 }
 0x807   :  { %9572 = vtanh.f32 %v630_v22  ;;  %v876_v22 = vld [vmem:[#allocation3 + $0x48] sm:$0xff] }
 0x811   :  { %v9573_v23 = vpop.eup %9572 }
 0x812   :  { %v632_v24 = vsub.f32 %v412_v50, %v9573_v23 }
 0x814   :  { %634 = vrot.lane.b32.xlu0 %v632_v24, %s10048_s0 }
 0x81a   :  { %v751_v26 = vpop.permute.xlu1 %750 }
 0x81b   :  { %v753_v27 = vadd.f32 %v751_v26, %v649_v25 }
 0x81d   :  { %9574 = vtanh.f32 %v753_v27 }
 0x81e   :  { %9576 = vpow2.f32 %v7870_v31 }
 0x827   :  { %v9575_v28 = vpop.eup %9574 }
 0x828   :  { %v755_v29 = vsub.f32 %v538_v54, %v9575_v28  ;;  %v9577_v35 = vpop.eup %9576 }
 0x829   :  { %v738_v37 = vadd.f32 1.0, %v9577_v35 }
 0x82a   :  { %757 = vrot.lane.b32.xlu1 %v755_v29, %s10048_s0 }
 0x82b   :  { %9578 = vrcp.f32 %v738_v37 }
 0x835   :  { %v9579_v39 = vpop.eup %9578 }
 0x886   :  { %v635_v32 = vpop.permute.xlu0 %634 }
 0x887   :  { %v637_v33 = vmul.f32 %v9567_v12, %v635_v32 }
 0x889   :  { %639 = vrot.lane.b32.xlu0 %v637_v33, %s10049_s14 }
 0x89c   :  { %v758_v41 = vpop.permute.xlu1 %757 }
 0x89d   :  { %v760_v43 = vmul.f32 %v9579_v39, %v758_v41 }
 0x89f   :  { %762 = vrot.lane.b32.xlu1 %v760_v43, %s10049_s14 }
 0x8fb   :  { %v640_v46 = vpop.permute.xlu0 %639 }
 0x8fc   :  { %v642_v48 = vadd.f32 %v9573_v23, %v640_v46 }
 0x911   :  { %v763_v44 = vpop.permute.xlu1 %762 }
 0x912   :  { %v10360_v45 = vadd.f32 %v9575_v28, %v763_v44 }
 0x914   :  { %878 = vrot.lane.b32.xlu1 %v10360_v45, %s10048_s0  ;;  %766 = vst.msk [vmem:[#allocation2 + $0x28] sm:$0xff] %vm308_vm2, %v10360_v45 }
 0x918   :  { %644 = vrot.lane.b32.xlu1 %v642_v48, %s10047_s13 }
 0x986   :  { %v879_v50 = vpop.permute.xlu1 %878 }
 0x987   :  { %8500 = vmatmul.mubr.msk.f32.vlgmr.msra.gmra.mrb[16].mxu0 %vm272_vm3, %v879_v50 }
 0x988   :  { %9158 = vmatpush3.bf16.msra.mxu0 %v10278_v49  ;;  %8521 = vmatprep.mubr.msk.f32.mxu0 %vm10051_vm1, %v10046_v3 }
 0x989   :  { %9159 = vmatprep.subr.bf16.mxu0 %v10050_v34 }
 0x98a   :  { %v645_v52 = vpop.permute.xlu1 %644 }
 0x98b   :  { %647 = vst.msk [vmem:[#allocation2 + $0x10] sm:$0xff] %vm272_vm3, %v645_v52  ;;  %8489 = vmatmul.mubr.msk.f32.vlgmr.msra.gmra.mrb[8].mxu1 %vm272_vm3, %v645_v52 }
 0x98c   :  { %9152 = vmatpush3.bf16.msra.mxu1 %v10257_v40  ;;  %9161 = vmatpush3.bf16.msra.mxu0 %v10288_v53 }
 0x98d   :  { %9153 = vmatprep.subr.bf16.mxu1 %v10050_v34  ;;  %8510 = vmatprep.mubr.msk.f32.mxu1 %vm10051_vm1, %v10046_v3 }
 0x98e   :  { %9168 = vmatprep.subr.bf16.mxu0 %v10050_v34 }
 0x990   :  { %9155 = vmatpush3.bf16.msra.mxu1 %v10266_v42 }
 0x991   :  { %9162 = vmatprep.subr.bf16.mxu1 %v10050_v34 }
 0xa5a   :  { %v948_v54 = vpop.f32.mrb[16].mxu0 }
 0xa5b   :  { %v970_v56 = vadd.f32 %v948_v54, %v10314_v0  ;;  %v8501_v57 = vpop.f32.mrb[17].mxu0  ;;  %953 = vrot.lane.b32.xlu0 %v948_v54, %s10048_s0 }
 0xa5d   :  { %972 = vrot.lane.b32.xlu1 %v970_v56, %s10049_s14 }
 0xa5e   :  { %v836_v58 = vpop.f32.mrb[8].mxu1 }
 0xa5f   :  { %v847_v59 = vadd.f32 %v836_v58, %v10238_v18  ;;  %v8490_v21 = vpop.f32.mrb[9].mxu1  ;;  %v840_v60 = vadd.f32 %v836_v58, %v10223_v55 }
 0xa61   :  { %849 = vrot.lane.b32.xlu1 %v847_v59, %s10047_s13  ;;  %v7872_v62 = vmul.f32 -1.442695, %v840_v60 }
 0xa63   :  { %9580 = vpow2.f32 %v7872_v62 }
 0xa6d   :  { %v9581_v63 = vpop.eup %9580 }
 0xa6e   :  { %v844_v2 = vadd.f32 1.0, %v9581_v63 }
 0xa70   :  { %9582 = vrcp.f32 %v844_v2 }
 0xa7a   :  { %v9583_v9 = vpop.eup %9582 }
 0xacd   :  { %v954_v4 = vpop.permute.xlu0 %953 }
 0xace   :  { %v956_v5 = vadd.f32 %v954_v4, %v10226_v61  ;;  %v957_v27 = vadd.f32 %v954_v4, %v876_v22 }
 0xacf   :  { %v973_v7 = vpop.permute.xlu1 %972 }
 0xad0   :  { %v7874_v8 = vmul.f32 -1.442695, %v956_v5  ;;  %v7875_v28 = vmul.f32 -1.442695, %v957_v27 }
 0xad2   :  { %9584 = vpow2.f32 %v7874_v8 }
 0xad3   :  { %v850_v10 = vpop.permute.xlu1 %849 }
 0xad4   :  { %v852_v11 = vmul.f32 %v9583_v9, %v850_v10 }
 0xad6   :  { %854 = vrot.lane.b32.xlu1 %v852_v11, %s10047_s13 }
 0xadc   :  { %v9585_v12 = vpop.eup %9584 }
 0xadd   :  { %v964_v13 = vadd.f32 1.0, %v9585_v12 }
 0xadf   :  { %9586 = vrcp.f32 %v964_v13 }
 0xae9   :  { %v9587_v14 = vpop.eup %9586 }
 0xaea   :  { %v975_v15 = vmul.f32 %v9587_v14, %v973_v7 }
 0xaec   :  { %977 = vrot.lane.b32.xlu0 %v975_v15, %s10047_s13 }
 0xb48   :  { %v855_v16 = vpop.permute.xlu1 %854 }
 0xb49   :  { %v857_v17 = vadd.f32 %v855_v16, %v10223_v55  ;;  %v1103_v16 = vld [vmem:[#allocation3 + $0x38] sm:$0xff] }
 0xb4b   :  { %9588 = vtanh.f32 %v857_v17 }
 0xb55   :  { %v9589_v19 = vpop.eup %9588 }
 0xb56   :  { %v859_v20 = vsub.f32 %v642_v48, %v9589_v19 }
 0xb58   :  { %861 = vrot.lane.b32.xlu1 %v859_v20, %s10048_s0 }
 0xb5e   :  { %v978_v23 = vpop.permute.xlu0 %977 }
 0xb5f   :  { %v980_v24 = vadd.f32 %v978_v23, %v876_v22 }
 0xb61   :  { %9590 = vtanh.f32 %v980_v24 }
 0xb62   :  { %9592 = vpow2.f32 %v7875_v28 }
 0xb6b   :  { %v9591_v25 = vpop.eup %9590 }
 0xb6c   :  { %v982_v26 = vsub.f32 %v10360_v45, %v9591_v25  ;;  %v9593_v31 = vpop.eup %9592 }
 0xb6d   :  { %v965_v32 = vadd.f32 1.0, %v9593_v31 }
 0xb6e   :  { %984 = vrot.lane.b32.xlu0 %v982_v26, %s10048_s0 }
 0xb6f   :  { %9594 = vrcp.f32 %v965_v32 }
 0xb79   :  { %v9595_v33 = vpop.eup %9594 }
 0xbca   :  { %v862_v29 = vpop.permute.xlu1 %861 }
 0xbcb   :  { %v864_v30 = vmul.f32 %v9583_v9, %v862_v29 }
 0xbcd   :  { %866 = vrot.lane.b32.xlu1 %v864_v30, %s10049_s14 }
 0xbe0   :  { %v985_v35 = vpop.permute.xlu0 %984 }
 0xbe1   :  { %v987_v37 = vmul.f32 %v9595_v33, %v985_v35 }
 0xbe3   :  { %989 = vrot.lane.b32.xlu0 %v987_v37, %s10049_s14 }
 0xc3f   :  { %v867_v43 = vpop.permute.xlu1 %866 }
 0xc40   :  { %v869_v44 = vadd.f32 %v9589_v19, %v867_v43 }
 0xc55   :  { %v990_v39 = vpop.permute.xlu0 %989 }
 0xc56   :  { %v10397_v41 = vadd.f32 %v9591_v25, %v990_v39 }
 0xc58   :  { %1105 = vrot.lane.b32.xlu0 %v10397_v41, %s10048_s0  ;;  %993 = vst.msk [vmem:[#allocation2 + $0x20] sm:$0xff] %vm308_vm2, %v10397_v41 }
 0xc5c   :  { %871 = vrot.lane.b32.xlu0 %v869_v44, %s10047_s13 }
 0xcca   :  { %v1106_v45 = vpop.permute.xlu0 %1105 }
 0xccb   :  { %8522 = vmatmul.mubr.msk.f32.vlgmr.msra.gmra.mrb[18].mxu0 %vm272_vm3, %v1106_v45 }
 0xccc   :  { %9170 = vmatpush3.bf16.msra.mxu0 %v10278_v49  ;;  %8543 = vmatprep.mubr.msk.f32.mxu0 %vm10051_vm1, %v10046_v3 }
 0xccd   :  { %9171 = vmatprep.subr.bf16.mxu0 %v10050_v34 }
 0xcce   :  { %v872_v46 = vpop.permute.xlu0 %871 }
 0xccf   :  { %874 = vst.msk [vmem:[#allocation2 + $0x18] sm:$0xff] %vm272_vm3, %v872_v46  ;;  %8511 = vmatmul.mubr.msk.f32.vlgmr.msra.gmra.mrb[10].mxu1 %vm272_vm3, %v872_v46 }
 0xcd0   :  { %9164 = vmatpush3.bf16.msra.mxu1 %v10257_v40  ;;  %8532 = vmatprep.mubr.msk.f32.mxu1 %vm10051_vm1, %v10046_v3 }
 0xcd1   :  { %9165 = vmatprep.subr.bf16.mxu1 %v10050_v34  ;;  %9173 = vmatpush3.bf16.msra.mxu0 %v10288_v53 }
 0xcd2   :  { %9180 = vmatprep.subr.bf16.mxu0 %v10050_v34 }
 0xcd4   :  { %9167 = vmatpush3.bf16.msra.mxu1 %v10266_v42 }
 0xcd5   :  { %9174 = vmatprep.subr.bf16.mxu1 %v10050_v34 }
 0xd9e   :  { %v1175_v48 = vpop.f32.mrb[18].mxu0 }
 0xd9f   :  { %v1197_v50 = vadd.f32 %v1175_v48, %v10314_v0  ;;  %v8523_v52 = vpop.f32.mrb[19].mxu0  ;;  %1180 = vrot.lane.b32.xlu1 %v1175_v48, %s10048_s0 }
 0xda1   :  { %1199 = vrot.lane.b32.xlu0 %v1197_v50, %s10049_s14 }
 0xda2   :  { %v1063_v54 = vpop.f32.mrb[10].mxu1 }
 0xda3   :  { %v1074_v56 = vadd.f32 %v1063_v54, %v10238_v18  ;;  %v8512_v57 = vpop.f32.mrb[11].mxu1  ;;  %v1067_v58 = vadd.f32 %v1063_v54, %v10226_v61 }
 0xda5   :  { %1076 = vrot.lane.b32.xlu1 %v1074_v56, %s10047_s13  ;;  %v7877_v59 = vmul.f32 -1.442695, %v1067_v58 }
 0xda7   :  { %9596 = vpow2.f32 %v7877_v59 }
 0xdb1   :  { %v9597_v21 = vpop.eup %9596 }
 0xdb2   :  { %v1071_v60 = vadd.f32 1.0, %v9597_v21 }
 0xdb4   :  { %9598 = vrcp.f32 %v1071_v60 }
 0xdbe   :  { %v9599_v4 = vpop.eup %9598 }
 0xe11   :  { %v1181_v62 = vpop.permute.xlu1 %1180 }
 0xe12   :  { %v1183_v63 = vadd.f32 %v1181_v62, %v10223_v55  ;;  %v1184_v23 = vadd.f32 %v1181_v62, %v1103_v16 }
 0xe13   :  { %v1200_v11 = vpop.permute.xlu0 %1199 }
 0xe14   :  { %v7879_v2 = vmul.f32 -1.442695, %v1183_v63  ;;  %v7880_v24 = vmul.f32 -1.442695, %v1184_v23 }
 0xe16   :  { %9600 = vpow2.f32 %v7879_v2 }
 0xe17   :  { %v1077_v5 = vpop.permute.xlu1 %1076 }
 0xe18   :  { %v1079_v7 = vmul.f32 %v9599_v4, %v1077_v5 }
 0xe1a   :  { %1081 = vrot.lane.b32.xlu1 %v1079_v7, %s10047_s13 }
 0xe20   :  { %v9601_v8 = vpop.eup %9600 }
 0xe21   :  { %v1191_v9 = vadd.f32 1.0, %v9601_v8 }
 0xe23   :  { %9602 = vrcp.f32 %v1191_v9 }
 0xe2d   :  { %v9603_v10 = vpop.eup %9602 }
 0xe2e   :  { %v1202_v12 = vmul.f32 %v9603_v10, %v1200_v11  ;;  %v1330_v11 = vld [vmem:[#allocation3 + $0x28] sm:$0xff] }
 0xe30   :  { %1204 = vrot.lane.b32.xlu0 %v1202_v12, %s10047_s13 }
 0xe8c   :  { %v1082_v13 = vpop.permute.xlu1 %1081 }
 0xe8d   :  { %v1084_v14 = vadd.f32 %v1082_v13, %v10226_v61 }
 0xe8f   :  { %9604 = vtanh.f32 %v1084_v14 }
 0xe99   :  { %v9605_v55 = vpop.eup %9604 }
 0xe9a   :  { %v1086_v15 = vsub.f32 %v869_v44, %v9605_v55 }
 0xe9c   :  { %1088 = vrot.lane.b32.xlu1 %v1086_v15, %s10048_s0 }
 0xea2   :  { %v1205_v17 = vpop.permute.xlu0 %1204 }
 0xea3   :  { %v1207_v19 = vadd.f32 %v1205_v17, %v1103_v16 }
 0xea5   :  { %9606 = vtanh.f32 %v1207_v19 }
 0xea6   :  { %9608 = vpow2.f32 %v7880_v24 }
 0xeaf   :  { %v9607_v20 = vpop.eup %9606 }
 0xeb0   :  { %v1209_v22 = vsub.f32 %v10397_v41, %v9607_v20  ;;  %v9609_v61 = vpop.eup %9608 }
 0xeb1   :  { %v1192_v27 = vadd.f32 1.0, %v9609_v61 }
 0xeb2   :  { %1211 = vrot.lane.b32.xlu0 %v1209_v22, %s10048_s0 }
 0xeb3   :  { %9610 = vrcp.f32 %v1192_v27 }
 0xebd   :  { %v9611_v28 = vpop.eup %9610 }
 0xf0e   :  { %v1089_v25 = vpop.permute.xlu1 %1088 }
 0xf0f   :  { %v1091_v26 = vmul.f32 %v9599_v4, %v1089_v25 }
 0xf11   :  { %1093 = vrot.lane.b32.xlu1 %v1091_v26, %s10049_s14 }
 0xf24   :  { %v1212_v29 = vpop.permute.xlu0 %1211 }
 0xf25   :  { %v1214_v30 = vmul.f32 %v9611_v28, %v1212_v29 }
 0xf27   :  { %1216 = vrot.lane.b32.xlu0 %v1214_v30, %s10049_s14 }
 0xf83   :  { %v1094_v31 = vpop.permute.xlu1 %1093 }
 0xf84   :  { %v1096_v32 = vadd.f32 %v9605_v55, %v1094_v31 }
 0xf86   :  { %1098 = vrot.lane.b32.xlu1 %v1096_v32, %s10047_s13 }
 0xf99   :  { %v1217_v33 = vpop.permute.xlu0 %1216 }
 0xf9a   :  { %v1219_v35 = vadd.f32 %v9607_v20, %v1217_v33 }
 0xf9c   :  { %1220 = vst.msk [vmem:[#allocation2 + $0x18] sm:$0xff] %vm308_vm2, %v1219_v35  ;;  %1332 = vrot.lane.b32.xlu0 %v1219_v35, %s10048_s0 }
 0xff8   :  { %v1099_v37 = vpop.permute.xlu1 %1098 }
 0xff9   :  { %1101 = vst.msk [vmem:[#allocation2 + $0x20] sm:$0xff] %vm272_vm3, %v1099_v37  ;;  %8533 = vmatmul.mubr.msk.f32.vlgmr.msra.gmra.mrb[12].mxu1 %vm272_vm3, %v1099_v37 }
 0xffa   :  { %9176 = vmatpush3.bf16.msra.mxu1 %v10257_v40  ;;  %8554 = vmatprep.mubr.msk.f32.mxu1 %vm10051_vm1, %v10046_v3 }
 0xffb   :  { %9177 = vmatprep.subr.bf16.mxu1 %v10050_v34 }
 0xffe   :  { %9179 = vmatpush3.bf16.msra.mxu1 %v10266_v42 }
 0xfff   :  { %9186 = vmatprep.subr.bf16.mxu1 %v10050_v34 }
0x100e   :  { %v1333_v39 = vpop.permute.xlu0 %1332 }
0x100f   :  { %8544 = vmatmul.mubr.msk.f32.vlgmr.msra.gmra.mrb[20].mxu0 %vm272_vm3, %v1333_v39 }
0x1010   :  { %9182 = vmatpush3.bf16.msra.mxu0 %v10278_v49  ;;  %8565 = vmatprep.mubr.msk.f32.mxu0 %vm10051_vm1, %v10046_v3 }
0x1011   :  { %9183 = vmatprep.subr.bf16.mxu0 %v10050_v34 }
0x1014   :  { %9185 = vmatpush3.bf16.msra.mxu0 %v10288_v53 }
0x1015   :  { %9192 = vmatprep.subr.bf16.mxu0 %v10050_v34 }
0x10cc   :  { %v1290_v41 = vpop.f32.mrb[12].mxu1 }
0x10cd   :  { %v8534_v43 = vpop.f32.mrb[13].mxu1  ;;  %v1301_v48 = vadd.f32 %v1290_v41, %v10238_v18  ;;  %v1294_v50 = vadd.f32 %v1290_v41, %v10229_v1 }
0x10cf   :  { %v7882_v52 = vmul.f32 -1.442695, %v1294_v50 }
0x10d1   :  { %9612 = vpow2.f32 %v7882_v52 }
0x10db   :  { %v9613_v54 = vpop.eup %9612 }
0x10dc   :  { %v1298_v56 = vadd.f32 1.0, %v9613_v54 }
0x10de   :  { %9614 = vrcp.f32 %v1298_v56 }
0x10e2   :  { %v1402_v44 = vpop.f32.mrb[20].mxu0 }
0x10e3   :  { %v1424_v45 = vadd.f32 %v1402_v44, %v10314_v0  ;;  %1407 = vrot.lane.b32.xlu0 %v1402_v44, %s10048_s0  ;;  %v8545_v46 = vpop.f32.mrb[21].mxu0 }
0x10e5   :  { %1426 = vrot.lane.b32.xlu1 %v1424_v45, %s10049_s14 }
0x10e7   :  { %1303 = vrot.lane.b32.xlu0 %v1301_v48, %s10047_s13 }
0x10e8   :  { %v9615_v21 = vpop.eup %9614 }
0x1155   :  { %v1408_v57 = vpop.permute.xlu0 %1407 }
0x1156   :  { %v1410_v58 = vadd.f32 %v1408_v57, %v10220_v51  ;;  %v1411_v15 = vadd.f32 %v1408_v57, %v1330_v11 }
0x1157   :  { %v1427_v5 = vpop.permute.xlu1 %1426 }
0x1158   :  { %v7884_v59 = vmul.f32 -1.442695, %v1410_v58  ;;  %v7885_v16 = vmul.f32 -1.442695, %v1411_v15 }
0x1159   :  { %v1304_v60 = vpop.permute.xlu0 %1303 }
0x115a   :  { %9616 = vpow2.f32 %v7884_v59  ;;  %v1306_v62 = vmul.f32 %v9615_v21, %v1304_v60  ;;  %v1557_v60 = vld [vmem:[#allocation3 + $0x18] sm:$0xff] }
0x115c   :  { %1308 = vrot.lane.b32.xlu0 %v1306_v62, %s10047_s13 }
0x1164   :  { %v9617_v63 = vpop.eup %9616 }
0x1165   :  { %v1418_v2 = vadd.f32 1.0, %v9617_v63 }
0x1167   :  { %9618 = vrcp.f32 %v1418_v2 }
0x1171   :  { %v9619_v4 = vpop.eup %9618 }
0x1172   :  { %v1429_v7 = vmul.f32 %v9619_v4, %v1427_v5 }
0x1174   :  { %1431 = vrot.lane.b32.xlu1 %v1429_v7, %s10047_s13 }
0x11ce   :  { %v1309_v8 = vpop.permute.xlu0 %1308 }
0x11cf   :  { %v1311_v9 = vadd.f32 %v1309_v8, %v10229_v1 }
0x11d1   :  { %9620 = vtanh.f32 %v1311_v9 }
0x11db   :  { %v9621_v51 = vpop.eup %9620 }
0x11dc   :  { %v1313_v10 = vsub.f32 %v1096_v32, %v9621_v51 }
0x11de   :  { %1315 = vrot.lane.b32.xlu0 %v1313_v10, %s10048_s0 }
0x11e6   :  { %v1432_v12 = vpop.permute.xlu1 %1431 }
0x11e7   :  { %v1434_v13 = vadd.f32 %v1432_v12, %v1330_v11 }
0x11e9   :  { %9622 = vtanh.f32 %v1434_v13 }
0x11ea   :  { %9624 = vpow2.f32 %v7885_v16 }
0x11f3   :  { %v9623_v14 = vpop.eup %9622 }
0x11f4   :  { %v1436_v55 = vsub.f32 %v1219_v35, %v9623_v14  ;;  %v9625_v1 = vpop.eup %9624 }
0x11f5   :  { %v1419_v20 = vadd.f32 1.0, %v9625_v1 }
0x11f6   :  { %1438 = vrot.lane.b32.xlu1 %v1436_v55, %s10048_s0 }
0x11f7   :  { %9626 = vrcp.f32 %v1419_v20 }
0x1201   :  { %v9627_v22 = vpop.eup %9626 }
0x1250   :  { %v1316_v17 = vpop.permute.xlu0 %1315 }
0x1251   :  { %v1318_v19 = vmul.f32 %v9615_v21, %v1316_v17 }
0x1253   :  { %1320 = vrot.lane.b32.xlu0 %v1318_v19, %s10049_s14 }
0x1268   :  { %v1439_v23 = vpop.permute.xlu1 %1438 }
0x1269   :  { %v1441_v24 = vmul.f32 %v9627_v22, %v1439_v23 }
0x126b   :  { %1443 = vrot.lane.b32.xlu1 %v1441_v24, %s10049_s14  ;;  %v1675_v24 = vld [vmem:[#allocation3 + $0x70] sm:$0xff] }
0x12c5   :  { %v1321_v25 = vpop.permute.xlu0 %1320 }
0x12c6   :  { %v1323_v26 = vadd.f32 %v9621_v51, %v1321_v25 }
0x12c8   :  { %1325 = vrot.lane.b32.xlu0 %v1323_v26, %s10047_s13 }
0x12dd   :  { %v1444_v61 = vpop.permute.xlu1 %1443 }
0x12de   :  { %v1446_v27 = vadd.f32 %v9623_v14, %v1444_v61 }
0x12e0   :  { %1447 = vst.msk [vmem:[#allocation2 + $0x10] sm:$0xff] %vm308_vm2, %v1446_v27  ;;  %1559 = vrot.lane.b32.xlu1 %v1446_v27, %s10048_s0 }
0x133a   :  { %v1326_v28 = vpop.permute.xlu0 %1325 }
0x133b   :  { %1328 = vst.msk [vmem:[#allocation2 + $0x28] sm:$0xff] %vm272_vm3, %v1326_v28  ;;  %8555 = vmatmul.mubr.msk.f32.vlgmr.msra.gmra.mrb[14].mxu1 %vm272_vm3, %v1326_v28 }
0x133c   :  { %9188 = vmatpush3.bf16.msra.mxu1 %v10257_v40  ;;  %8576 = vmatprep.mubr.msk.f32.mxu1 %vm10051_vm1, %v10046_v3 }
0x133d   :  { %9189 = vmatprep.subr.bf16.mxu1 %v10050_v34 }
0x1340   :  { %9191 = vmatpush3.bf16.msra.mxu1 %v10266_v42 }
0x1352   :  { %v1560_v29 = vpop.permute.xlu1 %1559 }
0x1353   :  { %8566 = vmatmul.mubr.msk.f32.vlgmr.msra.gmra.mrb[22].mxu0 %vm272_vm3, %v1560_v29 }
0x1354   :  { %9194 = vmatpush3.bf16.msra.mxu0 %v10278_v49  ;;  %8587 = vmatprep.mubr.msk.f32.mxu0 %vm10051_vm1, %v10046_v3 }
0x1355   :  { %9195 = vmatprep.subr.bf16.mxu0 %v10050_v34 }
0x1358   :  { %9197 = vmatpush3.bf16.msra.mxu0 %v10288_v53 }
0x1359   :  { %9214 = vmatprep.subr.bf16.mxu0 %v10050_v34 }
0x140e   :  { %v1517_v40 = vpop.f32.mrb[14].mxu1 }
0x140f   :  { %v1528_v30 = vadd.f32 %v1517_v40, %v10238_v18  ;;  %v8556_v31 = vpop.f32.mrb[15].mxu1  ;;  %v1521_v33 = vadd.f32 %v1517_v40, %v10232_v6  ;;  %v1783_v40 = vld [vmem:[#allocation3] sm:$0xff] }
0x1411   :  { %1530 = vrot.lane.b32.xlu0 %v1528_v30, %s10047_s13  ;;  %v7887_v35 = vmul.f32 -1.442695, %v1521_v33 }
0x1413   :  { %9628 = vpow2.f32 %v7887_v35 }
0x141d   :  { %v9629_v53 = vpop.eup %9628 }
0x141e   :  { %v1525_v37 = vadd.f32 1.0, %v9629_v53 }
0x1420   :  { %9630 = vrcp.f32 %v1525_v37 }
0x1426   :  { %v1629_v42 = vpop.f32.mrb[22].mxu0 }
0x1427   :  { %1634 = vrot.lane.b32.xlu1 %v1629_v42, %s10048_s0  ;;  %v8567_v32 = vpop.f32.mrb[23].mxu0  ;;  %v1651_v49 = vadd.f32 %v1629_v42, %v10314_v0 }
0x142a   :  { %v9631_v39 = vpop.eup %9630 }
0x142b   :  { %1653 = vrot.lane.b32.xlu1 %v1651_v49, %s10049_s14 }
0x1483   :  { %v1531_v41 = vpop.permute.xlu0 %1530 }
0x1484   :  { %v1533_v43 = vmul.f32 %v9631_v39, %v1531_v41 }
0x1486   :  { %1535 = vrot.lane.b32.xlu0 %v1533_v43, %s10047_s13  ;;  %v1784_v43 = vld [vmem:[#allocation3 + $0x8] sm:$0xff] }
0x1499   :  { %v1635_v44 = vpop.permute.xlu1 %1634 }
0x149a   :  { %v1637_v45 = vadd.f32 %v1635_v44, %v10217_v47  ;;  %v1638_v7 = vadd.f32 %v1635_v44, %v1557_v60 }
0x149c   :  { %v7889_v46 = vmul.f32 -1.442695, %v1637_v45  ;;  %v7890_v8 = vmul.f32 -1.442695, %v1638_v7 }
0x149d   :  { %v1654_v54 = vpop.permute.xlu1 %1653 }
0x149e   :  { %9632 = vpow2.f32 %v7889_v46 }
0x14a8   :  { %v9633_v48 = vpop.eup %9632 }
0x14a9   :  { %v1645_v50 = vadd.f32 1.0, %v9633_v48 }
0x14ab   :  { %9634 = vrcp.f32 %v1645_v50  ;;  %v7897_v50 = vld [vmem:[%s11758_s1 + $0x88] sm:$0xff] }
0x14b5   :  { %v9635_v52 = vpop.eup %9634 }
0x14b6   :  { %v1656_v56 = vmul.f32 %v9635_v52, %v1654_v54  ;;  %v7899_v52 = vld [vmem:[%s11758_s1 + $0x98] sm:$0xff]  ;;  %v7896_v54 = vld [vmem:[%s11758_s1 + $0x80] sm:$0xff] }
0x14b8   :  { %1658 = vrot.lane.b32.xlu1 %v1656_v56, %s10047_s13  ;;  %v9198_v56 = vpack.c.bf16 %v7899_v52, %v7897_v50 }
0x14ba   :  { %9199 = vmatprep.subr.bf16.mxu1 %v9198_v56 }
0x14f8   :  { %v1536_v57 = vpop.permute.xlu0 %1535 }
0x14f9   :  { %v1538_v58 = vadd.f32 %v1536_v57, %v10232_v6  ;;  %v7898_v57 = vld [vmem:[%s11758_s1 + $0x90] sm:$0xff] }
0x14fb   :  { %9636 = vtanh.f32 %v1538_v58  ;;  %v7901_v58 = vld [vmem:[%s11758_s1 + $0xa8] sm:$0xff] }
0x1505   :  { %v9637_v59 = vpop.eup %9636 }
0x1506   :  { %v1540_v21 = vsub.f32 %v1323_v26, %v9637_v59 }
0x1508   :  { %1542 = vrot.lane.b32.xlu0 %v1540_v21, %s10048_s0  ;;  %v9200_v21 = vpack.c.bf16 %v7898_v57, %v7896_v54 }
0x152a   :  { %v1659_v47 = vpop.permute.xlu1 %1658 }
0x152b   :  { %v1661_v62 = vadd.f32 %v1659_v47, %v1557_v60  ;;  %v7900_v47 = vld [vmem:[%s11758_s1 + $0xa0] sm:$0xff] }
0x152d   :  { %9638 = vtanh.f32 %v1661_v62  ;;  %v7902_v62 = vld [vmem:[%s11758_s1 + $0xb0] sm:$0xff] }
0x152e   :  { %9640 = vpow2.f32 %v7890_v8 }
0x1537   :  { %v9639_v63 = vpop.eup %9638 }
0x1538   :  { %v1663_v2 = vsub.f32 %v1446_v27, %v9639_v63  ;;  %v9641_v6 = vpop.eup %9640 }
0x1539   :  { %v1646_v9 = vadd.f32 1.0, %v9641_v6 }
0x153a   :  { %1665 = vrot.lane.b32.xlu1 %v1663_v2, %s10048_s0 }
0x153b   :  { %9642 = vrcp.f32 %v1646_v9  ;;  %v7905_v9 = vld [vmem:[%s11758_s1 + $0xc8] sm:$0xff] }
0x1545   :  { %v9643_v51 = vpop.eup %9642 }
0x157a   :  { %v1543_v4 = vpop.permute.xlu0 %1542 }
0x157b   :  { %v1545_v5 = vmul.f32 %v9631_v39, %v1543_v4 }
0x157d   :  { %1547 = vrot.lane.b32.xlu0 %v1545_v5, %s10049_s14 }
0x15ac   :  { %v1666_v10 = vpop.permute.xlu1 %1665 }
0x15ad   :  { %v1668_v11 = vmul.f32 %v9643_v51, %v1666_v10  ;;  %v7907_v51 = vld [vmem:[%s11758_s1 + $0xd8] sm:$0xff] }
0x15ae   :  { %v9206_v10 = vpack.c.bf16 %v7907_v51, %v7905_v9 }
0x15af   :  { %1670 = vrot.lane.b32.xlu1 %v1668_v11, %s10049_s14  ;;  %v7904_v11 = vld [vmem:[%s11758_s1 + $0xc0] sm:$0xff] }
0x15ef   :  { %v1548_v12 = vpop.permute.xlu0 %1547 }
0x15f0   :  { %v1550_v13 = vadd.f32 %v9637_v59, %v1548_v12  ;;  %v7903_v59 = vld [vmem:[%s11758_s1 + $0xb8] sm:$0xff]  ;;  %v7906_v12 = vld [vmem:[%s11758_s1 + $0xd0] sm:$0xff] }
0x15f1   :  { %v9202_v60 = vpack.c.bf16 %v7903_v59, %v7901_v58 }
0x15f2   :  { %1552 = vrot.lane.b32.xlu0 %v1550_v13, %s10047_s13 }
0x1621   :  { %v1671_v14 = vpop.permute.xlu1 %1670 }
0x1622   :  { %v1673_v55 = vadd.f32 %v9639_v63, %v1671_v14  ;;  %v9204_v63 = vpack.c.bf16 %v7902_v62, %v7900_v47  ;;  %v7909_v14 = vld [vmem:[%s11758_s1 + $0xe8] sm:$0xff] }
0x1624   :  { %1674 = vst.msk [vmem:[#allocation2 + $0x8] sm:$0xff] %vm308_vm2, %v1673_v55  ;;  %1786 = vrot.lane.b32.xlu1 %v1673_v55, %s10048_s0 }
0x1664   :  { %v1553_v15 = vpop.permute.xlu0 %1552 }
0x1665   :  { %1555 = vst.msk [vmem:[#allocation2 + $0x30] sm:$0xff] %vm272_vm3, %v1553_v15  ;;  %8577 = vmatmul.mubr.msk.f32.vlgmr.msra.gmra.mrb[16].mxu1 %vm272_vm3, %v1553_v15  ;;  %v7908_v15 = vld [vmem:[%s11758_s1 + $0xe0] sm:$0xff] }
0x1666   :  { %2028 = vmatprep.mubr.f32.mxu1 %v10046_v3  ;;  %9201 = vmatpush1.bf16.msra.mxu1 %v9200_v21 }
0x1667   :  { %9203 = vmatprep.subr.bf16.mxu1 %v9202_v60 }
0x166a   :  { %9205 = vmatpush1.bf16.msra.mxu1 %v9204_v63 }
0x166b   :  { %9207 = vmatprep.subr.bf16.mxu1 %v9206_v10 }
0x1696   :  { %v1787_v16 = vpop.permute.xlu1 %1786 }
0x1697   :  { %8588 = vmatmul.mubr.msk.f32.vlgmr.msra.gmra.mrb[24].mxu0 %vm272_vm3, %v1787_v16 }
0x1698   :  { %8598 = vmatprep.mubr.msk.f32.mxu0 %vm10051_vm1, %v10046_v3 }
0x1738   :  { %v1744_v17 = vpop.f32.mrb[16].mxu1 }
0x1739   :  { %v1755_v19 = vadd.f32 %v1744_v17, %v10238_v18  ;;  %v8578_v1 = vpop.f32.mrb[17].mxu1  ;;  %v1748_v25 = vadd.f32 %v1744_v17, %v1675_v24  ;;  %v7910_v17 = vld [vmem:[%s11758_s1 + $0xf0] sm:$0xff] }
0x173b   :  { %1757 = vrot.lane.b32.xlu0 %v1755_v19, %s10047_s13  ;;  %v7892_v26 = vmul.f32 -1.442695, %v1748_v25  ;;  %v9212_v19 = vpack.c.bf16 %v7910_v17, %v7908_v15 }
0x173d   :  { %9644 = vpow2.f32 %v7892_v26 }
0x1747   :  { %v9645_v61 = vpop.eup %9644 }
0x1748   :  { %v1752_v27 = vadd.f32 1.0, %v9645_v61 }
0x174a   :  { %9646 = vrcp.f32 %v1752_v27 }
0x1754   :  { %v9647_v28 = vpop.eup %9646 }
0x176a   :  { %v1856_v20 = vpop.f32.mrb[24].mxu0 }
0x176b   :  { %v1878_v22 = vadd.f32 %v1856_v20, %v10314_v0  ;;  %1861 = vrot.lane.b32.xlu1 %v1856_v20, %s10048_s0  ;;  %v8589_v23 = vpop.f32.mrb[25].mxu0 }
0x176c   :  { %v10569_v23 = vld [vmem:[%s11759_s4 + $0x1] ss:$0 sm:$0xff] }
0x176d   :  { %1880 = vrot.lane.b32.xlu0 %v1878_v22, %s10049_s14 }
0x17ad   :  { %v1758_v18 = vpop.permute.xlu0 %1757 }
0x17ae   :  { %v1760_v29 = vmul.f32 %v9647_v28, %v1758_v18  ;;  %v1921_v18 = vld [vmem:[#allocation2 + $0x10] sm:$0xff] }
0x17b0   :  { %1762 = vrot.lane.b32.xlu1 %v1760_v29, %s10047_s13  ;;  %v1922_v29 = vld [vmem:[#allocation2 + $0x18] sm:$0xff] }
0x17dd   :  { %v1862_v30 = vpop.permute.xlu1 %1861 }
0x17de   :  { %v1864_v0 = vadd.f32 %v1862_v30, %v1783_v40  ;;  %v1865_v5 = vadd.f32 %v1862_v30, %v1784_v43  ;;  %v1923_v40 = vld [vmem:[#allocation2 + $0x20] sm:$0xff]  ;;  %v1924_v30 = vld [vmem:[#allocation2 + $0x28] sm:$0xff] }
0x17df   :  { %v1881_v33 = vpop.permute.xlu0 %1880 }
0x17e0   :  { %v7894_v31 = vmul.f32 -1.442695, %v1864_v0  ;;  %v7895_v7 = vmul.f32 -1.442695, %v1865_v5  ;;  %v1925_v0 = vld [vmem:[#allocation2 + $0x30] sm:$0xff] }
0x17e2   :  { %9648 = vpow2.f32 %v7894_v31 }
0x17ec   :  { %v9649_v42 = vpop.eup %9648 }
0x17ed   :  { %v1872_v32 = vadd.f32 1.0, %v9649_v42 }
0x17ef   :  { %9650 = vrcp.f32 %v1872_v32  ;;  %v7912_v32 = vld [vmem:[%s11761_s2 + $0x2] sm:$0x3] }
0x17f9   :  { %v9651_v49 = vpop.eup %9650 }
0x17fa   :  { %v1883_v35 = vmul.f32 %v9651_v49, %v1881_v33  ;;  %v1933_v49 = vrot.slane %v7912_v32, %v10207_v36  ;;  %v1937_v33 = vrot.slane %v7912_v32, %v10212_v38  ;;  %v7922_v32 = vld [vmem:[%s11762_s3 + $0x48] sm:$0xff] }
0x17fc   :  { %1885 = vrot.lane.b32.xlu0 %v1883_v35, %s10047_s13 }
0x1822   :  { %v1763_v53 = vpop.permute.xlu1 %1762 }
0x1823   :  { %v1765_v37 = vadd.f32 %v1763_v53, %v1675_v24 }
0x1825   :  { %9652 = vtanh.f32 %v1765_v37 }
0x182f   :  { %v9653_v39 = vpop.eup %9652 }
0x1830   :  { %v1767_v41 = vsub.f32 %v1550_v13, %v9653_v39  ;;  %v9208_v13 = vpack.c.bf16 %v7906_v12, %v7904_v11 }
0x1832   :  { %1769 = vrot.lane.b32.xlu1 %v1767_v41, %s10048_s0  ;;  %9209 = vmatpush1.bf16.msra.mxu1 %v9208_v13 }
0x186e   :  { %v1886_v44 = vpop.permute.xlu0 %1885 }
0x186f   :  { %v1888_v45 = vadd.f32 %v1886_v44, %v1784_v43 }
0x1871   :  { %9654 = vtanh.f32 %v1888_v45 }
0x1872   :  { %9656 = vpow2.f32 %v7895_v7 }
0x187b   :  { %v9655_v46 = vpop.eup %9654 }
0x187c   :  { %v1890_v48 = vsub.f32 %v1673_v55, %v9655_v46  ;;  %v9657_v8 = vpop.eup %9656  ;;  %v7911_v55 = vld [vmem:[%s11758_s1 + $0xf8] sm:$0xff] }
0x187d   :  { %v1873_v6 = vadd.f32 1.0, %v9657_v8  ;;  %v9210_v16 = vpack.c.bf16 %v7911_v55, %v7909_v14 }
0x187e   :  { %1892 = vrot.lane.b32.xlu0 %v1890_v48, %s10048_s0 }
0x187f   :  { %9658 = vrcp.f32 %v1873_v6  ;;  %9211 = vmatprep.subr.bf16.mxu1 %v9210_v16 }
0x1880   :  { %9213 = vmatpush1.bf16.msra.mxu1 %v9212_v19 }
0x1881   :  { %9244 = vmatprep.subr.bf16.mxu1 %v10050_v34 }
0x1889   :  { %v9659_v1 = vpop.eup %9658 }
0x18a4   :  { %v1770_v2 = vpop.permute.xlu1 %1769 }
0x18a5   :  { %v1772_v4 = vmul.f32 %v9647_v28, %v1770_v2  ;;  %v1920_v28 = vld [vmem:[#allocation2 + $0x8] sm:$0xff] }
0x18a7   :  { %1774 = vrot.lane.b32.xlu1 %v1772_v4, %s10049_s14 }
0x18f0   :  { %v1893_v20 = vpop.permute.xlu0 %1892 }
0x18f1   :  { %v1895_v22 = vmul.f32 %v9659_v1, %v1893_v20 }
0x18f3   :  { %1897 = vrot.lane.b32.xlu0 %v1895_v22, %s10049_s14 }
0x18f7   :  { %2154 = vrot.lane.b32.xlu0 %v10569_v23, %s10047_s13 }
0x1919   :  { %v1775_v24 = vpop.permute.xlu1 %1774 }
0x191a   :  { %v1777_v25 = vadd.f32 %v9653_v39, %v1775_v24 }
0x191c   :  { %1779 = vrot.lane.b32.xlu1 %v1777_v25, %s10047_s13 }
0x1965   :  { %v1898_v26 = vpop.permute.xlu0 %1897 }
0x1966   :  { %v1900_v61 = vadd.f32 %v9655_v46, %v1898_v26 }
0x1968   :  { %1901 = vst.msk [vmem:[#allocation2] sm:$0xff] %vm308_vm2, %v1900_v61 }
0x1969   :  { %v10623_v1 = vpop.permute.xlu0 %2154 }
0x196f   :  { %v1919_v27 = vld [vmem:[#allocation2] sm:$0xff] }
0x1970   :  { %7913 = vmatmul.mubr.msk.f32.vlgmr.msra.gmra.mrb[18].mxu1 %vm74_vm0, %v1919_v27 }
0x1971   :  { %2034 = vmatprep.mubr.f32.mxu1 %v10046_v3 }
0x1974   :  { %7914 = vmatmul.mubr.msk.f32.gmra.mrb[20].mxu1 %vm74_vm0, %v1920_v28 }
0x1975   :  { %2040 = vmatprep.mubr.f32.mxu1 %v10046_v3 }
0x1978   :  { %7915 = vmatmul.mubr.msk.f32.gmra.mrb[22].mxu1 %vm74_vm0, %v1921_v18 }
0x1979   :  { %2046 = vmatprep.mubr.f32.mxu1 %v10046_v3 }
0x197c   :  { %7916 = vmatmul.mubr.msk.f32.gmra.mrb[24].mxu1 %vm74_vm0, %v1922_v29 }
0x197d   :  { %2052 = vmatprep.mubr.f32.mxu1 %v10046_v3 }
0x1980   :  { %7917 = vmatmul.mubr.msk.f32.gmra.mrb[26].mxu1 %vm74_vm0, %v1923_v40 }
0x1981   :  { %2058 = vmatprep.mubr.f32.mxu1 %v10046_v3 }
0x1984   :  { %7918 = vmatmul.mubr.msk.f32.gmra.mrb[28].mxu1 %vm74_vm0, %v1924_v30 }
0x1985   :  { %2064 = vmatprep.mubr.f32.mxu1 %v10046_v3 }
0x1988   :  { %7919 = vmatmul.mubr.msk.f32.gmra.mrb[30].mxu1 %vm74_vm0, %v1925_v0 }
0x1989   :  { %2070 = vmatprep.mubr.f32.mxu1 %v10046_v3 }
0x198e   :  { %v1780_v31 = vpop.permute.xlu1 %1779 }
0x198f   :  { %1782 = vst.msk [vmem:[#allocation2 + $0x38] sm:$0xff] %vm272_vm3, %v1780_v31 }
0x1996   :  { %v1926_v42 = vld [vmem:[#allocation2 + $0x38] sm:$0xff] }
0x1997   :  { %7920 = vmatmul.mubr.msk.f32.gmra.mrb[32].mxu1 %vm74_vm0, %v1926_v42  ;;  %v7921_v42 = vld [vmem:[%s11762_s3 + $0x40] sm:$0xff] }
0x1998   :  { %8653 = vmatprep.mubr.msk.f32.mxu1 %vm10051_vm1, %v10046_v3 }
0x1a43   :  { %v2030_v35 = vpop.f32.mrb[18].mxu1 }
0x1a44   :  { %v2031_v53 = vadd.f32 %v2030_v35, %v1933_v49  ;;  %v2032_v37 = vpop.f32.mrb[19].mxu1  ;;  %v7924_v35 = vld [vmem:[%s11762_s3 + $0x58] sm:$0xff] }
0x1a45   :  { %v2033_v39 = vadd.f32 %v2032_v37, %v1937_v33 }
0x1a46   :  { %2077 = vst [vmem:[#allocation3] sm:$0xff] %v2031_v53  ;;  %v7930_v41 = vmul.f32 -1.442695, %v2031_v53 }
0x1a47   :  { %2078 = vst.msk [vmem:[#allocation3 + $0x8] sm:$0xff] %vm74_vm0, %v2033_v39  ;;  %v2036_v43 = vpop.f32.mrb[20].mxu1 }
0x1a48   :  { %v10599_v44 = vadd.f32 %v2036_v43, %v1933_v49  ;;  %v2038_v45 = vpop.f32.mrb[21].mxu1  ;;  %9660 = vpow2.f32 %v7930_v41  ;;  %v7925_v43 = vld [vmem:[%s11762_s3 + $0x60] sm:$0xff] }
0x1a49   :  { %v2039_v46 = vadd.f32 %v2038_v45, %v1937_v33  ;;  %v7926_v45 = vld [vmem:[%s11762_s3 + $0x68] sm:$0xff] }
0x1a4b   :  { %2080 = vst.msk [vmem:[#allocation3 + $0x18] sm:$0xff] %vm74_vm0, %v2039_v46  ;;  %v2042_v48 = vpop.f32.mrb[22].mxu1  ;;  %v10657_v46 = vpack.c.bf16 %v7926_v45, %v7925_v43 }
0x1a4c   :  { %v10602_v50 = vadd.f32 %v2042_v48, %v1933_v49  ;;  %v2044_v52 = vpop.f32.mrb[23].mxu1  ;;  %v7927_v48 = vld [vmem:[%s11762_s3 + $0x70] sm:$0xff] }
0x1a4d   :  { %v2045_v54 = vadd.f32 %v2044_v52, %v1937_v33  ;;  %v7928_v52 = vld [vmem:[%s11762_s3 + $0x78] sm:$0xff]  ;;  %9246 = vmatpush3.bf16.msra.mxu1 %v10657_v46 }
0x1a4e   :  { %9247 = vmatprep.subr.bf16.mxu1 %v10050_v34 }
0x1a4f   :  { %2082 = vst.msk [vmem:[#allocation3 + $0x28] sm:$0xff] %vm74_vm0, %v2045_v54  ;;  %v2048_v56 = vpop.f32.mrb[24].mxu1  ;;  %v10667_v54 = vpack.c.bf16 %v7928_v52, %v7927_v48 }
0x1a50   :  { %v10605_v57 = vadd.f32 %v2048_v56, %v1933_v49  ;;  %v2050_v58 = vpop.f32.mrb[25].mxu1 }
0x1a51   :  { %v2051_v59 = vadd.f32 %v2050_v58, %v1937_v33  ;;  %9249 = vmatpush3.bf16.msra.mxu1 %v10667_v54 }
0x1a52   :  { %v9661_v21 = vpop.eup %9660  ;;  %9256 = vmatprep.subr.bf16.mxu1 %v10050_v34 }
0x1a53   :  { %2084 = vst.msk [vmem:[#allocation3 + $0x38] sm:$0xff] %vm74_vm0, %v2051_v59  ;;  %v2054_v60 = vpop.f32.mrb[26].mxu1  ;;  %v2109_v47 = vadd.f32 1.0, %v9661_v21 }
0x1a54   :  { %v10608_v62 = vadd.f32 %v2054_v60, %v1933_v49  ;;  %v2056_v63 = vpop.f32.mrb[27].mxu1 }
0x1a55   :  { %v2057_v2 = vadd.f32 %v2056_v63, %v1937_v33  ;;  %9662 = vrcp.f32 %v2109_v47 }
0x1a57   :  { %2086 = vst.msk [vmem:[#allocation3 + $0x48] sm:$0xff] %vm74_vm0, %v2057_v2  ;;  %v2060_v4 = vpop.f32.mrb[28].mxu1 }
0x1a58   :  { %v10611_v5 = vadd.f32 %v2060_v4, %v1933_v49  ;;  %v2062_v7 = vpop.f32.mrb[29].mxu1 }
0x1a59   :  { %v2063_v8 = vadd.f32 %v2062_v7, %v1937_v33 }
0x1a5b   :  { %2088 = vst.msk [vmem:[#allocation3 + $0x58] sm:$0xff] %vm74_vm0, %v2063_v8  ;;  %v2066_v6 = vpop.f32.mrb[30].mxu1 }
0x1a5c   :  { %v10614_v9 = vadd.f32 %v2066_v6, %v1933_v49  ;;  %v2068_v51 = vpop.f32.mrb[31].mxu1 }
0x1a5d   :  { %v2069_v10 = vadd.f32 %v2068_v51, %v1937_v33 }
0x1a5f   :  { %v9663_v11 = vpop.eup %9662  ;;  %2090 = vst.msk [vmem:[#allocation3 + $0x68] sm:$0xff] %vm74_vm0, %v2069_v10 }
0x1a60   :  { %v2118_v12 = vmul.f32 %v9663_v11, %v10569_v23 }
0x1a62   :  { %2120 = vrot.lane.b32.xlu1 %v2118_v12, %s10047_s13 }
0x1a6a   :  { %v2072_v13 = vpop.f32.mrb[32].mxu1 }
0x1a6b   :  { %v10619_v14 = vadd.f32 %v2072_v13, %v1933_v49  ;;  %v2074_v55 = vpop.f32.mrb[33].mxu1  ;;  %v7923_v49 = vld [vmem:[%s11762_s3 + $0x50] sm:$0xff] }
0x1a6c   :  { %v2075_v15 = vadd.f32 %v2074_v55, %v1937_v33  ;;  %v10639_v33 = vpack.c.bf16 %v7922_v32, %v7921_v42 }
0x1a6d   :  { %v7932_v16 = vmul.f32 -1.442695, %v10619_v14 }
0x1a6e   :  { %2092 = vst.msk [vmem:[#allocation3 + $0x78] sm:$0xff] %vm74_vm0, %v2075_v15  ;;  %9216 = vmatpush3.bf16.msra.mxu0 %v10639_v33 }
0x1a6f   :  { %9664 = vpow2.f32 %v7932_v16  ;;  %9217 = vmatprep.subr.bf16.mxu0 %v10050_v34 }
0x1a75   :  { %v2141_v61 = vld [vmem:[#allocation3 + $0x78] sm:$0xff] }
0x1a76   :  { %v7933_v30 = vmul.f32 -1.442695, %v2141_v61 }
0x1a79   :  { %v9665_v17 = vpop.eup %9664 }
0x1a7a   :  { %v2148_v19 = vadd.f32 1.0, %v9665_v17 }
0x1a7c   :  { %9666 = vrcp.f32 %v2148_v19 }
0x1a86   :  { %v9667_v20 = vpop.eup %9666 }
0x1a87   :  { %v2157_v22 = vmul.f32 %v9667_v20, %v10623_v1 }
0x1a89   :  { %2159 = vrot.lane.b32.xlu0 %v2157_v22, %s10047_s13 }
0x1ad4   :  { %v2121_v24 = vpop.permute.xlu1 %2120 }
0x1ad5   :  { %v2123_v25 = vadd.f32 %v2121_v24, %v2031_v53  ;;  %v10645_v53 = vpack.c.bf16 %v7924_v35, %v7923_v49 }
0x1ad7   :  { %9668 = vtanh.f32 %v2123_v25  ;;  %9219 = vmatpush3.bf16.msra.mxu0 %v10645_v53 }
0x1ad8   :  { %9220 = vmatprep.subr.bf16.mxu0 %v10050_v34 }
0x1ae1   :  { %v9669_v26 = vpop.eup %9668 }
0x1ae2   :  { %2126 = vrot.lane.b32.xlu1 %v9669_v26, %s10048_s0 }
0x1afb   :  { %v2160_v27 = vpop.permute.xlu0 %2159 }
0x1afc   :  { %v2162_v28 = vadd.f32 %v2160_v27, %v2141_v61 }
0x1afe   :  { %9670 = vtanh.f32 %v2162_v28 }
0x1aff   :  { %9672 = vpow2.f32 %v7933_v30 }
0x1b08   :  { %v9671_v18 = vpop.eup %9670 }
0x1b09   :  { %2165 = vrot.lane.b32.xlu0 %v9671_v18, %s10048_s0  ;;  %v9673_v0 = vpop.eup %9672 }
0x1b0a   :  { %v2149_v31 = vadd.f32 1.0, %v9673_v0 }
0x1b0c   :  { %9674 = vrcp.f32 %v2149_v31 }
0x1b16   :  { %v9675_v37 = vpop.eup %9674 }
0x1b54   :  { %v2127_v29 = vpop.permute.xlu1 %2126 }
0x1b55   :  { %v2129_v40 = vmul.f32 %v9663_v11, %v2127_v29  ;;  %v2284_v29 = vld [vmem:[#allocation3 + $0x68] sm:$0xff] }
0x1b57   :  { %2131 = vrot.lane.b32.xlu1 %v2129_v40, %s10049_s14 }
0x1b7b   :  { %v2166_v39 = vpop.permute.xlu0 %2165 }
0x1b7c   :  { %v2168_v41 = vmul.f32 %v9675_v37, %v2166_v39 }
0x1b7e   :  { %2170 = vrot.lane.b32.xlu0 %v2168_v41, %s10049_s14 }
0x1bc9   :  { %v2132_v56 = vpop.permute.xlu1 %2131 }
0x1bca   :  { %v2134_v58 = vsub.f32 %v9669_v26, %v2132_v56 }
0x1bcc   :  { %2136 = vrot.lane.b32.xlu1 %v2134_v58, %s10047_s13 }
0x1bd0   :  { %2378 = vrot.lane.b32.xlu1 %v10569_v23, %s10049_s14 }
0x1bf0   :  { %v2171_v59 = vpop.permute.xlu0 %2170 }
0x1bf1   :  { %v2173_v21 = vsub.f32 %v9671_v18, %v2171_v59 }
0x1bf3   :  { %2174 = vst.msk [vmem:[#allocation2 + $0x38] sm:$0xff] %vm308_vm2, %v2173_v21  ;;  %2286 = vrot.lane.b32.xlu0 %v2173_v21, %s10048_s0 }
0x1c3e   :  { %v2137_v60 = vpop.permute.xlu1 %2136 }
0x1c3f   :  { %2139 = vst.msk [vmem:[#allocation2] sm:$0xff] %vm272_vm3, %v2137_v60  ;;  %8599 = vmatmul.mubr.msk.f32.vlgmr.msra.gmra.mrb[26].mxu0 %vm272_vm3, %v2137_v60 }
0x1c40   :  { %9222 = vmatpush3.bf16.msra.mxu0 %v10657_v46  ;;  %8609 = vmatprep.mubr.msk.f32.mxu0 %vm10051_vm1, %v10046_v3 }
0x1c41   :  { %9223 = vmatprep.subr.bf16.mxu0 %v10050_v34 }
0x1c42   :  { %v10693_v4 = vpop.permute.xlu1 %2378 }
0x1c44   :  { %9225 = vmatpush3.bf16.msra.mxu0 %v10667_v54 }
0x1c45   :  { %9226 = vmatprep.subr.bf16.mxu0 %v10050_v34 }
0x1c65   :  { %v2287_v23 = vpop.permute.xlu0 %2286 }
0x1c66   :  { %8610 = vmatmul.mubr.msk.f32.vlgmr.msra.gmra.mrb[28].mxu0 %vm272_vm3, %v2287_v23 }
0x1c67   :  { %9228 = vmatpush3.bf16.msra.mxu0 %v10639_v33  ;;  %8620 = vmatprep.mubr.msk.f32.mxu0 %vm10051_vm1, %v10046_v3 }
0x1c68   :  { %9229 = vmatprep.subr.bf16.mxu0 %v10050_v34 }
0x1c6b   :  { %9231 = vmatpush3.bf16.msra.mxu0 %v10645_v53 }
0x1c6c   :  { %9232 = vmatprep.subr.bf16.mxu0 %v10050_v34 }
0x1d12   :  { %v2244_v47 = vpop.f32.mrb[26].mxu0 }
0x1d13   :  { %v2255_v63 = vadd.f32 %v2244_v47, %v10623_v1  ;;  %v8600_v2 = vpop.f32.mrb[27].mxu0  ;;  %v2248_v51 = vadd.f32 %v2244_v47, %v10599_v44 }
0x1d15   :  { %2257 = vrot.lane.b32.xlu1 %v2255_v63, %s10047_s13  ;;  %v7935_v10 = vmul.f32 -1.442695, %v2248_v51 }
0x1d17   :  { %9676 = vpow2.f32 %v7935_v10 }
0x1d21   :  { %v9677_v11 = vpop.eup %9676 }
0x1d22   :  { %v2252_v12 = vadd.f32 1.0, %v9677_v11 }
0x1d24   :  { %9678 = vrcp.f32 %v2252_v12 }
0x1d2e   :  { %v9679_v13 = vpop.eup %9678 }
0x1d39   :  { %v2356_v7 = vpop.f32.mrb[28].mxu0 }
0x1d3a   :  { %2361 = vrot.lane.b32.xlu0 %v2356_v7, %s10048_s0  ;;  %v8611_v8 = vpop.f32.mrb[29].mxu0  ;;  %v2381_v6 = vadd.f32 %v10693_v4, %v2356_v7 }
0x1d3e   :  { %2383 = vrot.lane.b32.xlu0 %v2381_v6, %s10049_s14 }
0x1d87   :  { %v2258_v55 = vpop.permute.xlu1 %2257 }
0x1d88   :  { %v2260_v15 = vmul.f32 %v9679_v13, %v2258_v55 }
0x1d8a   :  { %2262 = vrot.lane.b32.xlu1 %v2260_v15, %s10047_s13 }
0x1dac   :  { %v2362_v16 = vpop.permute.xlu0 %2361 }
0x1dad   :  { %v2364_v17 = vadd.f32 %v2362_v16, %v10614_v9  ;;  %v2365_v49 = vadd.f32 %v2362_v16, %v2284_v29 }
0x1daf   :  { %v7937_v19 = vmul.f32 -1.442695, %v2364_v17  ;;  %v7938_v35 = vmul.f32 -1.442695, %v2365_v49 }
0x1db0   :  { %v2384_v25 = vpop.permute.xlu0 %2383 }
0x1db1   :  { %9680 = vpow2.f32 %v7937_v19 }
0x1dbb   :  { %v9681_v20 = vpop.eup %9680 }
0x1dbc   :  { %v2372_v22 = vadd.f32 1.0, %v9681_v20 }
0x1dbe   :  { %9682 = vrcp.f32 %v2372_v22 }
0x1dc8   :  { %v9683_v24 = vpop.eup %9682 }
0x1dc9   :  { %v2386_v26 = vmul.f32 %v9683_v24, %v2384_v25 }
0x1dcb   :  { %2388 = vrot.lane.b32.xlu0 %v2386_v26, %s10047_s13 }
0x1dfc   :  { %v2263_v61 = vpop.permute.xlu1 %2262 }
0x1dfd   :  { %v2265_v27 = vadd.f32 %v2263_v61, %v10599_v44 }
0x1dff   :  { %9684 = vtanh.f32 %v2265_v27 }
0x1e09   :  { %v9685_v28 = vpop.eup %9684 }
0x1e0a   :  { %v2267_v18 = vsub.f32 %v2134_v58, %v9685_v28 }
0x1e0c   :  { %2269 = vrot.lane.b32.xlu1 %v2267_v18, %s10048_s0 }
0x1e3d   :  { %v2389_v40 = vpop.permute.xlu0 %2388 }
0x1e3e   :  { %v2391_v30 = vadd.f32 %v2389_v40, %v2284_v29 }
0x1e40   :  { %9686 = vtanh.f32 %v2391_v30 }
0x1e41   :  { %9688 = vpow2.f32 %v7938_v35 }
0x1e4a   :  { %v9687_v0 = vpop.eup %9686 }
0x1e4b   :  { %v2393_v31 = vsub.f32 %v2173_v21, %v9687_v0  ;;  %v9689_v37 = vpop.eup %9688 }
0x1e4c   :  { %v2373_v39 = vadd.f32 1.0, %v9689_v37 }
0x1e4d   :  { %2395 = vrot.lane.b32.xlu0 %v2393_v31, %s10048_s0 }
0x1e4e   :  { %9690 = vrcp.f32 %v2373_v39 }
0x1e58   :  { %v9691_v41 = vpop.eup %9690 }
0x1e7e   :  { %v2270_v42 = vpop.permute.xlu1 %2269 }
0x1e7f   :  { %v2272_v32 = vmul.f32 %v9679_v13, %v2270_v42 }
0x1e81   :  { %2274 = vrot.lane.b32.xlu1 %v2272_v32, %s10049_s14 }
0x1ebf   :  { %v2396_v43 = vpop.permute.xlu0 %2395 }
0x1ec0   :  { %v2398_v45 = vmul.f32 %v9691_v41, %v2396_v43 }
0x1ec2   :  { %2400 = vrot.lane.b32.xlu0 %v2398_v45, %s10049_s14 }
0x1ef3   :  { %v2275_v48 = vpop.permute.xlu1 %2274 }
0x1ef4   :  { %v2277_v52 = vadd.f32 %v9685_v28, %v2275_v48  ;;  %v2514_v28 = vld [vmem:[#allocation3 + $0x58] sm:$0xff] }
0x1ef6   :  { %2279 = vrot.lane.b32.xlu1 %v2277_v52, %s10047_s13 }
0x1f34   :  { %v2401_v56 = vpop.permute.xlu0 %2400 }
0x1f35   :  { %v2403_v58 = vadd.f32 %v9687_v0, %v2401_v56 }
0x1f37   :  { %2404 = vst.msk [vmem:[#allocation2 + $0x30] sm:$0xff] %vm308_vm2, %v2403_v58  ;;  %2516 = vrot.lane.b32.xlu0 %v2403_v58, %s10048_s0 }
0x1f68   :  { %v2280_v59 = vpop.permute.xlu1 %2279 }
0x1f69   :  { %2282 = vst.msk [vmem:[#allocation2 + $0x8] sm:$0xff] %vm272_vm3, %v2280_v59  ;;  %8621 = vmatmul.mubr.msk.f32.vlgmr.msra.gmra.mrb[30].mxu0 %vm272_vm3, %v2280_v59 }
0x1f6a   :  { %9234 = vmatpush3.bf16.msra.mxu0 %v10657_v46  ;;  %8631 = vmatprep.mubr.msk.f32.mxu0 %vm10051_vm1, %v10046_v3 }
0x1f6b   :  { %9235 = vmatprep.subr.bf16.mxu0 %v10050_v34 }
0x1f6e   :  { %9237 = vmatpush3.bf16.msra.mxu0 %v10667_v54 }
0x1f6f   :  { %9238 = vmatprep.subr.bf16.mxu0 %v10050_v34 }
0x1fa9   :  { %v2517_v21 = vpop.permute.xlu0 %2516 }
0x1faa   :  { %8632 = vmatmul.mubr.msk.f32.vlgmr.msra.gmra.mrb[32].mxu0 %vm272_vm3, %v2517_v21 }
0x1fab   :  { %9240 = vmatpush3.bf16.msra.mxu0 %v10639_v33  ;;  %8642 = vmatprep.mubr.msk.f32.mxu0 %vm10051_vm1, %v10046_v3 }
0x1fac   :  { %9241 = vmatprep.subr.bf16.mxu0 %v10050_v34 }
0x1faf   :  { %9243 = vmatpush3.bf16.msra.mxu0 %v10645_v53 }
0x1fb0   :  { %9250 = vmatprep.subr.bf16.mxu0 %v10050_v34 }
0x203c   :  { %v2474_v60 = vpop.f32.mrb[30].mxu0 }
0x203d   :  { %v8622_v23 = vpop.f32.mrb[31].mxu0  ;;  %v2485_v7 = vadd.f32 %v2474_v60, %v10623_v1  ;;  %v2478_v8 = vadd.f32 %v2474_v60, %v10602_v50 }
0x203f   :  { %v7940_v6 = vmul.f32 -1.442695, %v2478_v8 }
0x2041   :  { %9692 = vpow2.f32 %v7940_v6 }
0x204b   :  { %v9693_v51 = vpop.eup %9692 }
0x204c   :  { %v2482_v10 = vadd.f32 1.0, %v9693_v51 }
0x204e   :  { %9694 = vrcp.f32 %v2482_v10 }
0x2058   :  { %v9695_v15 = vpop.eup %9694 }
0x207d   :  { %v2586_v47 = vpop.f32.mrb[32].mxu0 }
0x207e   :  { %v2608_v63 = vadd.f32 %v2586_v47, %v10693_v4  ;;  %2591 = vrot.lane.b32.xlu1 %v2586_v47, %s10048_s0  ;;  %v8633_v2 = vpop.f32.mrb[33].mxu0 }
0x2080   :  { %2610 = vrot.lane.b32.xlu0 %v2608_v63, %s10049_s14 }
0x2084   :  { %2487 = vrot.lane.b32.xlu0 %v2485_v7, %s10047_s13 }
0x20f0   :  { %v2592_v11 = vpop.permute.xlu1 %2591 }
0x20f1   :  { %v2594_v12 = vadd.f32 %v2592_v11, %v10611_v5  ;;  %v2595_v0 = vadd.f32 %v2592_v11, %v2514_v28 }
0x20f2   :  { %v2611_v13 = vpop.permute.xlu0 %2610 }
0x20f3   :  { %v7942_v55 = vmul.f32 -1.442695, %v2594_v12  ;;  %v7943_v31 = vmul.f32 -1.442695, %v2595_v0 }
0x20f5   :  { %9696 = vpow2.f32 %v7942_v55 }
0x20f6   :  { %v2488_v16 = vpop.permute.xlu0 %2487 }
0x20f7   :  { %v2490_v17 = vmul.f32 %v9695_v15, %v2488_v16 }
0x20f9   :  { %2492 = vrot.lane.b32.xlu0 %v2490_v17, %s10047_s13 }
0x20ff   :  { %v9697_v19 = vpop.eup %9696 }
0x2100   :  { %v2602_v20 = vadd.f32 1.0, %v9697_v19 }
0x2102   :  { %9698 = vrcp.f32 %v2602_v20 }
0x210c   :  { %v9699_v22 = vpop.eup %9698 }
0x210d   :  { %v2613_v24 = vmul.f32 %v9699_v22, %v2611_v13 }
0x210f   :  { %2615 = vrot.lane.b32.xlu1 %v2613_v24, %s10047_s13 }
0x216b   :  { %v2493_v25 = vpop.permute.xlu0 %2492 }
0x216c   :  { %v2495_v26 = vadd.f32 %v2493_v25, %v10602_v50 }
0x216e   :  { %9700 = vtanh.f32 %v2495_v26 }
0x2178   :  { %v9701_v61 = vpop.eup %9700 }
0x2179   :  { %v2497_v27 = vsub.f32 %v2277_v52, %v9701_v61 }
0x217b   :  { %2499 = vrot.lane.b32.xlu0 %v2497_v27, %s10048_s0 }
0x2181   :  { %v2616_v18 = vpop.permute.xlu1 %2615 }
0x2182   :  { %v2618_v29 = vadd.f32 %v2616_v18, %v2514_v28 }
0x2184   :  { %9702 = vtanh.f32 %v2618_v29 }
0x2185   :  { %9704 = vpow2.f32 %v7943_v31 }
0x218e   :  { %v9703_v40 = vpop.eup %9702 }
0x218f   :  { %v2620_v30 = vsub.f32 %v2403_v58, %v9703_v40  ;;  %v9705_v49 = vpop.eup %9704 }
0x2190   :  { %v2603_v35 = vadd.f32 1.0, %v9705_v49 }
0x2191   :  { %2622 = vrot.lane.b32.xlu1 %v2620_v30, %s10048_s0 }
0x2192   :  { %9706 = vrcp.f32 %v2603_v35 }
0x219c   :  { %v9707_v37 = vpop.eup %9706 }
0x21ed   :  { %v2500_v42 = vpop.permute.xlu0 %2499 }
0x21ee   :  { %v2502_v32 = vmul.f32 %v9695_v15, %v2500_v42 }
0x21f0   :  { %2504 = vrot.lane.b32.xlu0 %v2502_v32, %s10049_s14 }
0x2203   :  { %v2623_v39 = vpop.permute.xlu1 %2622 }
0x2204   :  { %v2625_v41 = vmul.f32 %v9707_v37, %v2623_v39 }
0x2206   :  { %2627 = vrot.lane.b32.xlu1 %v2625_v41, %s10049_s14 }
0x2262   :  { %v2505_v48 = vpop.permute.xlu0 %2504 }
0x2263   :  { %v2507_v52 = vadd.f32 %v9701_v61, %v2505_v48  ;;  %v2741_v61 = vld [vmem:[#allocation3 + $0x48] sm:$0xff] }
0x2278   :  { %v2628_v43 = vpop.permute.xlu1 %2627 }
0x2279   :  { %v10739_v45 = vadd.f32 %v9703_v40, %v2628_v43 }
0x227b   :  { %2631 = vst.msk [vmem:[#allocation2 + $0x28] sm:$0xff] %vm308_vm2, %v10739_v45  ;;  %2743 = vrot.lane.b32.xlu1 %v10739_v45, %s10048_s0 }
0x227f   :  { %2509 = vrot.lane.b32.xlu1 %v2507_v52, %s10047_s13 }
0x22ed   :  { %v2744_v56 = vpop.permute.xlu1 %2743 }
0x22ee   :  { %8654 = vmatmul.mubr.msk.f32.vlgmr.msra.gmra.mrb[34].mxu1 %vm272_vm3, %v2744_v56 }
0x22ef   :  { %9258 = vmatpush3.bf16.msra.mxu1 %v10657_v46  ;;  %8675 = vmatprep.mubr.msk.f32.mxu1 %vm10051_vm1, %v10046_v3 }
0x22f0   :  { %9259 = vmatprep.subr.bf16.mxu1 %v10050_v34 }
0x22f1   :  { %v2510_v58 = vpop.permute.xlu1 %2509 }
0x22f2   :  { %2512 = vst.msk [vmem:[#allocation2 + $0x10] sm:$0xff] %vm272_vm3, %v2510_v58  ;;  %8643 = vmatmul.mubr.msk.f32.vlgmr.msra.gmra.mrb[34].mxu0 %vm272_vm3, %v2510_v58 }
0x22f3   :  { %9252 = vmatpush3.bf16.msra.mxu0 %v10639_v33  ;;  %9261 = vmatpush3.bf16.msra.mxu1 %v10667_v54 }
0x22f4   :  { %9253 = vmatprep.subr.bf16.mxu0 %v10050_v34  ;;  %8664 = vmatprep.mubr.msk.f32.mxu0 %vm10051_vm1, %v10046_v3 }
0x22f5   :  { %9268 = vmatprep.subr.bf16.mxu1 %v10050_v34 }
0x22f7   :  { %9255 = vmatpush3.bf16.msra.mxu0 %v10645_v53 }
0x22f8   :  { %9262 = vmatprep.subr.bf16.mxu0 %v10050_v34 }
0x23c1   :  { %v2813_v59 = vpop.f32.mrb[34].mxu1 }
0x23c2   :  { %v2835_v21 = vadd.f32 %v2813_v59, %v10693_v4  ;;  %v8655_v60 = vpop.f32.mrb[35].mxu1  ;;  %2818 = vrot.lane.b32.xlu0 %v2813_v59, %s10048_s0 }
0x23c4   :  { %2837 = vrot.lane.b32.xlu1 %v2835_v21, %s10049_s14 }
0x23c5   :  { %v2701_v23 = vpop.f32.mrb[34].mxu0 }
0x23c6   :  { %v2712_v47 = vadd.f32 %v2701_v23, %v10623_v1  ;;  %v8644_v63 = vpop.f32.mrb[35].mxu0  ;;  %v2705_v2 = vadd.f32 %v2701_v23, %v10605_v57 }
0x23c8   :  { %2714 = vrot.lane.b32.xlu1 %v2712_v47, %s10047_s13  ;;  %v7945_v7 = vmul.f32 -1.442695, %v2705_v2 }
0x23ca   :  { %9708 = vpow2.f32 %v7945_v7 }
0x23d4   :  { %v9709_v8 = vpop.eup %9708 }
0x23d5   :  { %v2709_v6 = vadd.f32 1.0, %v9709_v8 }
0x23d7   :  { %9710 = vrcp.f32 %v2709_v6 }
0x23e1   :  { %v9711_v13 = vpop.eup %9710 }
0x2434   :  { %v2819_v51 = vpop.permute.xlu0 %2818 }
0x2435   :  { %v2821_v10 = vadd.f32 %v2819_v51, %v10608_v62  ;;  %v2822_v40 = vadd.f32 %v2819_v51, %v2741_v61 }
0x2436   :  { %v2838_v11 = vpop.permute.xlu1 %2837 }
0x2437   :  { %v7947_v12 = vmul.f32 -1.442695, %v2821_v10  ;;  %v7948_v30 = vmul.f32 -1.442695, %v2822_v40 }
0x2439   :  { %9712 = vpow2.f32 %v7947_v12 }
0x243a   :  { %v2715_v55 = vpop.permute.xlu1 %2714 }
0x243b   :  { %v2717_v15 = vmul.f32 %v9711_v13, %v2715_v55 }
0x243d   :  { %2719 = vrot.lane.b32.xlu1 %v2717_v15, %s10047_s13 }
0x2443   :  { %v9713_v16 = vpop.eup %9712 }
0x2444   :  { %v2829_v17 = vadd.f32 1.0, %v9713_v16 }
0x2446   :  { %9714 = vrcp.f32 %v2829_v17 }
0x2450   :  { %v9715_v19 = vpop.eup %9714 }
0x2451   :  { %v2840_v20 = vmul.f32 %v9715_v19, %v2838_v11 }
0x2453   :  { %2842 = vrot.lane.b32.xlu0 %v2840_v20, %s10047_s13 }
0x24af   :  { %v2720_v22 = vpop.permute.xlu1 %2719 }
0x24b0   :  { %v2722_v24 = vadd.f32 %v2720_v22, %v10605_v57 }
0x24b2   :  { %9716 = vtanh.f32 %v2722_v24  ;;  %v2968_v24 = vld [vmem:[#allocation3 + $0x38] sm:$0xff] }
0x24bc   :  { %v9717_v25 = vpop.eup %9716 }
0x24bd   :  { %v2724_v26 = vsub.f32 %v2507_v52, %v9717_v25 }
0x24bf   :  { %2726 = vrot.lane.b32.xlu1 %v2724_v26, %s10048_s0 }
0x24c5   :  { %v2843_v27 = vpop.permute.xlu0 %2842 }
0x24c6   :  { %v2845_v28 = vadd.f32 %v2843_v27, %v2741_v61 }
0x24c8   :  { %9718 = vtanh.f32 %v2845_v28 }
0x24c9   :  { %9720 = vpow2.f32 %v7948_v30 }
0x24d2   :  { %v9719_v18 = vpop.eup %9718 }
0x24d3   :  { %v2847_v29 = vsub.f32 %v10739_v45, %v9719_v18  ;;  %v9721_v42 = vpop.eup %9720 }
0x24d4   :  { %v2830_v32 = vadd.f32 1.0, %v9721_v42 }
0x24d5   :  { %2849 = vrot.lane.b32.xlu0 %v2847_v29, %s10048_s0 }
0x24d6   :  { %9722 = vrcp.f32 %v2830_v32 }
0x24e0   :  { %v9723_v49 = vpop.eup %9722 }
0x2531   :  { %v2727_v0 = vpop.permute.xlu1 %2726 }
0x2532   :  { %v2729_v31 = vmul.f32 %v9711_v13, %v2727_v0 }
0x2534   :  { %2731 = vrot.lane.b32.xlu1 %v2729_v31, %s10049_s14 }
0x2547   :  { %v2850_v35 = vpop.permute.xlu0 %2849 }
0x2548   :  { %v2852_v37 = vmul.f32 %v9723_v49, %v2850_v35 }
0x254a   :  { %2854 = vrot.lane.b32.xlu0 %v2852_v37, %s10049_s14 }
0x25a6   :  { %v2732_v43 = vpop.permute.xlu1 %2731 }
0x25a7   :  { %v2734_v45 = vadd.f32 %v9717_v25, %v2732_v43 }
0x25bc   :  { %v2855_v39 = vpop.permute.xlu0 %2854 }
0x25bd   :  { %v10776_v41 = vadd.f32 %v9719_v18, %v2855_v39 }
0x25bf   :  { %2858 = vst.msk [vmem:[#allocation2 + $0x20] sm:$0xff] %vm308_vm2, %v10776_v41  ;;  %2970 = vrot.lane.b32.xlu0 %v10776_v41, %s10048_s0 }
0x25c3   :  { %2736 = vrot.lane.b32.xlu0 %v2734_v45, %s10047_s13 }
0x2631   :  { %v2971_v48 = vpop.permute.xlu0 %2970 }
0x2632   :  { %8676 = vmatmul.mubr.msk.f32.vlgmr.msra.gmra.mrb[36].mxu1 %vm272_vm3, %v2971_v48 }
0x2633   :  { %9270 = vmatpush3.bf16.msra.mxu1 %v10657_v46  ;;  %8697 = vmatprep.mubr.msk.f32.mxu1 %vm10051_vm1, %v10046_v3 }
0x2634   :  { %9271 = vmatprep.subr.bf16.mxu1 %v10050_v34 }
0x2635   :  { %v2737_v52 = vpop.permute.xlu0 %2736 }
0x2636   :  { %2739 = vst.msk [vmem:[#allocation2 + $0x18] sm:$0xff] %vm272_vm3, %v2737_v52  ;;  %8665 = vmatmul.mubr.msk.f32.vlgmr.msra.gmra.mrb[36].mxu0 %vm272_vm3, %v2737_v52 }
0x2637   :  { %9264 = vmatpush3.bf16.msra.mxu0 %v10639_v33  ;;  %8686 = vmatprep.mubr.msk.f32.mxu0 %vm10051_vm1, %v10046_v3 }
0x2638   :  { %9265 = vmatprep.subr.bf16.mxu0 %v10050_v34  ;;  %9273 = vmatpush3.bf16.msra.mxu1 %v10667_v54 }
0x2639   :  { %9280 = vmatprep.subr.bf16.mxu1 %v10050_v34 }
0x263b   :  { %9267 = vmatpush3.bf16.msra.mxu0 %v10645_v53 }
0x263c   :  { %9274 = vmatprep.subr.bf16.mxu0 %v10050_v34 }
0x2705   :  { %v3040_v56 = vpop.f32.mrb[36].mxu1 }
0x2706   :  { %v3062_v58 = vadd.f32 %v3040_v56, %v10693_v4  ;;  %v8677_v59 = vpop.f32.mrb[37].mxu1  ;;  %3045 = vrot.lane.b32.xlu1 %v3040_v56, %s10048_s0 }
0x2708   :  { %3064 = vrot.lane.b32.xlu0 %v3062_v58, %s10049_s14 }
0x2709   :  { %v2928_v21 = vpop.f32.mrb[36].mxu0 }
0x270a   :  { %v2939_v60 = vadd.f32 %v2928_v21, %v10623_v1  ;;  %v8666_v23 = vpop.f32.mrb[37].mxu0  ;;  %v2932_v47 = vadd.f32 %v2928_v21, %v10608_v62 }
0x270c   :  { %2941 = vrot.lane.b32.xlu1 %v2939_v60, %s10047_s13  ;;  %v7950_v63 = vmul.f32 -1.442695, %v2932_v47 }
0x270e   :  { %9724 = vpow2.f32 %v7950_v63 }
0x2718   :  { %v9725_v2 = vpop.eup %9724 }
0x2719   :  { %v2936_v7 = vadd.f32 1.0, %v9725_v2 }
0x271b   :  { %9726 = vrcp.f32 %v2936_v7 }
0x2725   :  { %v9727_v10 = vpop.eup %9726 }
0x2778   :  { %v3046_v8 = vpop.permute.xlu1 %3045 }
0x2779   :  { %v3048_v6 = vadd.f32 %v3046_v8, %v10605_v57  ;;  %v3049_v28 = vadd.f32 %v3046_v8, %v2968_v24 }
0x277a   :  { %v3065_v16 = vpop.permute.xlu0 %3064 }
0x277b   :  { %v7952_v51 = vmul.f32 -1.442695, %v3048_v6  ;;  %v7953_v18 = vmul.f32 -1.442695, %v3049_v28 }
0x277d   :  { %9728 = vpow2.f32 %v7952_v51 }
0x277e   :  { %v2942_v11 = vpop.permute.xlu1 %2941 }
0x277f   :  { %v2944_v12 = vmul.f32 %v9727_v10, %v2942_v11 }
0x2781   :  { %2946 = vrot.lane.b32.xlu1 %v2944_v12, %s10047_s13 }
0x2787   :  { %v9729_v13 = vpop.eup %9728 }
0x2788   :  { %v3056_v55 = vadd.f32 1.0, %v9729_v13 }
0x278a   :  { %9730 = vrcp.f32 %v3056_v55 }
0x2794   :  { %v9731_v15 = vpop.eup %9730 }
0x2795   :  { %v3067_v17 = vmul.f32 %v9731_v15, %v3065_v16 }
0x2797   :  { %3069 = vrot.lane.b32.xlu0 %v3067_v17, %s10047_s13  ;;  %v3195_v17 = vld [vmem:[#allocation3 + $0x28] sm:$0xff] }
0x27f3   :  { %v2947_v19 = vpop.permute.xlu1 %2946 }
0x27f4   :  { %v2949_v20 = vadd.f32 %v2947_v19, %v10608_v62 }
0x27f6   :  { %9732 = vtanh.f32 %v2949_v20 }
0x2800   :  { %v9733_v57 = vpop.eup %9732 }
0x2801   :  { %v2951_v22 = vsub.f32 %v2734_v45, %v9733_v57 }
0x2803   :  { %2953 = vrot.lane.b32.xlu1 %v2951_v22, %s10048_s0 }
0x2809   :  { %v3070_v25 = vpop.permute.xlu0 %3069 }
0x280a   :  { %v3072_v26 = vadd.f32 %v3070_v25, %v2968_v24 }
0x280c   :  { %9734 = vtanh.f32 %v3072_v26 }
0x280d   :  { %9736 = vpow2.f32 %v7953_v18 }
0x2816   :  { %v9735_v61 = vpop.eup %9734 }
0x2817   :  { %v3074_v27 = vsub.f32 %v10776_v41, %v9735_v61  ;;  %v9737_v62 = vpop.eup %9736 }
0x2818   :  { %v3057_v30 = vadd.f32 1.0, %v9737_v62 }
0x2819   :  { %3076 = vrot.lane.b32.xlu0 %v3074_v27, %s10048_s0 }
0x281a   :  { %9738 = vrcp.f32 %v3057_v30 }
0x2824   :  { %v9739_v0 = vpop.eup %9738 }
0x2875   :  { %v2954_v29 = vpop.permute.xlu1 %2953 }
0x2876   :  { %v2956_v40 = vmul.f32 %v9727_v10, %v2954_v29 }
0x2878   :  { %2958 = vrot.lane.b32.xlu1 %v2956_v40, %s10049_s14 }
0x288b   :  { %v3077_v31 = vpop.permute.xlu0 %3076 }
0x288c   :  { %v3079_v42 = vmul.f32 %v9739_v0, %v3077_v31 }
0x288e   :  { %3081 = vrot.lane.b32.xlu0 %v3079_v42, %s10049_s14 }
0x28ea   :  { %v2959_v32 = vpop.permute.xlu1 %2958 }
0x28eb   :  { %v2961_v49 = vadd.f32 %v9733_v57, %v2959_v32 }
0x28ed   :  { %2963 = vrot.lane.b32.xlu1 %v2961_v49, %s10047_s13 }
0x2900   :  { %v3082_v35 = vpop.permute.xlu0 %3081 }
0x2901   :  { %v3084_v37 = vadd.f32 %v9735_v61, %v3082_v35 }
0x2903   :  { %3085 = vst.msk [vmem:[#allocation2 + $0x18] sm:$0xff] %vm308_vm2, %v3084_v37  ;;  %3197 = vrot.lane.b32.xlu0 %v3084_v37, %s10048_s0 }
0x295f   :  { %v2964_v39 = vpop.permute.xlu1 %2963 }
0x2960   :  { %2966 = vst.msk [vmem:[#allocation2 + $0x20] sm:$0xff] %vm272_vm3, %v2964_v39  ;;  %8687 = vmatmul.mubr.msk.f32.vlgmr.msra.gmra.mrb[38].mxu0 %vm272_vm3, %v2964_v39 }
0x2961   :  { %9276 = vmatpush3.bf16.msra.mxu0 %v10639_v33  ;;  %8708 = vmatprep.mubr.msk.f32.mxu0 %vm10051_vm1, %v10046_v3 }
0x2962   :  { %9277 = vmatprep.subr.bf16.mxu0 %v10050_v34 }
0x2965   :  { %9279 = vmatpush3.bf16.msra.mxu0 %v10645_v53 }
0x2966   :  { %9286 = vmatprep.subr.bf16.mxu0 %v10050_v34 }
0x2975   :  { %v3198_v41 = vpop.permute.xlu0 %3197 }
0x2976   :  { %8698 = vmatmul.mubr.msk.f32.vlgmr.msra.gmra.mrb[38].mxu1 %vm272_vm3, %v3198_v41 }
0x2977   :  { %9282 = vmatpush3.bf16.msra.mxu1 %v10657_v46  ;;  %8719 = vmatprep.mubr.msk.f32.mxu1 %vm10051_vm1, %v10046_v3 }
0x2978   :  { %9283 = vmatprep.subr.bf16.mxu1 %v10050_v34 }
0x297b   :  { %9285 = vmatpush3.bf16.msra.mxu1 %v10667_v54 }
0x297c   :  { %9292 = vmatprep.subr.bf16.mxu1 %v10050_v34 }
0x2a33   :  { %v3155_v43 = vpop.f32.mrb[38].mxu0 }
0x2a34   :  { %v8688_v45 = vpop.f32.mrb[39].mxu0  ;;  %v3166_v58 = vadd.f32 %v3155_v43, %v10623_v1  ;;  %v3159_v59 = vadd.f32 %v3155_v43, %v10611_v5 }
0x2a36   :  { %v7955_v21 = vmul.f32 -1.442695, %v3159_v59 }
0x2a38   :  { %9740 = vpow2.f32 %v7955_v21 }
0x2a42   :  { %v9741_v60 = vpop.eup %9740 }
0x2a43   :  { %v3163_v23 = vadd.f32 1.0, %v9741_v60 }
0x2a45   :  { %9742 = vrcp.f32 %v3163_v23 }
0x2a49   :  { %v3267_v48 = vpop.f32.mrb[38].mxu1 }
0x2a4a   :  { %v3289_v52 = vadd.f32 %v3267_v48, %v10693_v4  ;;  %3272 = vrot.lane.b32.xlu0 %v3267_v48, %s10048_s0  ;;  %v8699_v56 = vpop.f32.mrb[39].mxu1 }
0x2a4c   :  { %3291 = vrot.lane.b32.xlu1 %v3289_v52, %s10049_s14 }
0x2a4e   :  { %3168 = vrot.lane.b32.xlu0 %v3166_v58, %s10047_s13 }
0x2a4f   :  { %v9743_v7 = vpop.eup %9742 }
0x2abc   :  { %v3273_v47 = vpop.permute.xlu0 %3272 }
0x2abd   :  { %v3275_v63 = vadd.f32 %v3273_v47, %v10602_v50  ;;  %v3276_v24 = vadd.f32 %v3273_v47, %v3195_v17 }
0x2abe   :  { %v3292_v12 = vpop.permute.xlu1 %3291 }
0x2abf   :  { %v7957_v2 = vmul.f32 -1.442695, %v3275_v63  ;;  %v7958_v25 = vmul.f32 -1.442695, %v3276_v24 }
0x2ac0   :  { %v3169_v8 = vpop.permute.xlu0 %3168 }
0x2ac1   :  { %9744 = vpow2.f32 %v7957_v2  ;;  %v3171_v6 = vmul.f32 %v9743_v7, %v3169_v8 }
0x2ac3   :  { %3173 = vrot.lane.b32.xlu0 %v3171_v6, %s10047_s13  ;;  %v3422_v6 = vld [vmem:[#allocation3 + $0x18] sm:$0xff] }
0x2acb   :  { %v9745_v51 = vpop.eup %9744 }
0x2acc   :  { %v3283_v10 = vadd.f32 1.0, %v9745_v51 }
0x2ace   :  { %9746 = vrcp.f32 %v3283_v10 }
0x2ad8   :  { %v9747_v11 = vpop.eup %9746 }
0x2ad9   :  { %v3294_v13 = vmul.f32 %v9747_v11, %v3292_v12 }
0x2adb   :  { %3296 = vrot.lane.b32.xlu1 %v3294_v13, %s10047_s13 }
0x2b35   :  { %v3174_v55 = vpop.permute.xlu0 %3173 }
0x2b36   :  { %v3176_v15 = vadd.f32 %v3174_v55, %v10611_v5 }
0x2b38   :  { %9748 = vtanh.f32 %v3176_v15 }
0x2b42   :  { %v9749_v50 = vpop.eup %9748 }
0x2b43   :  { %v3178_v16 = vsub.f32 %v2961_v49, %v9749_v50 }
0x2b45   :  { %3180 = vrot.lane.b32.xlu0 %v3178_v16, %s10048_s0 }
0x2b4d   :  { %v3297_v19 = vpop.permute.xlu1 %3296 }
0x2b4e   :  { %v3299_v20 = vadd.f32 %v3297_v19, %v3195_v17 }
0x2b50   :  { %9750 = vtanh.f32 %v3299_v20 }
0x2b51   :  { %9752 = vpow2.f32 %v7958_v25 }
0x2b5a   :  { %v9751_v57 = vpop.eup %9750 }
0x2b5b   :  { %v3301_v22 = vsub.f32 %v3084_v37, %v9751_v57  ;;  %v9753_v5 = vpop.eup %9752 }
0x2b5c   :  { %v3284_v27 = vadd.f32 1.0, %v9753_v5 }
0x2b5d   :  { %3303 = vrot.lane.b32.xlu1 %v3301_v22, %s10048_s0 }
0x2b5e   :  { %9754 = vrcp.f32 %v3284_v27 }
0x2b68   :  { %v9755_v28 = vpop.eup %9754 }
0x2bb7   :  { %v3181_v26 = vpop.permute.xlu0 %3180 }
0x2bb8   :  { %v3183_v61 = vmul.f32 %v9743_v7, %v3181_v26 }
0x2bba   :  { %3185 = vrot.lane.b32.xlu0 %v3183_v61, %s10049_s14 }
0x2bcf   :  { %v3304_v18 = vpop.permute.xlu1 %3303 }
0x2bd0   :  { %v3306_v29 = vmul.f32 %v9755_v28, %v3304_v18 }
0x2bd2   :  { %3308 = vrot.lane.b32.xlu1 %v3306_v29, %s10049_s14 }
0x2c2c   :  { %v3186_v40 = vpop.permute.xlu0 %3185 }
0x2c2d   :  { %v3188_v62 = vadd.f32 %v9749_v50, %v3186_v40 }
0x2c2f   :  { %3190 = vrot.lane.b32.xlu0 %v3188_v62, %s10047_s13 }
0x2c44   :  { %v3309_v30 = vpop.permute.xlu1 %3308 }
0x2c45   :  { %v3311_v0 = vadd.f32 %v9751_v57, %v3309_v30 }
0x2c47   :  { %3312 = vst.msk [vmem:[#allocation2 + $0x10] sm:$0xff] %vm308_vm2, %v3311_v0  ;;  %3424 = vrot.lane.b32.xlu1 %v3311_v0, %s10048_s0 }
0x2ca1   :  { %v3191_v31 = vpop.permute.xlu0 %3190 }
0x2ca2   :  { %3193 = vst.msk [vmem:[#allocation2 + $0x28] sm:$0xff] %vm272_vm3, %v3191_v31  ;;  %8709 = vmatmul.mubr.msk.f32.vlgmr.msra.gmra.mrb[40].mxu0 %vm272_vm3, %v3191_v31 }
0x2ca3   :  { %9288 = vmatpush3.bf16.msra.mxu0 %v10639_v33  ;;  %8730 = vmatprep.mubr.msk.f32.mxu0 %vm10051_vm1, %v10046_v3 }
0x2ca4   :  { %9289 = vmatprep.subr.bf16.mxu0 %v10050_v34 }
0x2ca7   :  { %9291 = vmatpush3.bf16.msra.mxu0 %v10645_v53 }
0x2cb9   :  { %v3425_v42 = vpop.permute.xlu1 %3424 }
0x2cba   :  { %8720 = vmatmul.mubr.msk.f32.vlgmr.msra.gmra.mrb[40].mxu1 %vm272_vm3, %v3425_v42 }
0x2cbb   :  { %9294 = vmatpush3.bf16.msra.mxu1 %v10657_v46  ;;  %8741 = vmatprep.mubr.msk.f32.mxu1 %vm10051_vm1, %v10046_v3 }
0x2cbc   :  { %9295 = vmatprep.subr.bf16.mxu1 %v10050_v34 }
0x2cbf   :  { %9297 = vmatpush3.bf16.msra.mxu1 %v10667_v54 }
0x2cc0   :  { %9314 = vmatprep.subr.bf16.mxu1 %v10050_v34 }
0x2d75   :  { %v3382_v33 = vpop.f32.mrb[40].mxu0 }
0x2d76   :  { %v3393_v32 = vadd.f32 %v3382_v33, %v10623_v1  ;;  %v8710_v49 = vpop.f32.mrb[41].mxu0  ;;  %v3386_v37 = vadd.f32 %v3382_v33, %v10614_v9  ;;  %v3648_v33 = vld [vmem:[#allocation3] sm:$0xff] }
0x2d78   :  { %3395 = vrot.lane.b32.xlu0 %v3393_v32, %s10047_s13  ;;  %v7960_v39 = vmul.f32 -1.442695, %v3386_v37 }
0x2d7a   :  { %9756 = vpow2.f32 %v7960_v39 }
0x2d84   :  { %v9757_v54 = vpop.eup %9756 }
0x2d85   :  { %v3390_v41 = vadd.f32 1.0, %v9757_v54 }
0x2d87   :  { %9758 = vrcp.f32 %v3390_v41 }
0x2d8d   :  { %v3494_v53 = vpop.f32.mrb[40].mxu1 }
0x2d8e   :  { %3499 = vrot.lane.b32.xlu1 %v3494_v53, %s10048_s0  ;;  %v8721_v35 = vpop.f32.mrb[41].mxu1  ;;  %v3516_v46 = vadd.f32 %v3494_v53, %v10693_v4 }
0x2d91   :  { %v9759_v43 = vpop.eup %9758 }
0x2d92   :  { %3518 = vrot.lane.b32.xlu1 %v3516_v46, %s10049_s14 }
0x2dea   :  { %v3396_v45 = vpop.permute.xlu0 %3395 }
0x2deb   :  { %v3398_v48 = vmul.f32 %v9759_v43, %v3396_v45 }
0x2ded   :  { %3400 = vrot.lane.b32.xlu0 %v3398_v48, %s10047_s13  ;;  %v3649_v48 = vld [vmem:[#allocation3 + $0x8] sm:$0xff] }
0x2e00   :  { %v3500_v52 = vpop.permute.xlu1 %3499 }
0x2e01   :  { %v3502_v56 = vadd.f32 %v3500_v52, %v10599_v44  ;;  %v3503_v55 = vadd.f32 %v3500_v52, %v3422_v6 }
0x2e03   :  { %v7962_v58 = vmul.f32 -1.442695, %v3502_v56  ;;  %v7963_v15 = vmul.f32 -1.442695, %v3503_v55 }
0x2e04   :  { %v3519_v23 = vpop.permute.xlu1 %3518 }
0x2e05   :  { %9760 = vpow2.f32 %v7962_v58 }
0x2e0f   :  { %v9761_v59 = vpop.eup %9760 }
0x2e10   :  { %v3510_v21 = vadd.f32 1.0, %v9761_v59 }
0x2e12   :  { %9762 = vrcp.f32 %v3510_v21  ;;  %v7970_v21 = vld [vmem:[%s11758_s1 + $0x108] sm:$0xff] }
0x2e1c   :  { %v9763_v60 = vpop.eup %9762 }
0x2e1d   :  { %v3521_v47 = vmul.f32 %v9763_v60, %v3519_v23  ;;  %v7969_v60 = vld [vmem:[%s11758_s1 + $0x100] sm:$0xff] }
0x2e1f   :  { %3523 = vrot.lane.b32.xlu1 %v3521_v47, %s10047_s13  ;;  %v7971_v47 = vld [vmem:[%s11758_s1 + $0x110] sm:$0xff] }
0x2e5f   :  { %v3401_v63 = vpop.permute.xlu0 %3400 }
0x2e60   :  { %v3403_v2 = vadd.f32 %v3401_v63, %v10614_v9  ;;  %v7974_v63 = vld [vmem:[%s11758_s1 + $0x128] sm:$0xff] }
0x2e62   :  { %9764 = vtanh.f32 %v3403_v2  ;;  %v7976_v2 = vld [vmem:[%s11758_s1 + $0x138] sm:$0xff] }
0x2e6c   :  { %v9765_v7 = vpop.eup %9764 }
0x2e6d   :  { %v3405_v8 = vsub.f32 %v3188_v62, %v9765_v7 }
0x2e6f   :  { %3407 = vrot.lane.b32.xlu0 %v3405_v8, %s10048_s0  ;;  %v9302_v8 = vpack.c.bf16 %v7976_v2, %v7974_v63 }
0x2e91   :  { %v3524_v44 = vpop.permute.xlu1 %3523 }
0x2e92   :  { %v3526_v51 = vadd.f32 %v3524_v44, %v3422_v6  ;;  %v7973_v6 = vld [vmem:[%s11758_s1 + $0x120] sm:$0xff]  ;;  %v7975_v44 = vld [vmem:[%s11758_s1 + $0x130] sm:$0xff] }
0x2e94   :  { %9766 = vtanh.f32 %v3526_v51  ;;  %v9304_v51 = vpack.c.bf16 %v7975_v44, %v7973_v6 }
0x2e95   :  { %9768 = vpow2.f32 %v7963_v15 }
0x2e9e   :  { %v9767_v10 = vpop.eup %9766 }
0x2e9f   :  { %v3528_v11 = vsub.f32 %v3311_v0, %v9767_v10  ;;  %v9769_v9 = vpop.eup %9768 }
0x2ea0   :  { %v3511_v50 = vadd.f32 1.0, %v9769_v9  ;;  %v7978_v9 = vld [vmem:[%s11758_s1 + $0x148] sm:$0xff] }
0x2ea1   :  { %3530 = vrot.lane.b32.xlu1 %v3528_v11, %s10048_s0 }
0x2ea2   :  { %9770 = vrcp.f32 %v3511_v50  ;;  %v7980_v50 = vld [vmem:[%s11758_s1 + $0x158] sm:$0xff] }
0x2eac   :  { %v9771_v16 = vpop.eup %9770 }
0x2ee1   :  { %v3408_v12 = vpop.permute.xlu0 %3407 }
0x2ee2   :  { %v3410_v13 = vmul.f32 %v9759_v43, %v3408_v12 }
0x2ee4   :  { %3412 = vrot.lane.b32.xlu0 %v3410_v13, %s10049_s14 }
0x2f13   :  { %v3531_v17 = vpop.permute.xlu1 %3530 }
0x2f14   :  { %v3533_v19 = vmul.f32 %v9771_v16, %v3531_v17  ;;  %v9306_v16 = vpack.c.bf16 %v7980_v50, %v7978_v9  ;;  %v7977_v17 = vld [vmem:[%s11758_s1 + $0x140] sm:$0xff] }
0x2f16   :  { %3535 = vrot.lane.b32.xlu1 %v3533_v19, %s10049_s14  ;;  %v7979_v19 = vld [vmem:[%s11758_s1 + $0x150] sm:$0xff] }
0x2f56   :  { %v3413_v20 = vpop.permute.xlu0 %3412 }
0x2f57   :  { %v3415_v57 = vadd.f32 %v9765_v7, %v3413_v20  ;;  %v9300_v7 = vpack.c.bf16 %v7971_v47, %v7969_v60  ;;  %v9308_v20 = vpack.c.bf16 %v7979_v19, %v7977_v17 }
0x2f59   :  { %3417 = vrot.lane.b32.xlu0 %v3415_v57, %s10047_s13 }
0x2f88   :  { %v3536_v22 = vpop.permute.xlu1 %3535 }
0x2f89   :  { %v3538_v24 = vadd.f32 %v9767_v10, %v3536_v22  ;;  %v7984_v22 = vld [vmem:[%s11758_s1 + $0x178] sm:$0xff] }
0x2f8b   :  { %3539 = vst.msk [vmem:[#allocation2 + $0x8] sm:$0xff] %vm308_vm2, %v3538_v24  ;;  %3651 = vrot.lane.b32.xlu1 %v3538_v24, %s10048_s0 }
0x2fcb   :  { %v3418_v25 = vpop.permute.xlu0 %3417 }
0x2fcc   :  { %3420 = vst.msk [vmem:[#allocation2 + $0x30] sm:$0xff] %vm272_vm3, %v3418_v25  ;;  %8731 = vmatmul.mubr.msk.f32.vlgmr.msra.gmra.mrb[42].mxu0 %vm272_vm3, %v3418_v25 }
0x2fcd   :  { %3893 = vmatprep.mubr.f32.mxu0 %v10046_v3 }
0x2ffd   :  { %v3652_v26 = vpop.permute.xlu1 %3651 }
0x2ffe   :  { %8742 = vmatmul.mubr.msk.f32.vlgmr.msra.gmra.mrb[42].mxu1 %vm272_vm3, %v3652_v26  ;;  %v7983_v26 = vld [vmem:[%s11758_s1 + $0x170] sm:$0xff] }
0x2fff   :  { %8752 = vmatprep.mubr.msk.f32.mxu1 %vm10051_vm1, %v10046_v3 }
0x309f   :  { %v3609_v61 = vpop.f32.mrb[42].mxu0 }
0x30a0   :  { %v3620_v5 = vadd.f32 %v3609_v61, %v10623_v1  ;;  %v8732_v27 = vpop.f32.mrb[43].mxu0  ;;  %v3613_v40 = vadd.f32 %v3609_v61, %v10619_v14 }
0x30a2   :  { %3622 = vrot.lane.b32.xlu0 %v3620_v5, %s10047_s13  ;;  %v7965_v62 = vmul.f32 -1.442695, %v3613_v40 }
0x30a4   :  { %9772 = vpow2.f32 %v7965_v62 }
0x30ae   :  { %v9773_v30 = vpop.eup %9772 }
0x30af   :  { %v3617_v0 = vadd.f32 1.0, %v9773_v30 }
0x30b1   :  { %9774 = vrcp.f32 %v3617_v0 }
0x30bb   :  { %v9775_v31 = vpop.eup %9774 }
0x30d1   :  { %v3721_v28 = vpop.f32.mrb[42].mxu1 }
0x30d2   :  { %v3743_v18 = vadd.f32 %v3721_v28, %v10693_v4  ;;  %3726 = vrot.lane.b32.xlu1 %v3721_v28, %s10048_s0  ;;  %v8743_v29 = vpop.f32.mrb[43].mxu1 }
0x30d4   :  { %3745 = vrot.lane.b32.xlu0 %v3743_v18, %s10049_s14  ;;  %v10950_v18 = vld [vmem:[%s11759_s4 + $0x2] ss:$0 sm:$0xff] }
0x3114   :  { %v3623_v1 = vpop.permute.xlu0 %3622 }
0x3115   :  { %v3625_v42 = vmul.f32 %v9775_v31, %v3623_v1  ;;  %v3786_v1 = vld [vmem:[#allocation2 + $0x10] sm:$0xff] }
0x3117   :  { %3627 = vrot.lane.b32.xlu1 %v3625_v42, %s10047_s13  ;;  %v3787_v42 = vld [vmem:[#allocation2 + $0x18] sm:$0xff] }
0x3144   :  { %v3727_v32 = vpop.permute.xlu1 %3726 }
0x3145   :  { %v3729_v4 = vadd.f32 %v3727_v32, %v3648_v33  ;;  %v3730_v12 = vadd.f32 %v3727_v32, %v3649_v48  ;;  %v3788_v33 = vld [vmem:[#allocation2 + $0x20] sm:$0xff]  ;;  %v3789_v32 = vld [vmem:[#allocation2 + $0x28] sm:$0xff] }
0x3146   :  { %v3746_v37 = vpop.permute.xlu0 %3745 }
0x3147   :  { %v7967_v49 = vmul.f32 -1.442695, %v3729_v4  ;;  %v7968_v13 = vmul.f32 -1.442695, %v3730_v12  ;;  %v3790_v4 = vld [vmem:[#allocation2 + $0x30] sm:$0xff] }
0x3149   :  { %9776 = vpow2.f32 %v7967_v49 }
0x3153   :  { %v9777_v53 = vpop.eup %9776 }
0x3154   :  { %v3737_v35 = vadd.f32 1.0, %v9777_v53 }
0x3156   :  { %9778 = vrcp.f32 %v3737_v35  ;;  %v7985_v35 = vld [vmem:[%s11761_s2 + $0x4] sm:$0x3] }
0x3160   :  { %v9779_v46 = vpop.eup %9778 }
0x3161   :  { %v3748_v39 = vmul.f32 %v9779_v46, %v3746_v37  ;;  %v3798_v46 = vrot.slane %v7985_v35, %v10207_v36  ;;  %v3802_v37 = vrot.slane %v7985_v35, %v10212_v38  ;;  %v7995_v35 = vld [vmem:[%s11762_s3 + $0x88] sm:$0xff] }
0x3163   :  { %3750 = vrot.lane.b32.xlu0 %v3748_v39, %s10047_s13 }
0x3189   :  { %v3628_v54 = vpop.permute.xlu1 %3627 }
0x318a   :  { %v3630_v41 = vadd.f32 %v3628_v54, %v10619_v14  ;;  %v7972_v14 = vld [vmem:[%s11758_s1 + $0x118] sm:$0xff] }
0x318b   :  { %v9298_v23 = vpack.c.bf16 %v7972_v14, %v7970_v21 }
0x318c   :  { %9780 = vtanh.f32 %v3630_v41 }
0x318d   :  { %9299 = vmatprep.subr.bf16.mxu0 %v9298_v23 }
0x318e   :  { %9301 = vmatpush1.bf16.msra.mxu0 %v9300_v7 }
0x318f   :  { %9303 = vmatprep.subr.bf16.mxu0 %v9302_v8 }
0x3192   :  { %9305 = vmatpush1.bf16.msra.mxu0 %v9304_v51 }
0x3193   :  { %9307 = vmatprep.subr.bf16.mxu0 %v9306_v16 }
0x3196   :  { %v9781_v43 = vpop.eup %9780  ;;  %9309 = vmatpush1.bf16.msra.mxu0 %v9308_v20 }
0x3197   :  { %v3632_v45 = vsub.f32 %v3415_v57, %v9781_v43  ;;  %v7982_v57 = vld [vmem:[%s11758_s1 + $0x168] sm:$0xff] }
0x3198   :  { %v9310_v25 = vpack.c.bf16 %v7984_v22, %v7982_v57 }
0x3199   :  { %3634 = vrot.lane.b32.xlu1 %v3632_v45, %s10048_s0 }
0x319a   :  { %9311 = vmatprep.subr.bf16.mxu0 %v9310_v25 }
0x31d5   :  { %v3751_v52 = vpop.permute.xlu0 %3750 }
0x31d6   :  { %v3753_v56 = vadd.f32 %v3751_v52, %v3649_v48 }
0x31d8   :  { %9782 = vtanh.f32 %v3753_v56 }
0x31d9   :  { %9784 = vpow2.f32 %v7968_v13 }
0x31e2   :  { %v9783_v58 = vpop.eup %9782 }
0x31e3   :  { %v3755_v59 = vsub.f32 %v3538_v24, %v9783_v58  ;;  %v9785_v55 = vpop.eup %9784  ;;  %v7981_v24 = vld [vmem:[%s11758_s1 + $0x160] sm:$0xff] }
0x31e4   :  { %v3738_v15 = vadd.f32 1.0, %v9785_v55  ;;  %v9312_v61 = vpack.c.bf16 %v7983_v26, %v7981_v24 }
0x31e5   :  { %3757 = vrot.lane.b32.xlu0 %v3755_v59, %s10048_s0 }
0x31e6   :  { %9786 = vrcp.f32 %v3738_v15  ;;  %9313 = vmatpush1.bf16.msra.mxu0 %v9312_v61 }
0x31e7   :  { %9344 = vmatprep.subr.bf16.mxu0 %v10050_v34 }
0x31f0   :  { %v9787_v5 = vpop.eup %9786 }
0x320b   :  { %v3635_v10 = vpop.permute.xlu1 %3634 }
0x320c   :  { %v3637_v11 = vmul.f32 %v9775_v31, %v3635_v10  ;;  %v3785_v31 = vld [vmem:[#allocation2 + $0x8] sm:$0xff] }
0x320e   :  { %3639 = vrot.lane.b32.xlu1 %v3637_v11, %s10049_s14 }
0x3257   :  { %v3758_v27 = vpop.permute.xlu0 %3757 }
0x3258   :  { %v3760_v28 = vmul.f32 %v9787_v5, %v3758_v27 }
0x325a   :  { %3762 = vrot.lane.b32.xlu0 %v3760_v28, %s10049_s14 }
0x325e   :  { %4019 = vrot.lane.b32.xlu0 %v10950_v18, %s10047_s13 }
0x3280   :  { %v3640_v29 = vpop.permute.xlu1 %3639 }
0x3281   :  { %v3642_v40 = vadd.f32 %v9781_v43, %v3640_v29 }
0x3283   :  { %3644 = vrot.lane.b32.xlu1 %v3642_v40, %s10047_s13 }
0x32cc   :  { %v3763_v62 = vpop.permute.xlu0 %3762 }
0x32cd   :  { %v3765_v30 = vadd.f32 %v9783_v58, %v3763_v62 }
0x32cf   :  { %3766 = vst.msk [vmem:[#allocation2] sm:$0xff] %vm308_vm2, %v3765_v30 }
0x32d0   :  { %v11001_v5 = vpop.permute.xlu0 %4019 }
0x32d6   :  { %v3784_v0 = vld [vmem:[#allocation2] sm:$0xff] }
0x32d7   :  { %7986 = vmatmul.mubr.msk.f32.vlgmr.msra.gmra.mrb[44].mxu0 %vm74_vm0, %v3784_v0 }
0x32d8   :  { %3899 = vmatprep.mubr.f32.mxu0 %v10046_v3 }
0x32db   :  { %7987 = vmatmul.mubr.msk.f32.gmra.mrb[46].mxu0 %vm74_vm0, %v3785_v31 }
0x32dc   :  { %3905 = vmatprep.mubr.f32.mxu0 %v10046_v3 }
0x32df   :  { %7988 = vmatmul.mubr.msk.f32.gmra.mrb[48].mxu0 %vm74_vm0, %v3786_v1 }
0x32e0   :  { %3911 = vmatprep.mubr.f32.mxu0 %v10046_v3 }
0x32e3   :  { %7989 = vmatmul.mubr.msk.f32.gmra.mrb[50].mxu0 %vm74_vm0, %v3787_v42 }
0x32e4   :  { %3917 = vmatprep.mubr.f32.mxu0 %v10046_v3 }
0x32e7   :  { %7990 = vmatmul.mubr.msk.f32.gmra.mrb[52].mxu0 %vm74_vm0, %v3788_v33 }
0x32e8   :  { %3923 = vmatprep.mubr.f32.mxu0 %v10046_v3 }
0x32eb   :  { %7991 = vmatmul.mubr.msk.f32.gmra.mrb[54].mxu0 %vm74_vm0, %v3789_v32 }
0x32ec   :  { %3929 = vmatprep.mubr.f32.mxu0 %v10046_v3 }
0x32ef   :  { %7992 = vmatmul.mubr.msk.f32.gmra.mrb[56].mxu0 %vm74_vm0, %v3790_v4 }
0x32f0   :  { %3935 = vmatprep.mubr.f32.mxu0 %v10046_v3 }
0x32f5   :  { %v3645_v49 = vpop.permute.xlu1 %3644 }
0x32f6   :  { %3647 = vst.msk [vmem:[#allocation2 + $0x38] sm:$0xff] %vm272_vm3, %v3645_v49 }
0x32fd   :  { %v3791_v53 = vld [vmem:[#allocation2 + $0x38] sm:$0xff] }
0x32fe   :  { %7993 = vmatmul.mubr.msk.f32.gmra.mrb[58].mxu0 %vm74_vm0, %v3791_v53  ;;  %v7994_v53 = vld [vmem:[%s11762_s3 + $0x80] sm:$0xff] }
0x32ff   :  { %8807 = vmatprep.mubr.msk.f32.mxu0 %vm10051_vm1, %v10046_v3 }
0x33aa   :  { %v3895_v39 = vpop.f32.mrb[44].mxu0 }
0x33ab   :  { %v3896_v54 = vadd.f32 %v3895_v39, %v3798_v46  ;;  %v3897_v41 = vpop.f32.mrb[45].mxu0  ;;  %v7997_v39 = vld [vmem:[%s11762_s3 + $0x98] sm:$0xff] }
0x33ac   :  { %v3898_v43 = vadd.f32 %v3897_v41, %v3802_v37 }
0x33ad   :  { %3942 = vst [vmem:[#allocation3] sm:$0xff] %v3896_v54  ;;  %v8003_v45 = vmul.f32 -1.442695, %v3896_v54 }
0x33ae   :  { %3943 = vst.msk [vmem:[#allocation3 + $0x8] sm:$0xff] %vm74_vm0, %v3898_v43  ;;  %v3901_v48 = vpop.f32.mrb[46].mxu0 }
0x33af   :  { %v10980_v52 = vadd.f32 %v3901_v48, %v3798_v46  ;;  %v3903_v56 = vpop.f32.mrb[47].mxu0  ;;  %9788 = vpow2.f32 %v8003_v45  ;;  %v7998_v48 = vld [vmem:[%s11762_s3 + $0xa0] sm:$0xff] }
0x33b0   :  { %v3904_v58 = vadd.f32 %v3903_v56, %v3802_v37  ;;  %v7999_v56 = vld [vmem:[%s11762_s3 + $0xa8] sm:$0xff] }
0x33b2   :  { %3945 = vst.msk [vmem:[#allocation3 + $0x18] sm:$0xff] %vm74_vm0, %v3904_v58  ;;  %v3907_v59 = vpop.f32.mrb[48].mxu0  ;;  %v11035_v58 = vpack.c.bf16 %v7999_v56, %v7998_v48 }
0x33b3   :  { %v10983_v21 = vadd.f32 %v3907_v59, %v3798_v46  ;;  %v3909_v14 = vpop.f32.mrb[49].mxu0  ;;  %v8000_v59 = vld [vmem:[%s11762_s3 + $0xb0] sm:$0xff] }
0x33b4   :  { %v3910_v60 = vadd.f32 %v3909_v14, %v3802_v37  ;;  %v8001_v14 = vld [vmem:[%s11762_s3 + $0xb8] sm:$0xff]  ;;  %9346 = vmatpush3.bf16.msra.mxu0 %v11035_v58 }
0x33b5   :  { %9347 = vmatprep.subr.bf16.mxu0 %v10050_v34 }
0x33b6   :  { %3947 = vst.msk [vmem:[#allocation3 + $0x28] sm:$0xff] %vm74_vm0, %v3910_v60  ;;  %v3913_v23 = vpop.f32.mrb[50].mxu0  ;;  %v11045_v60 = vpack.c.bf16 %v8001_v14, %v8000_v59 }
0x33b7   :  { %v10986_v47 = vadd.f32 %v3913_v23, %v3798_v46  ;;  %v3915_v63 = vpop.f32.mrb[51].mxu0 }
0x33b8   :  { %v3916_v2 = vadd.f32 %v3915_v63, %v3802_v37  ;;  %9349 = vmatpush3.bf16.msra.mxu0 %v11045_v60 }
0x33b9   :  { %v9789_v7 = vpop.eup %9788  ;;  %9356 = vmatprep.subr.bf16.mxu0 %v10050_v34 }
0x33ba   :  { %3949 = vst.msk [vmem:[#allocation3 + $0x38] sm:$0xff] %vm74_vm0, %v3916_v2  ;;  %v3919_v8 = vpop.f32.mrb[52].mxu0  ;;  %v3974_v6 = vadd.f32 1.0, %v9789_v7 }
0x33bb   :  { %v10989_v44 = vadd.f32 %v3919_v8, %v3798_v46  ;;  %v3921_v51 = vpop.f32.mrb[53].mxu0 }
0x33bc   :  { %v3922_v10 = vadd.f32 %v3921_v51, %v3802_v37  ;;  %9790 = vrcp.f32 %v3974_v6 }
0x33be   :  { %3951 = vst.msk [vmem:[#allocation3 + $0x48] sm:$0xff] %vm74_vm0, %v3922_v10  ;;  %v3925_v11 = vpop.f32.mrb[54].mxu0 }
0x33bf   :  { %v10992_v12 = vadd.f32 %v3925_v11, %v3798_v46  ;;  %v3927_v13 = vpop.f32.mrb[55].mxu0 }
0x33c0   :  { %v3928_v55 = vadd.f32 %v3927_v13, %v3802_v37 }
0x33c2   :  { %3953 = vst.msk [vmem:[#allocation3 + $0x58] sm:$0xff] %vm74_vm0, %v3928_v55  ;;  %v3931_v15 = vpop.f32.mrb[56].mxu0 }
0x33c3   :  { %v10995_v9 = vadd.f32 %v3931_v15, %v3798_v46  ;;  %v3933_v50 = vpop.f32.mrb[57].mxu0 }
0x33c4   :  { %v3934_v16 = vadd.f32 %v3933_v50, %v3802_v37 }
0x33c6   :  { %v9791_v17 = vpop.eup %9790  ;;  %3955 = vst.msk [vmem:[#allocation3 + $0x68] sm:$0xff] %vm74_vm0, %v3934_v16 }
0x33c7   :  { %v3983_v19 = vmul.f32 %v9791_v17, %v10950_v18 }
0x33c9   :  { %3985 = vrot.lane.b32.xlu1 %v3983_v19, %s10047_s13 }
0x33d1   :  { %v3937_v20 = vpop.f32.mrb[58].mxu0 }
0x33d2   :  { %v3938_v57 = vadd.f32 %v3937_v20, %v3798_v46  ;;  %v3939_v22 = vpop.f32.mrb[59].mxu0  ;;  %v7996_v46 = vld [vmem:[%s11762_s3 + $0x90] sm:$0xff] }
0x33d3   :  { %v3940_v24 = vadd.f32 %v3939_v22, %v3802_v37  ;;  %v11017_v37 = vpack.c.bf16 %v7995_v35, %v7994_v53 }
0x33d4   :  { %3956 = vst [vmem:[#allocation3 + $0x70] sm:$0xff] %v3938_v57  ;;  %v8005_v25 = vmul.f32 -1.442695, %v3938_v57 }
0x33d5   :  { %3957 = vst.msk [vmem:[#allocation3 + $0x78] sm:$0xff] %vm74_vm0, %v3940_v24  ;;  %9316 = vmatpush3.bf16.msra.mxu1 %v11017_v37 }
0x33d6   :  { %9792 = vpow2.f32 %v8005_v25  ;;  %9317 = vmatprep.subr.bf16.mxu1 %v10050_v34 }
0x33dc   :  { %v4006_v30 = vld [vmem:[#allocation3 + $0x78] sm:$0xff] }
0x33dd   :  { %v8006_v32 = vmul.f32 -1.442695, %v4006_v30 }
0x33e0   :  { %v9793_v26 = vpop.eup %9792 }
0x33e1   :  { %v4013_v61 = vadd.f32 1.0, %v9793_v26 }
0x33e3   :  { %9794 = vrcp.f32 %v4013_v61 }
0x33ed   :  { %v9795_v27 = vpop.eup %9794 }
0x33ee   :  { %v4022_v28 = vmul.f32 %v9795_v27, %v11001_v5 }
0x33f0   :  { %4024 = vrot.lane.b32.xlu0 %v4022_v28, %s10047_s13 }
0x343b   :  { %v3986_v29 = vpop.permute.xlu1 %3985 }
0x343c   :  { %v3988_v40 = vadd.f32 %v3986_v29, %v3896_v54  ;;  %v11023_v54 = vpack.c.bf16 %v7997_v39, %v7996_v46 }
0x343e   :  { %9796 = vtanh.f32 %v3988_v40  ;;  %9319 = vmatpush3.bf16.msra.mxu1 %v11023_v54 }
0x343f   :  { %9320 = vmatprep.subr.bf16.mxu1 %v10050_v34 }
0x3448   :  { %v9797_v62 = vpop.eup %9796 }
0x3449   :  { %3991 = vrot.lane.b32.xlu1 %v9797_v62, %s10048_s0 }
0x3462   :  { %v4025_v0 = vpop.permute.xlu0 %4024 }
0x3463   :  { %v4027_v31 = vadd.f32 %v4025_v0, %v4006_v30 }
0x3465   :  { %9798 = vtanh.f32 %v4027_v31 }
0x3466   :  { %9800 = vpow2.f32 %v8006_v32 }
0x346f   :  { %v9799_v1 = vpop.eup %9798 }
0x3470   :  { %4030 = vrot.lane.b32.xlu0 %v9799_v1, %s10048_s0  ;;  %v9801_v4 = vpop.eup %9800 }
0x3471   :  { %v4014_v49 = vadd.f32 1.0, %v9801_v4 }
0x3473   :  { %9802 = vrcp.f32 %v4014_v49 }
0x347d   :  { %v9803_v41 = vpop.eup %9802 }
0x34bb   :  { %v3992_v42 = vpop.permute.xlu1 %3991 }
0x34bc   :  { %v3994_v33 = vmul.f32 %v9791_v17, %v3992_v42 }
0x34be   :  { %3996 = vrot.lane.b32.xlu1 %v3994_v33, %s10049_s14 }
0x34e2   :  { %v4031_v43 = vpop.permute.xlu0 %4030 }
0x34e3   :  { %v4033_v45 = vmul.f32 %v9803_v41, %v4031_v43 }
0x34e5   :  { %4035 = vrot.lane.b32.xlu0 %v4033_v45, %s10049_s14 }
0x3530   :  { %v3997_v23 = vpop.permute.xlu1 %3996 }
0x3531   :  { %v3999_v63 = vsub.f32 %v9797_v62, %v3997_v23 }
0x3533   :  { %4001 = vrot.lane.b32.xlu1 %v3999_v63, %s10047_s13 }
0x3537   :  { %4243 = vrot.lane.b32.xlu1 %v10950_v18, %s10049_s14 }
0x3557   :  { %v4036_v2 = vpop.permute.xlu0 %4035 }
0x3558   :  { %v4038_v7 = vsub.f32 %v9799_v1, %v4036_v2  ;;  %v4149_v1 = vld [vmem:[#allocation3 + $0x68] sm:$0xff] }
0x355a   :  { %4039 = vst.msk [vmem:[#allocation2 + $0x38] sm:$0xff] %vm308_vm2, %v4038_v7  ;;  %4151 = vrot.lane.b32.xlu0 %v4038_v7, %s10048_s0 }
0x35a5   :  { %v4002_v8 = vpop.permute.xlu1 %4001 }
0x35a6   :  { %4004 = vst.msk [vmem:[#allocation2] sm:$0xff] %vm272_vm3, %v4002_v8  ;;  %8753 = vmatmul.mubr.msk.f32.vlgmr.msra.gmra.mrb[44].mxu1 %vm272_vm3, %v4002_v8 }
0x35a7   :  { %9322 = vmatpush3.bf16.msra.mxu1 %v11035_v58  ;;  %8763 = vmatprep.mubr.msk.f32.mxu1 %vm10051_vm1, %v10046_v3 }
0x35a8   :  { %9323 = vmatprep.subr.bf16.mxu1 %v10050_v34 }
0x35a9   :  { %v11071_v11 = vpop.permute.xlu1 %4243 }
0x35ab   :  { %9325 = vmatpush3.bf16.msra.mxu1 %v11045_v60 }
0x35ac   :  { %9326 = vmatprep.subr.bf16.mxu1 %v10050_v34 }
0x35cc   :  { %v4152_v18 = vpop.permute.xlu0 %4151 }
0x35cd   :  { %8764 = vmatmul.mubr.msk.f32.vlgmr.msra.gmra.mrb[46].mxu1 %vm272_vm3, %v4152_v18 }
0x35ce   :  { %9328 = vmatpush3.bf16.msra.mxu1 %v11017_v37  ;;  %8774 = vmatprep.mubr.msk.f32.mxu1 %vm10051_vm1, %v10046_v3 }
0x35cf   :  { %9329 = vmatprep.subr.bf16.mxu1 %v10050_v34 }
0x35d2   :  { %9331 = vmatpush3.bf16.msra.mxu1 %v11023_v54 }
0x35d3   :  { %9332 = vmatprep.subr.bf16.mxu1 %v10050_v34 }
0x3679   :  { %v4109_v6 = vpop.f32.mrb[44].mxu1 }
0x367a   :  { %v4120_v51 = vadd.f32 %v4109_v6, %v11001_v5  ;;  %v8754_v10 = vpop.f32.mrb[45].mxu1  ;;  %v4113_v50 = vadd.f32 %v4109_v6, %v10980_v52 }
0x367c   :  { %4122 = vrot.lane.b32.xlu1 %v4120_v51, %s10047_s13  ;;  %v8008_v16 = vmul.f32 -1.442695, %v4113_v50 }
0x367e   :  { %9804 = vpow2.f32 %v8008_v16 }
0x3688   :  { %v9805_v17 = vpop.eup %9804 }
0x3689   :  { %v4117_v19 = vadd.f32 1.0, %v9805_v17 }
0x368b   :  { %9806 = vrcp.f32 %v4117_v19 }
0x3695   :  { %v9807_v20 = vpop.eup %9806 }
0x36a0   :  { %v4221_v13 = vpop.f32.mrb[46].mxu1 }
0x36a1   :  { %4226 = vrot.lane.b32.xlu0 %v4221_v13, %s10048_s0  ;;  %v8765_v55 = vpop.f32.mrb[47].mxu1  ;;  %v4246_v15 = vadd.f32 %v11071_v11, %v4221_v13 }
0x36a5   :  { %4248 = vrot.lane.b32.xlu0 %v4246_v15, %s10049_s14 }
0x36ee   :  { %v4123_v57 = vpop.permute.xlu1 %4122 }
0x36ef   :  { %v4125_v22 = vmul.f32 %v9807_v20, %v4123_v57 }
0x36f1   :  { %4127 = vrot.lane.b32.xlu1 %v4125_v22, %s10047_s13 }
0x3713   :  { %v4227_v24 = vpop.permute.xlu0 %4226 }
0x3714   :  { %v4229_v25 = vadd.f32 %v4227_v24, %v10995_v9  ;;  %v4230_v35 = vadd.f32 %v4227_v24, %v4149_v1 }
0x3716   :  { %v8010_v26 = vmul.f32 -1.442695, %v4229_v25  ;;  %v8011_v46 = vmul.f32 -1.442695, %v4230_v35 }
0x3717   :  { %v4249_v29 = vpop.permute.xlu0 %4248 }
0x3718   :  { %9808 = vpow2.f32 %v8010_v26 }
0x3722   :  { %v9809_v61 = vpop.eup %9808 }
0x3723   :  { %v4237_v27 = vadd.f32 1.0, %v9809_v61 }
0x3725   :  { %9810 = vrcp.f32 %v4237_v27 }
0x372f   :  { %v9811_v28 = vpop.eup %9810 }
0x3730   :  { %v4251_v40 = vmul.f32 %v9811_v28, %v4249_v29 }
0x3732   :  { %4253 = vrot.lane.b32.xlu0 %v4251_v40, %s10047_s13 }
0x3763   :  { %v4128_v62 = vpop.permute.xlu1 %4127 }
0x3764   :  { %v4130_v30 = vadd.f32 %v4128_v62, %v10980_v52 }
0x3766   :  { %9812 = vtanh.f32 %v4130_v30 }
0x3770   :  { %v9813_v0 = vpop.eup %9812 }
0x3771   :  { %v4132_v31 = vsub.f32 %v3999_v63, %v9813_v0 }
0x3773   :  { %4134 = vrot.lane.b32.xlu1 %v4132_v31, %s10048_s0 }
0x37a4   :  { %v4254_v42 = vpop.permute.xlu0 %4253 }
0x37a5   :  { %v4256_v33 = vadd.f32 %v4254_v42, %v4149_v1 }
0x37a7   :  { %9814 = vtanh.f32 %v4256_v33 }
0x37a8   :  { %9816 = vpow2.f32 %v8011_v46 }
0x37b1   :  { %v9815_v32 = vpop.eup %9814 }
0x37b2   :  { %v4258_v4 = vsub.f32 %v4038_v7, %v9815_v32  ;;  %v9817_v39 = vpop.eup %9816 }
0x37b3   :  { %v4238_v41 = vadd.f32 1.0, %v9817_v39 }
0x37b4   :  { %4260 = vrot.lane.b32.xlu0 %v4258_v4, %s10048_s0 }
0x37b5   :  { %9818 = vrcp.f32 %v4238_v41 }
0x37bf   :  { %v9819_v43 = vpop.eup %9818 }
0x37e5   :  { %v4135_v49 = vpop.permute.xlu1 %4134 }
0x37e6   :  { %v4137_v53 = vmul.f32 %v9807_v20, %v4135_v49  ;;  %v4379_v20 = vld [vmem:[#allocation3 + $0x58] sm:$0xff] }
0x37e8   :  { %4139 = vrot.lane.b32.xlu1 %v4137_v53, %s10049_s14 }
0x3826   :  { %v4261_v45 = vpop.permute.xlu0 %4260 }
0x3827   :  { %v4263_v48 = vmul.f32 %v9819_v43, %v4261_v45 }
0x3829   :  { %4265 = vrot.lane.b32.xlu0 %v4263_v48, %s10049_s14 }
0x385a   :  { %v4140_v56 = vpop.permute.xlu1 %4139 }
0x385b   :  { %v11085_v59 = vadd.f32 %v9813_v0, %v4140_v56 }
0x385d   :  { %4144 = vrot.lane.b32.xlu1 %v11085_v59, %s10047_s13 }
0x389b   :  { %v4266_v14 = vpop.permute.xlu0 %4265 }
0x389c   :  { %v4268_v23 = vadd.f32 %v9815_v32, %v4266_v14 }
0x389e   :  { %4269 = vst.msk [vmem:[#allocation2 + $0x30] sm:$0xff] %vm308_vm2, %v4268_v23  ;;  %4381 = vrot.lane.b32.xlu0 %v4268_v23, %s10048_s0 }
0x38cf   :  { %v4145_v63 = vpop.permute.xlu1 %4144 }
0x38d0   :  { %4147 = vst.msk [vmem:[#allocation2 + $0x8] sm:$0xff] %vm272_vm3, %v4145_v63  ;;  %8775 = vmatmul.mubr.msk.f32.vlgmr.msra.gmra.mrb[48].mxu1 %vm272_vm3, %v4145_v63 }
0x38d1   :  { %9334 = vmatpush3.bf16.msra.mxu1 %v11035_v58  ;;  %8785 = vmatprep.mubr.msk.f32.mxu1 %vm10051_vm1, %v10046_v3 }
0x38d2   :  { %9335 = vmatprep.subr.bf16.mxu1 %v10050_v34 }
0x38d5   :  { %9337 = vmatpush3.bf16.msra.mxu1 %v11045_v60 }
0x38d6   :  { %9338 = vmatprep.subr.bf16.mxu1 %v10050_v34 }
0x3910   :  { %v4382_v2 = vpop.permute.xlu0 %4381 }
0x3911   :  { %8786 = vmatmul.mubr.msk.f32.vlgmr.msra.gmra.mrb[50].mxu1 %vm272_vm3, %v4382_v2 }
0x3912   :  { %9340 = vmatpush3.bf16.msra.mxu1 %v11017_v37  ;;  %8796 = vmatprep.mubr.msk.f32.mxu1 %vm10051_vm1, %v10046_v3 }
0x3913   :  { %9341 = vmatprep.subr.bf16.mxu1 %v10050_v34 }
0x3916   :  { %9343 = vmatpush3.bf16.msra.mxu1 %v11023_v54 }
0x3917   :  { %9350 = vmatprep.subr.bf16.mxu1 %v10050_v34 }
0x39a3   :  { %v4339_v7 = vpop.f32.mrb[48].mxu1 }
0x39a4   :  { %v8776_v8 = vpop.f32.mrb[49].mxu1  ;;  %v4350_v32 = vadd.f32 %v4339_v7, %v11001_v5  ;;  %v4343_v4 = vadd.f32 %v4339_v7, %v10983_v21 }
0x39a6   :  { %v8013_v49 = vmul.f32 -1.442695, %v4343_v4 }
0x39e4   :  { %v4451_v18 = vpop.f32.mrb[50].mxu1 }
0x39e5   :  { %v4473_v6 = vadd.f32 %v4451_v18, %v11071_v11  ;;  %4456 = vrot.lane.b32.xlu1 %v4451_v18, %s10048_s0  ;;  %v8787_v51 = vpop.f32.mrb[51].mxu1 }
0x39e6   :  { %v4606_v51 = vld [vmem:[#allocation3 + $0x48] sm:$0xff] }
0x39e7   :  { %4475 = vrot.lane.b32.xlu0 %v4473_v6, %s10049_s14 }
0x3a57   :  { %v4457_v10 = vpop.permute.xlu1 %4456 }
0x3a58   :  { %v4459_v13 = vadd.f32 %v4457_v10, %v10992_v12  ;;  %v4460_v26 = vadd.f32 %v4457_v10, %v4379_v20 }
0x3a59   :  { %v4476_v17 = vpop.permute.xlu0 %4475 }
0x3a5a   :  { %v8015_v55 = vmul.f32 -1.442695, %v4459_v13  ;;  %v8016_v61 = vmul.f32 -1.442695, %v4460_v26 }
0x3a5c   :  { %9820 = vpow2.f32 %v8015_v55 }
0x3a66   :  { %v9821_v15 = vpop.eup %9820 }
0x3a67   :  { %v4467_v50 = vadd.f32 1.0, %v9821_v15 }
0x3a69   :  { %9822 = vrcp.f32 %v4467_v50 }
0x3a73   :  { %v9823_v16 = vpop.eup %9822 }
0x3a74   :  { %v4478_v19 = vmul.f32 %v9823_v16, %v4476_v17 }
0x3a76   :  { %4480 = vrot.lane.b32.xlu1 %v4478_v19, %s10047_s13 }
0x3ae8   :  { %v4481_v57 = vpop.permute.xlu1 %4480 }
0x3ae9   :  { %v4483_v22 = vadd.f32 %v4481_v57, %v4379_v20 }
0x3aeb   :  { %9824 = vtanh.f32 %v4483_v22 }
0x3aec   :  { %9826 = vpow2.f32 %v8016_v61 }
0x3af5   :  { %v9825_v24 = vpop.eup %9824 }
0x3af6   :  { %v4485_v25 = vsub.f32 %v4268_v23, %v9825_v24  ;;  %v9827_v27 = vpop.eup %9826 }
0x3af7   :  { %v4468_v28 = vadd.f32 1.0, %v9827_v27 }
0x3af8   :  { %4487 = vrot.lane.b32.xlu0 %v4485_v25, %s10048_s0 }
0x3af9   :  { %9828 = vrcp.f32 %v4468_v28 }
0x3afa   :  { %9830 = vpow2.f32 %v8013_v49 }
0x3b03   :  { %v9829_v29 = vpop.eup %9828 }
0x3b04   :  { %v9831_v53 = vpop.eup %9830 }
0x3b05   :  { %v4347_v35 = vadd.f32 1.0, %v9831_v53 }
0x3b07   :  { %9832 = vrcp.f32 %v4347_v35 }
0x3b11   :  { %v9833_v43 = vpop.eup %9832 }
0x3b6a   :  { %v4488_v40 = vpop.permute.xlu0 %4487 }
0x3b6b   :  { %v4490_v62 = vmul.f32 %v9829_v29, %v4488_v40 }
0x3b6d   :  { %4492 = vrot.lane.b32.xlu1 %v4490_v62, %s10049_s14 }
0x3bdf   :  { %v4493_v30 = vpop.permute.xlu1 %4492 }
0x3be0   :  { %v4495_v0 = vadd.f32 %v9825_v24, %v4493_v30 }
0x3be2   :  { %4496 = vst.msk [vmem:[#allocation2 + $0x28] sm:$0xff] %vm308_vm2, %v4495_v0  ;;  %4608 = vrot.lane.b32.xlu0 %v4495_v0, %s10048_s0 }
0x3c54   :  { %v4609_v31 = vpop.permute.xlu0 %4608 }
0x3c55   :  { %8808 = vmatmul.mubr.msk.f32.vlgmr.msra.gmra.mrb[60].mxu0 %vm272_vm3, %v4609_v31 }
0x3c56   :  { %9358 = vmatpush3.bf16.msra.mxu0 %v11035_v58  ;;  %8829 = vmatprep.mubr.msk.f32.mxu0 %vm10051_vm1, %v10046_v3 }
0x3c57   :  { %9359 = vmatprep.subr.bf16.mxu0 %v10050_v34 }
0x3c5a   :  { %9361 = vmatpush3.bf16.msra.mxu0 %v11045_v60 }
0x3c5b   :  { %9368 = vmatprep.subr.bf16.mxu0 %v10050_v34 }
0x3d28   :  { %v4678_v1 = vpop.f32.mrb[60].mxu0 }
0x3d29   :  { %v4700_v42 = vadd.f32 %v4678_v1, %v11071_v11  ;;  %4683 = vrot.lane.b32.xlu1 %v4678_v1, %s10048_s0  ;;  %v8809_v33 = vpop.f32.mrb[61].mxu0 }
0x3d2b   :  { %4702 = vrot.lane.b32.xlu0 %v4700_v42, %s10049_s14 }
0x3d2d   :  { %4352 = vrot.lane.b32.xlu1 %v4350_v32, %s10047_s13 }
0x3d9b   :  { %v4684_v46 = vpop.permute.xlu1 %4683 }
0x3d9c   :  { %v4686_v39 = vadd.f32 %v4684_v46, %v10989_v44  ;;  %v4687_v50 = vadd.f32 %v4684_v46, %v4606_v51 }
0x3d9d   :  { %v4703_v63 = vpop.permute.xlu0 %4702 }
0x3d9e   :  { %v8020_v41 = vmul.f32 -1.442695, %v4686_v39  ;;  %v8021_v16 = vmul.f32 -1.442695, %v4687_v50 }
0x3d9f   :  { %v4353_v45 = vpop.permute.xlu1 %4352 }
0x3da0   :  { %9834 = vpow2.f32 %v8020_v41  ;;  %v4355_v48 = vmul.f32 %v9833_v43, %v4353_v45 }
0x3da2   :  { %4357 = vrot.lane.b32.xlu1 %v4355_v48, %s10047_s13 }
0x3daa   :  { %v9835_v56 = vpop.eup %9834 }
0x3dab   :  { %v4694_v14 = vadd.f32 1.0, %v9835_v56 }
0x3dad   :  { %9836 = vrcp.f32 %v4694_v14 }
0x3db7   :  { %v9837_v23 = vpop.eup %9836 }
0x3db8   :  { %v4705_v2 = vmul.f32 %v9837_v23, %v4703_v63 }
0x3dba   :  { %4707 = vrot.lane.b32.xlu0 %v4705_v2, %s10047_s13 }
0x3e14   :  { %v4358_v7 = vpop.permute.xlu1 %4357 }
0x3e15   :  { %v4360_v8 = vadd.f32 %v4358_v7, %v10983_v21 }
0x3e17   :  { %9838 = vtanh.f32 %v4360_v8  ;;  %v4833_v8 = vld [vmem:[#allocation3 + $0x38] sm:$0xff] }
0x3e21   :  { %v9839_v18 = vpop.eup %9838 }
0x3e22   :  { %v4362_v6 = vsub.f32 %v11085_v59, %v9839_v18 }
0x3e24   :  { %4364 = vrot.lane.b32.xlu1 %v4362_v6, %s10048_s0 }
0x3e2c   :  { %v4708_v10 = vpop.permute.xlu0 %4707 }
0x3e2d   :  { %v4710_v13 = vadd.f32 %v4708_v10, %v4606_v51 }
0x3e2f   :  { %9840 = vtanh.f32 %v4710_v13 }
0x3e30   :  { %9842 = vpow2.f32 %v8021_v16 }
0x3e39   :  { %v9841_v55 = vpop.eup %9840 }
0x3e3a   :  { %v4712_v15 = vsub.f32 %v4495_v0, %v9841_v55  ;;  %v9843_v20 = vpop.eup %9842 }
0x3e3b   :  { %v4695_v57 = vadd.f32 1.0, %v9843_v20 }
0x3e3c   :  { %4714 = vrot.lane.b32.xlu0 %v4712_v15, %s10048_s0 }
0x3e3d   :  { %9844 = vrcp.f32 %v4695_v57 }
0x3e47   :  { %v9845_v59 = vpop.eup %9844 }
0x3e96   :  { %v4365_v17 = vpop.permute.xlu1 %4364 }
0x3e97   :  { %v4367_v19 = vmul.f32 %v9833_v43, %v4365_v17 }
0x3e99   :  { %4369 = vrot.lane.b32.xlu1 %v4367_v19, %s10049_s14 }
0x3eae   :  { %v4715_v22 = vpop.permute.xlu0 %4714 }
0x3eaf   :  { %v4717_v24 = vmul.f32 %v9845_v59, %v4715_v22 }
0x3eb1   :  { %4719 = vrot.lane.b32.xlu0 %v4717_v24, %s10049_s14 }
0x3f0b   :  { %v4370_v25 = vpop.permute.xlu1 %4369 }
0x3f0c   :  { %v4372_v26 = vadd.f32 %v9839_v18, %v4370_v25 }
0x3f0e   :  { %4374 = vrot.lane.b32.xlu1 %v4372_v26, %s10047_s13 }
0x3f23   :  { %v4720_v61 = vpop.permute.xlu0 %4719 }
0x3f24   :  { %v4722_v27 = vadd.f32 %v9841_v55, %v4720_v61 }
0x3f26   :  { %4723 = vst.msk [vmem:[#allocation2 + $0x20] sm:$0xff] %vm308_vm2, %v4722_v27  ;;  %4835 = vrot.lane.b32.xlu0 %v4722_v27, %s10048_s0 }
0x3f80   :  { %v4375_v28 = vpop.permute.xlu1 %4374 }
0x3f81   :  { %4377 = vst.msk [vmem:[#allocation2 + $0x10] sm:$0xff] %vm272_vm3, %v4375_v28  ;;  %8797 = vmatmul.mubr.msk.f32.vlgmr.msra.gmra.mrb[52].mxu1 %vm272_vm3, %v4375_v28 }
0x3f82   :  { %9352 = vmatpush3.bf16.msra.mxu1 %v11017_v37  ;;  %8818 = vmatprep.mubr.msk.f32.mxu1 %vm10051_vm1, %v10046_v3 }
0x3f83   :  { %9353 = vmatprep.subr.bf16.mxu1 %v10050_v34 }
0x3f86   :  { %9355 = vmatpush3.bf16.msra.mxu1 %v11023_v54 }
0x3f87   :  { %9362 = vmatprep.subr.bf16.mxu1 %v10050_v34 }
0x3f98   :  { %v4836_v29 = vpop.permute.xlu0 %4835 }
0x3f99   :  { %8830 = vmatmul.mubr.msk.f32.vlgmr.msra.gmra.mrb[62].mxu0 %vm272_vm3, %v4836_v29 }
0x3f9a   :  { %9370 = vmatpush3.bf16.msra.mxu0 %v11035_v58  ;;  %8851 = vmatprep.mubr.msk.f32.mxu0 %vm10051_vm1, %v10046_v3 }
0x3f9b   :  { %9371 = vmatprep.subr.bf16.mxu0 %v10050_v34 }
0x3f9e   :  { %9373 = vmatpush3.bf16.msra.mxu0 %v11045_v60 }
0x3f9f   :  { %9380 = vmatprep.subr.bf16.mxu0 %v10050_v34 }
0x4054   :  { %v4566_v40 = vpop.f32.mrb[52].mxu1 }
0x4055   :  { %v4577_v62 = vadd.f32 %v4566_v40, %v11001_v5  ;;  %v8798_v30 = vpop.f32.mrb[53].mxu1  ;;  %v4570_v42 = vadd.f32 %v4566_v40, %v10986_v47 }
0x4057   :  { %4579 = vrot.lane.b32.xlu1 %v4577_v62, %s10047_s13  ;;  %v8018_v33 = vmul.f32 -1.442695, %v4570_v42 }
0x4059   :  { %9846 = vpow2.f32 %v8018_v33 }
0x4063   :  { %v9847_v32 = vpop.eup %9846 }
0x4064   :  { %v4574_v4 = vadd.f32 1.0, %v9847_v32 }
0x4066   :  { %9848 = vrcp.f32 %v4574_v4 }
0x406c   :  { %v4905_v0 = vpop.f32.mrb[62].mxu0 }
0x406d   :  { %4910 = vrot.lane.b32.xlu0 %v4905_v0, %s10048_s0  ;;  %v8831_v31 = vpop.f32.mrb[63].mxu0  ;;  %v4927_v1 = vadd.f32 %v4905_v0, %v11071_v11 }
0x4070   :  { %v9849_v49 = vpop.eup %9848 }
0x4071   :  { %4929 = vrot.lane.b32.xlu0 %v4927_v1, %s10049_s14 }
0x40c9   :  { %v4580_v53 = vpop.permute.xlu1 %4579 }
0x40ca   :  { %v4582_v35 = vmul.f32 %v9849_v49, %v4580_v53 }
0x40cc   :  { %4584 = vrot.lane.b32.xlu1 %v4582_v35, %s10047_s13 }
0x40df   :  { %v4911_v46 = vpop.permute.xlu0 %4910 }
0x40e0   :  { %v4913_v39 = vadd.f32 %v4911_v46, %v10986_v47  ;;  %v4914_v15 = vadd.f32 %v4911_v46, %v4833_v8 }
0x40e2   :  { %v8025_v41 = vmul.f32 -1.442695, %v4913_v39  ;;  %v8026_v50 = vmul.f32 -1.442695, %v4914_v15 }
0x40e3   :  { %v4930_v56 = vpop.permute.xlu0 %4929 }
0x40e4   :  { %9850 = vpow2.f32 %v8025_v41 }
0x40ee   :  { %v9851_v43 = vpop.eup %9850 }
0x40ef   :  { %v4921_v45 = vadd.f32 1.0, %v9851_v43 }
0x40f1   :  { %9852 = vrcp.f32 %v4921_v45 }
0x40fb   :  { %v9853_v48 = vpop.eup %9852 }
0x40fc   :  { %v4932_v14 = vmul.f32 %v9853_v48, %v4930_v56 }
0x40fe   :  { %4934 = vrot.lane.b32.xlu0 %v4932_v14, %s10047_s13 }
0x413e   :  { %v4585_v23 = vpop.permute.xlu1 %4584 }
0x413f   :  { %v4587_v63 = vadd.f32 %v4585_v23, %v10986_v47  ;;  %v5060_v23 = vld [vmem:[#allocation3 + $0x28] sm:$0xff] }
0x4141   :  { %9854 = vtanh.f32 %v4587_v63 }
0x414b   :  { %v9855_v2 = vpop.eup %9854 }
0x414c   :  { %v4589_v7 = vsub.f32 %v4372_v26, %v9855_v2 }
0x414e   :  { %4591 = vrot.lane.b32.xlu1 %v4589_v7, %s10048_s0 }
0x4170   :  { %v4935_v18 = vpop.permute.xlu0 %4934 }
0x4171   :  { %v4937_v6 = vadd.f32 %v4935_v18, %v4833_v8 }
0x4173   :  { %9856 = vtanh.f32 %v4937_v6 }
0x4174   :  { %9858 = vpow2.f32 %v8026_v50 }
0x417d   :  { %v9857_v51 = vpop.eup %9856 }
0x417e   :  { %v4939_v10 = vsub.f32 %v4722_v27, %v9857_v51  ;;  %v9859_v47 = vpop.eup %9858 }
0x417f   :  { %v4922_v16 = vadd.f32 1.0, %v9859_v47 }
0x4180   :  { %4941 = vrot.lane.b32.xlu0 %v4939_v10, %s10048_s0 }
0x4181   :  { %9860 = vrcp.f32 %v4922_v16 }
0x418b   :  { %v9861_v17 = vpop.eup %9860 }
0x41c0   :  { %v4592_v13 = vpop.permute.xlu1 %4591 }
0x41c1   :  { %v4594_v55 = vmul.f32 %v9849_v49, %v4592_v13 }
0x41c3   :  { %4596 = vrot.lane.b32.xlu1 %v4594_v55, %s10049_s14 }
0x41f2   :  { %v4942_v19 = vpop.permute.xlu0 %4941 }
0x41f3   :  { %v4944_v20 = vmul.f32 %v9861_v17, %v4942_v19 }
0x41f5   :  { %4946 = vrot.lane.b32.xlu0 %v4944_v20, %s10049_s14 }
0x4235   :  { %v4597_v57 = vpop.permute.xlu1 %4596 }
0x4236   :  { %v4599_v59 = vadd.f32 %v9855_v2, %v4597_v57 }
0x4238   :  { %4601 = vrot.lane.b32.xlu1 %v4599_v59, %s10047_s13 }
0x4267   :  { %v4947_v22 = vpop.permute.xlu0 %4946 }
0x4268   :  { %v4949_v24 = vadd.f32 %v9857_v51, %v4947_v22 }
0x426a   :  { %5062 = vrot.lane.b32.xlu0 %v4949_v24, %s10048_s0 }
0x42aa   :  { %v4602_v25 = vpop.permute.xlu1 %4601 }
0x42ab   :  { %4604 = vst.msk [vmem:[#allocation2 + $0x18] sm:$0xff] %vm272_vm3, %v4602_v25  ;;  %8819 = vmatmul.mubr.msk.f32.vlgmr.msra.gmra.mrb[54].mxu1 %vm272_vm3, %v4602_v25 }
0x42ac   :  { %4950 = vst.msk [vmem:[#allocation2 + $0x18] sm:$0xff] %vm308_vm2, %v4949_v24  ;;  %9364 = vmatpush3.bf16.msra.mxu1 %v11017_v37  ;;  %8840 = vmatprep.mubr.msk.f32.mxu1 %vm10051_vm1, %v10046_v3 }
0x42ad   :  { %9365 = vmatprep.subr.bf16.mxu1 %v10050_v34 }
0x42b0   :  { %9367 = vmatpush3.bf16.msra.mxu1 %v11023_v54 }
0x42b1   :  { %9374 = vmatprep.subr.bf16.mxu1 %v10050_v34 }
0x42dc   :  { %v5063_v26 = vpop.permute.xlu0 %5062 }
0x42dd   :  { %8852 = vmatmul.mubr.msk.f32.vlgmr.msra.gmra.mrb[64].mxu0 %vm272_vm3, %v5063_v26 }
0x42de   :  { %9382 = vmatpush3.bf16.msra.mxu0 %v11035_v58  ;;  %8873 = vmatprep.mubr.msk.f32.mxu0 %vm10051_vm1, %v10046_v3 }
0x42df   :  { %9383 = vmatprep.subr.bf16.mxu0 %v10050_v34 }
0x42e2   :  { %9385 = vmatpush3.bf16.msra.mxu0 %v11045_v60 }
0x42e3   :  { %9392 = vmatprep.subr.bf16.mxu0 %v10050_v34 }
0x437e   :  { %v4793_v61 = vpop.f32.mrb[54].mxu1 }
0x437f   :  { %v4804_v27 = vadd.f32 %v4793_v61, %v11001_v5  ;;  %v8820_v28 = vpop.f32.mrb[55].mxu1  ;;  %v4797_v30 = vadd.f32 %v4793_v61, %v10989_v44 }
0x4381   :  { %4806 = vrot.lane.b32.xlu1 %v4804_v27, %s10047_s13  ;;  %v8023_v0 = vmul.f32 -1.442695, %v4797_v30 }
0x4383   :  { %9862 = vpow2.f32 %v8023_v0 }
0x438d   :  { %v9863_v31 = vpop.eup %9862 }
0x438e   :  { %v4801_v1 = vadd.f32 1.0, %v9863_v31 }
0x4390   :  { %9864 = vrcp.f32 %v4801_v1 }
0x439a   :  { %v9865_v42 = vpop.eup %9864 }
0x43b0   :  { %v5132_v29 = vpop.f32.mrb[64].mxu0 }
0x43b1   :  { %v5154_v40 = vadd.f32 %v5132_v29, %v11071_v11  ;;  %5137 = vrot.lane.b32.xlu0 %v5132_v29, %s10048_s0  ;;  %v8853_v62 = vpop.f32.mrb[65].mxu0 }
0x43b3   :  { %5156 = vrot.lane.b32.xlu1 %v5154_v40, %s10049_s14 }
0x43f3   :  { %v4807_v33 = vpop.permute.xlu1 %4806 }
0x43f4   :  { %v4809_v32 = vmul.f32 %v9865_v42, %v4807_v33 }
0x43f6   :  { %4811 = vrot.lane.b32.xlu0 %v4809_v32, %s10047_s13 }
0x4423   :  { %v5138_v4 = vpop.permute.xlu0 %5137 }
0x4424   :  { %v5140_v49 = vadd.f32 %v5138_v4, %v10983_v21  ;;  %v5141_v6 = vadd.f32 %v5138_v4, %v5060_v23 }
0x4425   :  { %v5157_v41 = vpop.permute.xlu1 %5156 }
0x4426   :  { %v8030_v53 = vmul.f32 -1.442695, %v5140_v49  ;;  %v8031_v51 = vmul.f32 -1.442695, %v5141_v6 }
0x4428   :  { %9866 = vpow2.f32 %v8030_v53 }
0x4432   :  { %v9867_v35 = vpop.eup %9866 }
0x4433   :  { %v5148_v46 = vadd.f32 1.0, %v9867_v35 }
0x4435   :  { %9868 = vrcp.f32 %v5148_v46  ;;  %v5287_v46 = vld [vmem:[#allocation3 + $0x18] sm:$0xff] }
0x443f   :  { %v9869_v39 = vpop.eup %9868 }
0x4440   :  { %v5159_v43 = vmul.f32 %v9869_v39, %v5157_v41 }
0x4442   :  { %5161 = vrot.lane.b32.xlu1 %v5159_v43, %s10047_s13 }
0x4468   :  { %v4812_v45 = vpop.permute.xlu0 %4811 }
0x4469   :  { %v4814_v48 = vadd.f32 %v4812_v45, %v10989_v44 }
0x446b   :  { %9870 = vtanh.f32 %v4814_v48 }
0x4475   :  { %v9871_v56 = vpop.eup %9870 }
0x4476   :  { %v4816_v14 = vsub.f32 %v4599_v59, %v9871_v56 }
0x4478   :  { %4818 = vrot.lane.b32.xlu0 %v4816_v14, %s10048_s0 }
0x44b4   :  { %v5162_v21 = vpop.permute.xlu1 %5161 }
0x44b5   :  { %v5164_v63 = vadd.f32 %v5162_v21, %v5060_v23 }
0x44b7   :  { %9872 = vtanh.f32 %v5164_v63 }
0x44b8   :  { %9874 = vpow2.f32 %v8031_v51 }
0x44c1   :  { %v9873_v2 = vpop.eup %9872 }
0x44c2   :  { %v5166_v7 = vsub.f32 %v4949_v24, %v9873_v2  ;;  %v9875_v44 = vpop.eup %9874 }
0x44c3   :  { %v5149_v10 = vadd.f32 1.0, %v9875_v44 }
0x44c4   :  { %5168 = vrot.lane.b32.xlu1 %v5166_v7, %s10048_s0 }
0x44c5   :  { %9876 = vrcp.f32 %v5149_v10 }
0x44cf   :  { %v9877_v13 = vpop.eup %9876 }
0x44ea   :  { %v4819_v8 = vpop.permute.xlu0 %4818 }
0x44eb   :  { %v4821_v18 = vmul.f32 %v9865_v42, %v4819_v8 }
0x44ed   :  { %4823 = vrot.lane.b32.xlu0 %v4821_v18, %s10049_s14 }
0x4536   :  { %v5169_v55 = vpop.permute.xlu1 %5168 }
0x4537   :  { %v5171_v15 = vmul.f32 %v9877_v13, %v5169_v55 }
0x4539   :  { %5173 = vrot.lane.b32.xlu1 %v5171_v15, %s10049_s14 }
0x455f   :  { %v4824_v50 = vpop.permute.xlu0 %4823 }
0x4560   :  { %v4826_v47 = vadd.f32 %v9871_v56, %v4824_v50 }
0x4562   :  { %4828 = vrot.lane.b32.xlu0 %v4826_v47, %s10047_s13 }
0x45ab   :  { %v5174_v16 = vpop.permute.xlu1 %5173 }
0x45ac   :  { %v5176_v17 = vadd.f32 %v9873_v2, %v5174_v16 }
0x45ae   :  { %5177 = vst.msk [vmem:[#allocation2 + $0x10] sm:$0xff] %vm308_vm2, %v5176_v17  ;;  %5289 = vrot.lane.b32.xlu1 %v5176_v17, %s10048_s0 }
0x45d4   :  { %v4829_v19 = vpop.permute.xlu0 %4828 }
0x45d5   :  { %4831 = vst.msk [vmem:[#allocation2 + $0x20] sm:$0xff] %vm272_vm3, %v4829_v19  ;;  %8841 = vmatmul.mubr.msk.f32.vlgmr.msra.gmra.mrb[56].mxu1 %vm272_vm3, %v4829_v19 }
0x45d6   :  { %9376 = vmatpush3.bf16.msra.mxu1 %v11017_v37  ;;  %8862 = vmatprep.mubr.msk.f32.mxu1 %vm10051_vm1, %v10046_v3 }
0x45d7   :  { %9377 = vmatprep.subr.bf16.mxu1 %v10050_v34 }
0x45da   :  { %9379 = vmatpush3.bf16.msra.mxu1 %v11023_v54 }
0x45db   :  { %9386 = vmatprep.subr.bf16.mxu1 %v10050_v34 }
0x4620   :  { %v5290_v20 = vpop.permute.xlu1 %5289 }
0x4621   :  { %8874 = vmatmul.mubr.msk.f32.vlgmr.msra.gmra.mrb[66].mxu0 %vm272_vm3, %v5290_v20 }
0x4622   :  { %9394 = vmatpush3.bf16.msra.mxu0 %v11035_v58  ;;  %8895 = vmatprep.mubr.msk.f32.mxu0 %vm10051_vm1, %v10046_v3 }
0x4623   :  { %9395 = vmatprep.subr.bf16.mxu0 %v10050_v34 }
0x4626   :  { %9397 = vmatpush3.bf16.msra.mxu0 %v11045_v60 }
0x4627   :  { %9414 = vmatprep.subr.bf16.mxu0 %v10050_v34 }
0x46a8   :  { %v5020_v57 = vpop.f32.mrb[56].mxu1 }
0x46a9   :  { %v5031_v59 = vadd.f32 %v5020_v57, %v11001_v5  ;;  %v8842_v22 = vpop.f32.mrb[57].mxu1  ;;  %v5024_v26 = vadd.f32 %v5020_v57, %v10992_v12 }
0x46ab   :  { %5033 = vrot.lane.b32.xlu0 %v5031_v59, %s10047_s13  ;;  %v8028_v61 = vmul.f32 -1.442695, %v5024_v26  ;;  %v5513_v59 = vld [vmem:[#allocation3] sm:$0xff] }
0x46ad   :  { %9878 = vpow2.f32 %v8028_v61 }
0x46b7   :  { %v9879_v60 = vpop.eup %9878 }
0x46b8   :  { %v5028_v27 = vadd.f32 1.0, %v9879_v60 }
0x46ba   :  { %9880 = vrcp.f32 %v5028_v27 }
0x46c4   :  { %v9881_v28 = vpop.eup %9880 }
0x46f4   :  { %v5359_v24 = vpop.f32.mrb[66].mxu0 }
0x46f5   :  { %5364 = vrot.lane.b32.xlu1 %v5359_v24, %s10048_s0  ;;  %v8875_v25 = vpop.f32.mrb[67].mxu0  ;;  %v5381_v58 = vadd.f32 %v5359_v24, %v11071_v11 }
0x46f9   :  { %5383 = vrot.lane.b32.xlu1 %v5381_v58, %s10049_s14 }
0x471d   :  { %v5034_v29 = vpop.permute.xlu0 %5033 }
0x471e   :  { %v5036_v40 = vmul.f32 %v9881_v28, %v5034_v29 }
0x4720   :  { %5038 = vrot.lane.b32.xlu0 %v5036_v40, %s10047_s13 }
0x4767   :  { %v5365_v62 = vpop.permute.xlu1 %5364 }
0x4768   :  { %v5367_v30 = vadd.f32 %v5365_v62, %v10980_v52  ;;  %v5368_v56 = vadd.f32 %v5365_v62, %v5287_v46  ;;  %v5514_v62 = vld [vmem:[#allocation3 + $0x8] sm:$0xff] }
0x476a   :  { %v8035_v0 = vmul.f32 -1.442695, %v5367_v30  ;;  %v8036_v14 = vmul.f32 -1.442695, %v5368_v56  ;;  %v8044_v56 = vld [vmem:[%s11758_s1 + $0x190] sm:$0xff] }
0x476b   :  { %v5384_v33 = vpop.permute.xlu1 %5383 }
0x476c   :  { %9882 = vpow2.f32 %v8035_v0 }
0x4776   :  { %v9883_v31 = vpop.eup %9882 }
0x4777   :  { %v5375_v1 = vadd.f32 1.0, %v9883_v31 }
0x4779   :  { %9884 = vrcp.f32 %v5375_v1 }
0x4783   :  { %v9885_v42 = vpop.eup %9884 }
0x4784   :  { %v5386_v32 = vmul.f32 %v9885_v42, %v5384_v33 }
0x4786   :  { %5388 = vrot.lane.b32.xlu0 %v5386_v32, %s10047_s13 }
0x4792   :  { %v5039_v4 = vpop.permute.xlu0 %5038 }
0x4793   :  { %v5041_v49 = vadd.f32 %v5039_v4, %v10992_v12  ;;  %v8043_v4 = vld [vmem:[%s11758_s1 + $0x188] sm:$0xff] }
0x4795   :  { %9886 = vtanh.f32 %v5041_v49  ;;  %v8045_v49 = vld [vmem:[%s11758_s1 + $0x198] sm:$0xff] }
0x479f   :  { %v9887_v53 = vpop.eup %9886 }
0x47a0   :  { %v5043_v35 = vsub.f32 %v4826_v47, %v9887_v53 }
0x47a2   :  { %5045 = vrot.lane.b32.xlu1 %v5043_v35, %s10048_s0 }
0x47f8   :  { %v5389_v52 = vpop.permute.xlu0 %5388 }
0x47f9   :  { %v5391_v39 = vadd.f32 %v5389_v52, %v5287_v46 }
0x47fb   :  { %9888 = vtanh.f32 %v5391_v39 }
0x47fc   :  { %9890 = vpow2.f32 %v8036_v14  ;;  %v8047_v14 = vld [vmem:[%s11758_s1 + $0x1a8] sm:$0xff] }
0x4805   :  { %v9889_v41 = vpop.eup %9888 }
0x4806   :  { %v5393_v43 = vsub.f32 %v5176_v17, %v9889_v41  ;;  %v9891_v12 = vpop.eup %9890 }
0x4807   :  { %v5376_v23 = vadd.f32 1.0, %v9891_v12  ;;  %v8049_v12 = vld [vmem:[%s11758_s1 + $0x1b8] sm:$0xff] }
0x4808   :  { %5395 = vrot.lane.b32.xlu1 %v5393_v43, %s10048_s0 }
0x4809   :  { %9892 = vrcp.f32 %v5376_v23 }
0x4813   :  { %v9893_v21 = vpop.eup %9892 }
0x4814   :  { %v5046_v45 = vpop.permute.xlu1 %5045 }
0x4815   :  { %v5048_v48 = vmul.f32 %v9881_v28, %v5046_v45 }
0x4817   :  { %5050 = vrot.lane.b32.xlu0 %v5048_v48, %s10049_s14  ;;  %v8042_v48 = vld [vmem:[%s11758_s1 + $0x180] sm:$0xff] }
0x4818   :  { %v9400_v23 = vpack.c.bf16 %v8044_v56, %v8042_v48 }
0x487a   :  { %v5396_v63 = vpop.permute.xlu1 %5395 }
0x487b   :  { %v5398_v2 = vmul.f32 %v9893_v21, %v5396_v63  ;;  %v9402_v21 = vpack.c.bf16 %v8049_v12, %v8047_v14  ;;  %v8046_v63 = vld [vmem:[%s11758_s1 + $0x1a0] sm:$0xff] }
0x487d   :  { %5400 = vrot.lane.b32.xlu1 %v5398_v2, %s10049_s14  ;;  %v8048_v2 = vld [vmem:[%s11758_s1 + $0x1b0] sm:$0xff] }
0x4889   :  { %v5051_v7 = vpop.permute.xlu0 %5050 }
0x488a   :  { %v5053_v8 = vadd.f32 %v9887_v53, %v5051_v7  ;;  %v9398_v53 = vpack.c.bf16 %v8045_v49, %v8043_v4 }
0x488c   :  { %5055 = vrot.lane.b32.xlu0 %v5053_v8, %s10047_s13 }
0x48ef   :  { %v5401_v18 = vpop.permute.xlu1 %5400 }
0x48f0   :  { %v5403_v6 = vadd.f32 %v9889_v41, %v5401_v18  ;;  %v8053_v18 = vld [vmem:[%s11758_s1 + $0x1d8] sm:$0xff] }
0x48f2   :  { %5404 = vst.msk [vmem:[#allocation2 + $0x8] sm:$0xff] %vm308_vm2, %v5403_v6  ;;  %5516 = vrot.lane.b32.xlu0 %v5403_v6, %s10048_s0 }
0x48fe   :  { %v5056_v51 = vpop.permute.xlu0 %5055 }
0x48ff   :  { %5058 = vst.msk [vmem:[#allocation2 + $0x28] sm:$0xff] %vm272_vm3, %v5056_v51  ;;  %8863 = vmatmul.mubr.msk.f32.vlgmr.msra.gmra.mrb[58].mxu1 %vm272_vm3, %v5056_v51 }
0x4900   :  { %9388 = vmatpush3.bf16.msra.mxu1 %v11017_v37  ;;  %8884 = vmatprep.mubr.msk.f32.mxu1 %vm10051_vm1, %v10046_v3 }
0x4901   :  { %9389 = vmatprep.subr.bf16.mxu1 %v10050_v34 }
0x4904   :  { %9391 = vmatpush3.bf16.msra.mxu1 %v11023_v54 }
0x4905   :  { %9399 = vmatprep.subr.bf16.mxu1 %v9398_v53 }
0x4964   :  { %v5517_v44 = vpop.permute.xlu0 %5516 }
0x4965   :  { %8896 = vmatmul.mubr.msk.f32.vlgmr.msra.gmra.mrb[68].mxu0 %vm272_vm3, %v5517_v44  ;;  %v8050_v44 = vld [vmem:[%s11758_s1 + $0x1c0] sm:$0xff] }
0x4966   :  { %8906 = vmatprep.mubr.msk.f32.mxu0 %vm10051_vm1, %v10046_v3 }
0x49d2   :  { %v5247_v10 = vpop.f32.mrb[58].mxu1 }
0x49d3   :  { %v5258_v13 = vadd.f32 %v5247_v10, %v11001_v5  ;;  %v8864_v55 = vpop.f32.mrb[59].mxu1  ;;  %v5251_v37 = vadd.f32 %v5247_v10, %v10995_v9  ;;  %v8052_v10 = vld [vmem:[%s11758_s1 + $0x1d0] sm:$0xff] }
0x49d4   :  { %v8057_v55 = vld [vmem:[%s11758_s1 + $0x1f8] sm:$0xff] }
0x49d5   :  { %5260 = vrot.lane.b32.xlu1 %v5258_v13, %s10047_s13  ;;  %v8033_v15 = vmul.f32 -1.442695, %v5251_v37  ;;  %v8055_v13 = vld [vmem:[%s11758_s1 + $0x1e8] sm:$0xff]  ;;  %v9408_v37 = vpack.c.bf16 %v8052_v10, %v8050_v44 }
0x49d7   :  { %9894 = vpow2.f32 %v8033_v15  ;;  %v9410_v15 = vpack.c.bf16 %v8057_v55, %v8055_v13 }
0x49e1   :  { %v9895_v50 = vpop.eup %9894 }
0x49e2   :  { %v5255_v16 = vadd.f32 1.0, %v9895_v50  ;;  %v8054_v50 = vld [vmem:[%s11758_s1 + $0x1e0] sm:$0xff] }
0x49e4   :  { %9896 = vrcp.f32 %v5255_v16 }
0x49ee   :  { %v9897_v17 = vpop.eup %9896 }
0x4a38   :  { %v5586_v47 = vpop.f32.mrb[68].mxu0 }
0x4a39   :  { %v8897_v54 = vpop.f32.mrb[69].mxu0  ;;  %5591 = vrot.lane.b32.xlu1 %v5586_v47, %s10048_s0  ;;  %v5608_v57 = vadd.f32 %v5586_v47, %v11071_v11  ;;  %v8056_v47 = vld [vmem:[%s11758_s1 + $0x1f0] sm:$0xff] }
0x4a3a   :  { %v9412_v16 = vpack.c.bf16 %v8056_v47, %v8054_v50 }
0x4a47   :  { %v5261_v19 = vpop.permute.xlu1 %5260 }
0x4a48   :  { %v5263_v20 = vmul.f32 %v9897_v17, %v5261_v19 }
0x4a4a   :  { %5265 = vrot.lane.b32.xlu0 %v5263_v20, %s10047_s13  ;;  %v5650_v20 = vld [vmem:[#allocation2 + $0x8] sm:$0xff] }
0x4a4e   :  { %5610 = vrot.lane.b32.xlu0 %v5608_v57, %s10049_s14  ;;  %v5651_v57 = vld [vmem:[#allocation2 + $0x10] sm:$0xff] }
0x4aab   :  { %v5592_v22 = vpop.permute.xlu1 %5591 }
0x4aac   :  { %v5594_v24 = vadd.f32 %v5592_v22, %v5513_v59  ;;  %v5595_v33 = vadd.f32 %v5592_v22, %v5514_v62  ;;  %v5652_v59 = vld [vmem:[#allocation2 + $0x18] sm:$0xff]  ;;  %v5653_v22 = vld [vmem:[#allocation2 + $0x20] sm:$0xff] }
0x4aae   :  { %v8040_v25 = vmul.f32 -1.442695, %v5594_v24  ;;  %v8041_v32 = vmul.f32 -1.442695, %v5595_v33  ;;  %v5654_v24 = vld [vmem:[#allocation2 + $0x28] sm:$0xff] }
0x4ab0   :  { %9898 = vpow2.f32 %v8040_v25 }
0x4aba   :  { %v9899_v58 = vpop.eup %9898 }
0x4abb   :  { %v5602_v26 = vadd.f32 1.0, %v9899_v58 }
0x4abc   :  { %v5266_v61 = vpop.permute.xlu0 %5265 }
0x4abd   :  { %9900 = vrcp.f32 %v5602_v26  ;;  %v5268_v60 = vadd.f32 %v5266_v61, %v10995_v9 }
0x4abf   :  { %9902 = vtanh.f32 %v5268_v60  ;;  %v8058_v60 = vld [vmem:[%s11761_s2 + $0x6] sm:$0x3] }
0x4ac0   :  { %v5611_v28 = vpop.permute.xlu0 %5610 }
0x4ac7   :  { %v9901_v27 = vpop.eup %9900 }
0x4ac8   :  { %v5613_v29 = vmul.f32 %v9901_v27, %v5611_v28  ;;  %v11336_v27 = vrot.slane %v8058_v60, %v10207_v36  ;;  %v11339_v28 = vrot.slane %v8058_v60, %v10212_v38 }
0x4ac9   :  { %v9903_v40 = vpop.eup %9902 }
0x4aca   :  { %5615 = vrot.lane.b32.xlu0 %v5613_v29, %s10047_s13  ;;  %v5270_v11 = vsub.f32 %v5053_v8, %v9903_v40  ;;  %v8051_v8 = vld [vmem:[%s11758_s1 + $0x1c8] sm:$0xff] }
0x4acb   :  { %v9406_v51 = vpack.c.bf16 %v8053_v18, %v8051_v8  ;;  %v5405_v18 = vld [vmem:[#allocation3 + $0x70] sm:$0xff] }
0x4acc   :  { %5272 = vrot.lane.b32.xlu1 %v5270_v11, %s10048_s0 }
0x4b3c   :  { %v5616_v30 = vpop.permute.xlu0 %5615 }
0x4b3d   :  { %v5618_v0 = vadd.f32 %v5616_v30, %v5514_v62 }
0x4b3e   :  { %v5273_v31 = vpop.permute.xlu1 %5272 }
0x4b3f   :  { %9904 = vtanh.f32 %v5618_v0  ;;  %v5275_v1 = vmul.f32 %v9897_v17, %v5273_v31 }
0x4b40   :  { %9906 = vpow2.f32 %v8041_v32 }
0x4b41   :  { %5277 = vrot.lane.b32.xlu1 %v5275_v1, %s10049_s14 }
0x4b49   :  { %v9905_v42 = vpop.eup %9904 }
0x4b4a   :  { %v5620_v9 = vsub.f32 %v5403_v6, %v9905_v42  ;;  %v9907_v35 = vpop.eup %9906  ;;  %v9404_v6 = vpack.c.bf16 %v8048_v2, %v8046_v63  ;;  %v11378_v2 = vld [vmem:[%s11759_s4 + $0x3] ss:$0 sm:$0xff] }
0x4b4b   :  { %v5603_v46 = vadd.f32 1.0, %v9907_v35 }
0x4b4c   :  { %5622 = vrot.lane.b32.xlu0 %v5620_v9, %s10048_s0 }
0x4b4d   :  { %9908 = vrcp.f32 %v5603_v46 }
0x4b57   :  { %v9909_v41 = vpop.eup %9908 }
0x4bb3   :  { %v5278_v52 = vpop.permute.xlu1 %5277 }
0x4bb4   :  { %v11264_v39 = vadd.f32 %v9903_v40, %v5278_v52 }
0x4bb6   :  { %5282 = vrot.lane.b32.xlu1 %v11264_v39, %s10047_s13 }
0x4bbe   :  { %v5623_v43 = vpop.permute.xlu0 %5622 }
0x4bbf   :  { %v5625_v45 = vmul.f32 %v9909_v41, %v5623_v43 }
0x4bc1   :  { %5627 = vrot.lane.b32.xlu0 %v5625_v45, %s10049_s14 }
0x4c28   :  { %v5283_v7 = vpop.permute.xlu1 %5282 }
0x4c29   :  { %5285 = vst.msk [vmem:[#allocation2 + $0x30] sm:$0xff] %vm272_vm3, %v5283_v7  ;;  %8885 = vmatmul.mubr.msk.f32.vlgmr.msra.gmra.mrb[60].mxu1 %vm272_vm3, %v5283_v7 }
0x4c2a   :  { %9401 = vmatpush1.bf16.msra.mxu1 %v9400_v23  ;;  %5758 = vmatprep.mubr.f32.mxu1 %v10046_v3 }
0x4c2b   :  { %9403 = vmatprep.subr.bf16.mxu1 %v9402_v21 }
0x4c2e   :  { %9405 = vmatpush1.bf16.msra.mxu1 %v9404_v6 }
0x4c2f   :  { %9407 = vmatprep.subr.bf16.mxu1 %v9406_v51 }
0x4c30   :  { %v5655_v25 = vld [vmem:[#allocation2 + $0x30] sm:$0xff] }
0x4c32   :  { %9409 = vmatpush1.bf16.msra.mxu1 %v9408_v37 }
0x4c33   :  { %v5628_v54 = vpop.permute.xlu0 %5627  ;;  %9411 = vmatprep.subr.bf16.mxu1 %v9410_v15 }
0x4c34   :  { %v5630_v17 = vadd.f32 %v9905_v42, %v5628_v54 }
0x4c36   :  { %5631 = vst.msk [vmem:[#allocation2] sm:$0xff] %vm308_vm2, %v5630_v17  ;;  %9413 = vmatpush1.bf16.msra.mxu1 %v9412_v16 }
0x4c37   :  { %9444 = vmatprep.subr.bf16.mxu1 %v10050_v34 }
0x4c3d   :  { %v5649_v19 = vld [vmem:[#allocation2] sm:$0xff] }
0x4c3e   :  { %8059 = vmatmul.mubr.msk.f32.vlgmr.msra.gmra.mrb[62].mxu1 %vm74_vm0, %v5649_v19 }
0x4c3f   :  { %5764 = vmatprep.mubr.f32.mxu1 %v10046_v3 }
0x4c42   :  { %8060 = vmatmul.mubr.msk.f32.gmra.mrb[64].mxu1 %vm74_vm0, %v5650_v20 }
0x4c43   :  { %5770 = vmatprep.mubr.f32.mxu1 %v10046_v3 }
0x4c46   :  { %8061 = vmatmul.mubr.msk.f32.gmra.mrb[66].mxu1 %vm74_vm0, %v5651_v57 }
0x4c47   :  { %5776 = vmatprep.mubr.f32.mxu1 %v10046_v3 }
0x4c4a   :  { %8062 = vmatmul.mubr.msk.f32.gmra.mrb[68].mxu1 %vm74_vm0, %v5652_v59  ;;  %v8067_v59 = vld [vmem:[%s11762_s3 + $0xc0] sm:$0xff] }
0x4c4b   :  { %5782 = vmatprep.mubr.f32.mxu1 %v10046_v3 }
0x4c4e   :  { %8063 = vmatmul.mubr.msk.f32.gmra.mrb[70].mxu1 %vm74_vm0, %v5653_v22  ;;  %v8068_v22 = vld [vmem:[%s11762_s3 + $0xc8] sm:$0xff] }
0x4c4f   :  { %5788 = vmatprep.mubr.f32.mxu1 %v10046_v3 }
0x4c52   :  { %8064 = vmatmul.mubr.msk.f32.gmra.mrb[72].mxu1 %vm74_vm0, %v5654_v24  ;;  %v8069_v24 = vld [vmem:[%s11762_s3 + $0xd0] sm:$0xff] }
0x4c53   :  { %5794 = vmatprep.mubr.f32.mxu1 %v10046_v3 }
0x4c56   :  { %8065 = vmatmul.mubr.msk.f32.gmra.mrb[74].mxu1 %vm74_vm0, %v5655_v25  ;;  %v11397_v25 = vpack.c.bf16 %v8068_v22, %v8067_v59 }
0x4c57   :  { %5800 = vmatprep.mubr.f32.mxu1 %v10046_v3 }
0x4c58   :  { %9416 = vmatpush3.bf16.msra.mxu0 %v11397_v25 }
0x4c59   :  { %9417 = vmatprep.subr.bf16.mxu0 %v10050_v34 }
0x4cfc   :  { %v5474_v58 = vpop.f32.mrb[60].mxu1 }
0x4cfd   :  { %v5485_v26 = vadd.f32 %v5474_v58, %v11001_v5  ;;  %v8886_v61 = vpop.f32.mrb[61].mxu1  ;;  %v5478_v6 = vadd.f32 %v5474_v58, %v5405_v18 }
0x4cff   :  { %5487 = vrot.lane.b32.xlu1 %v5485_v26, %s10047_s13  ;;  %v8038_v51 = vmul.f32 -1.442695, %v5478_v6 }
0x4d11   :  { %v5760_v29 = vpop.f32.mrb[62].mxu1 }
0x4d12   :  { %v5761_v40 = vadd.f32 %v5760_v29, %v11336_v27  ;;  %v5762_v11 = vpop.f32.mrb[63].mxu1 }
0x4d13   :  { %v5763_v62 = vadd.f32 %v5762_v11, %v11339_v28 }
0x4d14   :  { %5807 = vst [vmem:[#allocation3] sm:$0xff] %v5761_v40  ;;  %v8076_v5 = vmul.f32 -1.442695, %v5761_v40 }
0x4d15   :  { %5808 = vst.msk [vmem:[#allocation3 + $0x8] sm:$0xff] %vm74_vm0, %v5763_v62  ;;  %v5766_v30 = vpop.f32.mrb[64].mxu1 }
0x4d16   :  { %v11345_v0 = vadd.f32 %v5766_v30, %v11336_v27  ;;  %v5768_v31 = vpop.f32.mrb[65].mxu1  ;;  %9910 = vpow2.f32 %v8076_v5 }
0x4d17   :  { %v5769_v36 = vadd.f32 %v5768_v31, %v11339_v28 }
0x4d18   :  { %5809 = vst [vmem:[#allocation3 + $0x10] sm:$0xff] %v11345_v0 }
0x4d19   :  { %5810 = vst.msk [vmem:[#allocation3 + $0x18] sm:$0xff] %vm74_vm0, %v5769_v36  ;;  %v5772_v38 = vpop.f32.mrb[66].mxu1 }
0x4d1a   :  { %v11351_v1 = vadd.f32 %v5772_v38, %v11336_v27  ;;  %v5774_v42 = vpop.f32.mrb[67].mxu1 }
0x4d1b   :  { %v5775_v9 = vadd.f32 %v5774_v42, %v11339_v28 }
0x4d1c   :  { %5811 = vst [vmem:[#allocation3 + $0x20] sm:$0xff] %v11351_v1 }
0x4d1d   :  { %5812 = vst.msk [vmem:[#allocation3 + $0x28] sm:$0xff] %vm74_vm0, %v5775_v9  ;;  %v5778_v33 = vpop.f32.mrb[68].mxu1 }
0x4d1e   :  { %v11357_v32 = vadd.f32 %v5778_v33, %v11336_v27  ;;  %v5780_v4 = vpop.f32.mrb[69].mxu1 }
0x4d1f   :  { %v5781_v49 = vadd.f32 %v5780_v4, %v11339_v28 }
0x4d20   :  { %v9911_v53 = vpop.eup %9910 }
0x4d21   :  { %5814 = vst.msk [vmem:[#allocation3 + $0x38] sm:$0xff] %vm74_vm0, %v5781_v49  ;;  %v5784_v35 = vpop.f32.mrb[70].mxu1  ;;  %v5839_v46 = vadd.f32 1.0, %v9911_v53 }
0x4d22   :  { %v11362_v52 = vadd.f32 %v5784_v35, %v11336_v27  ;;  %v5786_v41 = vpop.f32.mrb[71].mxu1 }
0x4d23   :  { %v5787_v43 = vadd.f32 %v5786_v41, %v11339_v28  ;;  %9912 = vrcp.f32 %v5839_v46 }
0x4d24   :  { %9914 = vpow2.f32 %v8038_v51 }
0x4d25   :  { %5816 = vst.msk [vmem:[#allocation3 + $0x48] sm:$0xff] %vm74_vm0, %v5787_v43  ;;  %v5790_v45 = vpop.f32.mrb[72].mxu1 }
0x4d26   :  { %v11367_v48 = vadd.f32 %v5790_v45, %v11336_v27  ;;  %v5792_v56 = vpop.f32.mrb[73].mxu1 }
0x4d27   :  { %v5793_v14 = vadd.f32 %v5792_v56, %v11339_v28 }
0x4d29   :  { %5818 = vst.msk [vmem:[#allocation3 + $0x58] sm:$0xff] %vm74_vm0, %v5793_v14  ;;  %v5796_v12 = vpop.f32.mrb[74].mxu1 }
0x4d2a   :  { %v11372_v23 = vadd.f32 %v5796_v12, %v11336_v27  ;;  %v5798_v21 = vpop.f32.mrb[75].mxu1 }
0x4d2b   :  { %v5799_v63 = vadd.f32 %v5798_v21, %v11339_v28 }
0x4d2d   :  { %v9913_v7 = vpop.eup %9912  ;;  %5820 = vst.msk [vmem:[#allocation3 + $0x68] sm:$0xff] %vm74_vm0, %v5799_v63 }
0x4d2e   :  { %v5848_v8 = vmul.f32 %v9913_v7, %v11378_v2  ;;  %v9915_v44 = vpop.eup %9914 }
0x4d2f   :  { %v5482_v10 = vadd.f32 1.0, %v9915_v44 }
0x4d30   :  { %5850 = vrot.lane.b32.xlu1 %v5848_v8, %s10047_s13 }
0x4d31   :  { %9916 = vrcp.f32 %v5482_v10 }
0x4d3b   :  { %v9917_v13 = vpop.eup %9916 }
0x4d71   :  { %v5488_v55 = vpop.permute.xlu1 %5487 }
0x4d72   :  { %v5490_v37 = vmul.f32 %v9917_v13, %v5488_v55 }
0x4d74   :  { %5492 = vrot.lane.b32.xlu0 %v5490_v37, %s10047_s13 }
0x4da2   :  { %v5851_v15 = vpop.permute.xlu1 %5850 }
0x4da3   :  { %v5853_v50 = vadd.f32 %v5851_v15, %v5761_v40 }
0x4da5   :  { %9918 = vtanh.f32 %v5853_v50 }
0x4daf   :  { %v9919_v47 = vpop.eup %9918 }
0x4db0   :  { %5856 = vrot.lane.b32.xlu1 %v9919_v47, %s10048_s0 }
0x4de6   :  { %v5493_v16 = vpop.permute.xlu0 %5492 }
0x4de7   :  { %v5495_v54 = vadd.f32 %v5493_v16, %v5405_v18  ;;  %v8072_v16 = vld [vmem:[%s11762_s3 + $0xe8] sm:$0xff] }
0x4de9   :  { %9920 = vtanh.f32 %v5495_v54  ;;  %v8073_v54 = vld [vmem:[%s11762_s3 + $0xf0] sm:$0xff] }
0x4df3   :  { %v9921_v17 = vpop.eup %9920 }
0x4df4   :  { %v5497_v19 = vsub.f32 %v11264_v39, %v9921_v17  ;;  %v8070_v39 = vld [vmem:[%s11762_s3 + $0xd8] sm:$0xff] }
0x4df5   :  { %v11403_v58 = vpack.c.bf16 %v8070_v39, %v8069_v24 }
0x4df6   :  { %5499 = vrot.lane.b32.xlu0 %v5497_v19, %s10048_s0  ;;  %v8074_v19 = vld [vmem:[%s11762_s3 + $0xf8] sm:$0xff] }
0x4df7   :  { %9419 = vmatpush3.bf16.msra.mxu0 %v11403_v58 }
0x4df8   :  { %9420 = vmatprep.subr.bf16.mxu0 %v10050_v34 }
0x4e22   :  { %v5857_v20 = vpop.permute.xlu1 %5856 }
0x4e23   :  { %v5859_v57 = vmul.f32 %v9913_v7, %v5857_v20  ;;  %v11455_v20 = vpack.c.bf16 %v8074_v19, %v8073_v54 }
0x4e25   :  { %5861 = vrot.lane.b32.xlu1 %v5859_v57, %s10049_s14 }
0x4e68   :  { %v5500_v26 = vpop.permute.xlu0 %5499 }
0x4e69   :  { %v5502_v61 = vmul.f32 %v9917_v13, %v5500_v26 }
0x4e6b   :  { %5504 = vrot.lane.b32.xlu0 %v5502_v61, %s10049_s14 }
0x4e97   :  { %v5862_v60 = vpop.permute.xlu1 %5861 }
0x4e98   :  { %v5864_v29 = vsub.f32 %v9919_v47, %v5862_v60 }
0x4e9a   :  { %5866 = vrot.lane.b32.xlu1 %v5864_v29, %s10047_s13 }
0x4edd   :  { %v5505_v40 = vpop.permute.xlu0 %5504 }
0x4ede   :  { %v5507_v11 = vadd.f32 %v9921_v17, %v5505_v40 }
0x4ee0   :  { %5509 = vrot.lane.b32.xlu0 %v5507_v11, %s10047_s13 }
0x4ee4   :  { %5884 = vrot.lane.b32.xlu0 %v11378_v2, %s10047_s13 }
0x4f0c   :  { %v5867_v62 = vpop.permute.xlu1 %5866 }
0x4f0d   :  { %5869 = vst.msk [vmem:[#allocation2] sm:$0xff] %vm272_vm3, %v5867_v62  ;;  %8907 = vmatmul.mubr.msk.f32.vlgmr.msra.gmra.mrb[70].mxu0 %vm272_vm3, %v5867_v62 }
0x4f0e   :  { %8917 = vmatprep.mubr.msk.f32.mxu0 %vm10051_vm1, %v10046_v3 }
0x4f52   :  { %v5510_v5 = vpop.permute.xlu0 %5509 }
0x4f53   :  { %5512 = vst.msk [vmem:[#allocation2 + $0x38] sm:$0xff] %vm272_vm3, %v5510_v5 }
0x4f56   :  { %v11421_v31 = vpop.permute.xlu0 %5884 }
0x4f5a   :  { %v5656_v30 = vld [vmem:[#allocation2 + $0x38] sm:$0xff] }
0x4f5b   :  { %8066 = vmatmul.mubr.msk.f32.gmra.mrb[76].mxu1 %vm74_vm0, %v5656_v30 }
0x4f5c   :  { %8961 = vmatprep.mubr.msk.f32.mxu1 %vm10051_vm1, %v10046_v3 }
0x4fe0   :  { %v5974_v36 = vpop.f32.mrb[70].mxu0 }
0x4fe1   :  { %v5985_v38 = vadd.f32 %v5974_v36, %v11421_v31  ;;  %v8908_v42 = vpop.f32.mrb[71].mxu0  ;;  %v5978_v35 = vadd.f32 %v5974_v36, %v11345_v0 }
0x4fe3   :  { %5987 = vrot.lane.b32.xlu1 %v5985_v38, %s10047_s13  ;;  %v8081_v46 = vmul.f32 -1.442695, %v5978_v35 }
0x502e   :  { %v5802_v9 = vpop.f32.mrb[76].mxu1 }
0x502f   :  { %v11426_v33 = vadd.f32 %v5802_v9, %v11336_v27  ;;  %v5804_v4 = vpop.f32.mrb[77].mxu1 }
0x5030   :  { %v5805_v49 = vadd.f32 %v5804_v4, %v11339_v28 }
0x5031   :  { %5821 = vst [vmem:[#allocation3 + $0x70] sm:$0xff] %v11426_v33  ;;  %v8078_v53 = vmul.f32 -1.442695, %v11426_v33 }
0x5032   :  { %5822 = vst.msk [vmem:[#allocation3 + $0x78] sm:$0xff] %vm74_vm0, %v5805_v49 }
0x5033   :  { %9922 = vpow2.f32 %v8078_v53 }
0x5034   :  { %9924 = vpow2.f32 %v8081_v46 }
0x5039   :  { %v5871_v63 = vld [vmem:[#allocation3 + $0x78] sm:$0xff] }
0x503a   :  { %v8079_v13 = vmul.f32 -1.442695, %v5871_v63 }
0x503d   :  { %v9923_v41 = vpop.eup %9922 }
0x503e   :  { %v5878_v43 = vadd.f32 1.0, %v9923_v41  ;;  %v9925_v45 = vpop.eup %9924 }
0x503f   :  { %v5982_v27 = vadd.f32 1.0, %v9925_v45 }
0x5040   :  { %9926 = vrcp.f32 %v5878_v43 }
0x5041   :  { %9928 = vrcp.f32 %v5982_v27 }
0x504a   :  { %v9927_v56 = vpop.eup %9926 }
0x504b   :  { %v5887_v28 = vmul.f32 %v9927_v56, %v11421_v31  ;;  %v9929_v14 = vpop.eup %9928 }
0x504d   :  { %5889 = vrot.lane.b32.xlu0 %v5887_v28, %s10047_s13 }
0x5055   :  { %v5988_v12 = vpop.permute.xlu1 %5987 }
0x5056   :  { %v5990_v21 = vmul.f32 %v9929_v14, %v5988_v12 }
0x5058   :  { %5992 = vrot.lane.b32.xlu1 %v5990_v21, %s10047_s13 }
0x50bf   :  { %v5890_v7 = vpop.permute.xlu0 %5889 }
0x50c0   :  { %v5892_v8 = vadd.f32 %v5890_v7, %v5871_v63  ;;  %v6014_v63 = vld [vmem:[#allocation3 + $0x68] sm:$0xff] }
0x50c2   :  { %9930 = vtanh.f32 %v5892_v8 }
0x50ca   :  { %v5993_v18 = vpop.permute.xlu1 %5992 }
0x50cb   :  { %v5995_v6 = vadd.f32 %v5993_v18, %v11345_v0  ;;  %v8071_v0 = vld [vmem:[%s11762_s3 + $0xe0] sm:$0xff] }
0x50cc   :  { %v9931_v51 = vpop.eup %9930  ;;  %v11449_v17 = vpack.c.bf16 %v8072_v16, %v8071_v0 }
0x50cd   :  { %9932 = vtanh.f32 %v5995_v6  ;;  %5895 = vrot.lane.b32.xlu0 %v9931_v51, %s10048_s0 }
0x50ce   :  { %9934 = vpow2.f32 %v8079_v13  ;;  %9422 = vmatpush3.bf16.msra.mxu0 %v11449_v17  ;;  %9446 = vmatpush3.bf16.msra.mxu1 %v11449_v17 }
0x50cf   :  { %9423 = vmatprep.subr.bf16.mxu0 %v10050_v34  ;;  %9447 = vmatprep.subr.bf16.mxu1 %v10050_v34 }
0x50d2   :  { %9425 = vmatpush3.bf16.msra.mxu0 %v11455_v20  ;;  %9449 = vmatpush3.bf16.msra.mxu1 %v11455_v20 }
0x50d3   :  { %9426 = vmatprep.subr.bf16.mxu0 %v10050_v34  ;;  %9456 = vmatprep.subr.bf16.mxu1 %v10050_v34 }
0x50d7   :  { %v9933_v44 = vpop.eup %9932 }
0x50d8   :  { %v5997_v10 = vsub.f32 %v5864_v29, %v9933_v44  ;;  %v9935_v55 = vpop.eup %9934 }
0x50d9   :  { %v5879_v37 = vadd.f32 1.0, %v9935_v55 }
0x50da   :  { %5999 = vrot.lane.b32.xlu1 %v5997_v10, %s10048_s0 }
0x50db   :  { %9936 = vrcp.f32 %v5879_v37 }
0x50e5   :  { %v9937_v15 = vpop.eup %9936 }
0x513f   :  { %v5896_v50 = vpop.permute.xlu0 %5895 }
0x5140   :  { %v5898_v47 = vmul.f32 %v9937_v15, %v5896_v50 }
0x5142   :  { %5900 = vrot.lane.b32.xlu0 %v5898_v47, %s10049_s14 }
0x514c   :  { %v6000_v57 = vpop.permute.xlu1 %5999 }
0x514d   :  { %v6002_v59 = vmul.f32 %v9929_v14, %v6000_v57 }
0x514f   :  { %6004 = vrot.lane.b32.xlu1 %v6002_v59, %s10049_s14 }
0x51b4   :  { %v5901_v22 = vpop.permute.xlu0 %5900 }
0x51b5   :  { %v11465_v24 = vsub.f32 %v9931_v51, %v5901_v22 }
0x51b7   :  { %5904 = vst.msk [vmem:[#allocation2 + $0x38] sm:$0xff] %vm308_vm2, %v11465_v24  ;;  %6016 = vrot.lane.b32.xlu0 %v11465_v24, %s10048_s0 }
0x51bb   :  { %6108 = vrot.lane.b32.xlu0 %v11378_v2, %s10049_s14 }
0x51c1   :  { %v6005_v39 = vpop.permute.xlu1 %6004 }
0x51c2   :  { %v6007_v26 = vadd.f32 %v9933_v44, %v6005_v39 }
0x51c4   :  { %6009 = vrot.lane.b32.xlu1 %v6007_v26, %s10047_s13 }
0x5229   :  { %v6017_v61 = vpop.permute.xlu0 %6016 }
0x522a   :  { %8918 = vmatmul.mubr.msk.f32.vlgmr.msra.gmra.mrb[72].mxu0 %vm272_vm3, %v6017_v61 }
0x522b   :  { %9428 = vmatpush3.bf16.msra.mxu0 %v11397_v25  ;;  %8928 = vmatprep.mubr.msk.f32.mxu0 %vm10051_vm1, %v10046_v3 }
0x522c   :  { %9429 = vmatprep.subr.bf16.mxu0 %v10050_v34 }
0x522d   :  { %v11489_v2 = vpop.permute.xlu0 %6108 }
0x522f   :  { %9431 = vmatpush3.bf16.msra.mxu0 %v11403_v58 }
0x5230   :  { %9432 = vmatprep.subr.bf16.mxu0 %v10050_v34 }
0x5236   :  { %v6010_v60 = vpop.permute.xlu1 %6009 }
0x5237   :  { %6012 = vst.msk [vmem:[#allocation2 + $0x8] sm:$0xff] %vm272_vm3, %v6010_v60  ;;  %8929 = vmatmul.mubr.msk.f32.vlgmr.msra.gmra.mrb[74].mxu0 %vm272_vm3, %v6010_v60 }
0x5238   :  { %9434 = vmatpush3.bf16.msra.mxu0 %v11449_v17  ;;  %8939 = vmatprep.mubr.msk.f32.mxu0 %vm10051_vm1, %v10046_v3 }
0x5239   :  { %9435 = vmatprep.subr.bf16.mxu0 %v10050_v34 }
0x523c   :  { %9437 = vmatpush3.bf16.msra.mxu0 %v11455_v20 }
0x523d   :  { %9438 = vmatprep.subr.bf16.mxu0 %v10050_v34 }
0x52fd   :  { %v6086_v29 = vpop.f32.mrb[72].mxu0 }
0x52fe   :  { %6091 = vrot.lane.b32.xlu1 %v6086_v29, %s10048_s0  ;;  %v8919_v40 = vpop.f32.mrb[73].mxu0  ;;  %v6111_v11 = vadd.f32 %v11489_v2, %v6086_v29 }
0x5300   :  { %6113 = vrot.lane.b32.xlu0 %v6111_v11, %s10049_s14 }
0x530a   :  { %v6204_v62 = vpop.f32.mrb[74].mxu0 }
0x530b   :  { %v6215_v5 = vadd.f32 %v6204_v62, %v11421_v31  ;;  %v8930_v30 = vpop.f32.mrb[75].mxu0  ;;  %v6208_v36 = vadd.f32 %v6204_v62, %v11351_v1 }
0x530d   :  { %6217 = vrot.lane.b32.xlu1 %v6215_v5, %s10047_s13  ;;  %v8086_v38 = vmul.f32 -1.442695, %v6208_v36 }
0x530f   :  { %9938 = vpow2.f32 %v8086_v38 }
0x5319   :  { %v9939_v42 = vpop.eup %9938 }
0x531a   :  { %v6212_v9 = vadd.f32 1.0, %v9939_v42 }
0x531c   :  { %9940 = vrcp.f32 %v6212_v9 }
0x5326   :  { %v9941_v35 = vpop.eup %9940 }
0x5370   :  { %v6092_v4 = vpop.permute.xlu1 %6091 }
0x5371   :  { %v6094_v49 = vadd.f32 %v6092_v4, %v11372_v23  ;;  %v6095_v44 = vadd.f32 %v6092_v4, %v6014_v63 }
0x5372   :  { %v6114_v56 = vpop.permute.xlu0 %6113 }
0x5373   :  { %v8083_v53 = vmul.f32 -1.442695, %v6094_v49  ;;  %v8084_v10 = vmul.f32 -1.442695, %v6095_v44 }
0x5375   :  { %9942 = vpow2.f32 %v8083_v53 }
0x537f   :  { %v9943_v46 = vpop.eup %9942  ;;  %v6218_v41 = vpop.permute.xlu1 %6217 }
0x5380   :  { %v6102_v43 = vadd.f32 1.0, %v9943_v46  ;;  %v6220_v45 = vmul.f32 %v9941_v35, %v6218_v41 }
0x5382   :  { %9944 = vrcp.f32 %v6102_v43  ;;  %6222 = vrot.lane.b32.xlu1 %v6220_v45, %s10047_s13 }
0x538c   :  { %v9945_v27 = vpop.eup %9944 }
0x538d   :  { %v6116_v28 = vmul.f32 %v9945_v27, %v6114_v56  ;;  %v6244_v56 = vld [vmem:[#allocation3 + $0x58] sm:$0xff] }
0x538f   :  { %6118 = vrot.lane.b32.xlu0 %v6116_v28, %s10047_s13 }
0x53f4   :  { %v6223_v14 = vpop.permute.xlu1 %6222 }
0x53f5   :  { %v6225_v12 = vadd.f32 %v6223_v14, %v11351_v1 }
0x53f7   :  { %9946 = vtanh.f32 %v6225_v12 }
0x5401   :  { %v9947_v21 = vpop.eup %9946  ;;  %v6119_v7 = vpop.permute.xlu0 %6118 }
0x5402   :  { %v6121_v8 = vadd.f32 %v6119_v7, %v6014_v63  ;;  %v6227_v18 = vsub.f32 %v6007_v26, %v9947_v21 }
0x5404   :  { %9948 = vtanh.f32 %v6121_v8  ;;  %6229 = vrot.lane.b32.xlu1 %v6227_v18, %s10048_s0 }
0x5405   :  { %9950 = vpow2.f32 %v8084_v10 }
0x540e   :  { %v9949_v6 = vpop.eup %9948 }
0x540f   :  { %v6123_v51 = vsub.f32 %v11465_v24, %v9949_v6  ;;  %v9951_v13 = vpop.eup %9950 }
0x5410   :  { %v6103_v55 = vadd.f32 1.0, %v9951_v13 }
0x5411   :  { %6125 = vrot.lane.b32.xlu0 %v6123_v51, %s10048_s0 }
0x5412   :  { %9952 = vrcp.f32 %v6103_v55 }
0x541c   :  { %v9953_v15 = vpop.eup %9952 }
0x5476   :  { %v6230_v1 = vpop.permute.xlu1 %6229 }
0x5477   :  { %v6232_v37 = vmul.f32 %v9941_v35, %v6230_v1 }
0x5479   :  { %6234 = vrot.lane.b32.xlu1 %v6232_v37, %s10049_s14 }
0x5483   :  { %v6126_v50 = vpop.permute.xlu0 %6125 }
0x5484   :  { %v6128_v47 = vmul.f32 %v9953_v15, %v6126_v50 }
0x5486   :  { %6130 = vrot.lane.b32.xlu0 %v6128_v47, %s10049_s14 }
0x54eb   :  { %v6235_v0 = vpop.permute.xlu1 %6234 }
0x54ec   :  { %v6237_v16 = vadd.f32 %v9947_v21, %v6235_v0 }
0x54ee   :  { %6239 = vrot.lane.b32.xlu1 %v6237_v16, %s10047_s13 }
0x54f8   :  { %v6131_v54 = vpop.permute.xlu0 %6130 }
0x54f9   :  { %v6133_v19 = vadd.f32 %v9949_v6, %v6131_v54 }
0x54fb   :  { %6134 = vst.msk [vmem:[#allocation2 + $0x30] sm:$0xff] %vm308_vm2, %v6133_v19  ;;  %6246 = vrot.lane.b32.xlu0 %v6133_v19, %s10048_s0 }
0x5560   :  { %v6240_v57 = vpop.permute.xlu1 %6239 }
0x5561   :  { %6242 = vst.msk [vmem:[#allocation2 + $0x10] sm:$0xff] %vm272_vm3, %v6240_v57 }
0x556d   :  { %v6247_v59 = vpop.permute.xlu0 %6246 }
0x556e   :  { %8940 = vmatmul.mubr.msk.f32.vlgmr.msra.gmra.mrb[76].mxu0 %vm272_vm3, %v6247_v59 }
0x556f   :  { %9440 = vmatpush3.bf16.msra.mxu0 %v11397_v25  ;;  %8950 = vmatprep.mubr.msk.f32.mxu0 %vm10051_vm1, %v10046_v3 }
0x5570   :  { %9441 = vmatprep.subr.bf16.mxu0 %v10050_v34 }
0x5573   :  { %9443 = vmatpush3.bf16.msra.mxu0 %v11403_v58 }
0x5574   :  { %9450 = vmatprep.subr.bf16.mxu0 %v10050_v34 }
0x5576   :  { %8951 = vmatmul.mubr.msk.f32.vlgmr.msra.gmra.mrb[78].mxu0 %vm272_vm3, %v6240_v57 }
0x5577   :  { %9452 = vmatpush3.bf16.msra.mxu0 %v11397_v25  ;;  %8972 = vmatprep.mubr.msk.f32.mxu0 %vm10051_vm1, %v10046_v3 }
0x5578   :  { %9453 = vmatprep.subr.bf16.mxu0 %v10050_v34 }
0x557b   :  { %9455 = vmatpush3.bf16.msra.mxu0 %v11403_v58 }
0x557c   :  { %9462 = vmatprep.subr.bf16.mxu0 %v10050_v34 }
0x5641   :  { %v6316_v22 = vpop.f32.mrb[76].mxu0 }
0x5642   :  { %6321 = vrot.lane.b32.xlu1 %v6316_v22, %s10048_s0  ;;  %v8941_v24 = vpop.f32.mrb[77].mxu0  ;;  %v6338_v39 = vadd.f32 %v6316_v22, %v11489_v2 }
0x5646   :  { %6340 = vrot.lane.b32.xlu1 %v6338_v39, %s10049_s14 }
0x5649   :  { %v6431_v26 = vpop.f32.mrb[78].mxu0 }
0x564a   :  { %v6442_v61 = vadd.f32 %v6431_v26, %v11421_v31  ;;  %v8952_v60 = vpop.f32.mrb[79].mxu0  ;;  %v6435_v29 = vadd.f32 %v6431_v26, %v11357_v32 }
0x564c   :  { %6444 = vrot.lane.b32.xlu0 %v6442_v61, %s10047_s13  ;;  %v8091_v40 = vmul.f32 -1.442695, %v6435_v29 }
0x564e   :  { %9954 = vpow2.f32 %v8091_v40 }
0x5658   :  { %v9955_v11 = vpop.eup %9954 }
0x5659   :  { %v6439_v62 = vadd.f32 1.0, %v9955_v11 }
0x565b   :  { %9956 = vrcp.f32 %v6439_v62 }
0x5665   :  { %v9957_v38 = vpop.eup %9956 }
0x56b4   :  { %v6322_v5 = vpop.permute.xlu1 %6321 }
0x56b5   :  { %v6324_v30 = vadd.f32 %v6322_v5, %v11367_v48  ;;  %v6325_v63 = vadd.f32 %v6322_v5, %v6244_v56 }
0x56b7   :  { %v8088_v36 = vmul.f32 -1.442695, %v6324_v30  ;;  %v8089_v7 = vmul.f32 -1.442695, %v6325_v63 }
0x56b8   :  { %v6341_v35 = vpop.permute.xlu1 %6340 }
0x56b9   :  { %9958 = vpow2.f32 %v8088_v36 }
0x56be   :  { %v6445_v42 = vpop.permute.xlu0 %6444 }
0x56bf   :  { %v6447_v9 = vmul.f32 %v9957_v38, %v6445_v42 }
0x56c1   :  { %6449 = vrot.lane.b32.xlu0 %v6447_v9, %s10047_s13 }
0x56c3   :  { %v9959_v4 = vpop.eup %9958 }
0x56c4   :  { %v6332_v49 = vadd.f32 1.0, %v9959_v4 }
0x56c6   :  { %9960 = vrcp.f32 %v6332_v49 }
0x56d0   :  { %v9961_v53 = vpop.eup %9960 }
0x56d1   :  { %v6343_v46 = vmul.f32 %v9961_v53, %v6341_v35  ;;  %v6471_v35 = vld [vmem:[#allocation3 + $0x48] sm:$0xff] }
0x56d3   :  { %6345 = vrot.lane.b32.xlu0 %v6343_v46, %s10047_s13 }
0x5733   :  { %v6450_v41 = vpop.permute.xlu0 %6449 }
0x5734   :  { %v6452_v43 = vadd.f32 %v6450_v41, %v11357_v32 }
0x5736   :  { %9962 = vtanh.f32 %v6452_v43 }
0x5740   :  { %v9963_v45 = vpop.eup %9962 }
0x5741   :  { %v6454_v27 = vsub.f32 %v6237_v16, %v9963_v45 }
0x5743   :  { %6456 = vrot.lane.b32.xlu1 %v6454_v27, %s10048_s0 }
0x5745   :  { %v6346_v28 = vpop.permute.xlu0 %6345 }
0x5746   :  { %v6348_v14 = vadd.f32 %v6346_v28, %v6244_v56 }
0x5748   :  { %9964 = vtanh.f32 %v6348_v14 }
0x5749   :  { %9966 = vpow2.f32 %v8089_v7 }
0x5752   :  { %v9965_v12 = vpop.eup %9964 }
0x5753   :  { %v6350_v21 = vsub.f32 %v6133_v19, %v9965_v12  ;;  %v9967_v18 = vpop.eup %9966 }
0x5754   :  { %v6333_v51 = vadd.f32 1.0, %v9967_v18 }
0x5755   :  { %6352 = vrot.lane.b32.xlu1 %v6350_v21, %s10048_s0 }
0x5756   :  { %9968 = vrcp.f32 %v6333_v51 }
0x5760   :  { %v9969_v44 = vpop.eup %9968 }
0x57b5   :  { %v6457_v8 = vpop.permute.xlu1 %6456 }
0x57b6   :  { %v6459_v6 = vmul.f32 %v9957_v38, %v6457_v8 }
0x57b8   :  { %6461 = vrot.lane.b32.xlu0 %v6459_v6, %s10049_s14 }
0x57c7   :  { %v6353_v10 = vpop.permute.xlu1 %6352 }
0x57c8   :  { %v6355_v13 = vmul.f32 %v9969_v44, %v6353_v10 }
0x57ca   :  { %6357 = vrot.lane.b32.xlu1 %v6355_v13, %s10049_s14 }
0x582a   :  { %v6462_v55 = vpop.permute.xlu0 %6461 }
0x582b   :  { %v6464_v1 = vadd.f32 %v9963_v45, %v6462_v55 }
0x582d   :  { %6466 = vrot.lane.b32.xlu0 %v6464_v1, %s10047_s13 }
0x583c   :  { %v6358_v37 = vpop.permute.xlu1 %6357 }
0x583d   :  { %v6360_v15 = vadd.f32 %v9965_v12, %v6358_v37 }
0x583f   :  { %6361 = vst.msk [vmem:[#allocation2 + $0x28] sm:$0xff] %vm308_vm2, %v6360_v15  ;;  %6473 = vrot.lane.b32.xlu0 %v6360_v15, %s10048_s0 }
0x589f   :  { %v6467_v50 = vpop.permute.xlu0 %6466 }
0x58a0   :  { %6469 = vst.msk [vmem:[#allocation2 + $0x18] sm:$0xff] %vm272_vm3, %v6467_v50  ;;  %8973 = vmatmul.mubr.msk.f32.vlgmr.msra.gmra.mrb[80].mxu0 %vm272_vm3, %v6467_v50 }
0x58a1   :  { %9464 = vmatpush3.bf16.msra.mxu0 %v11397_v25  ;;  %8994 = vmatprep.mubr.msk.f32.mxu0 %vm10051_vm1, %v10046_v3 }
0x58a2   :  { %9465 = vmatprep.subr.bf16.mxu0 %v10050_v34 }
0x58a5   :  { %9467 = vmatpush3.bf16.msra.mxu0 %v11403_v58 }
0x58a6   :  { %9474 = vmatprep.subr.bf16.mxu0 %v10050_v34 }
0x58b1   :  { %v6474_v47 = vpop.permute.xlu0 %6473 }
0x58b2   :  { %8962 = vmatmul.mubr.msk.f32.vlgmr.msra.gmra.mrb[78].mxu1 %vm272_vm3, %v6474_v47 }
0x58b3   :  { %9458 = vmatpush3.bf16.msra.mxu1 %v11449_v17  ;;  %8983 = vmatprep.mubr.msk.f32.mxu1 %vm10051_vm1, %v10046_v3 }
0x58b4   :  { %9459 = vmatprep.subr.bf16.mxu1 %v10050_v34 }
0x58b7   :  { %9461 = vmatpush3.bf16.msra.mxu1 %v11455_v20 }
0x58b8   :  { %9468 = vmatprep.subr.bf16.mxu1 %v10050_v34 }
0x5973   :  { %v6658_v0 = vpop.f32.mrb[80].mxu0 }
0x5974   :  { %v6669_v16 = vadd.f32 %v6658_v0, %v11421_v31  ;;  %v8974_v54 = vpop.f32.mrb[81].mxu0  ;;  %v6662_v22 = vadd.f32 %v6658_v0, %v11362_v52 }
0x5976   :  { %6671 = vrot.lane.b32.xlu1 %v6669_v16, %s10047_s13  ;;  %v8096_v24 = vmul.f32 -1.442695, %v6662_v22 }
0x5978   :  { %9970 = vpow2.f32 %v8096_v24 }
0x5982   :  { %v9971_v39 = vpop.eup %9970 }
0x5983   :  { %v6666_v26 = vadd.f32 1.0, %v9971_v39 }
0x5985   :  { %v6543_v19 = vpop.f32.mrb[78].mxu1  ;;  %9972 = vrcp.f32 %v6666_v26 }
0x5986   :  { %6548 = vrot.lane.b32.xlu0 %v6543_v19, %s10048_s0  ;;  %v8963_v57 = vpop.f32.mrb[79].mxu1  ;;  %v6565_v59 = vadd.f32 %v6543_v19, %v11489_v2 }
0x598a   :  { %6567 = vrot.lane.b32.xlu0 %v6565_v59, %s10049_s14 }
0x598f   :  { %v9973_v61 = vpop.eup %9972 }
0x59e8   :  { %v6672_v60 = vpop.permute.xlu1 %6671 }
0x59e9   :  { %v6674_v29 = vmul.f32 %v9973_v61, %v6672_v60 }
0x59eb   :  { %6676 = vrot.lane.b32.xlu1 %v6674_v29, %s10047_s13 }
0x59f8   :  { %v6549_v40 = vpop.permute.xlu0 %6548 }
0x59f9   :  { %v6551_v11 = vadd.f32 %v6549_v40, %v11362_v52  ;;  %v6552_v28 = vadd.f32 %v6549_v40, %v6471_v35 }
0x59fb   :  { %v8093_v62 = vmul.f32 -1.442695, %v6551_v11  ;;  %v8094_v14 = vmul.f32 -1.442695, %v6552_v28 }
0x59fc   :  { %v6568_v38 = vpop.permute.xlu0 %6567 }
0x59fd   :  { %9974 = vpow2.f32 %v8093_v62 }
0x5a07   :  { %v9975_v5 = vpop.eup %9974 }
0x5a08   :  { %v6559_v30 = vadd.f32 1.0, %v9975_v5 }
0x5a0a   :  { %9976 = vrcp.f32 %v6559_v30 }
0x5a14   :  { %v9977_v36 = vpop.eup %9976 }
0x5a15   :  { %v6570_v42 = vmul.f32 %v9977_v36, %v6568_v38  ;;  %v6698_v36 = vld [vmem:[#allocation3 + $0x38] sm:$0xff] }
0x5a17   :  { %6572 = vrot.lane.b32.xlu0 %v6570_v42, %s10047_s13 }
0x5a5d   :  { %v6677_v9 = vpop.permute.xlu1 %6676 }
0x5a5e   :  { %v6679_v4 = vadd.f32 %v6677_v9, %v11362_v52 }
0x5a60   :  { %9978 = vtanh.f32 %v6679_v4 }
0x5a6a   :  { %v9979_v49 = vpop.eup %9978 }
0x5a6b   :  { %v6681_v53 = vsub.f32 %v6464_v1, %v9979_v49 }
0x5a6d   :  { %6683 = vrot.lane.b32.xlu1 %v6681_v53, %s10048_s0 }
0x5a89   :  { %v6573_v46 = vpop.permute.xlu0 %6572 }
0x5a8a   :  { %v6575_v41 = vadd.f32 %v6573_v46, %v6471_v35 }
0x5a8c   :  { %9980 = vtanh.f32 %v6575_v41 }
0x5a8d   :  { %9982 = vpow2.f32 %v8094_v14 }
0x5a96   :  { %v9981_v43 = vpop.eup %9980 }
0x5a97   :  { %v6577_v45 = vsub.f32 %v6360_v15, %v9981_v43  ;;  %v9983_v52 = vpop.eup %9982 }
0x5a98   :  { %v6560_v12 = vadd.f32 1.0, %v9983_v52 }
0x5a99   :  { %6579 = vrot.lane.b32.xlu0 %v6577_v45, %s10048_s0 }
0x5a9a   :  { %9984 = vrcp.f32 %v6560_v12 }
0x5aa4   :  { %v9985_v21 = vpop.eup %9984 }
0x5adf   :  { %v6684_v27 = vpop.permute.xlu1 %6683 }
0x5ae0   :  { %v6686_v56 = vmul.f32 %v9973_v61, %v6684_v27 }
0x5ae2   :  { %6688 = vrot.lane.b32.xlu1 %v6686_v56, %s10049_s14 }
0x5b0b   :  { %v6580_v63 = vpop.permute.xlu0 %6579 }
0x5b0c   :  { %v6582_v7 = vmul.f32 %v9985_v21, %v6580_v63 }
0x5b0e   :  { %6584 = vrot.lane.b32.xlu0 %v6582_v7, %s10049_s14 }
0x5b54   :  { %v6689_v8 = vpop.permute.xlu1 %6688 }
0x5b55   :  { %v6691_v18 = vadd.f32 %v9979_v49, %v6689_v8 }
0x5b57   :  { %6693 = vrot.lane.b32.xlu1 %v6691_v18, %s10047_s13 }
0x5b80   :  { %v6585_v6 = vpop.permute.xlu0 %6584 }
0x5b81   :  { %v11571_v51 = vadd.f32 %v9981_v43, %v6585_v6 }
0x5b83   :  { %6588 = vst.msk [vmem:[#allocation2 + $0x20] sm:$0xff] %vm308_vm2, %v11571_v51  ;;  %6700 = vrot.lane.b32.xlu1 %v11571_v51, %s10048_s0 }
0x5bc9   :  { %v6694_v44 = vpop.permute.xlu1 %6693 }
0x5bca   :  { %6696 = vst.msk [vmem:[#allocation2 + $0x20] sm:$0xff] %vm272_vm3, %v6694_v44  ;;  %8995 = vmatmul.mubr.msk.f32.vlgmr.msra.gmra.mrb[82].mxu0 %vm272_vm3, %v6694_v44 }
0x5bcb   :  { %9476 = vmatpush3.bf16.msra.mxu0 %v11397_v25  ;;  %9016 = vmatprep.mubr.msk.f32.mxu0 %vm10051_vm1, %v10046_v3 }
0x5bcc   :  { %9477 = vmatprep.subr.bf16.mxu0 %v10050_v34 }
0x5bcf   :  { %9479 = vmatpush3.bf16.msra.mxu0 %v11403_v58 }
0x5bd0   :  { %9486 = vmatprep.subr.bf16.mxu0 %v10050_v34 }
0x5bf5   :  { %v6701_v10 = vpop.permute.xlu1 %6700 }
0x5bf6   :  { %8984 = vmatmul.mubr.msk.f32.vlgmr.msra.gmra.mrb[80].mxu1 %vm272_vm3, %v6701_v10 }
0x5bf7   :  { %9470 = vmatpush3.bf16.msra.mxu1 %v11449_v17  ;;  %9005 = vmatprep.mubr.msk.f32.mxu1 %vm10051_vm1, %v10046_v3 }
0x5bf8   :  { %9471 = vmatprep.subr.bf16.mxu1 %v10050_v34 }
0x5bfb   :  { %9473 = vmatpush3.bf16.msra.mxu1 %v11455_v20 }
0x5bfc   :  { %9480 = vmatprep.subr.bf16.mxu1 %v10050_v34 }
0x5c9d   :  { %v6885_v13 = vpop.f32.mrb[82].mxu0 }
0x5c9e   :  { %v6896_v55 = vadd.f32 %v6885_v13, %v11421_v31  ;;  %v8996_v1 = vpop.f32.mrb[83].mxu0  ;;  %v6889_v50 = vadd.f32 %v6885_v13, %v11367_v48 }
0x5ca0   :  { %6898 = vrot.lane.b32.xlu0 %v6896_v55, %s10047_s13  ;;  %v8101_v47 = vmul.f32 -1.442695, %v6889_v50  ;;  %v10044_v50 = vld [vmem:[#allocation3 + $0x20] sm:$0xff] }
0x5ca2   :  { %9986 = vpow2.f32 %v8101_v47 }
0x5cac   :  { %v9987_v0 = vpop.eup %9986 }
0x5cad   :  { %v6893_v16 = vadd.f32 1.0, %v9987_v0 }
0x5caf   :  { %9988 = vrcp.f32 %v6893_v16 }
0x5cb9   :  { %v9989_v54 = vpop.eup %9988 }
0x5cc9   :  { %v6770_v37 = vpop.f32.mrb[80].mxu1 }
0x5cca   :  { %v8985_v15 = vpop.f32.mrb[81].mxu1  ;;  %6775 = vrot.lane.b32.xlu0 %v6770_v37, %s10048_s0  ;;  %v6792_v59 = vadd.f32 %v6770_v37, %v11489_v2 }
0x5d12   :  { %v6899_v19 = vpop.permute.xlu0 %6898 }
0x5d13   :  { %v6901_v57 = vmul.f32 %v9989_v54, %v6899_v19 }
0x5d15   :  { %6903 = vrot.lane.b32.xlu1 %v6901_v57, %s10047_s13 }
0x5d19   :  { %6794 = vrot.lane.b32.xlu1 %v6792_v59, %s10049_s14 }
0x5d3c   :  { %v6776_v22 = vpop.permute.xlu0 %6775 }
0x5d3d   :  { %v6778_v24 = vadd.f32 %v6776_v22, %v11357_v32  ;;  %v6779_v49 = vadd.f32 %v6776_v22, %v6698_v36 }
0x5d3f   :  { %v8098_v39 = vmul.f32 -1.442695, %v6778_v24  ;;  %v8099_v53 = vmul.f32 -1.442695, %v6779_v49 }
0x5d41   :  { %9990 = vpow2.f32 %v8098_v39 }
0x5d4b   :  { %v9991_v26 = vpop.eup %9990 }
0x5d4c   :  { %v6786_v61 = vadd.f32 1.0, %v9991_v26  ;;  %v6925_v26 = vld [vmem:[#allocation3 + $0x28] sm:$0xff] }
0x5d4e   :  { %9992 = vrcp.f32 %v6786_v61 }
0x5d58   :  { %v9993_v40 = vpop.eup %9992 }
0x5d87   :  { %v6904_v60 = vpop.permute.xlu1 %6903 }
0x5d88   :  { %v6906_v29 = vadd.f32 %v6904_v60, %v11367_v48 }
0x5d8a   :  { %9994 = vtanh.f32 %v6906_v29  ;;  %v7501_v29 = vld [vmem:[%s11763_s5] sm:$0xff] }
0x5d8b   :  { %v6795_v11 = vpop.permute.xlu1 %6794 }
0x5d8c   :  { %v6797_v62 = vmul.f32 %v9993_v40, %v6795_v11  ;;  %v7502_v40 = vld [vmem:[%s11763_s5 + $0x8] sm:$0xff] }
0x5d8d   :  { %v9498_v11 = vpack.c.bf16 %v7502_v40, %v7501_v29  ;;  %v7152_v29 = vld [vmem:[#allocation3 + $0x18] sm:$0xff] }
0x5d8e   :  { %6799 = vrot.lane.b32.xlu1 %v6797_v62, %s10047_s13 }
0x5d94   :  { %v9995_v5 = vpop.eup %9994 }
0x5d95   :  { %v6908_v30 = vsub.f32 %v6691_v18, %v9995_v5 }
0x5d97   :  { %6910 = vrot.lane.b32.xlu0 %v6908_v30, %s10048_s0 }
0x5e00   :  { %v6800_v32 = vpop.permute.xlu1 %6799 }
0x5e01   :  { %v6802_v38 = vadd.f32 %v6800_v32, %v6698_v36 }
0x5e03   :  { %9996 = vtanh.f32 %v6802_v38 }
0x5e04   :  { %9998 = vpow2.f32 %v8099_v53  ;;  %v7503_v53 = vld [vmem:[%s11763_s5 + $0x10] sm:$0xff] }
0x5e09   :  { %v6911_v42 = vpop.permute.xlu0 %6910 }
0x5e0a   :  { %v6913_v9 = vmul.f32 %v9989_v54, %v6911_v42 }
0x5e0c   :  { %6915 = vrot.lane.b32.xlu0 %v6913_v9, %s10049_s14 }
0x5e0d   :  { %v9997_v4 = vpop.eup %9996 }
0x5e0e   :  { %v6804_v48 = vsub.f32 %v11571_v51, %v9997_v4  ;;  %v9999_v35 = vpop.eup %9998 }
0x5e0f   :  { %v6787_v46 = vadd.f32 1.0, %v9999_v35  ;;  %v7504_v35 = vld [vmem:[%s11763_s5 + $0x18] sm:$0xff] }
0x5e10   :  { %6806 = vrot.lane.b32.xlu1 %v6804_v48, %s10048_s0 }
0x5e11   :  { %10000 = vrcp.f32 %v6787_v46  ;;  %v9502_v46 = vpack.c.bf16 %v7504_v35, %v7503_v53  ;;  %v7617_v53 = vld [vmem:[%s11764_s7] sm:$0xff]  ;;  %v7618_v35 = vld [vmem:[%s11764_s7 + $0x8] sm:$0xff] }
0x5e1b   :  { %v10001_v45 = vpop.eup %10000 }
0x5e7e   :  { %v6916_v41 = vpop.permute.xlu0 %6915 }
0x5e7f   :  { %v6918_v43 = vadd.f32 %v9995_v5, %v6916_v41 }
0x5e81   :  { %6920 = vrot.lane.b32.xlu0 %v6918_v43, %s10047_s13 }
0x5e82   :  { %v6807_v27 = vpop.permute.xlu1 %6806 }
0x5e83   :  { %v6809_v56 = vmul.f32 %v10001_v45, %v6807_v27  ;;  %v7506_v45 = vld [vmem:[%s11763_s5 + $0x28] sm:$0xff]  ;;  %v7497_v27 = vld [vmem:[#allocation2 + $0x20] sm:$0xff] }
0x5e85   :  { %6811 = vrot.lane.b32.xlu1 %v6809_v56, %s10049_s14 }
0x5ef3   :  { %v6921_v28 = vpop.permute.xlu0 %6920 }
0x5ef4   :  { %6923 = vst.msk [vmem:[#allocation2 + $0x28] sm:$0xff] %vm272_vm3, %v6921_v28  ;;  %9017 = vmatmul.mubr.msk.f32.vlgmr.msra.gmra.mrb[84].mxu0 %vm272_vm3, %v6921_v28  ;;  %v7507_v28 = vld [vmem:[%s11763_s5 + $0x30] sm:$0xff] }
0x5ef5   :  { %9488 = vmatpush3.bf16.msra.mxu0 %v11397_v25  ;;  %9038 = vmatprep.mubr.msk.f32.mxu0 %vm10051_vm1, %v10046_v3 }
0x5ef6   :  { %9489 = vmatprep.subr.bf16.mxu0 %v10050_v34 }
0x5ef7   :  { %v6812_v14 = vpop.permute.xlu1 %6811 }
0x5ef8   :  { %v6814_v52 = vadd.f32 %v9997_v4, %v6812_v14  ;;  %v7508_v14 = vld [vmem:[%s11763_s5 + $0x38] sm:$0xff] }
0x5ef9   :  { %9491 = vmatpush3.bf16.msra.mxu0 %v11403_v58 }
0x5efa   :  { %6815 = vst.msk [vmem:[#allocation2 + $0x18] sm:$0xff] %vm308_vm2, %v6814_v52  ;;  %6927 = vrot.lane.b32.xlu0 %v6814_v52, %s10048_s0  ;;  %9499 = vmatprep.subr.bf16.mxu0 %v9498_v11 }
0x5f6c   :  { %v6928_v12 = vpop.permute.xlu0 %6927 }
0x5f6d   :  { %9006 = vmatmul.mubr.msk.f32.vlgmr.msra.gmra.mrb[82].mxu1 %vm272_vm3, %v6928_v12  ;;  %v7498_v12 = vld [vmem:[#allocation2 + $0x28] sm:$0xff] }
0x5f6e   :  { %9482 = vmatpush3.bf16.msra.mxu1 %v11449_v17  ;;  %9027 = vmatprep.mubr.msk.f32.mxu1 %vm10051_vm1, %v10046_v3 }
0x5f6f   :  { %9483 = vmatprep.subr.bf16.mxu1 %v10050_v34 }
0x5f72   :  { %9485 = vmatpush3.bf16.msra.mxu1 %v11455_v20 }
0x5f73   :  { %9492 = vmatprep.subr.bf16.mxu1 %v10050_v34 }
0x5fc7   :  { %v7112_v25 = vpop.f32.mrb[84].mxu0 }
0x5fc8   :  { %v7123_v58 = vadd.f32 %v7112_v25, %v11421_v31  ;;  %v9018_v21 = vpop.f32.mrb[85].mxu0  ;;  %v7116_v63 = vadd.f32 %v7112_v25, %v11372_v23 }
0x5fca   :  { %7125 = vrot.lane.b32.xlu1 %v7123_v58, %s10047_s13  ;;  %v8106_v7 = vmul.f32 -1.442695, %v7116_v63 }
0x5fcc   :  { %10002 = vpow2.f32 %v8106_v7 }
0x5fd6   :  { %v10003_v8 = vpop.eup %10002 }
0x5fd7   :  { %v7120_v18 = vadd.f32 1.0, %v10003_v8 }
0x5fd9   :  { %10004 = vrcp.f32 %v7120_v18 }
0x5fe3   :  { %v10005_v6 = vpop.eup %10004 }
0x603c   :  { %v7126_v51 = vpop.permute.xlu1 %7125 }
0x603d   :  { %v7128_v44 = vmul.f32 %v10005_v6, %v7126_v51 }
0x603f   :  { %7130 = vrot.lane.b32.xlu0 %v7128_v44, %s10047_s13 }
0x6040   :  { %v6997_v10 = vpop.f32.mrb[82].mxu1 }
0x6041   :  { %v9007_v13 = vpop.f32.mrb[83].mxu1  ;;  %7002 = vrot.lane.b32.xlu1 %v6997_v10, %s10048_s0  ;;  %v7019_v55 = vadd.f32 %v6997_v10, %v11489_v2 }
0x6045   :  { %7021 = vrot.lane.b32.xlu1 %v7019_v55, %s10049_s14 }
0x60b1   :  { %v7131_v1 = vpop.permute.xlu0 %7130 }
0x60b2   :  { %v7133_v37 = vadd.f32 %v7131_v1, %v11372_v23 }
0x60b3   :  { %v7003_v15 = vpop.permute.xlu1 %7002 }
0x60b4   :  { %10006 = vtanh.f32 %v7133_v37  ;;  %v7005_v47 = vadd.f32 %v10044_v50, %v7003_v15  ;;  %v7006_v30 = vadd.f32 %v7003_v15, %v6925_v26  ;;  %v10045_v37 = vld [vmem:[#allocation3 + $0x70] sm:$0xff] }
0x60b6   :  { %v8103_v0 = vmul.f32 -1.442695, %v7005_v47  ;;  %v8104_v36 = vmul.f32 -1.442695, %v7006_v30 }
0x60b7   :  { %v7022_v22 = vpop.permute.xlu1 %7021 }
0x60b8   :  { %10008 = vpow2.f32 %v8103_v0 }
0x60be   :  { %v10007_v16 = vpop.eup %10006 }
0x60bf   :  { %v7135_v54 = vsub.f32 %v6918_v43, %v10007_v16  ;;  %v7505_v43 = vld [vmem:[%s11763_s5 + $0x20] sm:$0xff] }
0x60c0   :  { %v9506_v56 = vpack.c.bf16 %v7506_v45, %v7505_v43 }
0x60c1   :  { %7137 = vrot.lane.b32.xlu0 %v7135_v54, %s10048_s0 }
0x60c2   :  { %v10009_v19 = vpop.eup %10008 }
0x60c3   :  { %v7013_v57 = vadd.f32 1.0, %v10009_v19 }
0x60c5   :  { %10010 = vrcp.f32 %v7013_v57 }
0x60cf   :  { %v10011_v59 = vpop.eup %10010 }
0x60d0   :  { %v7024_v24 = vmul.f32 %v10011_v59, %v7022_v22 }
0x60d2   :  { %7026 = vrot.lane.b32.xlu1 %v7024_v24, %s10047_s13 }
0x6133   :  { %v7138_v39 = vpop.permute.xlu0 %7137 }
0x6134   :  { %v7140_v23 = vmul.f32 %v10005_v6, %v7138_v39 }
0x6136   :  { %7142 = vrot.lane.b32.xlu0 %v7140_v23, %s10049_s14 }
0x6144   :  { %v7027_v61 = vpop.permute.xlu1 %7026 }
0x6145   :  { %v7029_v60 = vadd.f32 %v7027_v61, %v6925_v26 }
0x6147   :  { %10012 = vtanh.f32 %v7029_v60 }
0x6148   :  { %10014 = vpow2.f32 %v8104_v36 }
0x6151   :  { %v10013_v62 = vpop.eup %10012 }
0x6152   :  { %v7031_v5 = vsub.f32 %v6814_v52, %v10013_v62  ;;  %v10015_v42 = vpop.eup %10014  ;;  %v9510_v52 = vpack.c.bf16 %v7508_v14, %v7507_v28  ;;  %v7619_v14 = vld [vmem:[%s11764_s7 + $0x10] sm:$0xff] }
0x6153   :  { %v7014_v9 = vadd.f32 1.0, %v10015_v42 }
0x6154   :  { %7033 = vrot.lane.b32.xlu1 %v7031_v5, %s10048_s0 }
0x6155   :  { %10016 = vrcp.f32 %v7014_v9 }
0x615f   :  { %v10017_v4 = vpop.eup %10016 }
0x61a8   :  { %v7143_v32 = vpop.permute.xlu0 %7142 }
0x61a9   :  { %v11642_v38 = vadd.f32 %v10007_v16, %v7143_v32  ;;  %v7151_v16 = vld [vmem:[#allocation3 + $0x10] sm:$0xff] }
0x61ab   :  { %7147 = vrot.lane.b32.xlu0 %v11642_v38, %s10047_s13 }
0x61c6   :  { %v7034_v48 = vpop.permute.xlu1 %7033 }
0x61c7   :  { %v7036_v49 = vmul.f32 %v10017_v4, %v7034_v48 }
0x61c9   :  { %7038 = vrot.lane.b32.xlu0 %v7036_v49, %s10049_s14 }
0x621d   :  { %v7148_v41 = vpop.permute.xlu0 %7147 }
0x621e   :  { %7150 = vst.msk [vmem:[#allocation2 + $0x30] sm:$0xff] %vm272_vm3, %v7148_v41  ;;  %9039 = vmatmul.mubr.msk.f32.vlgmr.msra.gmra.mrb[86].mxu0 %vm272_vm3, %v7148_v41 }
0x621f   :  { %9501 = vmatpush3.bf16.msra.mxu0 %v9498_v11  ;;  %9068 = vmatprep.mubr.msk.f32.mxu0 %vm74_vm0, %v7497_v27 }
0x6220   :  { %9503 = vmatprep.subr.bf16.mxu0 %v9502_v46 }
0x6223   :  { %9505 = vmatpush3.bf16.msra.mxu0 %v9502_v46  ;;  %v9514_v46 = vpack.c.bf16 %v7618_v35, %v7617_v53 }
0x6224   :  { %9507 = vmatprep.subr.bf16.mxu0 %v9506_v56 }
0x6225   :  { %v7499_v25 = vld [vmem:[#allocation2 + $0x30] sm:$0xff] }
0x6227   :  { %9509 = vmatpush3.bf16.msra.mxu0 %v9506_v56  ;;  %v8115_v56 = vld [vmem:[%s11765_s6] ss:$0 sm:$0xff] }
0x6228   :  { %9511 = vmatprep.subr.bf16.mxu0 %v9510_v52 }
0x622b   :  { %9513 = vmatpush3.bf16.msra.mxu0 %v9510_v52  ;;  %v7620_v52 = vld [vmem:[%s11764_s7 + $0x18] sm:$0xff] }
0x622e   :  { %9069 = vmatmul.mubr.msk.f32.vlgmr.msra.gmra.mrb[88].mxu0 %vm74_vm0, %v7498_v12  ;;  %v9518_v12 = vpack.c.bf16 %v7620_v52, %v7619_v14 }
0x622f   :  { %9071 = vmatprep.mubr.msk.f32.mxu0 %vm74_vm0, %v7499_v25 }
0x623b   :  { %v7039_v58 = vpop.permute.xlu0 %7038 }
0x623c   :  { %v7041_v21 = vadd.f32 %v10013_v62, %v7039_v58 }
0x623e   :  { %7042 = vst.msk [vmem:[#allocation2 + $0x10] sm:$0xff] %vm308_vm2, %v7041_v21  ;;  %7154 = vrot.lane.b32.xlu1 %v7041_v21, %s10048_s0 }
0x62b0   :  { %v7155_v63 = vpop.permute.xlu1 %7154 }
0x62b1   :  { %9028 = vmatmul.mubr.msk.f32.vlgmr.msra.gmra.mrb[84].mxu1 %vm272_vm3, %v7155_v63 }
0x62b2   :  { %9494 = vmatpush3.bf16.msra.mxu1 %v11449_v17  ;;  %9049 = vmatprep.mubr.msk.f32.mxu1 %vm10051_vm1, %v10046_v3 }
0x62b3   :  { %9495 = vmatprep.subr.bf16.mxu1 %v10050_v34 }
0x62b6   :  { %9497 = vmatpush3.bf16.msra.mxu1 %v11455_v20 }
0x62b7   :  { %9515 = vmatprep.subr.bf16.mxu1 %v9514_v46 }
0x62f1   :  { %v7339_v7 = vpop.f32.mrb[86].mxu0 }
0x62f2   :  { %v7350_v8 = vadd.f32 %v7339_v7, %v11421_v31  ;;  %v9040_v18 = vpop.f32.mrb[87].mxu0  ;;  %v7343_v44 = vadd.f32 %v7339_v7, %v11426_v33 }
0x62f4   :  { %7352 = vrot.lane.b32.xlu0 %v7350_v8, %s10047_s13  ;;  %v8111_v17 = vmul.f32 -1.442695, %v7343_v44  ;;  %v7729_v44 = vld [vmem:[%s11766_s9] sm:$0xff] }
0x62f6   :  { %10018 = vpow2.f32 %v8111_v17 }
0x6300   :  { %v10019_v10 = vpop.eup %10018 }
0x6301   :  { %v11680_v6 = vpop.f32.mrb[88].mxu0  ;;  %v7347_v3 = vadd.f32 1.0, %v10019_v10 }
0x6302   :  { %v11682_v51 = vpop.f32.mrb[89].mxu0 }
0x6303   :  { %10020 = vrcp.f32 %v7347_v3  ;;  %v7595_v28 = vadd.f32 %v8115_v56, %v11682_v51 }
0x6305   :  { %v7613_v25 = vmax.f32 %v7595_v28, 0.0 }
0x630d   :  { %v10021_v34 = vpop.eup %10020 }
0x6366   :  { %v7353_v13 = vpop.permute.xlu0 %7352 }
0x6367   :  { %v7355_v20 = vmul.f32 %v10021_v34, %v7353_v13  ;;  %v8120_v13 = vld [vmem:[%s11767_s8] ss:$0 sm:$0xff] }
0x6369   :  { %7357 = vrot.lane.b32.xlu1 %v7355_v20, %s10047_s13 }
0x6384   :  { %v7224_v31 = vpop.f32.mrb[84].mxu1 }
0x6385   :  { %v9029_v55 = vpop.f32.mrb[85].mxu1  ;;  %7229 = vrot.lane.b32.xlu1 %v7224_v31, %s10048_s0  ;;  %v7246_v47 = vadd.f32 %v7224_v31, %v11489_v2 }
0x63db   :  { %v7358_v1 = vpop.permute.xlu1 %7357 }
0x63dc   :  { %v7360_v15 = vadd.f32 %v10045_v37, %v7358_v1 }
0x63de   :  { %10022 = vtanh.f32 %v7360_v15 }
0x63e8   :  { %v10023_v50 = vpop.eup %10022 }
0x63e9   :  { %v7362_v33 = vsub.f32 %v11642_v38, %v10023_v50 }
0x63eb   :  { %7364 = vrot.lane.b32.xlu0 %v7362_v33, %s10048_s0 }
0x63ef   :  { %7248 = vrot.lane.b32.xlu0 %v7246_v47, %s10049_s14 }
0x63f7   :  { %v7230_v0 = vpop.permute.xlu1 %7229 }
0x63f8   :  { %v7232_v54 = vadd.f32 %v7230_v0, %v7151_v16  ;;  %v7233_v30 = vadd.f32 %v7230_v0, %v7152_v29 }
0x63fa   :  { %v8108_v19 = vmul.f32 -1.442695, %v7232_v54  ;;  %v8109_v36 = vmul.f32 -1.442695, %v7233_v30  ;;  %v7378_v54 = vld [vmem:[#allocation3] sm:$0xff] }
0x63fc   :  { %10024 = vpow2.f32 %v8108_v19 }
0x6406   :  { %v10025_v57 = vpop.eup %10024 }
0x6407   :  { %v7240_v59 = vadd.f32 1.0, %v10025_v57 }
0x6409   :  { %10026 = vrcp.f32 %v7240_v59 }
0x6413   :  { %v10027_v39 = vpop.eup %10026 }
0x645d   :  { %v7365_v22 = vpop.permute.xlu0 %7364 }
0x645e   :  { %v7367_v24 = vmul.f32 %v10021_v34, %v7365_v22 }
0x6460   :  { %7369 = vrot.lane.b32.xlu1 %v7367_v24, %s10049_s14 }
0x6461   :  { %v7249_v23 = vpop.permute.xlu0 %7248 }
0x6462   :  { %v7251_v26 = vmul.f32 %v10027_v39, %v7249_v23 }
0x6464   :  { %7253 = vrot.lane.b32.xlu0 %v7251_v26, %s10047_s13 }
0x64d2   :  { %v7370_v61 = vpop.permute.xlu1 %7369 }
0x64d3   :  { %v7372_v60 = vadd.f32 %v10023_v50, %v7370_v61  ;;  %v8125_v61 = vld [vmem:[%s11768_s10] ss:$0 sm:$0xff] }
0x64d5   :  { %7374 = vrot.lane.b32.xlu1 %v7372_v60, %s10047_s13 }
0x64d6   :  { %v7254_v40 = vpop.permute.xlu0 %7253 }
0x64d7   :  { %v7256_v11 = vadd.f32 %v7254_v40, %v7152_v29 }
0x64d9   :  { %10028 = vtanh.f32 %v7256_v11 }
0x64da   :  { %10030 = vpow2.f32 %v8109_v36 }
0x64e3   :  { %v10029_v62 = vpop.eup %10028 }
0x64e4   :  { %v7258_v5 = vsub.f32 %v7041_v21, %v10029_v62  ;;  %v10031_v32 = vpop.eup %10030  ;;  %v7600_v21 = vadd.f32 %v11680_v6, %v8115_v56  ;;  %v7730_v6 = vld [vmem:[%s11766_s9 + $0x8] sm:$0xff] }
0x64e5   :  { %v7241_v42 = vadd.f32 1.0, %v10031_v32  ;;  %v9522_v17 = vpack.c.bf16 %v7730_v6, %v7729_v44  ;;  %v7379_v32 = vld [vmem:[#allocation3 + $0x8] sm:$0xff] }
0x64e6   :  { %7260 = vrot.lane.b32.xlu0 %v7258_v5, %s10048_s0  ;;  %v7614_v7 = vmax.f32 %v7600_v21, 0.0 }
0x64e7   :  { %10032 = vrcp.f32 %v7241_v42 }
0x64f1   :  { %v10033_v4 = vpop.eup %10032 }
0x6547   :  { %v7375_v38 = vpop.permute.xlu1 %7374 }
0x6548   :  { %7377 = vst.msk [vmem:[#allocation2 + $0x38] sm:$0xff] %vm272_vm3, %v7375_v38 }
0x654f   :  { %v7500_v9 = vld [vmem:[#allocation2 + $0x38] sm:$0xff] }
0x6550   :  { %9072 = vmatmul.mubr.msk.f32.gmra.mrb[90].mxu0 %vm74_vm0, %v7500_v9 }
0x6558   :  { %v7261_v48 = vpop.permute.xlu0 %7260 }
0x6559   :  { %v7263_v49 = vmul.f32 %v10033_v4, %v7261_v48 }
0x655b   :  { %7265 = vrot.lane.b32.xlu1 %v7263_v49, %s10049_s14 }
0x65cd   :  { %v7266_v41 = vpop.permute.xlu1 %7265 }
0x65ce   :  { %v11704_v43 = vadd.f32 %v10029_v62, %v7266_v41 }
0x65d0   :  { %7269 = vst.msk [vmem:[#allocation2 + $0x8] sm:$0xff] %vm308_vm2, %v11704_v43  ;;  %7381 = vrot.lane.b32.xlu0 %v11704_v43, %s10048_s0 }
0x6623   :  { %v9073_v45 = vpop.f32.mrb[90].mxu0 }
0x6624   :  { %v7604_v27 = vpop.f32.mrb[91].mxu0  ;;  %v7610_v8 = vadd.f32 %v9073_v45, %v8115_v56 }
0x6625   :  { %v7605_v63 = vadd.f32 %v8115_v56, %v7604_v27 }
0x6626   :  { %v7616_v51 = vmax.f32 %v7610_v8, 0.0 }
0x6627   :  { %v7615_v18 = vmax.f32 %v7605_v63, 0.0 }
0x6642   :  { %v7382_v58 = vpop.permute.xlu0 %7381 }
0x6643   :  { %9050 = vmatmul.mubr.msk.f32.vlgmr.msra.gmra.mrb[86].mxu1 %vm272_vm3, %v7382_v58 }
0x6644   :  { %9517 = vmatpush3.bf16.msra.mxu1 %v9514_v46  ;;  %9082 = vmatprep.mubr.msk.f32.mxu1 %vm272_vm3, %v7613_v25 }
0x6645   :  { %9519 = vmatprep.subr.bf16.mxu1 %v9518_v12 }
0x6648   :  { %9521 = vmatpush3.bf16.msra.mxu1 %v9518_v12 }
0x6649   :  { %9523 = vmatprep.subr.bf16.mxu1 %v9522_v17 }
0x664b   :  { %9083 = vmatmul.mubr.msk.f32.vlgmr.msra.gmra.mrb[88].mxu1 %vm272_vm3, %v7614_v7 }
0x664c   :  { %9085 = vmatprep.mubr.msk.f32.mxu1 %vm272_vm3, %v7615_v18  ;;  %9525 = vmatpush3.bf16.msra.mxu1 %v9522_v17 }
0x664f   :  { %9086 = vmatmul.mubr.msk.f32.gmra.mrb[90].mxu1 %vm272_vm3, %v7616_v51 }
0x6716   :  { %v7451_v10 = vpop.f32.mrb[86].mxu1 }
0x6717   :  { %v7473_v3 = vadd.f32 %v7451_v10, %v11489_v2  ;;  %7456 = vrot.lane.b32.xlu1 %v7451_v10, %s10048_s0  ;;  %v9051_v34 = vpop.f32.mrb[87].mxu1 }
0x6719   :  { %7475 = vrot.lane.b32.xlu0 %v7473_v3, %s10049_s14 }
0x671e   :  { %v9084_v20 = vpop.f32.mrb[88].mxu1 }
0x671f   :  { %v7712_v31 = vadd.f32 %v9084_v20, %v8120_v13  ;;  %v7706_v55 = vpop.f32.mrb[89].mxu1 }
0x6720   :  { %v7707_v1 = vadd.f32 %v8120_v13, %v7706_v55 }
0x6721   :  { %v7726_v50 = vmax.f32 %v7712_v31, 0.0 }
0x6722   :  { %v7725_v37 = vmax.f32 %v7707_v1, 0.0  ;;  %v9087_v15 = vpop.f32.mrb[90].mxu1 }
0x6723   :  { %v7722_v33 = vadd.f32 %v9087_v15, %v8120_v13  ;;  %v7716_v47 = vpop.f32.mrb[91].mxu1 }
0x6724   :  { %v7717_v2 = vadd.f32 %v8120_v13, %v7716_v47  ;;  %9092 = vmatprep.mubr.msk.f32.mxu1 %vm7738_vm4, %v7725_v37 }
0x6725   :  { %9093 = vmatmul.mubr.msk.f32.vlgmr.msra.gmra.mrb[92].mxu1 %vm7738_vm4, %v7726_v50  ;;  %v7728_v16 = vmax.f32 %v7722_v33, 0.0 }
0x6726   :  { %v7727_v0 = vmax.f32 %v7717_v2, 0.0 }
0x6728   :  { %9095 = vmatprep.mubr.msk.f32.mxu1 %vm7738_vm4, %v7727_v0 }
0x6729   :  { %9096 = vmatmul.mubr.msk.f32.gmra.mrb[94].mxu1 %vm7738_vm4, %v7728_v16 }
0x6789   :  { %v7457_v19 = vpop.permute.xlu1 %7456 }
0x678a   :  { %v7459_v57 = vadd.f32 %v7457_v19, %v7378_v54  ;;  %v7460_v48 = vadd.f32 %v7457_v19, %v7379_v32 }
0x678b   :  { %v7476_v23 = vpop.permute.xlu0 %7475 }
0x678c   :  { %v8113_v59 = vmul.f32 -1.442695, %v7459_v57  ;;  %v8114_v49 = vmul.f32 -1.442695, %v7460_v48 }
0x678e   :  { %10034 = vpow2.f32 %v8113_v59 }
0x6798   :  { %v10035_v22 = vpop.eup %10034 }
0x6799   :  { %v7467_v24 = vadd.f32 1.0, %v10035_v22 }
0x679b   :  { %10036 = vrcp.f32 %v7467_v24 }
0x67a5   :  { %v10037_v39 = vpop.eup %10036 }
0x67a6   :  { %v7478_v26 = vmul.f32 %v10037_v39, %v7476_v23 }
0x67a8   :  { %7480 = vrot.lane.b32.xlu1 %v7478_v26, %s10047_s13 }
0x67f8   :  { %v9094_v60 = vpop.f32.mrb[92].mxu1 }
0x67f9   :  { %v7823_v29 = vadd.f32 %v9094_v60, %v8125_v61  ;;  %v7817_v40 = vpop.f32.mrb[93].mxu1 }
0x67fa   :  { %v7818_v11 = vadd.f32 %v8125_v61, %v7817_v40 }
0x67fb   :  { %7838 = vst.msk [vmem:[%s11769_s11 + $0x8] sm:$0xff] %vm7836_vm5, %v7823_v29 }
0x67fc   :  { %7837 = vst.msk [vmem:[%s11769_s11] sm:$0xff] %vm7836_vm5, %v7818_v11  ;;  %v9097_v62 = vpop.f32.mrb[94].mxu1 }
0x67fd   :  { %v7833_v5 = vadd.f32 %v9097_v62, %v8125_v61  ;;  %v7827_v30 = vpop.f32.mrb[95].mxu1 }
0x67fe   :  { %v7828_v36 = vadd.f32 %v8125_v61, %v7827_v30 }
0x67ff   :  { %7840 = vst.msk [vmem:[%s11769_s11 + $0x18] sm:$0xff] %vm7836_vm5, %v7833_v5 }
0x6800   :  { %7839 = vst.msk [vmem:[%s11769_s11 + $0x10] sm:$0xff] %vm7836_vm5, %v7828_v36 }
0x681a   :  { %v7481_v38 = vpop.permute.xlu1 %7480 }
0x681b   :  { %v7483_v42 = vadd.f32 %v7481_v38, %v7379_v32 }
0x681d   :  { %10038 = vtanh.f32 %v7483_v42 }
0x681e   :  { %10040 = vpow2.f32 %v8114_v49 }
0x6827   :  { %v10039_v9 = vpop.eup %10038 }
0x6828   :  { %v7485_v4 = vsub.f32 %v11704_v43, %v10039_v9  ;;  %v10041_v53 = vpop.eup %10040 }
0x6829   :  { %v7468_v35 = vadd.f32 1.0, %v10041_v53 }
0x682a   :  { %7487 = vrot.lane.b32.xlu0 %v7485_v4, %s10048_s0 }
0x682b   :  { %10042 = vrcp.f32 %v7468_v35 }
0x6835   :  { %v10043_v46 = vpop.eup %10042 }
0x689c   :  { %v7488_v41 = vpop.permute.xlu0 %7487 }
0x689d   :  { %v7490_v45 = vmul.f32 %v10043_v46, %v7488_v41 }
0x689f   :  { %7492 = vrot.lane.b32.xlu1 %v7490_v45, %s10049_s14 }
0x6911   :  { %v7493_v27 = vpop.permute.xlu1 %7492 }
0x6912   :  { %v7495_v56 = vadd.f32 %v10039_v9, %v7493_v27 }
0x6914   :  { %7496 = vst.msk [vmem:[#allocation2] sm:$0xff] %vm308_vm2, %v7495_v56 }

</bundles_post_ra>
